<compile_context>
chip_gen: v6e
topology: v6e:2x2x1
jax: 0.10.0
libtpu: 0.0.40
codegen_flags: <defaults>
</compile_context>

<pallas_src>
import functools
import math

import jax
import jax.numpy as jnp
from jax.experimental import pallas as pl
from jax.experimental.pallas import tpu as pltpu


def relation_fused_kernel(f_a_ref, pos_ref, wg_ref, w_ref, b_ref, scat_ref, out_ref,
                          *, num_heads, key_dim):
    H, K = num_heads, key_dim
    N, D = f_a_ref.shape

    f_a = f_a_ref[...]                           # (N, D)       f32
    pos = pos_ref[...]                           # (N, N, G+1)  last channel == 1 (bias)
    wg = wg_ref[...]                             # (H, G+1)     last column == WG bias

    # ---- geometric gate for all heads: relu(WG(pos)) with the torch clamp -----------
    # torch: clamp(relu(x), min=1e-6) == max(x, 1e-6)
    gate = jnp.sum(pos[None, :, :, :] * wg[:, None, None, :], axis=-1)   # (H, N, N)
    gate = jnp.maximum(gate, 1e-6)

    # ---- K / Q / V projections: ONE head-batched MXU einsum over 3H "heads" ---------
    f_a_b = jnp.broadcast_to(f_a[None, :, :], (3 * H, N, D))
    kqv = jnp.einsum("xnd,xkd->xnk", f_a_b, w_ref[...],
                     preferred_element_type=jnp.float32)                 # (3H, N, K)
    kqv = kqv + b_ref[...][:, None, :]
    w_k, w_q, w_v = kqv[:H], kqv[H:2 * H], kqv[2 * H:]                   # (H, N, K) each

    # ---- attention logits + gated, log-free softmax over the key axis ---------------
    s = jnp.einsum("hmk,hnk->hmn", w_k, w_q,
                   preferred_element_type=jnp.float32)                   # (H, N, N)
    s = s * jnp.float32(1.0 / math.sqrt(K))
    # softmax(log(gate) + s) == gate * exp(s - max s) / sum(gate * exp(s - max s))
    p = gate * jnp.exp(s - jnp.max(s, axis=-1, keepdims=True))
    # exact divide; pl.reciprocal(denom, approx=True) is the faster (EUP) production
    # choice but costs ~1e-3 relative error.
    p = p / jnp.sum(p, axis=-1, keepdims=True)

    # ---- per-head value aggregation --------------------------------------------------
    agg = jnp.einsum("hmn,hnk->hmk", p, w_v,
                     preferred_element_type=jnp.float32)                 # (H, N, K)

    # ---- interleave heads into the torch.cat(..., -1) layout --------------------------
    # scat[h, k, h*K + k] == 1 (precomputed in the wrapper), so
    #   cat[m, h*K + k] = agg[h, m, k].
    cat = jnp.einsum("hmk,hkj->hmj", agg, scat_ref[...],
                     preferred_element_type=jnp.float32)                 # (H, N, H*K)
    cat = jnp.sum(cat, axis=0)                                           # (N, H*K)

    # residual fused in-kernel; single lane-dense (N, 128) store
    out_ref[...] = (cat + f_a).astype(out_ref.dtype)


def relation_module_forward(f_a, pos_emb, params):
    """Pallas implementation of RelationModule.forward((f_a, position_embedding))."""
    N, D = f_a.shape
    H, K, _ = params["wk_w"].shape
    G = pos_emb.shape[-1]
    assert H * K == D, "concat of heads must match appearance dim for the residual add"

    # ---- lane-dense, DMA-friendly parameter packing (done once per call, outside) ----
    # WG bias folded in via a ones channel appended to the position embedding.
    pos_aug = jnp.concatenate(
        [pos_emb.astype(jnp.float32), jnp.ones((N, N, 1), jnp.float32)], axis=-1)      # (N,N,G+1)
    wg_aug = jnp.concatenate(
        [params["wg_w"], params["wg_b"][:, None]], axis=-1).astype(jnp.float32)        # (H,G+1)
    w_all = jnp.concatenate(
        [params["wk_w"], params["wq_w"], params["wv_w"]], axis=0).astype(jnp.float32)  # (3H,K,D)
    b_all = jnp.concatenate(
        [params["wk_b"], params["wq_b"], params["wv_b"]], axis=0).astype(jnp.float32)  # (3H,K)

    # Constant head-interleave scatter, hoisted out of the kernel body.
    scat = jax.nn.one_hot(
        jnp.arange(H, dtype=jnp.int32)[:, None] * K + jnp.arange(K, dtype=jnp.int32)[None, :],
        H * K, dtype=jnp.float32)                                                       # (H,K,H*K)

    kernel = functools.partial(relation_fused_kernel, num_heads=H, key_dim=K)

    return pl.pallas_call(
        kernel,
        out_shape=jax.ShapeDtypeStruct((N, D), jnp.float32),
        grid_spec=pltpu.PrefetchScalarGridSpec(
            num_scalar_prefetch=0,
            grid=(1,),                      # single fused step: all 16 heads at once
            in_specs=[
                pl.BlockSpec((N, D), lambda i: (0, 0)),               # f_a
                pl.BlockSpec((N, N, G + 1), lambda i: (0, 0, 0)),     # position emb (+1s)
                pl.BlockSpec((H, G + 1), lambda i: (0, 0)),           # WG weight|bias
                pl.BlockSpec((3 * H, K, D), lambda i: (0, 0, 0)),     # stacked K/Q/V weights
                pl.BlockSpec((3 * H, K), lambda i: (0, 0)),           # stacked K/Q/V biases
                pl.BlockSpec((H, K, H * K), lambda i: (0, 0, 0)),     # head-interleave scatter
            ],
            out_specs=pl.BlockSpec((N, D), lambda i: (0, 0)),
        ),
        compiler_params=pltpu.CompilerParams(dimension_semantics=("arbitrary",)),
    )(f_a.astype(jnp.float32), pos_aug, wg_aug, w_all, b_all, scat)


def reference_forward(f_a, pos_emb, params):
    """Pure-JAX reference matching the PyTorch RelationModule semantics."""
    H, K, _ = params["wk_w"].shape
    outs = []
    for h in range(H):
        w_g = jnp.maximum(
            jnp.einsum("mng,g->mn", pos_emb, params["wg_w"][h]) + params["wg_b"][h], 0.0)
        w_k = f_a @ params["wk_w"][h].T + params["wk_b"][h]
        w_q = f_a @ params["wq_w"][h].T + params["wq_b"][h]
        s = (w_k @ w_q.T) / math.sqrt(K)
        w_mn = jax.nn.softmax(jnp.log(jnp.maximum(w_g, 1e-6)) + s, axis=1)
        w_v = f_a @ params["wv_w"][h].T + params["wv_b"][h]
        outs.append(w_mn @ w_v)
    return jnp.concatenate(outs, axis=-1) + f_a


def init_params(key, num_heads, appearance_dim, key_dim, geo_dim):
    ks = jax.random.split(key, 8)
    scale = 0.05
    return {
        # per-head linear weights in native nn.Linear (out_features, in_features) layout
        "wg_w": scale * jax.random.normal(ks[0], (num_heads, geo_dim), jnp.float32),
        "wg_b": scale * jax.random.normal(ks[1], (num_heads,), jnp.float32),
        "wk_w": scale * jax.random.normal(ks[2], (num_heads, key_dim, appearance_dim), jnp.float32),
        "wk_b": scale * jax.random.normal(ks[3], (num_heads, key_dim), jnp.float32),
        "wq_w": scale * jax.random.normal(ks[4], (num_heads, key_dim, appearance_dim), jnp.float32),
        "wq_b": scale * jax.random.normal(ks[5], (num_heads, key_dim), jnp.float32),
        "wv_w": scale * jax.random.normal(ks[6], (num_heads, key_dim, appearance_dim), jnp.float32),
        "wv_b": scale * jax.random.normal(ks[7], (num_heads, key_dim), jnp.float32),
    }


if __name__ == "__main__":
    # Small shapes consistent with the module: 16 heads, key_dim * 16 == appearance_dim.
    NUM_HEADS = 16
    N = 8                                   # number of RoIs / objects
    KEY_DIM = 8
    APPEARANCE_DIM = NUM_HEADS * KEY_DIM    # 128
    GEO_DIM = 8

    root = jax.random.PRNGKey(0)
    k_fa, k_pos, k_par = jax.random.split(root, 3)

    f_a = jax.random.normal(k_fa, (N, APPEARANCE_DIM), jnp.float32)
    pos_emb = jax.random.uniform(k_pos, (N, N, GEO_DIM), jnp.float32)
    params = init_params(k_par, NUM_HEADS, APPEARANCE_DIM, KEY_DIM, GEO_DIM)

    out = relation_module_forward(f_a, pos_emb, params)
    out = jax.block_until_ready(out)

    ref = reference_forward(f_a, pos_emb, params)
    assert out.shape == (N, APPEARANCE_DIM)
    assert jnp.allclose(out, ref, atol=1e-3, rtol=1e-3), "mismatch vs pure-JAX reference"

    print("KERNEL_OK")
</pallas_src>

<mosaic_0001>
module attributes {stable_mosaic.version = 11 : i64} {
  func.func @relation_fused_kernel(%arg0: i32, %arg1: memref<8x128xf32, #tpu.memory_space<vmem>>, %arg2: memref<8x8x9xf32, #tpu.memory_space<vmem>>, %arg3: memref<16x9xf32, #tpu.memory_space<vmem>>, %arg4: memref<48x8x128xf32, #tpu.memory_space<vmem>>, %arg5: memref<48x8xf32, #tpu.memory_space<vmem>>, %arg6: memref<16x8x128xf32, #tpu.memory_space<vmem>>, %arg7: memref<8x128xf32, #tpu.memory_space<vmem>>) attributes {dimension_semantics = [#tpu.dimension_semantics<arbitrary>], iteration_bounds = array<i64: 1>, scalar_prefetch = 0 : i64, scratch_operands = 0 : i64, tpu.core_type = #tpu.core_type<tc>, window_params = [{pipeline_mode = #tpu.pipeline_mode<synchronous>, transform_indices = @transform_0, window_bounds = array<i64: 8, 128>}, {pipeline_mode = #tpu.pipeline_mode<synchronous>, transform_indices = @transform_1, window_bounds = array<i64: 8, 8, 9>}, {pipeline_mode = #tpu.pipeline_mode<synchronous>, transform_indices = @transform_2, window_bounds = array<i64: 16, 9>}, {pipeline_mode = #tpu.pipeline_mode<synchronous>, transform_indices = @transform_3, window_bounds = array<i64: 48, 8, 128>}, {pipeline_mode = #tpu.pipeline_mode<synchronous>, transform_indices = @transform_4, window_bounds = array<i64: 48, 8>}, {pipeline_mode = #tpu.pipeline_mode<synchronous>, transform_indices = @transform_5, window_bounds = array<i64: 16, 8, 128>}, {pipeline_mode = #tpu.pipeline_mode<synchronous>, transform_indices = @transform_6, window_bounds = array<i64: 8, 128>}]} {
    %c0 = arith.constant 0 : index
    %c0_0 = arith.constant 0 : index
    %0 = vector.load %arg1[%c0, %c0_0] : memref<8x128xf32, #tpu.memory_space<vmem>>, vector<8x128xf32>
    %c0_1 = arith.constant 0 : index
    %c0_2 = arith.constant 0 : index
    %c0_3 = arith.constant 0 : index
    %1 = vector.load %arg2[%c0_1, %c0_2, %c0_3] : memref<8x8x9xf32, #tpu.memory_space<vmem>>, vector<8x8x9xf32>
    %c0_4 = arith.constant 0 : index
    %c0_5 = arith.constant 0 : index
    %2 = vector.load %arg3[%c0_4, %c0_5] : memref<16x9xf32, #tpu.memory_space<vmem>>, vector<16x9xf32>
    %3 = vector.shape_cast %1 : vector<8x8x9xf32> to vector<1x8x8x9xf32>
    %4 = vector.shape_cast %2 : vector<16x9xf32> to vector<16x1x1x9xf32>
    %5 = vector.broadcast %3 : vector<1x8x8x9xf32> to vector<16x8x8x9xf32>
    %6 = vector.broadcast %4 : vector<16x1x1x9xf32> to vector<16x8x8x9xf32>
    %7 = arith.mulf %5, %6 : vector<16x8x8x9xf32>
    %cst = arith.constant dense<0.000000e+00> : vector<16x8x8xf32>
    %8 = vector.multi_reduction <add>, %7, %cst [3] : vector<16x8x8x9xf32> to vector<16x8x8xf32>
    %cst_6 = arith.constant 9.99999997E-7 : f32
    %9 = vector.broadcast %cst_6 : f32 to vector<16x8x8xf32>
    %10 = arith.maximumf %8, %9 : vector<16x8x8xf32>
    %11 = vector.shape_cast %0 : vector<8x128xf32> to vector<1x8x128xf32>
    %12 = vector.shape_cast %11 : vector<1x8x128xf32> to vector<1x8x128xf32>
    %13 = vector.broadcast %12 : vector<1x8x128xf32> to vector<48x8x128xf32>
    %c0_7 = arith.constant 0 : index
    %c0_8 = arith.constant 0 : index
    %c0_9 = arith.constant 0 : index
    %14 = vector.load %arg4[%c0_7, %c0_8, %c0_9] : memref<48x8x128xf32, #tpu.memory_space<vmem>>, vector<48x8x128xf32>
    "tpu.trace_start"() <{level = 10 : i32, message = "xnd,xkd->xnk"}> : () -> ()
    %cst_10 = arith.constant dense<0.000000e+00> : vector<48x8x8xf32>
    %15 = tpu.matmul %13, %14, %cst_10 {dimension_numbers = #tpu.dot_dimension_numbers<[2], [2], [1], [1], [0, 0, 0, 1, 1, 1], [0], [0]>} : vector<48x8x128xf32>, vector<48x8x128xf32>, vector<48x8x8xf32> -> vector<48x8x8xf32>
    "tpu.trace_stop"() : () -> ()
    %c0_11 = arith.constant 0 : index
    %c0_12 = arith.constant 0 : index
    %16 = vector.load %arg5[%c0_11, %c0_12] : memref<48x8xf32, #tpu.memory_space<vmem>>, vector<48x8xf32>
    %17 = vector.shape_cast %16 : vector<48x8xf32> to vector<48x1x8xf32>
    %18 = vector.broadcast %17 : vector<48x1x8xf32> to vector<48x8x8xf32>
    %19 = arith.addf %15, %18 : vector<48x8x8xf32>
    %20 = vector.extract_strided_slice %19 {offsets = [0, 0, 0], sizes = [16, 8, 8], strides = [1, 1, 1]} : vector<48x8x8xf32> to vector<16x8x8xf32>
    %21 = vector.extract_strided_slice %19 {offsets = [16, 0, 0], sizes = [16, 8, 8], strides = [1, 1, 1]} : vector<48x8x8xf32> to vector<16x8x8xf32>
    %22 = vector.extract_strided_slice %19 {offsets = [32, 0, 0], sizes = [16, 8, 8], strides = [1, 1, 1]} : vector<48x8x8xf32> to vector<16x8x8xf32>
    "tpu.trace_start"() <{level = 10 : i32, message = "hmk,hnk->hmn"}> : () -> ()
    %cst_13 = arith.constant dense<0.000000e+00> : vector<16x8x8xf32>
    %23 = tpu.matmul %20, %21, %cst_13 {dimension_numbers = #tpu.dot_dimension_numbers<[2], [2], [1], [1], [0, 0, 0, 1, 1, 1], [0], [0]>} : vector<16x8x8xf32>, vector<16x8x8xf32>, vector<16x8x8xf32> -> vector<16x8x8xf32>
    "tpu.trace_stop"() : () -> ()
    %cst_14 = arith.constant 0.353553385 : f32
    %24 = vector.broadcast %cst_14 : f32 to vector<16x8x8xf32>
    %25 = arith.mulf %23, %24 : vector<16x8x8xf32>
    %cst_15 = arith.constant dense<0xFF800000> : vector<16x8xf32>
    %26 = vector.multi_reduction <maximumf>, %25, %cst_15 [2] : vector<16x8x8xf32> to vector<16x8xf32>
    %27 = vector.shape_cast %26 : vector<16x8xf32> to vector<16x8x1xf32>
    %28 = vector.broadcast %27 : vector<16x8x1xf32> to vector<16x8x8xf32>
    %29 = arith.subf %25, %28 : vector<16x8x8xf32>
    %30 = math.exp %29 : vector<16x8x8xf32>
    %31 = arith.mulf %10, %30 : vector<16x8x8xf32>
    %cst_16 = arith.constant dense<0.000000e+00> : vector<16x8xf32>
    %32 = vector.multi_reduction <add>, %31, %cst_16 [2] : vector<16x8x8xf32> to vector<16x8xf32>
    %33 = vector.shape_cast %32 : vector<16x8xf32> to vector<16x8x1xf32>
    %34 = vector.broadcast %33 : vector<16x8x1xf32> to vector<16x8x8xf32>
    %35 = arith.divf %31, %34 : vector<16x8x8xf32>
    "tpu.trace_start"() <{level = 10 : i32, message = "hmn,hnk->hmk"}> : () -> ()
    %cst_17 = arith.constant dense<0.000000e+00> : vector<16x8x8xf32>
    %36 = tpu.matmul %35, %22, %cst_17 {dimension_numbers = #tpu.dot_dimension_numbers<[2], [1], [1], [2], [0, 0, 0, 1, 1, 2], [0], [0]>} : vector<16x8x8xf32>, vector<16x8x8xf32>, vector<16x8x8xf32> -> vector<16x8x8xf32>
    "tpu.trace_stop"() : () -> ()
    %c0_18 = arith.constant 0 : index
    %c0_19 = arith.constant 0 : index
    %c0_20 = arith.constant 0 : index
    %37 = vector.load %arg6[%c0_18, %c0_19, %c0_20] : memref<16x8x128xf32, #tpu.memory_space<vmem>>, vector<16x8x128xf32>
    "tpu.trace_start"() <{level = 10 : i32, message = "hmk,hkj->hmj"}> : () -> ()
    %cst_21 = arith.constant dense<0.000000e+00> : vector<16x8x128xf32>
    %38 = tpu.matmul %36, %37, %cst_21 {dimension_numbers = #tpu.dot_dimension_numbers<[2], [1], [1], [2], [0, 0, 0, 1, 1, 2], [0], [0]>} : vector<16x8x8xf32>, vector<16x8x128xf32>, vector<16x8x128xf32> -> vector<16x8x128xf32>
    "tpu.trace_stop"() : () -> ()
    %cst_22 = arith.constant dense<0.000000e+00> : vector<8x128xf32>
    %39 = vector.multi_reduction <add>, %38, %cst_22 [0] : vector<16x8x128xf32> to vector<8x128xf32>
    %40 = arith.addf %39, %0 : vector<8x128xf32>
    %c0_23 = arith.constant 0 : index
    %c0_24 = arith.constant 0 : index
    %41 = vector.load %arg7[%c0_23, %c0_24] : memref<8x128xf32, #tpu.memory_space<vmem>>, vector<8x128xf32>
    tpu.vector_store %arg7[%c0_23, %c0_24], %40 {strides = array<i32>} : memref<8x128xf32, #tpu.memory_space<vmem>>, vector<8x128xf32>,
    return
  }
  func.func @transform_0(%arg0: i32) -> (i32, i32) {
    %c0_i32 = arith.constant 0 : i32
    %c0_i32_0 = arith.constant 0 : i32
    %c0_i32_1 = arith.constant 0 : i32
    return %c0_i32, %c0_i32_0 : i32, i32
  }
  func.func @transform_1(%arg0: i32) -> (i32, i32, i32) {
    %c0_i32 = arith.constant 0 : i32
    %c0_i32_0 = arith.constant 0 : i32
    %c0_i32_1 = arith.constant 0 : i32
    %c0_i32_2 = arith.constant 0 : i32
    return %c0_i32, %c0_i32_0, %c0_i32_1 : i32, i32, i32
  }
  func.func @transform_2(%arg0: i32) -> (i32, i32) {
    %c0_i32 = arith.constant 0 : i32
    %c0_i32_0 = arith.constant 0 : i32
    %c0_i32_1 = arith.constant 0 : i32
    return %c0_i32, %c0_i32_0 : i32, i32
  }
  func.func @transform_3(%arg0: i32) -> (i32, i32, i32) {
    %c0_i32 = arith.constant 0 : i32
    %c0_i32_0 = arith.constant 0 : i32
    %c0_i32_1 = arith.constant 0 : i32
    %c0_i32_2 = arith.constant 0 : i32
    return %c0_i32, %c0_i32_0, %c0_i32_1 : i32, i32, i32
  }
  func.func @transform_4(%arg0: i32) -> (i32, i32) {
    %c0_i32 = arith.constant 0 : i32
    %c0_i32_0 = arith.constant 0 : i32
    %c0_i32_1 = arith.constant 0 : i32
    return %c0_i32, %c0_i32_0 : i32, i32
  }
  func.func @transform_5(%arg0: i32) -> (i32, i32, i32) {
    %c0_i32 = arith.constant 0 : i32
    %c0_i32_0 = arith.constant 0 : i32
    %c0_i32_1 = arith.constant 0 : i32
    %c0_i32_2 = arith.constant 0 : i32
    return %c0_i32, %c0_i32_0, %c0_i32_1 : i32, i32, i32
  }
  func.func @transform_6(%arg0: i32) -> (i32, i32) {
    %c0_i32 = arith.constant 0 : i32
    %c0_i32_0 = arith.constant 0 : i32
    %c0_i32_1 = arith.constant 0 : i32
    return %c0_i32, %c0_i32_0 : i32, i32
  }
}

</mosaic_0001>

<bundles_post_ra>
// kernel: tpu_custom_call.1
= control target key start
LH: loop header
LB: loop body
LE: loop exit
PB: predicated region body
PF: predicated region fallthrough
CT: control target
= control target key end

     0   :  { %11 = vsyncpa [#allocation3], 0  ;;  %s17911_s0 = inlined_call_operand.vmem [shape: f32[8,128], index: 0, kind: input, shape index: {}]   ;;  %s17912_s1 = inlined_call_operand.hbm [shape: f32[8,8,9], index: 1, kind: input, shape index: {}]   ;;  %s17913_s2 = inlined_call_operand.vmem [shape: f32[16,9], index: 2, kind: input, shape index: {}]   ;;  %s17914_s3 = inlined_call_operand.hbm [shape: f32[48,8,128], index: 3, kind: input, shape index: {}]   ;;  %s17915_s4 = inlined_call_operand.vmem [shape: f32[48,8], index: 4, kind: input, shape index: {}]   ;;  %s17916_s5 = inlined_call_operand.hbm [shape: f32[16,8,128], index: 5, kind: input, shape index: {}]   ;;  %s17917_s6 = inlined_call_operand.hbm [shape: f32[8,128], index: 6, kind: output, shape index: {}]  }
   0x1   :  { %12 = vsyncpa [#allocation6], 0 }
   0x2   :  { %13 = vsyncpa [#allocation4], 0  ;;  %s14115_s21 = smov [#allocation5]   ;;  %s14116_s23 = smov [#allocation2]  }
   0x3   :  { %s35_s22 = sshll.u32 %s14115_s21, 4  ;;  %s21_s24 = sshll.u32 %s14116_s23, 4  ;;  %s36_s22 = int_to_ptr.vmem [resolvable:$true] %s35_s22  ;;  %s22_s24 = int_to_ptr.vmem [resolvable:$true] %s21_s24 }
   0x4   :  { %s14037_s25 = scalar_lea.vmem %s36_s22, 6144  ;;  %p14042_p1 = scmp.lt.s32.totalorder %s36_s22, %s36_s22 }
   0x5   :  { %p14038_p0 = scmp.ne.s32.totalorder %s36_s22, %s14037_s25  ;;  %p14043_p2 = scmp.lt.s32.totalorder %s14037_s25, %s14037_s25 }
   0x7   :  { %p14044_p3 = por %p14043_p2, %p14042_p1 }
   0x9   :  { %p14045_p4 = pnand %p14044_p3, %p14038_p0 }
   0xb   :  { %14048 = shalt.err (!%p14045_p4)
}
   0xc   :  { %s14117_s26 = smov 128   ;;  %s14118_s27 = smov 8  }
   0xd   :  { %41 = dma.hbm_to_vmem [thread:$0]  %s17914_s3, 6144, %s36_s22, [#allocation6], %s14117_s26, %s14117_s26, %s14118_s27  }
   0xe   :  { %s14057_s30 = scalar_lea.vmem %s22_s24, 1024  ;;  %p14062_p6 = scmp.lt.s32.totalorder %s22_s24, %s22_s24 }
   0xf   :  { %p14058_p5 = scmp.ne.s32.totalorder %s22_s24, %s14057_s30  ;;  %p14063_p7 = scmp.lt.s32.totalorder %s14057_s30, %s14057_s30 }
  0x11   :  { %p14064_p8 = por %p14063_p7, %p14062_p6 }
  0x13   :  { %p14065_p9 = pnand %p14064_p8, %p14058_p5 }
  0x15   :  { %14068 = shalt.err (!%p14065_p9)
}
  0x16   :  { %27 = dma.hbm_to_vmem [thread:$0]  %s17912_s1, 1024, %s22_s24, [#allocation3], %s14117_s26, %s14117_s26, %s14118_s27  }
  0x17   :  { %s14119_s9 = smov [#allocation7]  }
  0x18   :  { %s49_s10 = sshll.u32 %s14119_s9, 4  ;;  %s50_s10 = int_to_ptr.vmem [resolvable:$true] %s49_s10 }
  0x19   :  { %s14077_s11 = scalar_lea.vmem %s50_s10, 2048  ;;  %p14082_p11 = scmp.lt.s32.totalorder %s50_s10, %s50_s10 }
  0x1a   :  { %p14078_p10 = scmp.ne.s32.totalorder %s50_s10, %s14077_s11  ;;  %p14083_p12 = scmp.lt.s32.totalorder %s14077_s11, %s14077_s11 }
  0x1c   :  { %p14084_p13 = por %p14083_p12, %p14082_p11 }
  0x1e   :  { %p14085_p0 = pnand %p14084_p13, %p14078_p10 }
  0x20   :  { %14088 = shalt.err (!%p14085_p0)
}
  0x21   :  { %55 = dma.hbm_to_vmem [thread:$0]  %s17916_s5, 2048, %s50_s10, [#allocation6], %s14117_s26, %s14117_s26, %s14118_s27  }
  0x22   :  { %14109 = dma.done.wait [#allocation3], 1024  }
  0x23   :  { %14110 = vsyncadd [#allocation3], 4294966272 }
  0x24   :  { %14111 = dma.done.wait [#allocation6], 8192  }
  0x25   :  { %14112 = vsyncadd [#allocation6], 4294959104  ;;  %v17919_v0 = vmov 0.0   ;;  %vm14121_vm0 = vmmov 0   ;;  %v897_v1 = vld [vmem:[#allocation5] sm:$0xff]  ;;  %v898_v2 = vld [vmem:[#allocation5 + $0x8] sm:$0xff]  ;;  %v17918_v22 = vlaneseq }
  0x26   :  { %13230 = vmatprep.subr.mxu0 %v17919_v0  ;;  %13235 = vmatprep.subr.mxu1 %v17919_v0  ;;  %v14178_v3 = vld [vmem:[%s17911_s0] sm:$0xff]  ;;  %v899_v4 = vld [vmem:[#allocation5 + $0x10] sm:$0xff]  ;;  %v900_v5 = vld [vmem:[#allocation5 + $0x18] sm:$0xff]  ;;  %v14122_v20 = vmov 1966171168   ;;  %vm384_vm1 = vcmask 72704  }
  0x27   :  { %13232 = vmatprep.mubr.msk.f32.mxu0 %vm14121_vm0, %v17919_v0  ;;  %13237 = vmatprep.mubr.msk.f32.mxu1 %vm14121_vm0, %v17919_v0  ;;  %v901_v6 = vld [vmem:[#allocation5 + $0x20] sm:$0xff]  ;;  %v902_v7 = vld [vmem:[#allocation5 + $0x28] sm:$0xff]  ;;  %v903_v8 = vld [vmem:[#allocation5 + $0x30] sm:$0xff]  ;;  %v80_v21 = vunpack.c.l.s4 %v14122_v20  ;;  %v14249_v26 = vshrl.u32 %v17918_v22, 7  ;;  %vm4851_vm2 = vcmask 64512   ;;  %vm8374_vm3 = vcmask 1041409  }
  0x28   :  { %13231 = vmatpush3.xpose.msra.mxu0 %v897_v1  ;;  %13236 = vmatpush3.xpose.msra.mxu1 %v898_v2  ;;  %v904_v9 = vld [vmem:[#allocation5 + $0x38] sm:$0xff]  ;;  %v905_v10 = vld [vmem:[#allocation5 + $0x40] sm:$0xff]  ;;  %v906_v11 = vld [vmem:[#allocation5 + $0x48] sm:$0xff]  ;;  %vm8376_vm4 = vcmask 1042434   ;;  %vm8378_vm5 = vcmask 1043459   ;;  %vm8380_vm6 = vcmask 1044484  }
  0x29   :  { %13240 = vmatprep.subr.mxu0 %v17919_v0  ;;  %13245 = vmatprep.subr.mxu1 %v17919_v0  ;;  %v907_v12 = vld [vmem:[#allocation5 + $0x50] sm:$0xff]  ;;  %v908_v13 = vld [vmem:[#allocation5 + $0x58] sm:$0xff]  ;;  %v909_v14 = vld [vmem:[#allocation5 + $0x60] sm:$0xff]  ;;  %v81_v25 = vunpack.c.0.s8 %v80_v21  ;;  %18068 = vst [vmem:[#allocation12_spill] sm:$0xff] %v14249_v26  ;;  %v14292_v37 = vsub.s32 0, %v14249_v26  ;;  %vm8382_vm7 = vcmask 1045509  }
  0x2a   :  { %v910_v15 = vld [vmem:[#allocation5 + $0x68] sm:$0xff]  ;;  %v911_v16 = vld [vmem:[#allocation5 + $0x70] sm:$0xff]  ;;  %v912_v17 = vld [vmem:[#allocation5 + $0x78] sm:$0xff]  ;;  %vm8384_vm8 = vcmask 1046534   ;;  %vm8386_vm9 = vcmask 1047559  }
  0x2b   :  { %13233 = vmatmul.mubr.f32.vlgmr.msra.gmra.mxu0 %v14178_v3  ;;  %13238 = vmatmul.mubr.f32.vlgmr.msra.gmra.mxu1 %v14178_v3  ;;  %v913_v18 = vld [vmem:[#allocation5 + $0x80] sm:$0xff]  ;;  %v914_v19 = vld [vmem:[#allocation5 + $0x88] sm:$0xff]  ;;  %v915_v23 = vld [vmem:[#allocation5 + $0x90] sm:$0xff]  ;;  %v14260_v29 = vsub.s32 %v81_v25, %v14249_v26  ;;  %18070 = vst [vmem:[#allocation14_spill] sm:$0xff] %v14292_v37 }
  0x2c   :  { %13241 = vmatpush3.xpose.msra.mxu0 %v899_v4  ;;  %13246 = vmatpush3.xpose.msra.mxu1 %v900_v5  ;;  %v916_v24 = vld [vmem:[#allocation5 + $0x98] sm:$0xff]  ;;  %v917_v27 = vld [vmem:[#allocation5 + $0xa0] sm:$0xff]  ;;  %v918_v28 = vld [vmem:[#allocation5 + $0xa8] sm:$0xff] }
  0x2d   :  { %13242 = vmatprep.mubr.msk.f32.mxu0 %vm14121_vm0, %v17919_v0  ;;  %13247 = vmatprep.mubr.msk.f32.mxu1 %vm14121_vm0, %v17919_v0  ;;  %18069 = vst [vmem:[#allocation13_spill] sm:$0xff] %v14260_v29  ;;  %v14265_v30 = vld [vmem:[%s17913_s2] sm:$0xff]  ;;  %v919_v31 = vld [vmem:[#allocation5 + $0xb0] sm:$0xff]  ;;  %v920_v32 = vld [vmem:[#allocation5 + $0xb8] sm:$0xff] }
  0x2e   :  { %13250 = vmatprep.subr.mxu0 %v17919_v0  ;;  %13255 = vmatprep.subr.mxu1 %v17919_v0  ;;  %v14277_v33 = vrot.slane %v14265_v30, %v14260_v29  ;;  %v921_v34 = vld [vmem:[#allocation5 + $0xc0] sm:$0xff]  ;;  %v922_v35 = vld [vmem:[#allocation5 + $0xc8] sm:$0xff]  ;;  %v923_v38 = vld [vmem:[#allocation5 + $0xd0] sm:$0xff] }
  0x2f   :  { %13243 = vmatmul.mubr.f32.vlgmr.msra.gmra.mxu0 %v14178_v3  ;;  %13248 = vmatmul.mubr.f32.vlgmr.msra.gmra.mxu1 %v14178_v3  ;;  %v924_v39 = vld [vmem:[#allocation5 + $0xd8] sm:$0xff]  ;;  %v14304_v41 = vld [vmem:[#allocation2 + $0x10] sm:$0xff]  ;;  %v14306_v42 = vld [vmem:[#allocation2] sm:$0xff] }
  0x30   :  { %13251 = vmatpush3.xpose.msra.mxu0 %v901_v6  ;;  %13256 = vmatpush3.xpose.msra.mxu1 %v902_v7  ;;  %v14289_v36 = vrot.slane %v14277_v33, %v14260_v29  ;;  %v925_v43 = vld [vmem:[#allocation5 + $0xe0] sm:$0xff]  ;;  %v926_v44 = vld [vmem:[#allocation5 + $0xe8] sm:$0xff]  ;;  %v14318_v47 = vld [vmem:[#allocation2 + $0x18] sm:$0xff]  ;;  %v93_v51 = vcombine.high %v14277_v33, %v14277_v33 }
  0x31   :  { %13252 = vmatprep.mubr.msk.f32.mxu0 %vm14121_vm0, %v17919_v0  ;;  %13257 = vmatprep.mubr.msk.f32.mxu1 %vm14121_vm0, %v17919_v0  ;;  %v14320_v48 = vld [vmem:[#allocation2 + $0x8] sm:$0xff]  ;;  %v927_v49 = vld [vmem:[#allocation5 + $0xf0] sm:$0xff]  ;;  %v928_v50 = vld [vmem:[#allocation5 + $0xf8] sm:$0xff] }
  0x32   :  { %13260 = vmatprep.subr.mxu0 %v17919_v0  ;;  %13265 = vmatprep.subr.mxu1 %v17919_v0  ;;  %v179_v40 = vrot.slane %v14289_v36, %v14292_v37  ;;  %v14336_v56 = vld [vmem:[#allocation2 + $0x28] sm:$0xff]  ;;  %v14338_v57 = vld [vmem:[#allocation2 + $0x20] sm:$0xff]  ;;  %v14345_v58 = vrot.slane %v93_v51, %v14260_v29  ;;  %v14353_v63 = vld [vmem:[#allocation2 + $0x38] sm:$0xff] }
  0x33   :  { %13253 = vmatmul.mubr.f32.vlgmr.msra.gmra.mxu0 %v14178_v3  ;;  %13258 = vmatmul.mubr.f32.vlgmr.msra.gmra.mxu1 %v14178_v3  ;;  %v14355_v1 = vld [vmem:[#allocation2 + $0x30] sm:$0xff]  ;;  %v933_v20 = vld [vmem:[#allocation5 + $0x120] sm:$0xff]  ;;  %v934_v21 = vld [vmem:[#allocation5 + $0x128] sm:$0xff] }
  0x34   :  { %13261 = vmatpush3.xpose.msra.mxu0 %v903_v8  ;;  %13266 = vmatpush3.xpose.msra.mxu1 %v904_v9  ;;  %v258_v45 = vmul.f32 %v179_v40, %v14304_v41  ;;  %v256_v46 = vmul.f32 %v179_v40, %v14306_v42  ;;  %v259_v54 = vmul.f32 %v179_v40, %v14318_v47  ;;  %v929_v8 = vld [vmem:[#allocation5 + $0x100] sm:$0xff]  ;;  %v930_v9 = vld [vmem:[#allocation5 + $0x108] sm:$0xff]  ;;  %v936_v33 = vld [vmem:[#allocation5 + $0x138] sm:$0xff] }
  0x35   :  { %13262 = vmatprep.mubr.msk.f32.mxu0 %vm14121_vm0, %v17919_v0  ;;  %13267 = vmatprep.mubr.msk.f32.mxu1 %vm14121_vm0, %v17919_v0  ;;  %v257_v55 = vmul.f32 %v179_v40, %v14320_v48  ;;  %v261_v61 = vmul.f32 %v179_v40, %v14336_v56  ;;  %v260_v62 = vmul.f32 %v179_v40, %v14338_v57 }
  0x36   :  { %13270 = vmatprep.subr.mxu0 %v17919_v0  ;;  %13275 = vmatprep.subr.mxu1 %v17919_v0  ;;  %v391_v52 = vsel %vm384_vm1, %v258_v45, 0.0  ;;  %v385_v53 = vsel %vm384_vm1, %v256_v46, 0.0  ;;  %v394_v59 = vsel %vm384_vm1, %v259_v54, 0.0  ;;  %v263_v2 = vmul.f32 %v179_v40, %v14353_v63  ;;  %v938_v46 = vld [vmem:[#allocation5 + $0x148] sm:$0xff]  ;;  %v940_v54 = vld [vmem:[#allocation5 + $0x158] sm:$0xff] }
  0x37   :  { %13263 = vmatmul.mubr.f32.vlgmr.msra.gmra.mxu0 %v14178_v3  ;;  %13268 = vmatmul.mubr.f32.vlgmr.msra.gmra.mxu1 %v14178_v3  ;;  %v388_v60 = vsel %vm384_vm1, %v257_v55, 0.0  ;;  %v400_v4 = vsel %vm384_vm1, %v261_v61, 0.0  ;;  %v397_v5 = vsel %vm384_vm1, %v260_v62, 0.0  ;;  %v262_v6 = vmul.f32 %v179_v40, %v14355_v1 }
  0x38   :  { %13271 = vmatpush3.xpose.msra.mxu0 %v905_v10  ;;  %13276 = vmatpush3.xpose.msra.mxu1 %v906_v11  ;;  %v183_v7 = vrot.slane %v14345_v58, %v14292_v37  ;;  %v406_v10 = vsel %vm384_vm1, %v263_v2, 0.0  ;;  %v125_v62 = vcombine.high %v14345_v58, %v14345_v58  ;;  %v941_v2 = vld [vmem:[#allocation5 + $0x160] sm:$0xff] }
  0x39   :  { %13272 = vmatprep.mubr.msk.f32.mxu0 %vm14121_vm0, %v17919_v0  ;;  %13277 = vmatprep.mubr.msk.f32.mxu1 %vm14121_vm0, %v17919_v0  ;;  %v403_v11 = vsel %vm384_vm1, %v262_v6, 0.0 }
  0x3a   :  { %13280 = vmatprep.subr.mxu0 %v17919_v0  ;;  %13285 = vmatprep.subr.mxu1 %v17919_v0 }
  0x3b   :  { %13273 = vmatmul.mubr.f32.vlgmr.msra.gmra.mxu0 %v14178_v3  ;;  %13278 = vmatmul.mubr.f32.vlgmr.msra.gmra.mxu1 %v14178_v3 }
  0x3c   :  { %13281 = vmatpush3.xpose.msra.mxu0 %v907_v12  ;;  %13286 = vmatpush3.xpose.msra.mxu1 %v908_v13  ;;  %v265_v12 = vmul.f32 %v183_v7, %v14320_v48  ;;  %v264_v13 = vmul.f32 %v183_v7, %v14306_v42 }
  0x3d   :  { %13282 = vmatprep.mubr.msk.f32.mxu0 %vm14121_vm0, %v17919_v0  ;;  %13287 = vmatprep.mubr.msk.f32.mxu1 %vm14121_vm0, %v17919_v0 }
  0x3e   :  { %13290 = vmatprep.subr.mxu0 %v17919_v0  ;;  %13295 = vmatprep.subr.mxu1 %v17919_v0 }
  0x3f   :  { %13283 = vmatmul.mubr.f32.vlgmr.msra.gmra.mxu0 %v14178_v3  ;;  %13288 = vmatmul.mubr.f32.vlgmr.msra.gmra.mxu1 %v14178_v3 }
  0x40   :  { %13291 = vmatpush3.xpose.msra.mxu0 %v909_v14  ;;  %13296 = vmatpush3.xpose.msra.mxu1 %v910_v15  ;;  %v931_v14 = vld [vmem:[#allocation5 + $0x110] sm:$0xff]  ;;  %v932_v15 = vld [vmem:[#allocation5 + $0x118] sm:$0xff] }
  0x41   :  { %13292 = vmatprep.mubr.msk.f32.mxu0 %vm14121_vm0, %v17919_v0  ;;  %13297 = vmatprep.mubr.msk.f32.mxu1 %vm14121_vm0, %v17919_v0 }
  0x42   :  { %13300 = vmatprep.subr.mxu0 %v17919_v0  ;;  %13305 = vmatprep.subr.mxu1 %v17919_v0 }
  0x43   :  { %13293 = vmatmul.mubr.f32.vlgmr.msra.gmra.mxu0 %v14178_v3  ;;  %13298 = vmatmul.mubr.f32.vlgmr.msra.gmra.mxu1 %v14178_v3 }
  0x44   :  { %13301 = vmatpush3.xpose.msra.mxu0 %v911_v16  ;;  %13306 = vmatpush3.xpose.msra.mxu1 %v912_v17  ;;  %v412_v16 = vsel %vm384_vm1, %v265_v12, 0.0  ;;  %v409_v17 = vsel %vm384_vm1, %v264_v13, 0.0 }
  0x45   :  { %13302 = vmatprep.mubr.msk.f32.mxu0 %vm14121_vm0, %v17919_v0  ;;  %13307 = vmatprep.mubr.msk.f32.mxu1 %vm14121_vm0, %v17919_v0 }
  0x46   :  { %13310 = vmatprep.subr.mxu0 %v17919_v0  ;;  %13315 = vmatprep.subr.mxu1 %v17919_v0 }
  0x47   :  { %13303 = vmatmul.mubr.f32.vlgmr.msra.gmra.mxu0 %v14178_v3  ;;  %13308 = vmatmul.mubr.f32.vlgmr.msra.gmra.mxu1 %v14178_v3 }
  0x48   :  { %13311 = vmatpush3.xpose.msra.mxu0 %v913_v18  ;;  %13316 = vmatpush3.xpose.msra.mxu1 %v914_v19  ;;  %v267_v18 = vmul.f32 %v183_v7, %v14318_v47  ;;  %v266_v19 = vmul.f32 %v183_v7, %v14304_v41 }
  0x49   :  { %13312 = vmatprep.mubr.msk.f32.mxu0 %vm14121_vm0, %v17919_v0  ;;  %13317 = vmatprep.mubr.msk.f32.mxu1 %vm14121_vm0, %v17919_v0 }
  0x4a   :  { %13320 = vmatprep.subr.mxu0 %v17919_v0  ;;  %13325 = vmatprep.subr.mxu1 %v17919_v0  ;;  %v415_v25 = vsel %vm384_vm1, %v266_v19, 0.0 }
  0x4b   :  { %13313 = vmatmul.mubr.f32.vlgmr.msra.gmra.mxu0 %v14178_v3  ;;  %13318 = vmatmul.mubr.f32.vlgmr.msra.gmra.mxu1 %v14178_v3 }
  0x4c   :  { %13321 = vmatpush3.xpose.msra.mxu0 %v915_v23  ;;  %13326 = vmatpush3.xpose.msra.mxu1 %v916_v24  ;;  %v269_v23 = vmul.f32 %v183_v7, %v14336_v56  ;;  %v418_v24 = vsel %vm384_vm1, %v267_v18, 0.0 }
  0x4d   :  { %13322 = vmatprep.mubr.msk.f32.mxu0 %vm14121_vm0, %v17919_v0  ;;  %13327 = vmatprep.mubr.msk.f32.mxu1 %vm14121_vm0, %v17919_v0 }
  0x4e   :  { %13330 = vmatprep.subr.mxu0 %v17919_v0  ;;  %13335 = vmatprep.subr.mxu1 %v17919_v0 }
  0x4f   :  { %13323 = vmatmul.mubr.f32.vlgmr.msra.gmra.mxu0 %v14178_v3  ;;  %13328 = vmatmul.mubr.f32.vlgmr.msra.gmra.mxu1 %v14178_v3 }
  0x50   :  { %13331 = vmatpush3.xpose.msra.mxu0 %v917_v27  ;;  %13336 = vmatpush3.xpose.msra.mxu1 %v918_v28  ;;  %v268_v27 = vmul.f32 %v183_v7, %v14338_v57  ;;  %v123_v28 = vcombine.high %v14289_v36, %v14289_v36  ;;  %v270_v36 = vmul.f32 %v183_v7, %v14355_v1 }
  0x51   :  { %13332 = vmatprep.mubr.msk.f32.mxu0 %vm14121_vm0, %v17919_v0  ;;  %13337 = vmatprep.mubr.msk.f32.mxu1 %vm14121_vm0, %v17919_v0 }
  0x52   :  { %13340 = vmatprep.subr.mxu0 %v17919_v0  ;;  %13345 = vmatprep.subr.mxu1 %v17919_v0 }
  0x53   :  { %13333 = vmatmul.mubr.f32.vlgmr.msra.gmra.mxu0 %v14178_v3  ;;  %13338 = vmatmul.mubr.f32.vlgmr.msra.gmra.mxu1 %v14178_v3 }
  0x54   :  { %13341 = vmatpush3.xpose.msra.mxu0 %v919_v31  ;;  %13346 = vmatpush3.xpose.msra.mxu1 %v920_v32  ;;  %v935_v31 = vld [vmem:[#allocation5 + $0x130] sm:$0xff]  ;;  %v424_v32 = vsel %vm384_vm1, %v269_v23, 0.0 }
  0x55   :  { %13342 = vmatprep.mubr.msk.f32.mxu0 %vm14121_vm0, %v17919_v0  ;;  %13347 = vmatprep.mubr.msk.f32.mxu1 %vm14121_vm0, %v17919_v0 }
  0x56   :  { %13350 = vmatprep.subr.mxu0 %v17919_v0  ;;  %13355 = vmatprep.subr.mxu1 %v17919_v0 }
  0x57   :  { %13343 = vmatmul.mubr.f32.vlgmr.msra.gmra.mxu0 %v14178_v3  ;;  %13348 = vmatmul.mubr.f32.vlgmr.msra.gmra.mxu1 %v14178_v3 }
  0x58   :  { %13351 = vmatpush3.xpose.msra.mxu0 %v921_v34  ;;  %13356 = vmatpush3.xpose.msra.mxu1 %v922_v35  ;;  %v421_v34 = vsel %vm384_vm1, %v268_v27, 0.0  ;;  %v271_v35 = vmul.f32 %v183_v7, %v14353_v63 }
  0x59   :  { %13352 = vmatprep.mubr.msk.f32.mxu0 %vm14121_vm0, %v17919_v0  ;;  %13357 = vmatprep.mubr.msk.f32.mxu1 %vm14121_vm0, %v17919_v0 }
  0x5a   :  { %13360 = vmatprep.subr.mxu0 %v17919_v0  ;;  %13365 = vmatprep.subr.mxu1 %v17919_v0  ;;  %v430_v40 = vsel %vm384_vm1, %v271_v35, 0.0 }
  0x5b   :  { %13353 = vmatmul.mubr.f32.vlgmr.msra.gmra.mxu0 %v14178_v3  ;;  %13358 = vmatmul.mubr.f32.vlgmr.msra.gmra.mxu1 %v14178_v3 }
  0x5c   :  { %13361 = vmatpush3.xpose.msra.mxu0 %v923_v38  ;;  %13366 = vmatpush3.xpose.msra.mxu1 %v924_v39  ;;  %v187_v38 = vrot.slane %v123_v28, %v14292_v37  ;;  %v937_v39 = vld [vmem:[#allocation5 + $0x140] sm:$0xff] }
  0x5d   :  { %13362 = vmatprep.mubr.msk.f32.mxu0 %vm14121_vm0, %v17919_v0  ;;  %13367 = vmatprep.mubr.msk.f32.mxu1 %vm14121_vm0, %v17919_v0 }
  0x5e   :  { %13370 = vmatprep.subr.mxu0 %v17919_v0  ;;  %13375 = vmatprep.subr.mxu1 %v17919_v0  ;;  %v272_v45 = vmul.f32 %v187_v38, %v14306_v42  ;;  %v277_v55 = vmul.f32 %v187_v38, %v14336_v56  ;;  %v276_v61 = vmul.f32 %v187_v38, %v14338_v57 }
  0x5f   :  { %13363 = vmatmul.mubr.f32.vlgmr.msra.gmra.mxu0 %v14178_v3  ;;  %13368 = vmatmul.mubr.f32.vlgmr.msra.gmra.mxu1 %v14178_v3  ;;  %v279_v7 = vmul.f32 %v187_v38, %v14353_v63  ;;  %v278_v58 = vmul.f32 %v187_v38, %v14355_v1 }
  0x60   :  { %13371 = vmatpush3.xpose.msra.mxu0 %v925_v43  ;;  %13376 = vmatpush3.xpose.msra.mxu1 %v926_v44  ;;  %v427_v43 = vsel %vm384_vm1, %v270_v36, 0.0  ;;  %v273_v44 = vmul.f32 %v187_v38, %v14320_v48  ;;  %v433_v51 = vsel %vm384_vm1, %v272_v45, 0.0  ;;  %v445_v6 = vsel %vm384_vm1, %v276_v61, 0.0 }
  0x61   :  { %13372 = vmatprep.mubr.msk.f32.mxu0 %vm14121_vm0, %v17919_v0  ;;  %13377 = vmatprep.mubr.msk.f32.mxu1 %vm14121_vm0, %v17919_v0  ;;  %v451_v12 = vsel %vm384_vm1, %v278_v58, 0.0 }
  0x62   :  { %13380 = vmatprep.subr.mxu0 %v17919_v0  ;;  %13385 = vmatprep.subr.mxu1 %v17919_v0 }
  0x63   :  { %13373 = vmatmul.mubr.f32.vlgmr.msra.gmra.mxu0 %v14178_v3  ;;  %13378 = vmatmul.mubr.f32.vlgmr.msra.gmra.mxu1 %v14178_v3 }
  0x64   :  { %13381 = vmatpush3.xpose.msra.mxu0 %v927_v49  ;;  %13386 = vmatpush3.xpose.msra.mxu1 %v928_v50  ;;  %v939_v49 = vld [vmem:[#allocation5 + $0x150] sm:$0xff]  ;;  %v436_v50 = vsel %vm384_vm1, %v273_v44, 0.0 }
  0x65   :  { %13382 = vmatprep.mubr.msk.f32.mxu0 %vm14121_vm0, %v17919_v0  ;;  %13387 = vmatprep.mubr.msk.f32.mxu1 %vm14121_vm0, %v17919_v0 }
  0x66   :  { %392 = vadd.xlane.f32.xlu1 %v391_v52  ;;  %386 = vadd.xlane.f32.xlu0 %v385_v53  ;;  %v275_v52 = vmul.f32 %v187_v38, %v14318_v47  ;;  %v274_v53 = vmul.f32 %v187_v38, %v14304_v41 }
  0x67   :  { %13383 = vmatmul.mubr.f32.vlgmr.msra.gmra.mxu0 %v14178_v3  ;;  %13388 = vmatmul.mubr.f32.vlgmr.msra.gmra.mxu1 %v14178_v3 }
  0x68   :  { %13390 = vmatprep.subr.mxu0 %v17919_v0  ;;  %13395 = vmatprep.subr.mxu1 %v17919_v0 }
  0x69   :  { %13392 = vmatprep.mubr.msk.f32.mxu0 %vm14121_vm0, %v17919_v0  ;;  %13397 = vmatprep.mubr.msk.f32.mxu1 %vm14121_vm0, %v17919_v0 }
  0x6a   :  { %395 = vadd.xlane.f32.xlu1 %v394_v59  ;;  %389 = vadd.xlane.f32.xlu0 %v388_v60  ;;  %v442_v59 = vsel %vm384_vm1, %v275_v52, 0.0  ;;  %v439_v60 = vsel %vm384_vm1, %v274_v53, 0.0 }
  0x6b   :  { %13391 = vmatpush3.xpose.msra.mxu0 %v929_v8  ;;  %13396 = vmatpush3.xpose.msra.mxu1 %v930_v9  ;;  %v191_v8 = vrot.slane %v125_v62, %v14292_v37  ;;  %v943_v9 = vld [vmem:[#allocation5 + $0x170] sm:$0xff] }
  0x6c   :  { %13400 = vmatprep.subr.mxu0 %v17919_v0  ;;  %13405 = vmatprep.subr.mxu1 %v17919_v0 }
  0x6d   :  { %v281_v13 = vmul.f32 %v191_v8, %v14320_v48  ;;  %v283_v18 = vmul.f32 %v191_v8, %v14318_v47  ;;  %v282_v19 = vmul.f32 %v191_v8, %v14304_v41 }
  0x6e   :  { %401 = vadd.xlane.f32.xlu1 %v400_v4  ;;  %398 = vadd.xlane.f32.xlu0 %v397_v5  ;;  %v448_v4 = vsel %vm384_vm1, %v277_v55, 0.0  ;;  %v942_v5 = vld [vmem:[#allocation5 + $0x168] sm:$0xff] }
  0x6f   :  { %13393 = vmatmul.mubr.f32.vlgmr.msra.gmra.mxu0 %v14178_v3  ;;  %13398 = vmatmul.mubr.f32.vlgmr.msra.gmra.mxu1 %v14178_v3  ;;  %v463_v23 = vsel %vm384_vm1, %v282_v19, 0.0 }
  0x70   :  { %13401 = vmatpush3.xpose.msra.mxu0 %v931_v14  ;;  %13402 = vmatprep.mubr.msk.f32.mxu0 %vm14121_vm0, %v17919_v0  ;;  %v280_v14 = vmul.f32 %v191_v8, %v14306_v42 }
  0x71   :  { %13410 = vmatprep.subr.mxu0 %v17919_v0  ;;  %13406 = vmatpush3.xpose.msra.mxu1 %v932_v15  ;;  %v944_v15 = vld [vmem:[#allocation5 + $0x178] sm:$0xff] }
  0x72   :  { %407 = vadd.xlane.f32.xlu1 %v406_v10  ;;  %404 = vadd.xlane.f32.xlu0 %v403_v11  ;;  %v78_v10 = vcombine.high %v14265_v30, %v14265_v30  ;;  %v454_v11 = vsel %vm384_vm1, %v279_v7, 0.0 }
  0x73   :  { %13403 = vmatmul.mubr.f32.vlgmr.msra.gmra.mxu0 %v14178_v3  ;;  %13407 = vmatprep.mubr.msk.f32.mxu1 %vm14121_vm0, %v17919_v0 }
  0x74   :  { %13411 = vmatpush3.xpose.msra.mxu0 %v933_v20  ;;  %13415 = vmatprep.subr.mxu1 %v17919_v0  ;;  %v92_v30 = vrot.slane %v78_v10, %v14260_v29 }
  0x75   :  { %13408 = vmatmul.mubr.f32.vlgmr.msra.gmra.mxu1 %v14178_v3  ;;  %13412 = vmatprep.mubr.msk.f32.mxu0 %vm14121_vm0, %v17919_v0 }
  0x76   :  { %413 = vadd.xlane.f32.xlu1 %v412_v16  ;;  %410 = vadd.xlane.f32.xlu0 %v409_v17  ;;  %v460_v16 = vsel %vm384_vm1, %v281_v13, 0.0  ;;  %v457_v17 = vsel %vm384_vm1, %v280_v14, 0.0  ;;  %v14480_v20 = vrot.slane %v92_v30, %v14260_v29  ;;  %v94_v44 = vcombine.high %v92_v30, %v92_v30 }
  0x77   :  { %13416 = vmatpush3.xpose.msra.mxu1 %v934_v21  ;;  %13413 = vmatmul.mubr.f32.vlgmr.msra.gmra.mxu0 %v14178_v3  ;;  %v466_v21 = vsel %vm384_vm1, %v283_v18, 0.0 }
  0x78   :  { %13417 = vmatprep.mubr.msk.f32.mxu1 %vm14121_vm0, %v17919_v0  ;;  %13420 = vmatprep.subr.mxu0 %v17919_v0  ;;  %v195_v27 = vrot.slane %v14480_v20, %v14292_v37 }
  0x79   :  { %13421 = vmatpush3.xpose.msra.mxu0 %v935_v31  ;;  %13425 = vmatprep.subr.mxu1 %v17919_v0 }
  0x7a   :  { %419 = vadd.xlane.f32.xlu1 %v418_v24  ;;  %416 = vadd.xlane.f32.xlu0 %v415_v25  ;;  %v285_v24 = vmul.f32 %v191_v8, %v14336_v56  ;;  %v284_v25 = vmul.f32 %v191_v8, %v14338_v57  ;;  %v288_v36 = vmul.f32 %v195_v27, %v14306_v42 }
  0x7b   :  { %13418 = vmatmul.mubr.f32.vlgmr.msra.gmra.mxu1 %v14178_v3  ;;  %13422 = vmatprep.mubr.msk.f32.mxu0 %vm14121_vm0, %v17919_v0  ;;  %v293_v45 = vmul.f32 %v195_v27, %v14336_v56  ;;  %v294_v55 = vmul.f32 %v195_v27, %v14355_v1 }
  0x7c   :  { %13426 = vmatpush3.xpose.msra.mxu1 %v936_v33  ;;  %13427 = vmatprep.mubr.msk.f32.mxu1 %vm14121_vm0, %v17919_v0  ;;  %v472_v28 = vsel %vm384_vm1, %v285_v24, 0.0  ;;  %v469_v31 = vsel %vm384_vm1, %v284_v25, 0.0  ;;  %v286_v33 = vmul.f32 %v191_v8, %v14355_v1 }
  0x7d   :  { %13423 = vmatmul.mubr.f32.vlgmr.msra.gmra.mxu0 %v14178_v3  ;;  %13430 = vmatprep.subr.mxu0 %v17919_v0  ;;  %v496_v52 = vsel %vm384_vm1, %v293_v45, 0.0  ;;  %v499_v61 = vsel %vm384_vm1, %v294_v55, 0.0 }
  0x7e   :  { %425 = vadd.xlane.f32.xlu1 %v424_v32  ;;  %422 = vadd.xlane.f32.xlu0 %v421_v34  ;;  %v287_v32 = vmul.f32 %v191_v8, %v14353_v63  ;;  %v475_v35 = vsel %vm384_vm1, %v286_v33, 0.0 }
  0x7f   :  { %13428 = vmatmul.mubr.f32.vlgmr.msra.gmra.mxu1 %v14178_v3  ;;  %13431 = vmatpush3.xpose.msra.mxu0 %v937_v39  ;;  %v481_v39 = vsel %vm384_vm1, %v288_v36, 0.0 }
  0x80   :  { %13435 = vmatprep.subr.mxu1 %v17919_v0  ;;  %13432 = vmatprep.mubr.msk.f32.mxu0 %vm14121_vm0, %v17919_v0  ;;  %v478_v34 = vsel %vm384_vm1, %v287_v32, 0.0 }
  0x81   :  { %13436 = vmatpush3.xpose.msra.mxu1 %v938_v46  ;;  %13437 = vmatprep.mubr.msk.f32.mxu1 %vm14121_vm0, %v17919_v0 }
  0x82   :  { %431 = vadd.xlane.f32.xlu1 %v430_v40  ;;  %428 = vadd.xlane.f32.xlu0 %v427_v43  ;;  %v291_v40 = vmul.f32 %v195_v27, %v14318_v47  ;;  %v290_v43 = vmul.f32 %v195_v27, %v14304_v41 }
  0x83   :  { %13433 = vmatmul.mubr.f32.vlgmr.msra.gmra.mxu0 %v14178_v3  ;;  %13440 = vmatprep.subr.mxu0 %v17919_v0 }
  0x84   :  { %13441 = vmatpush3.xpose.msra.mxu0 %v939_v49  ;;  %13445 = vmatprep.subr.mxu1 %v17919_v0  ;;  %v490_v46 = vsel %vm384_vm1, %v291_v40, 0.0  ;;  %v487_v49 = vsel %vm384_vm1, %v290_v43, 0.0 }
  0x85   :  { %13438 = vmatmul.mubr.f32.vlgmr.msra.gmra.mxu1 %v14178_v3  ;;  %13442 = vmatprep.mubr.msk.f32.mxu0 %vm14121_vm0, %v17919_v0 }
  0x86   :  { %437 = vadd.xlane.f32.xlu1 %v436_v50  ;;  %434 = vadd.xlane.f32.xlu0 %v433_v51  ;;  %v292_v50 = vmul.f32 %v195_v27, %v14338_v57  ;;  %v122_v51 = vrot.slane %v94_v44, %v14260_v29  ;;  %v14556_v44 = vld [vmem:[%s17913_s2 + $0x8] sm:$0xff] }
  0x87   :  { %13446 = vmatpush3.xpose.msra.mxu1 %v940_v54  ;;  %13443 = vmatmul.mubr.f32.vlgmr.msra.gmra.mxu0 %v14178_v3  ;;  %v295_v54 = vmul.f32 %v195_v27, %v14353_v63  ;;  %v134_v45 = vrot.slane %v14556_v44, %v14260_v29 }
  0x88   :  { %13447 = vmatprep.mubr.msk.f32.mxu1 %vm14121_vm0, %v17919_v0  ;;  %13450 = vmatprep.subr.mxu0 %v17919_v0  ;;  %v493_v53 = vsel %vm384_vm1, %v292_v50, 0.0  ;;  %v126_v25 = vcombine.high %v122_v51, %v122_v51 }
  0x89   :  { %13451 = vmatpush3.xpose.msra.mxu0 %v941_v2  ;;  %13455 = vmatprep.subr.mxu1 %v17919_v0 }
  0x8a   :  { %443 = vadd.xlane.f32.xlu1 %v442_v59  ;;  %440 = vadd.xlane.f32.xlu0 %v439_v60  ;;  %v199_v59 = vrot.slane %v122_v51, %v14292_v37  ;;  %v502_v60 = vsel %vm384_vm1, %v295_v54, 0.0  ;;  %v207_v33 = vrot.slane %v126_v25, %v14292_v37 }
  0x8b   :  { %13448 = vmatmul.mubr.f32.vlgmr.msra.gmra.mxu1 %v14178_v3  ;;  %13452 = vmatprep.mubr.msk.f32.mxu0 %vm14121_vm0, %v17919_v0 }
  0x8c   :  { %13456 = vmatpush3.xpose.msra.mxu1 %v942_v5  ;;  %13457 = vmatprep.mubr.msk.f32.mxu1 %vm14121_vm0, %v17919_v0  ;;  %v297_v62 = vmul.f32 %v199_v59, %v14320_v48  ;;  %v296_v2 = vmul.f32 %v199_v59, %v14306_v42  ;;  %v298_v7 = vmul.f32 %v199_v59, %v14304_v41 }
  0x8d   :  { %13453 = vmatmul.mubr.f32.vlgmr.msra.gmra.mxu0 %v14178_v3  ;;  %13460 = vmatprep.subr.mxu0 %v17919_v0  ;;  %v301_v58 = vmul.f32 %v199_v59, %v14336_v56  ;;  %v300_v10 = vmul.f32 %v199_v59, %v14338_v57  ;;  %v303_v14 = vmul.f32 %v199_v59, %v14353_v63 }
  0x8e   :  { %449 = vadd.xlane.f32.xlu1 %v448_v4  ;;  %446 = vadd.xlane.f32.xlu0 %v445_v6  ;;  %v508_v4 = vsel %vm384_vm1, %v297_v62, 0.0  ;;  %v505_v5 = vsel %vm384_vm1, %v296_v2, 0.0  ;;  %v299_v6 = vmul.f32 %v199_v59, %v14318_v47  ;;  %v313_v40 = vmul.f32 %v207_v33, %v14320_v48 }
  0x8f   :  { %13458 = vmatmul.mubr.f32.vlgmr.msra.gmra.mxu1 %v14178_v3  ;;  %13461 = vmatpush3.xpose.msra.mxu0 %v943_v9  ;;  %v511_v9 = vsel %vm384_vm1, %v298_v7, 0.0  ;;  %v517_v13 = vsel %vm384_vm1, %v300_v10, 0.0  ;;  %v312_v43 = vmul.f32 %v207_v33, %v14306_v42  ;;  %v315_v50 = vmul.f32 %v207_v33, %v14318_v47 }
  0x90   :  { %13465 = vmatprep.subr.mxu1 %v17919_v0  ;;  %13462 = vmatprep.mubr.msk.f32.mxu0 %vm14121_vm0, %v17919_v0  ;;  %v514_v8 = vsel %vm384_vm1, %v299_v6, 0.0  ;;  %v314_v51 = vmul.f32 %v207_v33, %v14304_v41  ;;  %v317_v55 = vmul.f32 %v207_v33, %v14336_v56  ;;  %v318_v2 = vmul.f32 %v207_v33, %v14355_v1 }
  0x91   :  { %13466 = vmatpush3.xpose.msra.mxu1 %v944_v15  ;;  %13467 = vmatprep.mubr.msk.f32.mxu1 %vm14121_vm0, %v17919_v0  ;;  %v302_v15 = vmul.f32 %v199_v59, %v14355_v1  ;;  %v316_v59 = vmul.f32 %v207_v33, %v14338_v57 }
  0x92   :  { %455 = vadd.xlane.f32.xlu1 %v454_v11  ;;  %452 = vadd.xlane.f32.xlu0 %v451_v12  ;;  %v124_v11 = vcombine.high %v14480_v20, %v14480_v20  ;;  %v520_v12 = vsel %vm384_vm1, %v301_v58, 0.0  ;;  %v559_v54 = vsel %vm384_vm1, %v314_v51, 0.0  ;;  %v571_v6 = vsel %vm384_vm1, %v318_v2, 0.0 }
  0x93   :  { %13463 = vmatmul.mubr.f32.vlgmr.msra.gmra.mxu0 %v14178_v3  ;;  %13470 = vmatprep.subr.mxu0 %v17919_v0  ;;  %v565_v62 = vsel %vm384_vm1, %v316_v59, 0.0 }
  0x94   :  { %13475 = vmatprep.subr.mxu1 %v17919_v0  ;;  %13472 = vmatprep.mubr.msk.f32.mxu0 %vm14121_vm0, %v17919_v0  ;;  %v203_v30 = vrot.slane %v124_v11, %v14292_v37 }
  0x95   :  { %13468 = vmatmul.mubr.f32.vlgmr.msra.gmra.mxu1 %v14178_v3  ;;  %v289_v3 = vmul.f32 %v195_v27, %v14320_v48 }
  0x96   :  { %461 = vadd.xlane.f32.xlu1 %v460_v16  ;;  %458 = vadd.xlane.f32.xlu0 %v457_v17  ;;  %v526_v16 = vsel %vm384_vm1, %v303_v14, 0.0  ;;  %v523_v17 = vsel %vm384_vm1, %v302_v15, 0.0  ;;  %v305_v18 = vmul.f32 %v203_v30, %v14320_v48  ;;  %v304_v19 = vmul.f32 %v203_v30, %v14306_v42 }
  0x97   :  { %13477 = vmatprep.mubr.msk.f32.mxu1 %vm14121_vm0, %v17919_v0  ;;  %v484_v38 = vsel %vm384_vm1, %v289_v3, 0.0  ;;  %v306_v24 = vmul.f32 %v203_v30, %v14304_v41  ;;  %v308_v32 = vmul.f32 %v203_v30, %v14338_v57  ;;  %v310_v36 = vmul.f32 %v203_v30, %v14355_v1 }
  0x98   :  { %v532_v20 = vsel %vm384_vm1, %v305_v18, 0.0 }
  0x9a   :  { %467 = vadd.xlane.f32.xlu1 %v466_v21  ;;  %464 = vadd.xlane.f32.xlu0 %v463_v23  ;;  %v529_v21 = vsel %vm384_vm1, %v304_v19, 0.0  ;;  %v307_v23 = vmul.f32 %v203_v30, %v14318_v47 }
  0x9c   :  { %v538_v27 = vsel %vm384_vm1, %v307_v23, 0.0 }
  0x9e   :  { %473 = vadd.xlane.f32.xlu1 %v472_v28  ;;  %470 = vadd.xlane.f32.xlu0 %v469_v31  ;;  %v535_v28 = vsel %vm384_vm1, %v306_v24, 0.0  ;;  %v309_v31 = vmul.f32 %v203_v30, %v14336_v56 }
  0xa0   :  { %v544_v3 = vsel %vm384_vm1, %v309_v31, 0.0 }
  0xa2   :  { %479 = vadd.xlane.f32.xlu1 %v478_v34  ;;  %476 = vadd.xlane.f32.xlu0 %v475_v35  ;;  %v541_v34 = vsel %vm384_vm1, %v308_v32, 0.0  ;;  %v311_v35 = vmul.f32 %v203_v30, %v14353_v63 }
  0xa6   :  { %485 = vadd.xlane.f32.xlu1 %v484_v38  ;;  %482 = vadd.xlane.f32.xlu0 %v481_v39  ;;  %v550_v38 = vsel %vm384_vm1, %v311_v35, 0.0  ;;  %v547_v39 = vsel %vm384_vm1, %v310_v36, 0.0 }
  0xaa   :  { %491 = vadd.xlane.f32.xlu1 %v490_v46  ;;  %488 = vadd.xlane.f32.xlu0 %v487_v49  ;;  %v556_v46 = vsel %vm384_vm1, %v313_v40, 0.0  ;;  %v553_v49 = vsel %vm384_vm1, %v312_v43, 0.0 }
  0xae   :  { %497 = vadd.xlane.f32.xlu1 %v496_v52  ;;  %494 = vadd.xlane.f32.xlu0 %v493_v53  ;;  %v14565_v52 = vrot.slane %v134_v45, %v14260_v29  ;;  %v562_v53 = vsel %vm384_vm1, %v315_v50, 0.0 }
  0xb0   :  { %v172_v59 = vcombine.high %v14565_v52, %v14565_v52 }
  0xb2   :  { %503 = vadd.xlane.f32.xlu1 %v502_v60  ;;  %500 = vadd.xlane.f32.xlu0 %v499_v61  ;;  %v319_v60 = vmul.f32 %v207_v33, %v14353_v63  ;;  %v568_v61 = vsel %vm384_vm1, %v317_v55, 0.0 }
  0xb6   :  { %509 = vadd.xlane.f32.xlu1 %v508_v4  ;;  %506 = vadd.xlane.f32.xlu0 %v505_v5  ;;  %v211_v4 = vrot.slane %v14565_v52, %v14292_v37  ;;  %v574_v5 = vsel %vm384_vm1, %v319_v60, 0.0  ;;  %v945_v60 = vld [vmem:[%s17915_s4] sm:$0xff] }
  0xb8   :  { %v321_v7 = vmul.f32 %v211_v4, %v14320_v48  ;;  %v320_v58 = vmul.f32 %v211_v4, %v14306_v42  ;;  %v323_v11 = vmul.f32 %v211_v4, %v14318_v47  ;;  %v325_v30 = vmul.f32 %v211_v4, %v14336_v56 }
  0xb9   :  { %v326_v23 = vmul.f32 %v211_v4, %v14355_v1 }
  0xba   :  { %515 = vadd.xlane.f32.xlu1 %v514_v8  ;;  %512 = vadd.xlane.f32.xlu0 %v511_v9  ;;  %v142_v8 = vcombine.high %v134_v45, %v134_v45  ;;  %v580_v9 = vsel %vm384_vm1, %v321_v7, 0.0  ;;  %v577_v10 = vsel %vm384_vm1, %v320_v58, 0.0  ;;  %v586_v14 = vsel %vm384_vm1, %v323_v11, 0.0 }
  0xbb   :  { %v595_v33 = vsel %vm384_vm1, %v326_v23, 0.0  ;;  %v14648_v11 = vrot.slane %v172_v59, %v14292_v37 }
  0xbe   :  { %521 = vadd.xlane.f32.xlu1 %v520_v12  ;;  %518 = vadd.xlane.f32.xlu0 %v517_v13  ;;  %v322_v12 = vmul.f32 %v211_v4, %v14304_v41  ;;  %v14586_v13 = vrot.slane %v142_v8, %v14260_v29 }
  0xc0   :  { %v583_v15 = vsel %vm384_vm1, %v322_v12, 0.0  ;;  %v215_v24 = vrot.slane %v14586_v13, %v14292_v37 }
  0xc2   :  { %527 = vadd.xlane.f32.xlu1 %v526_v16  ;;  %524 = vadd.xlane.f32.xlu0 %v523_v17  ;;  %v324_v16 = vmul.f32 %v211_v4, %v14338_v57  ;;  %v327_v17 = vmul.f32 %v211_v4, %v14353_v63  ;;  %v330_v50 = vmul.f32 %v215_v24, %v14304_v41 }
  0xc4   :  { %v598_v32 = vsel %vm384_vm1, %v327_v17, 0.0  ;;  %v607_v4 = vsel %vm384_vm1, %v330_v50, 0.0  ;;  %v334_v17 = vmul.f32 %v215_v24, %v14355_v1 }
  0xc6   :  { %533 = vadd.xlane.f32.xlu1 %v532_v20  ;;  %530 = vadd.xlane.f32.xlu0 %v529_v21  ;;  %v592_v20 = vsel %vm384_vm1, %v325_v30, 0.0  ;;  %v589_v21 = vsel %vm384_vm1, %v324_v16, 0.0  ;;  %v335_v16 = vmul.f32 %v215_v24, %v14353_v63 }
  0xc8   :  { %v622_v1 = vsel %vm384_vm1, %v335_v16, 0.0 }
  0xca   :  { %539 = vadd.xlane.f32.xlu1 %v538_v27  ;;  %536 = vadd.xlane.f32.xlu0 %v535_v28 }
  0xce   :  { %545 = vadd.xlane.f32.xlu1 %v544_v3  ;;  %542 = vadd.xlane.f32.xlu0 %v541_v34  ;;  %v329_v3 = vmul.f32 %v215_v24, %v14320_v48  ;;  %v328_v34 = vmul.f32 %v215_v24, %v14306_v42 }
  0xd0   :  { %v604_v45 = vsel %vm384_vm1, %v329_v3, 0.0 }
  0xd2   :  { %551 = vadd.xlane.f32.xlu1 %v550_v38  ;;  %548 = vadd.xlane.f32.xlu0 %v547_v39 }
  0xd6   :  { %557 = vadd.xlane.f32.xlu1 %v556_v46  ;;  %554 = vadd.xlane.f32.xlu0 %v553_v49  ;;  %v601_v46 = vsel %vm384_vm1, %v328_v34, 0.0  ;;  %v331_v49 = vmul.f32 %v215_v24, %v14318_v47 }
  0xd8   :  { %v610_v2 = vsel %vm384_vm1, %v331_v49, 0.0 }
  0xda   :  { %563 = vadd.xlane.f32.xlu1 %v562_v53  ;;  %560 = vadd.xlane.f32.xlu0 %v559_v54 }
  0xde   :  { %569 = vadd.xlane.f32.xlu1 %v568_v61  ;;  %566 = vadd.xlane.f32.xlu0 %v565_v62 }
  0xe2   :  { %575 = vadd.xlane.f32.xlu1 %v574_v5  ;;  %572 = vadd.xlane.f32.xlu0 %v571_v6  ;;  %v333_v5 = vmul.f32 %v215_v24, %v14336_v56  ;;  %v332_v6 = vmul.f32 %v215_v24, %v14338_v57  ;;  %v619_v24 = vsel %vm384_vm1, %v334_v17, 0.0 }
  0xe4   :  { %v613_v30 = vsel %vm384_vm1, %v332_v6, 0.0 }
  0xe6   :  { %581 = vadd.xlane.f32.xlu1 %v580_v9  ;;  %578 = vadd.xlane.f32.xlu0 %v577_v10  ;;  %v947_v9 = vld [vmem:[%s17915_s4 + $0x10] sm:$0xff]  ;;  %v964_v10 = vrot.slane %v945_v60, %v14260_v29 }
  0xe7   :  { %v1062_v23 = vrot.slane %v947_v9, %v14260_v29  ;;  %v1055_v34 = vcombine.high %v947_v9, %v947_v9  ;;  %v339_v9 = vmul.f32 %v14648_v11, %v14318_v47 }
  0xe8   :  { %v14664_v3 = vrot.slane %v964_v10, %v14260_v29 }
  0xe9   :  { %v1070_v50 = vcombine.high %v1062_v23, %v1062_v23 }
  0xea   :  { %587 = vadd.xlane.f32.xlu1 %v586_v14  ;;  %584 = vadd.xlane.f32.xlu0 %v583_v15  ;;  %v616_v15 = vsel %vm384_vm1, %v333_v5, 0.0  ;;  %v1002_v59 = vcombine.high %v14664_v3, %v14664_v3 }
  0xeb   :  { %v14593_v18 = vpop.f32.mrf.mxu0  ;;  %v14595_v19 = vpop.f32.mrf.mxu1 }
  0xed   :  { %v13234_v25 = vpop.f32.mrf.mxu0  ;;  %v13239_v27 = vpop.f32.mrf.mxu1 }
  0xee   :  { %593 = vadd.xlane.f32.xlu1 %v592_v20  ;;  %590 = vadd.xlane.f32.xlu0 %v589_v21  ;;  %v972_v20 = vcombine.high %v964_v10, %v964_v10  ;;  %v957_v21 = vcombine.high %v945_v60, %v945_v60  ;;  %v338_v10 = vmul.f32 %v14648_v11, %v14304_v41 }
  0xef   :  { %v14602_v28 = vpop.f32.mrf.mxu0  ;;  %v14604_v31 = vpop.f32.mrf.mxu1 }
  0xf0   :  { %v14610_v35 = vpop.xlane.xlu1 %392  ;;  %v14612_v36 = vpop.xlane.xlu0 %386  ;;  %v971_v49 = vrot.slane %v957_v21, %v14260_v29  ;;  %v14708_v21 = vrot.slane %v1002_v59, %v14292_v37 }
  0xf1   :  { %v13244_v38 = vpop.f32.mrf.mxu0  ;;  %v13249_v39 = vpop.f32.mrf.mxu1 }
  0xf2   :  { %599 = vadd.xlane.f32.xlu1 %v598_v32  ;;  %596 = vadd.xlane.f32.xlu0 %v595_v33  ;;  %v337_v39 = vmul.f32 %v14648_v11, %v14320_v48 }
  0xf3   :  { %v14614_v40 = vpop.f32.mrf.mxu0  ;;  %v14616_v43 = vpop.f32.mrf.mxu1 }
  0xf4   :  { %v14622_v51 = vpop.xlane.xlu1 %395  ;;  %v14624_v53 = vpop.xlane.xlu0 %389 }
  0xf5   :  { %v13254_v54 = vpop.f32.mrf.mxu0  ;;  %v13259_v55 = vpop.f32.mrf.mxu1 }
  0xf6   :  { %605 = vadd.xlane.f32.xlu1 %v604_v45  ;;  %602 = vadd.xlane.f32.xlu0 %v601_v46  ;;  %v336_v45 = vmul.f32 %v14648_v11, %v14306_v42  ;;  %v14677_v46 = vrot.slane %v972_v20, %v14260_v29  ;;  %v1069_v42 = vrot.slane %v1055_v34, %v14260_v29  ;;  %v14721_v34 = vld [vmem:[%s17915_s4 + $0x8] sm:$0xff] }
  0xf7   :  { %v14631_v61 = vpop.f32.mrf.mxu0  ;;  %v14633_v62 = vpop.f32.mrf.mxu1  ;;  %v1254_v20 = vrot.slane %v14664_v3, %v14292_v37 }
  0xf8   :  { %v14639_v7 = vpop.xlane.xlu1 %401  ;;  %v14641_v58 = vpop.xlane.xlu0 %398  ;;  %v1004_v48 = vcombine.high %v14677_v46, %v14677_v46  ;;  %v1258_v41 = vrot.slane %v14677_v46, %v14292_v37  ;;  %v1071_v3 = vcombine.high %v1069_v42, %v1069_v42  ;;  %v14735_v46 = vld [vmem:[%s17915_s4 + $0x18] sm:$0xff] }
  0xf9   :  { %v13264_v52 = vpop.f32.mrf.mxu0  ;;  %v13269_v8 = vpop.f32.mrf.mxu1  ;;  %v1111_v0 = vrot.slane %v14735_v46, %v14260_v29 }
  0xfa   :  { %611 = vadd.xlane.f32.xlu1 %v610_v2  ;;  %608 = vadd.xlane.f32.xlu0 %v607_v4  ;;  %v973_v4 = vcombine.high %v971_v49, %v971_v49  ;;  %v628_v52 = vsel %vm384_vm1, %v337_v39, 0.0  ;;  %v625_v8 = vsel %vm384_vm1, %v336_v45, 0.0  ;;  %v14759_v22 = vrot.slane %v1071_v3, %v14260_v29 }
  0xfb   :  { %v14650_v12 = vpop.f32.mrf.mxu0  ;;  %v14652_v14 = vpop.f32.mrf.mxu1 }
  0xfc   :  { %v14659_v25 = vpop.xlane.xlu1 %407  ;;  %v14661_v27 = vpop.xlane.xlu0 %404 }
  0xfd   :  { %v13274_v32 = vpop.f32.mrf.mxu0  ;;  %v13279_v33 = vpop.f32.mrf.mxu1 }
  0xfe   :  { %617 = vadd.xlane.f32.xlu1 %v616_v15  ;;  %614 = vadd.xlane.f32.xlu0 %v613_v30  ;;  %v1078_v15 = vrot.slane %v1062_v23, %v14260_v29  ;;  %v1092_v30 = vrot.slane %v1070_v50, %v14260_v29  ;;  %v14711_v32 = vrot.slane %v971_v49, %v14260_v29  ;;  %v634_v49 = vsel %vm384_vm1, %v339_v9, 0.0 }
  0xff   :  { %v14666_v38 = vpop.f32.mrf.mxu0  ;;  %v14668_v63 = vpop.f32.mrf.mxu1  ;;  %v14716_v23 = vrot.slane %v1004_v48, %v14292_v37  ;;  %v631_v50 = vsel %vm384_vm1, %v338_v10, 0.0  ;;  %v14750_v9 = vrot.slane %v1069_v42, %v14260_v29  ;;  %v341_v10 = vmul.f32 %v14648_v11, %v14336_v56 }
 0x100   :  { %v14680_v54 = vpop.xlane.xlu1 %413  ;;  %v14682_v55 = vpop.xlane.xlu0 %410  ;;  %v1318_v59 = vrot.slane %v1078_v15, %v14292_v37  ;;  %v1102_v48 = vcombine.high %v1092_v30, %v1092_v30 }
 0x101   :  { %18071 = vst [vmem:[#allocation15_spill] sm:$0xff] %v14682_v55  ;;  %v13284_v60 = vpop.f32.mrf.mxu0  ;;  %v13289_v2 = vpop.f32.mrf.mxu1  ;;  %v1334_v55 = vrot.slane %v14750_v9, %v14292_v37 }
 0x102   :  { %623 = vadd.xlane.f32.xlu1 %v622_v1  ;;  %620 = vadd.xlane.f32.xlu0 %v619_v24  ;;  %v14724_v1 = vrot.slane %v973_v4, %v14260_v29  ;;  %v1003_v24 = vcombine.high %v14711_v32, %v14711_v32  ;;  %v1322_v60 = vrot.slane %v1092_v30, %v14292_v37 }
 0x103   :  { %v14689_v5 = vpop.f32.mrf.mxu0  ;;  %v14691_v6 = vpop.f32.mrf.mxu1  ;;  %v1100_v2 = vcombine.high %v1078_v15, %v1078_v15  ;;  %v340_v15 = vmul.f32 %v14648_v11, %v14338_v57 }
 0x104   :  { %v14701_v16 = vpop.xlane.xlu1 %419  ;;  %v14703_v17 = vpop.xlane.xlu0 %416  ;;  %v1005_v56 = vcombine.high %v14724_v1, %v14724_v1 }
 0x105   :  { %18072 = vst [vmem:[#allocation16_spill] sm:$0xff] %v14703_v17  ;;  %v13294_v47 = vpop.f32.mrf.mxu0  ;;  %v13299_v33 = vpop.f32.mrf.mxu1  ;;  %v1330_v17 = vrot.slane %v1102_v48, %v14292_v37  ;;  %v1101_v48 = vcombine.high %v14750_v9, %v14750_v9 }
 0x106   :  { %629 = vadd.xlane.f32.xlu1 %v628_v52  ;;  %626 = vadd.xlane.f32.xlu0 %v625_v8  ;;  %v14747_v8 = vrot.slane %v14721_v34, %v14260_v29 }
 0x107   :  { %v14728_v39 = vpop.f32.mrf.mxu0  ;;  %v14730_v45 = vpop.f32.mrf.mxu1 }
 0x108   :  { %v14741_v4 = vpop.xlane.xlu1 %425  ;;  %v14743_v52 = vpop.xlane.xlu0 %422 }
 0x109   :  { %18073 = vst [vmem:[#allocation17_spill] sm:$0xff] %v14741_v4  ;;  %18074 = vst [vmem:[#allocation18_spill] sm:$0xff] %v14743_v52  ;;  %v13304_v47 = vpop.f32.mrf.mxu0  ;;  %v13309_v33 = vpop.f32.mrf.mxu1  ;;  %v1326_v52 = vrot.slane %v1100_v2, %v14292_v37  ;;  %v1338_v2 = vrot.slane %v14759_v22, %v14292_v37 }
 0x10a   :  { %635 = vadd.xlane.f32.xlu1 %v634_v49  ;;  %632 = vadd.xlane.f32.xlu0 %v631_v50  ;;  %v14766_v47 = vrot.slane %v1003_v24, %v14292_v37  ;;  %v14778_v24 = vrot.slane %v14747_v8, %v14260_v29 }
 0x10b   :  { %v2677_v57 = vpop.f32.mrf.mxu0  ;;  %v2747_v33 = vpop.f32.mrf.mxu1 }
 0x10c   :  { %v2678_v30 = vadd.f32 %v2677_v57, %v1318_v59  ;;  %v2748_v3 = vadd.f32 %v2747_v33, %v1322_v60  ;;  %v14772_v49 = vpop.xlane.xlu1 %431  ;;  %v14774_v50 = vpop.xlane.xlu0 %428  ;;  %v640_v59 = vsel %vm384_vm1, %v341_v10, 0.0  ;;  %v637_v60 = vsel %vm384_vm1, %v340_v15, 0.0 }
 0x10d   :  { %18075 = vst [vmem:[#allocation19_spill] sm:$0xff] %v14772_v49  ;;  %18076 = vst [vmem:[#allocation20_spill] sm:$0xff] %v14774_v50  ;;  %v13314_v42 = vpop.f32.mrf.mxu0  ;;  %v13319_v4 = vpop.f32.mrf.mxu1  ;;  %v1119_v57 = vcombine.high %v1111_v0, %v1111_v0  ;;  %v18077_v10 = vmov 0.0   ;;  %v1104_v15 = vcombine.high %v14735_v46, %v14735_v46  ;;  %v1103_v49 = vcombine.high %v14759_v22, %v14759_v22 }
 0x10e   :  { %13471 = vmatpush3.xpose.msk.msra.mxu0 %vm4851_vm2, %v2678_v30  ;;  %13476 = vmatpush3.xpose.msk.msra.mxu1 %vm4851_vm2, %v2748_v3  ;;  %v1558_v4 = vadd.f32 %v14593_v18, %v1254_v20  ;;  %v1628_v42 = vadd.f32 %v14595_v19, %v1258_v41  ;;  %v14801_v18 = vrot.slane %v1005_v56, %v14292_v37 }
 0x10f   :  { %v2817_v33 = vpop.f32.mrf.mxu0  ;;  %v2887_v50 = vpop.f32.mrf.mxu1  ;;  %13480 = vmatprep.subr.mxu0 %v18077_v10  ;;  %13485 = vmatprep.subr.mxu1 %v18077_v10  ;;  %v1021_v19 = vcombine.high %v14747_v8, %v14747_v8  ;;  %v1006_v20 = vcombine.high %v14721_v34, %v14721_v34  ;;  %v1342_v22 = vrot.slane %v1101_v48, %v14292_v37 }
 0x110   :  { %v2818_v30 = vadd.f32 %v2817_v33, %v1326_v52  ;;  %v2888_v3 = vadd.f32 %v2887_v50, %v1330_v17  ;;  %641 = vadd.xlane.f32.xlu1 %v640_v59  ;;  %638 = vadd.xlane.f32.xlu0 %v637_v60  ;;  %v14798_v9 = vpop.xlane.xlu0 %434  ;;  %v1127_v17 = vrot.slane %v1111_v0, %v14260_v29  ;;  %v14816_v8 = vpop.xlane.xlu1 %437 }
 0x111   :  { %v13324_v41 = vpop.f32.mrf.mxu0  ;;  %v13329_v46 = vpop.f32.mrf.mxu1  ;;  %13473 = vmatmul.mubr.msk.f32.vlgmr.msra.gmra.mxu0 %vm4851_vm2, %v1558_v4  ;;  %13478 = vmatmul.mubr.msk.f32.vlgmr.msra.gmra.mxu1 %vm4851_vm2, %v1628_v42  ;;  %v14814_v52 = vrot.slane %v1119_v57, %v14260_v29  ;;  %v1698_v34 = vadd.f32 %v14602_v28, %v14708_v21  ;;  %v1768_v56 = vadd.f32 %v14604_v31, %v14716_v23 }
 0x112   :  { %13481 = vmatpush3.xpose.msk.msra.mxu0 %vm4851_vm2, %v2818_v30  ;;  %13486 = vmatpush3.xpose.msk.msra.mxu1 %vm4851_vm2, %v2888_v3  ;;  %v1118_v0 = vrot.slane %v1104_v15, %v14260_v29  ;;  %v1346_v28 = vrot.slane %v1103_v49, %v14292_v37  ;;  %v1286_v31 = vrot.slane %v14778_v24, %v14292_v37 }
 0x113   :  { %v2957_v50 = vpop.f32.mrf.mxu0  ;;  %v3027_v59 = vpop.f32.mrf.mxu1  ;;  %13482 = vmatprep.mubr.msk.f32.mxu0 %vm14121_vm0, %v18077_v10  ;;  %13487 = vmatprep.mubr.msk.f32.mxu1 %vm14121_vm0, %v18077_v10  ;;  %v14835_v23 = vrot.slane %v1021_v19, %v14260_v29  ;;  %v1020_v57 = vrot.slane %v1006_v20, %v14260_v29  ;;  %v1354_v49 = vrot.slane %v14814_v52, %v14292_v37 }
 0x114   :  { %v2958_v60 = vadd.f32 %v2957_v50, %v1334_v55  ;;  %v3028_v48 = vadd.f32 %v3027_v59, %v1338_v2  ;;  %13490 = vmatprep.subr.mxu0 %v18077_v10  ;;  %13495 = vmatprep.subr.mxu1 %v18077_v10  ;;  %v14830_v21 = vpop.xlane.xlu0 %440  ;;  %v1350_v55 = vrot.slane %v1127_v17, %v14292_v37 }
 0x115   :  { %v13334_v4 = vpop.f32.mrf.mxu0  ;;  %v13339_v42 = vpop.f32.mrf.mxu1  ;;  %13483 = vmatmul.mubr.msk.f32.vlgmr.msra.gmra.mxu0 %vm4851_vm2, %v1698_v34  ;;  %13488 = vmatmul.mubr.msk.f32.vlgmr.msra.gmra.mxu1 %vm4851_vm2, %v1768_v56  ;;  %v1149_v2 = vcombine.high %v1127_v17, %v1127_v17  ;;  %v18078_v33 = vrot.slane %v14711_v32, %v14292_v37  ;;  %v18079_v30 = vrot.slane %v14724_v1, %v14292_v37 }
 0x116   :  { %13491 = vmatpush3.xpose.msk.msra.mxu0 %vm4851_vm2, %v2958_v60  ;;  %13496 = vmatpush3.xpose.msk.msra.mxu1 %vm4851_vm2, %v3028_v48  ;;  %v1120_v41 = vcombine.high %v1118_v0, %v1118_v0  ;;  %v14861_v32 = vpop.xlane.xlu1 %443  ;;  %v1051_v1 = vcombine.high %v14778_v24, %v14778_v24  ;;  %v1053_v34 = vcombine.high %v14835_v23, %v14835_v23 }
 0x117   :  { %v1838_v15 = vadd.f32 %v14614_v40, %v18078_v33  ;;  %v1908_v3 = vadd.f32 %v14616_v43, %v18079_v30  ;;  %v3097_v19 = vpop.f32.mrf.mxu0  ;;  %v3167_v20 = vpop.f32.mrf.mxu1  ;;  %13492 = vmatprep.mubr.msk.f32.mxu0 %vm14121_vm0, %v18077_v10  ;;  %13497 = vmatprep.mubr.msk.f32.mxu1 %vm14121_vm0, %v18077_v10  ;;  %v1151_v40 = vcombine.high %v14814_v52, %v14814_v52 }
 0x118   :  { %v3098_v46 = vadd.f32 %v3097_v19, %v1342_v22  ;;  %v3168_v17 = vadd.f32 %v3167_v20, %v1346_v28  ;;  %13500 = vmatprep.subr.mxu0 %v18077_v10  ;;  %13505 = vmatprep.subr.mxu1 %v18077_v10  ;;  %v1290_v43 = vrot.slane %v14835_v23, %v14292_v37  ;;  %v14875_v60 = vpop.xlane.xlu0 %446 }
 0x119   :  { %v13344_v22 = vpop.f32.mrf.mxu0  ;;  %v13349_v56 = vpop.f32.mrf.mxu1  ;;  %13493 = vmatmul.mubr.msk.f32.vlgmr.msra.gmra.mxu0 %vm4851_vm2, %v1838_v15  ;;  %13498 = vmatmul.mubr.msk.f32.vlgmr.msra.gmra.mxu1 %vm4851_vm2, %v1908_v3  ;;  %v1022_v50 = vcombine.high %v1020_v57, %v1020_v57  ;;  %v1358_v52 = vrot.slane %v1149_v2, %v14292_v37  ;;  %v1134_v59 = vrot.slane %v1118_v0, %v14260_v29 }
 0x11a   :  { %13501 = vmatpush3.xpose.msk.msra.mxu0 %vm4851_vm2, %v3098_v46  ;;  %13506 = vmatpush3.xpose.msk.msra.mxu1 %vm4851_vm2, %v3168_v17  ;;  %18080 = vst [vmem:[#allocation21_spill] sm:$0xff] %v14875_v60  ;;  %v1978_v48 = vadd.f32 %v14631_v61, %v14766_v47  ;;  %v2048_v28 = vadd.f32 %v14633_v62, %v14801_v18  ;;  %v14900_v3 = vpop.xlane.xlu1 %449 }
 0x11b   :  { %v3237_v23 = vpop.f32.mrf.mxu0  ;;  %v3307_v4 = vpop.f32.mrf.mxu1  ;;  %13502 = vmatprep.mubr.msk.f32.mxu0 %vm14121_vm0, %v18077_v10  ;;  %13507 = vmatprep.mubr.msk.f32.mxu1 %vm14121_vm0, %v18077_v10  ;;  %v1148_v42 = vrot.slane %v1120_v41, %v14260_v29  ;;  %v1362_v61 = vrot.slane %v1151_v40, %v14292_v37  ;;  %v1294_v62 = vrot.slane %v1051_v1, %v14292_v37 }
 0x11c   :  { %v3238_v2 = vadd.f32 %v3237_v23, %v1350_v55  ;;  %v3308_v0 = vadd.f32 %v3307_v4, %v1354_v49  ;;  %13510 = vmatprep.subr.mxu0 %v18077_v10  ;;  %13515 = vmatprep.subr.mxu1 %v18077_v10  ;;  %v1298_v47 = vrot.slane %v1053_v34, %v14292_v37 }
 0x11d   :  { %v14892_v18 = vrot.slane %v1020_v57, %v14260_v29  ;;  %v13354_v33 = vpop.f32.mrf.mxu0  ;;  %v13359_v15 = vpop.f32.mrf.mxu1  ;;  %13503 = vmatmul.mubr.msk.f32.vlgmr.msra.gmra.mxu0 %vm4851_vm2, %v1978_v48  ;;  %13508 = vmatmul.mubr.msk.f32.vlgmr.msra.gmra.mxu1 %vm4851_vm2, %v2048_v28  ;;  %v1050_v55 = vrot.slane %v1022_v50, %v14260_v29  ;;  %v1366_v49 = vrot.slane %v1134_v59, %v14292_v37 }
 0x11e   :  { %13511 = vmatpush3.xpose.msk.msra.mxu0 %vm4851_vm2, %v3238_v2  ;;  %13516 = vmatpush3.xpose.msk.msra.mxu1 %vm4851_vm2, %v3308_v0  ;;  %v1150_v30 = vcombine.high %v1134_v59, %v1134_v59  ;;  %v2118_v57 = vadd.f32 %v14650_v12, %v1286_v31  ;;  %v2188_v19 = vadd.f32 %v14652_v14, %v1290_v43  ;;  %v14914_v12 = vpop.xlane.xlu0 %452  ;;  %v14919_v14 = vld [vmem:[%s17915_s4 + $0x20] sm:$0xff] }
 0x11f   :  { %v3377_v20 = vpop.f32.mrf.mxu0  ;;  %v3447_v41 = vpop.f32.mrf.mxu1  ;;  %13512 = vmatprep.mubr.msk.f32.mxu0 %vm14121_vm0, %v18077_v10  ;;  %13517 = vmatprep.mubr.msk.f32.mxu1 %vm14121_vm0, %v18077_v10  ;;  %v1370_v46 = vrot.slane %v1148_v42, %v14292_v37  ;;  %v1152_v24 = vcombine.high %v1148_v42, %v1148_v42  ;;  %18081 = vst [vmem:[#allocation22_spill] sm:$0xff] %v14914_v12 }
 0x120   :  { %v3378_v17 = vadd.f32 %v3377_v20, %v1358_v52  ;;  %v3448_v40 = vadd.f32 %v3447_v41, %v1362_v61  ;;  %13520 = vmatprep.subr.mxu0 %v18077_v10  ;;  %13525 = vmatprep.subr.mxu1 %v18077_v10  ;;  %v1302_v31 = vrot.slane %v14892_v18, %v14292_v37  ;;  %v14948_v61 = vld [vmem:[#allocation2 + $0x38] sm:$0xff] }
 0x121   :  { %v1052_v43 = vcombine.high %v14892_v18, %v14892_v18  ;;  %v13364_v1 = vpop.f32.mrf.mxu0  ;;  %v13369_v34 = vpop.f32.mrf.mxu1  ;;  %13513 = vmatmul.mubr.msk.f32.vlgmr.msra.gmra.mxu0 %vm4851_vm2, %v2118_v57  ;;  %13518 = vmatmul.mubr.msk.f32.vlgmr.msra.gmra.mxu1 %vm4851_vm2, %v2188_v19  ;;  %v174_v22 = vcombine.high %v14586_v13, %v14586_v13  ;;  %v1306_v56 = vrot.slane %v1050_v55, %v14292_v37 }
 0x122   :  { %v1054_v50 = vcombine.high %v1050_v55, %v1050_v55  ;;  %13521 = vmatpush3.xpose.msk.msra.mxu0 %vm4851_vm2, %v3378_v17  ;;  %13526 = vmatpush3.xpose.msk.msra.mxu1 %vm4851_vm2, %v3448_v40  ;;  %v1374_v52 = vrot.slane %v1150_v30, %v14292_v37  ;;  %v2258_v59 = vadd.f32 %v14666_v38, %v1294_v62  ;;  %v14980_v40 = vld [vmem:[#allocation2 + $0x8] sm:$0xff] }
 0x123   :  { %v2328_v48 = vadd.f32 %v14668_v63, %v1298_v47  ;;  %v3517_v28 = vpop.f32.mrf.mxu0  ;;  %v3587_v23 = vpop.f32.mrf.mxu1  ;;  %13522 = vmatprep.mubr.msk.f32.mxu0 %vm14121_vm0, %v18077_v10  ;;  %13527 = vmatprep.mubr.msk.f32.mxu1 %vm14121_vm0, %v18077_v10  ;;  %v1160_v13 = vrot.slane %v14919_v14, %v14260_v29  ;;  %v1378_v38 = vrot.slane %v1152_v24, %v14292_v37  ;;  %v14952_v47 = vld [vmem:[#allocation2 + $0x30] sm:$0xff] }
 0x124   :  { %v3518_v4 = vadd.f32 %v3517_v28, %v1366_v49  ;;  %v3588_v42 = vadd.f32 %v3587_v23, %v1370_v46  ;;  %13530 = vmatprep.subr.mxu0 %v18077_v10  ;;  %13535 = vmatprep.subr.mxu1 %v18077_v10  ;;  %v14944_v63 = vpop.xlane.xlu1 %455  ;;  %v343_v62 = vmul.f32 %v14948_v61, %v14648_v11  ;;  %v14963_v49 = vpop.xlane.xlu0 %458 }
 0x125   :  { %v13374_v2 = vpop.f32.mrf.mxu0  ;;  %v13379_v0 = vpop.f32.mrf.mxu1  ;;  %13523 = vmatmul.mubr.msk.f32.vlgmr.msra.gmra.mxu0 %vm4851_vm2, %v2258_v59  ;;  %13528 = vmatmul.mubr.msk.f32.vlgmr.msra.gmra.mxu1 %vm4851_vm2, %v2328_v48  ;;  %v342_v18 = vmul.f32 %v14952_v47, %v14648_v11  ;;  %v14957_v33 = vrot.slane %v174_v22, %v14292_v37  ;;  %v1310_v15 = vrot.slane %v1052_v43, %v14292_v37 }
 0x126   :  { %v1314_v55 = vrot.slane %v1054_v50, %v14292_v37  ;;  %13531 = vmatpush3.xpose.msk.msra.mxu0 %vm4851_vm2, %v3518_v4  ;;  %13536 = vmatpush3.xpose.msk.msra.mxu1 %vm4851_vm2, %v3588_v42  ;;  %18082 = vst [vmem:[#allocation23_spill] sm:$0xff] %v14963_v49  ;;  %v127_v30 = vcombine.high %v14556_v44, %v14556_v44  ;;  %v15015_v42 = vld [vmem:[#allocation2 + $0x10] sm:$0xff]  ;;  %v15022_v0 = vld [vmem:[#allocation2 + $0x28] sm:$0xff] }
 0x127   :  { %v2398_v57 = vadd.f32 %v14689_v5, %v1302_v31  ;;  %v2468_v11 = vadd.f32 %v14691_v6, %v1306_v56  ;;  %v3657_v19 = vpop.f32.mrf.mxu0  ;;  %v3727_v20 = vpop.f32.mrf.mxu1  ;;  %13532 = vmatprep.mubr.msk.f32.mxu0 %vm14121_vm0, %v18077_v10  ;;  %13537 = vmatprep.mubr.msk.f32.mxu1 %vm14121_vm0, %v18077_v10  ;;  %v1176_v41 = vrot.slane %v1160_v13, %v14260_v29  ;;  %v646_v5 = vsel %vm384_vm1, %v343_v62, 0.0  ;;  %v14984_v31 = vld [vmem:[#allocation2] sm:$0xff] }
 0x128   :  { %v3658_v46 = vadd.f32 %v3657_v19, %v1374_v52  ;;  %v3728_v17 = vadd.f32 %v3727_v20, %v1378_v38  ;;  %13540 = vmatprep.subr.mxu0 %v18077_v10  ;;  %13545 = vmatprep.subr.mxu1 %v18077_v10  ;;  %v1168_v44 = vcombine.high %v1160_v13, %v1160_v13  ;;  %v643_v6 = vsel %vm384_vm1, %v342_v18, 0.0  ;;  %v14990_v22 = vpop.xlane.xlu1 %461  ;;  %v15000_v48 = vpop.xlane.xlu0 %464  ;;  %v15011_v13 = vld [vmem:[#allocation2 + $0x18] sm:$0xff] }
 0x129   :  { %13533 = vmatmul.mubr.msk.f32.vlgmr.msra.gmra.mxu0 %vm4851_vm2, %v2398_v57  ;;  %13538 = vmatmul.mubr.msk.f32.vlgmr.msra.gmra.mxu1 %vm4851_vm2, %v2468_v11  ;;  %v345_v24 = vmul.f32 %v14980_v40, %v14957_v33  ;;  %v344_v43 = vmul.f32 %v14984_v31, %v14957_v33  ;;  %v13389_v1 = vpop.f32.mrf.mxu1  ;;  %v13384_v34 = vpop.f32.mrf.mxu0  ;;  %18083 = vst [vmem:[#allocation24_spill] sm:$0xff] %v14990_v22  ;;  %18084 = vst [vmem:[#allocation25_spill] sm:$0xff] %v15000_v48 }
 0x12a   :  { %13541 = vmatpush3.xpose.msk.msra.mxu0 %vm4851_vm2, %v3658_v46  ;;  %13546 = vmatpush3.xpose.msk.msra.mxu1 %vm4851_vm2, %v3728_v17  ;;  %v1153_v56 = vcombine.high %v14919_v14, %v14919_v14  ;;  %v2538_v50 = vadd.f32 %v14728_v39, %v1310_v15  ;;  %v2608_v52 = vadd.f32 %v14730_v45, %v1314_v55  ;;  %v15036_v46 = vld [vmem:[#allocation2 + $0x20] sm:$0xff] }
 0x12b   :  { %13542 = vmatprep.mubr.msk.f32.mxu0 %vm14121_vm0, %v18077_v10  ;;  %13547 = vmatprep.mubr.msk.f32.mxu1 %vm14121_vm0, %v18077_v10  ;;  %v1198_v59 = vcombine.high %v1176_v41, %v1176_v41  ;;  %v15003_v28 = vrot.slane %v127_v30, %v14260_v29  ;;  %v1382_v14 = vrot.slane %v1176_v41, %v14292_v37  ;;  %v652_v45 = vsel %vm384_vm1, %v345_v24, 0.0 }
 0x12c   :  { %647 = vadd.xlane.f32.xlu1 %v646_v5  ;;  %644 = vadd.xlane.f32.xlu0 %v643_v6  ;;  %v1190_v39 = vrot.slane %v1168_v44, %v14260_v29  ;;  %v649_v23 = vsel %vm384_vm1, %v344_v43, 0.0  ;;  %v347_v4 = vmul.f32 %v15011_v13, %v14957_v33  ;;  %v346_v38 = vmul.f32 %v15015_v42, %v14957_v33  ;;  %v15031_v30 = vpop.xlane.xlu1 %467  ;;  %v15044_v6 = vpop.xlane.xlu0 %470 }
 0x12d   :  { %13543 = vmatmul.mubr.msk.f32.vlgmr.msra.gmra.mxu0 %vm4851_vm2, %v2538_v50  ;;  %13548 = vmatmul.mubr.msk.f32.vlgmr.msra.gmra.mxu1 %vm4851_vm2, %v2608_v52  ;;  %v1167_v2 = vrot.slane %v1153_v56, %v14260_v29  ;;  %v349_v62 = vmul.f32 %v15022_v0, %v14957_v33  ;;  %v1390_v15 = vrot.slane %v1198_v59, %v14292_v37 }
 0x12e   :  { %13550 = vmatprep.subr.mxu0 %v18077_v10  ;;  %13555 = vmatprep.subr.mxu1 %v18077_v10  ;;  %v1200_v55 = vcombine.high %v1190_v39, %v1190_v39  ;;  %18085 = vst [vmem:[#allocation26_spill] sm:$0xff] %v15031_v30  ;;  %v1386_v11 = vrot.slane %v1190_v39, %v14292_v37  ;;  %v658_v20 = vsel %vm384_vm1, %v347_v4, 0.0  ;;  %v655_v41 = vsel %vm384_vm1, %v346_v38, 0.0 }
 0x12f   :  { %v3797_v18 = vpop.f32.mrf.mxu0  ;;  %13552 = vmatprep.mubr.msk.f32.mxu0 %vm14121_vm0, %v18077_v10  ;;  %13557 = vmatprep.mubr.msk.f32.mxu1 %vm14121_vm0, %v18077_v10  ;;  %v1169_v19 = vcombine.high %v1167_v2, %v1167_v2  ;;  %v348_v17 = vmul.f32 %v15036_v46, %v14957_v33  ;;  %v15042_v44 = vrot.slane %v15003_v28, %v14260_v29  ;;  %v3867_v1 = vpop.f32.mrf.mxu1 }
 0x130   :  { %653 = vadd.xlane.f32.xlu1 %v652_v45  ;;  %650 = vadd.xlane.f32.xlu0 %v649_v23  ;;  %v3798_v57 = vadd.f32 %v3797_v18, %v1382_v14  ;;  %18086 = vst [vmem:[#allocation27_spill] sm:$0xff] %v15044_v6  ;;  %v1183_v24 = vrot.slane %v1167_v2, %v14260_v29  ;;  %v664_v14 = vsel %vm384_vm1, %v349_v62, 0.0  ;;  %v15060_v2 = vpop.xlane.xlu1 %473  ;;  %v15064_v62 = vpop.xlane.xlu0 %476 }
 0x131   :  { %v13394_v5 = vpop.f32.mrf.mxu0  ;;  %v351_v43 = vmul.f32 %v14948_v61, %v14957_v33  ;;  %v1394_v56 = vrot.slane %v1200_v55, %v14292_v37  ;;  %v3868_v50 = vadd.f32 %v3867_v1, %v1386_v11  ;;  %v1197_v59 = vrot.slane %v1169_v19, %v14260_v29  ;;  %v13399_v4 = vpop.f32.mrf.mxu1  ;;  %18088 = vst [vmem:[#allocation29_spill] sm:$0xff] %v15060_v2 }
 0x132   :  { %13551 = vmatpush3.msra.mxu0 %v3798_v57  ;;  %v661_v39 = vsel %vm384_vm1, %v348_v17, 0.0  ;;  %v350_v45 = vmul.f32 %v14952_v47, %v14957_v33  ;;  %v227_v23 = vrot.slane %v15042_v44, %v14292_v37  ;;  %v1398_v18 = vrot.slane %v1183_v24, %v14292_v37  ;;  %18089 = vst [vmem:[#allocation30_spill] sm:$0xff] %v15064_v62 }
 0x133   :  { %v3937_v34 = vpop.f32.mrf.mxu0  ;;  %13560 = vmatprep.subr.mxu0 %v18077_v10  ;;  %13556 = vmatpush3.msra.mxu1 %v3868_v50  ;;  %v1402_v33 = vrot.slane %v1197_v59, %v14292_v37  ;;  %v1199_v57 = vcombine.high %v1183_v24, %v1183_v24  ;;  %v670_v11 = vsel %vm384_vm1, %v351_v43, 0.0  ;;  %v143_v24 = vcombine.high %v15003_v28, %v15003_v28  ;;  %v950_v28 = vld [vmem:[%s17915_s4 + $0x28] sm:$0xff] }
 0x134   :  { %659 = vadd.xlane.f32.xlu1 %v658_v20  ;;  %656 = vadd.xlane.f32.xlu0 %v655_v41  ;;  %v15051_v52 = vadd.f32 %v3937_v34, %v1390_v15  ;;  %v667_v19 = vsel %vm384_vm1, %v350_v45, 0.0  ;;  %v353_v20 = vmul.f32 %v14980_v40, %v227_v23  ;;  %v352_v41 = vmul.f32 %v14984_v31, %v227_v23 }
 0x135   :  { %v13404_v38 = vpop.f32.mrf.mxu0  ;;  %v4007_v15 = vpop.f32.mrf.mxu1  ;;  %13565 = vmatprep.subr.mxu1 %v18077_v10  ;;  %v1201_v34 = vcombine.high %v1197_v59, %v1197_v59  ;;  %v354_v59 = vmul.f32 %v15015_v42, %v227_v23  ;;  %v173_v10 = vcombine.high %v15042_v44, %v15042_v44 }
 0x136   :  { %18087 = vst [vmem:[#allocation28_spill] sm:$0xff] %v15051_v52  ;;  %v15066_v55 = vadd.f32 %v4007_v15, %v1394_v56  ;;  %v15075_v56 = vpop.xlane.xlu1 %479  ;;  %v676_v45 = vsel %vm384_vm1, %v353_v20, 0.0  ;;  %v673_v4 = vsel %vm384_vm1, %v352_v41, 0.0  ;;  %v355_v38 = vmul.f32 %v15011_v13, %v227_v23  ;;  %v15086_v15 = vpop.xlane.xlu0 %482 }
 0x137   :  { %v13409_v17 = vpop.f32.mrf.mxu1  ;;  %v4077_v5 = vpop.f32.mrf.mxu0  ;;  %18092 = vst [vmem:[#allocation33_spill] sm:$0xff] %v15075_v56  ;;  %18094 = vst [vmem:[#allocation35_spill] sm:$0xff] %v15086_v15  ;;  %v1202_v20 = vcombine.high %v950_v28, %v950_v28 }
 0x138   :  { %665 = vadd.xlane.f32.xlu1 %v664_v14  ;;  %662 = vadd.xlane.f32.xlu0 %v661_v39  ;;  %18090 = vst [vmem:[#allocation31_spill] sm:$0xff] %v15066_v55  ;;  %v15073_v1 = vadd.f32 %v4077_v5, %v1398_v18  ;;  %v1406_v39 = vrot.slane %v1199_v57, %v14292_v37  ;;  %v682_v41 = vsel %vm384_vm1, %v355_v38, 0.0  ;;  %v679_v17 = vsel %vm384_vm1, %v354_v59, 0.0 }
 0x139   :  { %v13414_v14 = vpop.f32.mrf.mxu0  ;;  %v357_v5 = vmul.f32 %v15022_v0, %v227_v23  ;;  %v1216_v59 = vrot.slane %v1202_v20, %v14260_v29 }
 0x13a   :  { %18091 = vst [vmem:[#allocation32_spill] sm:$0xff] %v15073_v1  ;;  %v15108_v38 = vpop.xlane.xlu0 %488 }
 0x13b   :  { %v4147_v50 = vpop.f32.mrf.mxu1  ;;  %18099 = vst [vmem:[#allocation40_spill] sm:$0xff] %v15108_v38 }
 0x13c   :  { %671 = vadd.xlane.f32.xlu1 %v670_v11  ;;  %668 = vadd.xlane.f32.xlu0 %v667_v19  ;;  %v15079_v43 = vadd.f32 %v4147_v50, %v1402_v33  ;;  %v1410_v11 = vrot.slane %v1201_v34, %v14292_v37  ;;  %v15093_v33 = vrot.slane %v143_v24, %v14260_v29 }
 0x13d   :  { %v13419_v18 = vpop.f32.mrf.mxu1  ;;  %v4217_v19 = vpop.f32.mrf.mxu0  ;;  %v356_v34 = vmul.f32 %v15036_v46, %v227_v23 }
 0x13e   :  { %18093 = vst [vmem:[#allocation34_spill] sm:$0xff] %v15079_v43  ;;  %v15095_v57 = vadd.f32 %v4217_v19, %v1406_v39  ;;  %v15101_v18 = vpop.xlane.xlu1 %485  ;;  %v359_v39 = vmul.f32 %v14948_v61, %v227_v23  ;;  %v688_v19 = vsel %vm384_vm1, %v357_v5, 0.0 }
 0x13f   :  { %v4287_v50 = vpop.f32.mrf.mxu1  ;;  %v13424_v14 = vpop.f32.mrf.mxu0  ;;  %18096 = vst [vmem:[#allocation37_spill] sm:$0xff] %v15101_v18  ;;  %v685_v28 = vsel %vm384_vm1, %v356_v34, 0.0 }
 0x140   :  { %677 = vadd.xlane.f32.xlu1 %v676_v45  ;;  %674 = vadd.xlane.f32.xlu0 %v673_v4  ;;  %18095 = vst [vmem:[#allocation36_spill] sm:$0xff] %v15095_v57  ;;  %v15103_v45 = vadd.f32 %v4287_v50, %v1410_v11  ;;  %v358_v14 = vmul.f32 %v14952_v47, %v227_v23  ;;  %v694_v20 = vsel %vm384_vm1, %v359_v39, 0.0 }
 0x141   :  { %v13429_v4 = vpop.f32.mrf.mxu1  ;;  %v231_v11 = vrot.slane %v15093_v33, %v14292_v37 }
 0x142   :  { %18097 = vst [vmem:[#allocation38_spill] sm:$0xff] %v15103_v45  ;;  %v1218_v4 = vcombine.high %v1216_v59, %v1216_v59  ;;  %v691_v5 = vsel %vm384_vm1, %v358_v14, 0.0 }
 0x143   :  { %v15105_v24 = vpop.f32.mrf.mxu0  ;;  %v361_v34 = vmul.f32 %v14980_v40, %v231_v11  ;;  %v360_v23 = vmul.f32 %v14984_v31, %v231_v11  ;;  %v367_v44 = vmul.f32 %v14948_v61, %v231_v11 }
 0x144   :  { %18098 = vst [vmem:[#allocation39_spill] sm:$0xff] %v15105_v24  ;;  %683 = vadd.xlane.f32.xlu1 %v682_v41  ;;  %680 = vadd.xlane.f32.xlu0 %v679_v17  ;;  %v15118_v41 = vpop.xlane.xlu1 %491  ;;  %v1232_v17 = vrot.slane %v1216_v59, %v14260_v29 }
 0x145   :  { %v13434_v50 = vpop.f32.mrf.mxu0  ;;  %v15116_v24 = vpop.f32.mrf.mxu1  ;;  %18101 = vst [vmem:[#allocation42_spill] sm:$0xff] %v15118_v41  ;;  %v700_v14 = vsel %vm384_vm1, %v361_v34, 0.0  ;;  %v697_v43 = vsel %vm384_vm1, %v360_v23, 0.0 }
 0x146   :  { %18100 = vst [vmem:[#allocation41_spill] sm:$0xff] %v15116_v24  ;;  %v15127_v50 = vpop.xlane.xlu0 %494  ;;  %v1430_v39 = vrot.slane %v1232_v17, %v14292_v37  ;;  %v1248_v59 = vcombine.high %v1232_v17, %v1232_v17 }
 0x147   :  { %v13439_v45 = vpop.f32.mrf.mxu1  ;;  %v15125_v57 = vpop.f32.mrf.mxu0  ;;  %18103 = vst [vmem:[#allocation44_spill] sm:$0xff] %v15127_v50 }
 0x148   :  { %689 = vadd.xlane.f32.xlu1 %v688_v19  ;;  %686 = vadd.xlane.f32.xlu0 %v685_v28  ;;  %18102 = vst [vmem:[#allocation43_spill] sm:$0xff] %v15125_v57  ;;  %v1246_v19 = vrot.slane %v1218_v4, %v14260_v29  ;;  %v363_v45 = vmul.f32 %v15011_v13, %v231_v11  ;;  %v15137_v55 = vpop.xlane.xlu1 %497 }
 0x149   :  { %v13444_v24 = vpop.f32.mrf.mxu0  ;;  %v362_v57 = vmul.f32 %v15015_v42, %v231_v11  ;;  %18105 = vst [vmem:[#allocation46_spill] sm:$0xff] %v15137_v55  ;;  %v1438_v34 = vrot.slane %v1248_v59, %v14292_v37  ;;  %v364_v29 = vmul.f32 %v15036_v46, %v231_v11 }
 0x14a   :  { %v1434_v4 = vrot.slane %v1246_v19, %v14292_v37  ;;  %v365_v24 = vmul.f32 %v15022_v0, %v231_v11  ;;  %v1250_v23 = vcombine.high %v1246_v19, %v1246_v19 }
 0x14b   :  { %v15130_v28 = vpop.f32.mrf.mxu1 }
 0x14c   :  { %18104 = vst [vmem:[#allocation45_spill] sm:$0xff] %v15130_v28  ;;  %695 = vadd.xlane.f32.xlu1 %v694_v20  ;;  %692 = vadd.xlane.f32.xlu0 %v691_v5  ;;  %v15141_v5 = vpop.xlane.xlu0 %500  ;;  %v706_v28 = vsel %vm384_vm1, %v363_v45, 0.0  ;;  %v712_v19 = vsel %vm384_vm1, %v365_v24, 0.0  ;;  %v709_v45 = vsel %vm384_vm1, %v364_v29, 0.0  ;;  %v718_v24 = vsel %vm384_vm1, %v367_v44, 0.0 }
 0x14d   :  { %v13449_v1 = vpop.f32.mrf.mxu1  ;;  %v4637_v20 = vpop.f32.mrf.mxu0  ;;  %18106 = vst [vmem:[#allocation47_spill] sm:$0xff] %v15141_v5 }
 0x14e   :  { %v15143_v17 = vadd.f32 %v4637_v20, %v1430_v39  ;;  %v703_v1 = vsel %vm384_vm1, %v362_v57, 0.0  ;;  %v15153_v39 = vpop.xlane.xlu1 %503  ;;  %v1442_v57 = vrot.slane %v1250_v23, %v14292_v37 }
 0x14f   :  { %v4707_v52 = vpop.f32.mrf.mxu1  ;;  %v13454_v50 = vpop.f32.mrf.mxu0  ;;  %18109 = vst [vmem:[#allocation50_spill] sm:$0xff] %v15153_v39 }
 0x150   :  { %701 = vadd.xlane.f32.xlu1 %v700_v14  ;;  %698 = vadd.xlane.f32.xlu0 %v697_v43  ;;  %18107 = vst [vmem:[#allocation48_spill] sm:$0xff] %v15143_v17  ;;  %v15151_v14 = vadd.f32 %v4707_v52, %v1434_v4  ;;  %v366_v50 = vmul.f32 %v14952_v47, %v231_v11  ;;  %v15163_v20 = vpop.xlane.xlu0 %506 }
 0x151   :  { %v13459_v43 = vpop.f32.mrf.mxu1  ;;  %v235_v52 = vrot.slane %v173_v10, %v14292_v37  ;;  %18111 = vst [vmem:[#allocation52_spill] sm:$0xff] %v15163_v20 }
 0x152   :  { %18108 = vst [vmem:[#allocation49_spill] sm:$0xff] %v15151_v14  ;;  %v15171_v11 = vpop.xlane.xlu1 %509 }
 0x153   :  { %v4777_v5 = vpop.f32.mrf.mxu0  ;;  %v369_v29 = vmul.f32 %v14980_v40, %v235_v52  ;;  %18113 = vst [vmem:[#allocation54_spill] sm:$0xff] %v15171_v11  ;;  %v15472_v11 = vsub.s32 7, %v14249_v26 }
 0x154   :  { %707 = vadd.xlane.f32.xlu1 %v706_v28  ;;  %704 = vadd.xlane.f32.xlu0 %v703_v1  ;;  %v15156_v59 = vadd.f32 %v4777_v5, %v1438_v34  ;;  %v715_v5 = vsel %vm384_vm1, %v366_v50, 0.0  ;;  %v368_v34 = vmul.f32 %v14984_v31, %v235_v52  ;;  %v15173_v10 = vpop.xlane.xlu0 %512  ;;  %v373_v50 = vmul.f32 %v15022_v0, %v235_v52 }
 0x155   :  { %v13464_v4 = vpop.f32.mrf.mxu0  ;;  %v4847_v28 = vpop.f32.mrf.mxu1  ;;  %18114 = vst [vmem:[#allocation55_spill] sm:$0xff] %v15173_v10  ;;  %v724_v43 = vsel %vm384_vm1, %v369_v29, 0.0  ;;  %18206 = vst [vmem:[#allocation147_spill] sm:$0xff] %v15472_v11 }
 0x156   :  { %18110 = vst [vmem:[#allocation51_spill] sm:$0xff] %v15156_v59  ;;  %v15165_v1 = vadd.f32 %v4847_v28, %v1442_v57  ;;  %v371_v57 = vmul.f32 %v15011_v13, %v235_v52  ;;  %v15179_v44 = vpop.xlane.xlu1 %515 }
 0x157   :  { %v13469_v23 = vpop.f32.mrf.mxu1  ;;  %18115 = vst [vmem:[#allocation56_spill] sm:$0xff] %v15179_v44 }
 0x158   :  { %713 = vadd.xlane.f32.xlu1 %v712_v19  ;;  %710 = vadd.xlane.f32.xlu0 %v709_v45  ;;  %18112 = vst [vmem:[#allocation53_spill] sm:$0xff] %v15165_v1  ;;  %v721_v19 = vsel %vm384_vm1, %v368_v34, 0.0  ;;  %v370_v45 = vmul.f32 %v15015_v42, %v235_v52  ;;  %v730_v4 = vsel %vm384_vm1, %v371_v57, 0.0  ;;  %v15187_v29 = vpop.xlane.xlu0 %518  ;;  %v736_v34 = vsel %vm384_vm1, %v373_v50, 0.0 }
 0x159   :  { %18116 = vst [vmem:[#allocation57_spill] sm:$0xff] %v15187_v29 }
 0x15a   :  { %v727_v28 = vsel %vm384_vm1, %v370_v45, 0.0  ;;  %v15194_v45 = vpop.xlane.xlu1 %521 }
 0x15b   :  { %18117 = vst [vmem:[#allocation58_spill] sm:$0xff] %v15194_v45 }
 0x15c   :  { %719 = vadd.xlane.f32.xlu1 %v718_v24  ;;  %716 = vadd.xlane.f32.xlu0 %v715_v5  ;;  %v372_v24 = vmul.f32 %v15036_v46, %v235_v52  ;;  %v175_v5 = vcombine.high %v15093_v33, %v15093_v33  ;;  %v15196_v1 = vpop.xlane.xlu0 %524 }
 0x15d   :  { %18118 = vst [vmem:[#allocation59_spill] sm:$0xff] %v15196_v1 }
 0x15e   :  { %v733_v23 = vsel %vm384_vm1, %v372_v24, 0.0  ;;  %v239_v57 = vrot.slane %v175_v5, %v14292_v37  ;;  %v15202_v24 = vpop.xlane.xlu1 %527 }
 0x15f   :  { %18119 = vst [vmem:[#allocation60_spill] sm:$0xff] %v15202_v24 }
 0x160   :  { %725 = vadd.xlane.f32.xlu1 %v724_v43  ;;  %722 = vadd.xlane.f32.xlu0 %v721_v19  ;;  %v375_v43 = vmul.f32 %v14948_v61, %v235_v52  ;;  %v374_v19 = vmul.f32 %v14952_v47, %v235_v52  ;;  %v377_v50 = vmul.f32 %v14980_v40, %v239_v57 }
 0x161   :  { %v379_v59 = vmul.f32 %v15011_v13, %v239_v57 }
 0x162   :  { %v742_v33 = vsel %vm384_vm1, %v375_v43, 0.0  ;;  %v748_v52 = vsel %vm384_vm1, %v377_v50, 0.0  ;;  %v381_v43 = vmul.f32 %v15022_v0, %v239_v57  ;;  %v383_v50 = vmul.f32 %v14948_v61, %v239_v57 }
 0x163   :  { %v754_v40 = vsel %vm384_vm1, %v379_v59, 0.0  ;;  %v382_v59 = vmul.f32 %v14952_v47, %v239_v57 }
 0x164   :  { %731 = vadd.xlane.f32.xlu1 %v730_v4  ;;  %728 = vadd.xlane.f32.xlu0 %v727_v28  ;;  %v739_v4 = vsel %vm384_vm1, %v374_v19, 0.0  ;;  %v376_v28 = vmul.f32 %v14984_v31, %v239_v57  ;;  %v380_v19 = vmul.f32 %v15036_v46, %v239_v57  ;;  %v760_v13 = vsel %vm384_vm1, %v381_v43, 0.0 }
 0x165   :  { %v766_v0 = vsel %vm384_vm1, %v383_v50, 0.0  ;;  %v763_v46 = vsel %vm384_vm1, %v382_v59, 0.0 }
 0x166   :  { %v745_v5 = vsel %vm384_vm1, %v376_v28, 0.0 }
 0x168   :  { %737 = vadd.xlane.f32.xlu1 %v736_v34  ;;  %734 = vadd.xlane.f32.xlu0 %v733_v23  ;;  %v378_v34 = vmul.f32 %v15015_v42, %v239_v57  ;;  %v15208_v23 = vpop.xlane.xlu0 %530  ;;  %v757_v42 = vsel %vm384_vm1, %v380_v19, 0.0 }
 0x169   :  { %18120 = vst [vmem:[#allocation61_spill] sm:$0xff] %v15208_v23 }
 0x16a   :  { %v751_v31 = vsel %vm384_vm1, %v378_v34, 0.0 }
 0x16c   :  { %743 = vadd.xlane.f32.xlu1 %v742_v33  ;;  %740 = vadd.xlane.f32.xlu0 %v739_v4  ;;  %v15214_v33 = vpop.xlane.xlu1 %533  ;;  %v15216_v4 = vpop.xlane.xlu0 %536 }
 0x16d   :  { %18121 = vst [vmem:[#allocation62_spill] sm:$0xff] %v15214_v33  ;;  %18122 = vst [vmem:[#allocation63_spill] sm:$0xff] %v15216_v4 }
 0x170   :  { %749 = vadd.xlane.f32.xlu1 %v748_v52  ;;  %746 = vadd.xlane.f32.xlu0 %v745_v5  ;;  %v15222_v28 = vpop.xlane.xlu1 %539  ;;  %v15226_v52 = vpop.xlane.xlu0 %542 }
 0x171   :  { %18123 = vst [vmem:[#allocation64_spill] sm:$0xff] %v15222_v28  ;;  %18124 = vst [vmem:[#allocation65_spill] sm:$0xff] %v15226_v52 }
 0x174   :  { %755 = vadd.xlane.f32.xlu1 %v754_v40  ;;  %752 = vadd.xlane.f32.xlu0 %v751_v31  ;;  %v15228_v5 = vpop.xlane.xlu1 %545  ;;  %v15230_v34 = vpop.xlane.xlu0 %548 }
 0x175   :  { %18125 = vst [vmem:[#allocation66_spill] sm:$0xff] %v15228_v5  ;;  %18126 = vst [vmem:[#allocation67_spill] sm:$0xff] %v15230_v34 }
 0x178   :  { %761 = vadd.xlane.f32.xlu1 %v760_v13  ;;  %758 = vadd.xlane.f32.xlu0 %v757_v42  ;;  %v15232_v40 = vpop.xlane.xlu1 %551  ;;  %v15234_v61 = vpop.xlane.xlu0 %554 }
 0x179   :  { %18127 = vst [vmem:[#allocation68_spill] sm:$0xff] %v15232_v40  ;;  %18128 = vst [vmem:[#allocation69_spill] sm:$0xff] %v15234_v61 }
 0x17c   :  { %767 = vadd.xlane.f32.xlu1 %v766_v0  ;;  %764 = vadd.xlane.f32.xlu0 %v763_v46  ;;  %v15236_v47 = vpop.xlane.xlu1 %557  ;;  %v15238_v57 = vpop.xlane.xlu0 %560 }
 0x17d   :  { %18129 = vst [vmem:[#allocation70_spill] sm:$0xff] %v15236_v47  ;;  %18130 = vst [vmem:[#allocation71_spill] sm:$0xff] %v15238_v57 }
 0x180   :  { %v15240_v31 = vpop.xlane.xlu1 %563  ;;  %v15242_v43 = vpop.xlane.xlu0 %566 }
 0x181   :  { %18131 = vst [vmem:[#allocation72_spill] sm:$0xff] %v15240_v31  ;;  %18132 = vst [vmem:[#allocation73_spill] sm:$0xff] %v15242_v43 }
 0x184   :  { %v15244_v19 = vpop.xlane.xlu1 %569  ;;  %v15246_v13 = vpop.xlane.xlu0 %572 }
 0x185   :  { %18133 = vst [vmem:[#allocation74_spill] sm:$0xff] %v15244_v19  ;;  %18134 = vst [vmem:[#allocation75_spill] sm:$0xff] %v15246_v13 }
 0x188   :  { %v15248_v42 = vpop.xlane.xlu1 %575  ;;  %v15250_v50 = vpop.xlane.xlu0 %578 }
 0x189   :  { %18135 = vst [vmem:[#allocation76_spill] sm:$0xff] %v15248_v42  ;;  %18136 = vst [vmem:[#allocation77_spill] sm:$0xff] %v15250_v50 }
 0x18c   :  { %v15252_v59 = vpop.xlane.xlu1 %581  ;;  %v15254_v0 = vpop.xlane.xlu0 %584 }
 0x18d   :  { %18137 = vst [vmem:[#allocation78_spill] sm:$0xff] %v15252_v59  ;;  %18138 = vst [vmem:[#allocation79_spill] sm:$0xff] %v15254_v0 }
 0x190   :  { %v15256_v46 = vpop.xlane.xlu1 %587  ;;  %v15258_v14 = vpop.xlane.xlu0 %590 }
 0x191   :  { %18139 = vst [vmem:[#allocation80_spill] sm:$0xff] %v15256_v46  ;;  %18140 = vst [vmem:[#allocation81_spill] sm:$0xff] %v15258_v14 }
 0x194   :  { %v15260_v17 = vpop.xlane.xlu1 %593  ;;  %v15262_v57 = vpop.xlane.xlu0 %596 }
 0x195   :  { %18141 = vst [vmem:[#allocation82_spill] sm:$0xff] %v15260_v17  ;;  %18142 = vst [vmem:[#allocation83_spill] sm:$0xff] %v15262_v57 }
 0x198   :  { %v15264_v43 = vpop.xlane.xlu1 %599  ;;  %v15266_v19 = vpop.xlane.xlu0 %602 }
 0x199   :  { %18143 = vst [vmem:[#allocation84_spill] sm:$0xff] %v15264_v43  ;;  %18144 = vst [vmem:[#allocation85_spill] sm:$0xff] %v15266_v19 }
 0x19c   :  { %v15268_v13 = vpop.xlane.xlu1 %605  ;;  %v15270_v42 = vpop.xlane.xlu0 %608 }
 0x19d   :  { %18145 = vst [vmem:[#allocation86_spill] sm:$0xff] %v15268_v13  ;;  %18146 = vst [vmem:[#allocation87_spill] sm:$0xff] %v15270_v42 }
 0x1a0   :  { %v15272_v50 = vpop.xlane.xlu1 %611  ;;  %v15274_v59 = vpop.xlane.xlu0 %614 }
 0x1a1   :  { %18147 = vst [vmem:[#allocation88_spill] sm:$0xff] %v15272_v50  ;;  %18148 = vst [vmem:[#allocation89_spill] sm:$0xff] %v15274_v59 }
 0x1a4   :  { %v15276_v0 = vpop.xlane.xlu1 %617  ;;  %v15278_v46 = vpop.xlane.xlu0 %620 }
 0x1a5   :  { %18149 = vst [vmem:[#allocation90_spill] sm:$0xff] %v15276_v0  ;;  %18150 = vst [vmem:[#allocation91_spill] sm:$0xff] %v15278_v46 }
 0x1a8   :  { %v15280_v14 = vpop.xlane.xlu1 %623  ;;  %v15282_v17 = vpop.xlane.xlu0 %626 }
 0x1a9   :  { %18151 = vst [vmem:[#allocation92_spill] sm:$0xff] %v15280_v14  ;;  %18152 = vst [vmem:[#allocation93_spill] sm:$0xff] %v15282_v17 }
 0x1ac   :  { %v15288_v13 = vpop.xlane.xlu1 %629  ;;  %v15294_v0 = vpop.xlane.xlu0 %632 }
 0x1ad   :  { %18153 = vst [vmem:[#allocation94_spill] sm:$0xff] %v15288_v13  ;;  %18154 = vst [vmem:[#allocation95_spill] sm:$0xff] %v15294_v0 }
 0x1b0   :  { %v15304_v34 = vpop.xlane.xlu1 %635 }
 0x1b1   :  { %18155 = vst [vmem:[#allocation96_spill] sm:$0xff] %v15304_v34 }
 0x1d1   :  { %v4924_v57 = vpop.f32.mrf.mxu0  ;;  %v5000_v43 = vpop.f32.mrf.mxu1 }
 0x1d2   :  { %v15284_v61 = vmul.f32 0.35355338, %v4924_v57  ;;  %v15286_v19 = vmul.f32 0.35355338, %v5000_v43 }
 0x1d3   :  { %v13474_v42 = vpop.f32.mrf.mxu0  ;;  %v13479_v50 = vpop.f32.mrf.mxu1 }
 0x1d4   :  { %v6087_v59 = vsel %vm4851_vm2, %v15286_v19, -inf  ;;  %v6084_v46 = vsel %vm4851_vm2, %v15284_v61, -inf }
 0x1d5   :  { %6088 = vmax.xlane.f32.xlu1 %v6087_v59  ;;  %v5152_v17 = vpop.f32.mrf.mxu1  ;;  %6085 = vmax.xlane.f32.xlu0 %v6084_v46  ;;  %v5076_v14 = vpop.f32.mrf.mxu0 }
 0x1d6   :  { %v15296_v57 = vmul.f32 0.35355338, %v5152_v17  ;;  %v15298_v43 = vmul.f32 0.35355338, %v5076_v14  ;;  %v15310_v14 = vpop.xlane.xlu0 %638 }
 0x1d7   :  { %v13484_v31 = vpop.f32.mrf.mxu0  ;;  %v13489_v13 = vpop.f32.mrf.mxu1  ;;  %18156 = vst [vmem:[#allocation97_spill] sm:$0xff] %v15310_v14 }
 0x1d8   :  { %v6093_v42 = vsel %vm4851_vm2, %v15296_v57, -inf  ;;  %v6090_v50 = vsel %vm4851_vm2, %v15298_v43, -inf }
 0x1d9   :  { %6094 = vmax.xlane.f32.xlu1 %v6093_v42  ;;  %v5304_v0 = vpop.f32.mrf.mxu1  ;;  %6091 = vmax.xlane.f32.xlu0 %v6090_v50  ;;  %v5228_v59 = vpop.f32.mrf.mxu0 }
 0x1da   :  { %v15306_v46 = vmul.f32 0.35355338, %v5304_v0  ;;  %v15308_v17 = vmul.f32 0.35355338, %v5228_v59  ;;  %v15320_v59 = vpop.xlane.xlu1 %641  ;;  %v15326_v4 = vpop.xlane.xlu0 %644 }
 0x1db   :  { %v13494_v31 = vpop.f32.mrf.mxu0  ;;  %v13499_v13 = vpop.f32.mrf.mxu1  ;;  %18157 = vst [vmem:[#allocation98_spill] sm:$0xff] %v15320_v59  ;;  %18158 = vst [vmem:[#allocation99_spill] sm:$0xff] %v15326_v4 }
 0x1dc   :  { %v6099_v47 = vsel %vm4851_vm2, %v15306_v46, -inf  ;;  %v6096_v52 = vsel %vm4851_vm2, %v15308_v17, -inf }
 0x1dd   :  { %6100 = vmax.xlane.f32.xlu1 %v6099_v47  ;;  %v5456_v34 = vpop.f32.mrf.mxu1  ;;  %6097 = vmax.xlane.f32.xlu0 %v6096_v52  ;;  %v5380_v42 = vpop.f32.mrf.mxu0 }
 0x1de   :  { %v15316_v50 = vmul.f32 0.35355338, %v5456_v34  ;;  %v15318_v0 = vmul.f32 0.35355338, %v5380_v42  ;;  %v15336_v23 = vpop.xlane.xlu1 %647 }
 0x1df   :  { %v13504_v40 = vpop.f32.mrf.mxu0  ;;  %v13509_v14 = vpop.f32.mrf.mxu1  ;;  %18159 = vst [vmem:[#allocation100_spill] sm:$0xff] %v15336_v23 }
 0x1e0   :  { %v6105_v31 = vsel %vm4851_vm2, %v15316_v50, -inf  ;;  %v6102_v13 = vsel %vm4851_vm2, %v15318_v0, -inf }
 0x1e1   :  { %6106 = vmax.xlane.f32.xlu1 %v6105_v31  ;;  %v5608_v47 = vpop.f32.mrf.mxu1  ;;  %6103 = vmax.xlane.f32.xlu0 %v6102_v13  ;;  %v5532_v52 = vpop.f32.mrf.mxu0 }
 0x1e2   :  { %v15328_v34 = vmul.f32 0.35355338, %v5608_v47  ;;  %v15330_v42 = vmul.f32 0.35355338, %v5532_v52  ;;  %v15342_v52 = vpop.xlane.xlu0 %650 }
 0x1e3   :  { %v13514_v5 = vpop.f32.mrf.mxu0  ;;  %v13519_v59 = vpop.f32.mrf.mxu1  ;;  %18160 = vst [vmem:[#allocation101_spill] sm:$0xff] %v15342_v52 }
 0x1e4   :  { %v6111_v40 = vsel %vm4851_vm2, %v15328_v34, -inf  ;;  %v6108_v14 = vsel %vm4851_vm2, %v15330_v42, -inf }
 0x1e5   :  { %6112 = vmax.xlane.f32.xlu1 %v6111_v40  ;;  %v5760_v4 = vpop.f32.mrf.mxu1  ;;  %6109 = vmax.xlane.f32.xlu0 %v6108_v14  ;;  %v5684_v31 = vpop.f32.mrf.mxu0 }
 0x1e6   :  { %v15338_v13 = vmul.f32 0.35355338, %v5760_v4  ;;  %v15340_v47 = vmul.f32 0.35355338, %v5684_v31  ;;  %v15352_v31 = vpop.xlane.xlu1 %653  ;;  %v15358_v29 = vpop.xlane.xlu0 %656 }
 0x1e7   :  { %v13524_v5 = vpop.f32.mrf.mxu0  ;;  %v13529_v59 = vpop.f32.mrf.mxu1  ;;  %18161 = vst [vmem:[#allocation102_spill] sm:$0xff] %v15352_v31  ;;  %18162 = vst [vmem:[#allocation103_spill] sm:$0xff] %v15358_v29 }
 0x1e8   :  { %v6117_v28 = vsel %vm4851_vm2, %v15338_v13, -inf  ;;  %v6114_v1 = vsel %vm4851_vm2, %v15340_v47, -inf }
 0x1e9   :  { %6118 = vmax.xlane.f32.xlu1 %v6117_v28  ;;  %v5912_v23 = vpop.f32.mrf.mxu1  ;;  %6115 = vmax.xlane.f32.xlu0 %v6114_v1  ;;  %v5836_v40 = vpop.f32.mrf.mxu0 }
 0x1ea   :  { %v15348_v14 = vmul.f32 0.35355338, %v5912_v23  ;;  %v15350_v4 = vmul.f32 0.35355338, %v5836_v40  ;;  %v15368_v10 = vpop.xlane.xlu1 %659 }
 0x1eb   :  { %v13534_v33 = vpop.f32.mrf.mxu0  ;;  %v13539_v52 = vpop.f32.mrf.mxu1  ;;  %18163 = vst [vmem:[#allocation104_spill] sm:$0xff] %v15368_v10 }
 0x1ec   :  { %v6123_v5 = vsel %vm4851_vm2, %v15348_v14, -inf  ;;  %v6120_v59 = vsel %vm4851_vm2, %v15350_v4, -inf }
 0x1ed   :  { %6124 = vmax.xlane.f32.xlu1 %v6123_v5  ;;  %v6064_v28 = vpop.f32.mrf.mxu1  ;;  %6121 = vmax.xlane.f32.xlu0 %v6120_v59  ;;  %v5988_v1 = vpop.f32.mrf.mxu0 }
 0x1ee   :  { %v15360_v23 = vmul.f32 0.35355338, %v6064_v28  ;;  %v15362_v40 = vmul.f32 0.35355338, %v5988_v1  ;;  %v15370_v5 = vpop.xlane.xlu0 %662  ;;  %v15372_v59 = vpop.xlane.xlu1 %665 }
 0x1ef   :  { %v13544_v24 = vpop.f32.mrf.mxu0  ;;  %v13549_v31 = vpop.f32.mrf.mxu1  ;;  %18164 = vst [vmem:[#allocation105_spill] sm:$0xff] %v15370_v5  ;;  %18165 = vst [vmem:[#allocation106_spill] sm:$0xff] %v15372_v59 }
 0x1f0   :  { %v6129_v33 = vsel %vm4851_vm2, %v15360_v23, -inf  ;;  %v6126_v52 = vsel %vm4851_vm2, %v15362_v40, -inf }
 0x1f1   :  { %6130 = vmax.xlane.f32.xlu1 %v6129_v33  ;;  %6127 = vmax.xlane.f32.xlu0 %v6126_v52 }
 0x1f2   :  { %v15374_v28 = vpop.xlane.xlu0 %668  ;;  %v15376_v1 = vpop.xlane.xlu1 %671 }
 0x1f3   :  { %18166 = vst [vmem:[#allocation107_spill] sm:$0xff] %v15374_v28  ;;  %18167 = vst [vmem:[#allocation108_spill] sm:$0xff] %v15376_v1 }
 0x1f6   :  { %v15378_v24 = vpop.xlane.xlu0 %674  ;;  %v15380_v31 = vpop.xlane.xlu1 %677 }
 0x1f7   :  { %18168 = vst [vmem:[#allocation109_spill] sm:$0xff] %v15378_v24  ;;  %18169 = vst [vmem:[#allocation110_spill] sm:$0xff] %v15380_v31 }
 0x1fa   :  { %v15382_v29 = vpop.xlane.xlu0 %680  ;;  %v15384_v45 = vpop.xlane.xlu1 %683 }
 0x1fb   :  { %18170 = vst [vmem:[#allocation111_spill] sm:$0xff] %v15382_v29  ;;  %18171 = vst [vmem:[#allocation112_spill] sm:$0xff] %v15384_v45 }
 0x1fe   :  { %v15386_v33 = vpop.xlane.xlu0 %686  ;;  %v15388_v52 = vpop.xlane.xlu1 %689 }
 0x1ff   :  { %18172 = vst [vmem:[#allocation113_spill] sm:$0xff] %v15386_v33  ;;  %18173 = vst [vmem:[#allocation114_spill] sm:$0xff] %v15388_v52 }
 0x202   :  { %v15390_v10 = vpop.xlane.xlu0 %692  ;;  %v15392_v5 = vpop.xlane.xlu1 %695 }
 0x203   :  { %18174 = vst [vmem:[#allocation115_spill] sm:$0xff] %v15390_v10  ;;  %18175 = vst [vmem:[#allocation116_spill] sm:$0xff] %v15392_v5 }
 0x206   :  { %v15394_v59 = vpop.xlane.xlu0 %698  ;;  %v15396_v28 = vpop.xlane.xlu1 %701 }
 0x207   :  { %18176 = vst [vmem:[#allocation117_spill] sm:$0xff] %v15394_v59  ;;  %18177 = vst [vmem:[#allocation118_spill] sm:$0xff] %v15396_v28 }
 0x20a   :  { %v15398_v1 = vpop.xlane.xlu0 %704  ;;  %v15400_v24 = vpop.xlane.xlu1 %707 }
 0x20b   :  { %18178 = vst [vmem:[#allocation119_spill] sm:$0xff] %v15398_v1  ;;  %18179 = vst [vmem:[#allocation120_spill] sm:$0xff] %v15400_v24 }
 0x20e   :  { %v15402_v31 = vpop.xlane.xlu0 %710  ;;  %v15404_v29 = vpop.xlane.xlu1 %713 }
 0x20f   :  { %18180 = vst [vmem:[#allocation121_spill] sm:$0xff] %v15402_v31  ;;  %18181 = vst [vmem:[#allocation122_spill] sm:$0xff] %v15404_v29 }
 0x212   :  { %v15406_v45 = vpop.xlane.xlu0 %716  ;;  %v15408_v33 = vpop.xlane.xlu1 %719 }
 0x213   :  { %18182 = vst [vmem:[#allocation123_spill] sm:$0xff] %v15406_v45  ;;  %18183 = vst [vmem:[#allocation124_spill] sm:$0xff] %v15408_v33 }
 0x216   :  { %v15410_v52 = vpop.xlane.xlu0 %722  ;;  %v15412_v10 = vpop.xlane.xlu1 %725 }
 0x217   :  { %18184 = vst [vmem:[#allocation125_spill] sm:$0xff] %v15410_v52  ;;  %18185 = vst [vmem:[#allocation126_spill] sm:$0xff] %v15412_v10 }
 0x21a   :  { %v15414_v5 = vpop.xlane.xlu0 %728  ;;  %v15416_v59 = vpop.xlane.xlu1 %731 }
 0x21b   :  { %18186 = vst [vmem:[#allocation127_spill] sm:$0xff] %v15414_v5  ;;  %18187 = vst [vmem:[#allocation128_spill] sm:$0xff] %v15416_v59 }
 0x21e   :  { %v15418_v28 = vpop.xlane.xlu0 %734  ;;  %v15420_v1 = vpop.xlane.xlu1 %737 }
 0x21f   :  { %18188 = vst [vmem:[#allocation129_spill] sm:$0xff] %v15418_v28  ;;  %18189 = vst [vmem:[#allocation130_spill] sm:$0xff] %v15420_v1 }
 0x222   :  { %v15422_v24 = vpop.xlane.xlu0 %740  ;;  %v15424_v31 = vpop.xlane.xlu1 %743 }
 0x223   :  { %18190 = vst [vmem:[#allocation131_spill] sm:$0xff] %v15422_v24  ;;  %18191 = vst [vmem:[#allocation132_spill] sm:$0xff] %v15424_v31 }
 0x226   :  { %v15426_v29 = vpop.xlane.xlu0 %746  ;;  %v15428_v45 = vpop.xlane.xlu1 %749 }
 0x227   :  { %18192 = vst [vmem:[#allocation133_spill] sm:$0xff] %v15426_v29  ;;  %18193 = vst [vmem:[#allocation134_spill] sm:$0xff] %v15428_v45 }
 0x22a   :  { %v15430_v33 = vpop.xlane.xlu0 %752  ;;  %v15432_v52 = vpop.xlane.xlu1 %755 }
 0x22b   :  { %18194 = vst [vmem:[#allocation135_spill] sm:$0xff] %v15430_v33  ;;  %18195 = vst [vmem:[#allocation136_spill] sm:$0xff] %v15432_v52  ;;  %v15445_v52 = vsub.s32 1, %v14249_v26 }
 0x22d   :  { %18200 = vst [vmem:[#allocation141_spill] sm:$0xff] %v15445_v52 }
 0x22e   :  { %v15434_v10 = vpop.xlane.xlu0 %758  ;;  %v15436_v5 = vpop.xlane.xlu1 %761 }
 0x22f   :  { %18196 = vst [vmem:[#allocation137_spill] sm:$0xff] %v15434_v10  ;;  %18197 = vst [vmem:[#allocation138_spill] sm:$0xff] %v15436_v5 }
 0x232   :  { %v15438_v59 = vpop.xlane.xlu0 %764  ;;  %v15440_v28 = vpop.xlane.xlu1 %767 }
 0x233   :  { %18198 = vst [vmem:[#allocation139_spill] sm:$0xff] %v15438_v59  ;;  %18199 = vst [vmem:[#allocation140_spill] sm:$0xff] %v15440_v28  ;;  %v15450_v28 = vsub.s32 2, %v14249_v26 }
 0x235   :  { %18201 = vst [vmem:[#allocation142_spill] sm:$0xff] %v15450_v28 }
 0x25e   :  { %v6086_v1 = vpop.xlane.xlu0 %6085  ;;  %v6089_v20 = vpop.xlane.xlu1 %6088 }
 0x25f   :  { %v6132_v24 = vsub.f32 %v15284_v61, %v6086_v1  ;;  %v6133_v29 = vsub.f32 %v15286_v19, %v6089_v20  ;;  %v15453_v61 = vsub.s32 4, %v14249_v26  ;;  %v15456_v20 = vsub.s32 3, %v14249_v26 }
 0x261   :  { %v6148_v31 = vmul.f32 1.442695, %v6132_v24  ;;  %v6150_v45 = vmul.f32 1.442695, %v6133_v29  ;;  %18202 = vst [vmem:[#allocation143_spill] sm:$0xff] %v15453_v61  ;;  %18203 = vst [vmem:[#allocation144_spill] sm:$0xff] %v15456_v20 }
 0x262   :  { %v6092_v1 = vpop.xlane.xlu0 %6091  ;;  %v15462_v24 = vsub.s32 6, %v14249_v26 }
 0x263   :  { %13730 = vpow2.f32 %v6148_v31  ;;  %v6134_v29 = vsub.f32 %v15298_v43, %v6092_v1 }
 0x264   :  { %13732 = vpow2.f32 %v6150_v45  ;;  %18204 = vst [vmem:[#allocation145_spill] sm:$0xff] %v15462_v24 }
 0x265   :  { %v6152_v31 = vmul.f32 1.442695, %v6134_v29 }
 0x267   :  { %13734 = vpow2.f32 %v6152_v31 }
 0x270   :  { %v13731_v10 = vpop.eup %13730 }
 0x271   :  { %v6206_v5 = vrot.slane %v13731_v10, %v15445_v52  ;;  %v6199_v59 = vrot.slane %v13731_v10, %v14292_v37  ;;  %v6213_v45 = vrot.slane %v13731_v10, %v15450_v28  ;;  %v6227_v19 = vrot.slane %v13731_v10, %v15453_v61  ;;  %v13733_v44 = vpop.eup %13732 }
 0x272   :  { %v6220_v33 = vrot.slane %v13731_v10, %v15456_v20  ;;  %v6255_v1 = vrot.slane %v13733_v44, %v14292_v37  ;;  %v6248_v29 = vrot.slane %v13731_v10, %v15472_v11  ;;  %v6262_v31 = vrot.slane %v13733_v44, %v15445_v52 }
 0x273   :  { %6208 = vbcast.lane.b32.xlu1 %v6206_v5, 256  ;;  %6201 = vbcast.lane.b32.xlu0 %v6199_v59, 256  ;;  %v6241_v5 = vrot.slane %v13731_v10, %v15462_v24  ;;  %v15467_v59 = vsub.s32 5, %v14249_v26  ;;  %v6276_v26 = vrot.slane %v13733_v44, %v15456_v20 }
 0x275   :  { %18205 = vst [vmem:[#allocation146_spill] sm:$0xff] %v15467_v59  ;;  %v6234_v43 = vrot.slane %v13731_v10, %v15467_v59  ;;  %v6290_v10 = vrot.slane %v13733_v44, %v15467_v59 }
 0x277   :  { %6215 = vbcast.lane.b32.xlu1 %v6213_v45, 256  ;;  %6229 = vbcast.lane.b32.xlu0 %v6227_v19, 256  ;;  %v6269_v45 = vrot.slane %v13733_v44, %v15450_v28  ;;  %v6095_v19 = vpop.xlane.xlu1 %6094 }
 0x27b   :  { %6222 = vbcast.lane.b32.xlu1 %v6220_v33, 256  ;;  %6243 = vbcast.lane.b32.xlu0 %v6241_v5, 256  ;;  %v6135_v33 = vsub.f32 %v15296_v57, %v6095_v19  ;;  %v6283_v5 = vrot.slane %v13733_v44, %v15453_v61  ;;  %v6304_v57 = vrot.slane %v13733_v44, %v15472_v11  ;;  %v6098_v19 = vpop.xlane.xlu0 %6097 }
 0x27d   :  { %v6154_v39 = vmul.f32 1.442695, %v6135_v33  ;;  %v6136_v33 = vsub.f32 %v15308_v17, %v6098_v19 }
 0x27f   :  { %6236 = vbcast.lane.b32.xlu1 %v6234_v43, 256  ;;  %6257 = vbcast.lane.b32.xlu0 %v6255_v1, 256  ;;  %v6297_v43 = vrot.slane %v13733_v44, %v15462_v24  ;;  %v13735_v1 = vpop.eup %13734  ;;  %13736 = vpow2.f32 %v6154_v39  ;;  %v6156_v39 = vmul.f32 1.442695, %v6136_v33 }
 0x280   :  { %v6346_v44 = vrot.slane %v13735_v1, %v15467_v59  ;;  %v6360_v17 = vrot.slane %v13735_v1, %v15472_v11 }
 0x281   :  { %13738 = vpow2.f32 %v6156_v39 }
 0x283   :  { %6250 = vbcast.lane.b32.xlu1 %v6248_v29, 256  ;;  %6271 = vbcast.lane.b32.xlu0 %v6269_v45, 256  ;;  %v6311_v29 = vrot.slane %v13735_v1, %v14292_v37  ;;  %v6325_v45 = vrot.slane %v13735_v1, %v15450_v28 }
 0x287   :  { %6264 = vbcast.lane.b32.xlu1 %v6262_v31, 256  ;;  %6285 = vbcast.lane.b32.xlu0 %v6283_v5, 256  ;;  %v6318_v31 = vrot.slane %v13735_v1, %v15445_v52  ;;  %v6332_v5 = vrot.slane %v13735_v1, %v15456_v20 }
 0x28b   :  { %6278 = vbcast.lane.b32.xlu1 %v6276_v26, 256  ;;  %6299 = vbcast.lane.b32.xlu0 %v6297_v43, 256  ;;  %v6339_v26 = vrot.slane %v13735_v1, %v15453_v61  ;;  %v6353_v43 = vrot.slane %v13735_v1, %v15462_v24 }
 0x28f   :  { %6292 = vbcast.lane.b32.xlu1 %v6290_v10, 256  ;;  %6313 = vbcast.lane.b32.xlu0 %v6311_v29, 256  ;;  %v13737_v10 = vpop.eup %13736 }
 0x290   :  { %v6367_v29 = vrot.slane %v13737_v10, %v14292_v37  ;;  %v6374_v33 = vrot.slane %v13737_v10, %v15445_v52  ;;  %v6388_v39 = vrot.slane %v13737_v10, %v15456_v20  ;;  %v6402_v1 = vrot.slane %v13737_v10, %v15467_v59 }
 0x293   :  { %6306 = vbcast.lane.b32.xlu1 %v6304_v57, 256  ;;  %6327 = vbcast.lane.b32.xlu0 %v6325_v45, 256  ;;  %v6381_v57 = vrot.slane %v13737_v10, %v15450_v28  ;;  %v6101_v45 = vpop.xlane.xlu1 %6100 }
 0x294   :  { %v6137_v19 = vsub.f32 %v15306_v46, %v6101_v45  ;;  %v6416_v46 = vrot.slane %v13737_v10, %v15472_v11 }
 0x297   :  { %6320 = vbcast.lane.b32.xlu1 %v6318_v31, 256  ;;  %6341 = vbcast.lane.b32.xlu0 %v6339_v26, 256  ;;  %v6395_v31 = vrot.slane %v13737_v10, %v15453_v61  ;;  %v6158_v26 = vmul.f32 1.442695, %v6137_v19 }
 0x299   :  { %13740 = vpow2.f32 %v6158_v26 }
 0x29b   :  { %6334 = vbcast.lane.b32.xlu1 %v6332_v5, 256  ;;  %6355 = vbcast.lane.b32.xlu0 %v6353_v43, 256  ;;  %v6409_v5 = vrot.slane %v13737_v10, %v15462_v24  ;;  %v13739_v43 = vpop.eup %13738 }
 0x29c   :  { %v6430_v45 = vrot.slane %v13739_v43, %v15445_v52  ;;  %v6451_v19 = vrot.slane %v13739_v43, %v15453_v61  ;;  %v6465_v26 = vrot.slane %v13739_v43, %v15462_v24  ;;  %v6458_v10 = vrot.slane %v13739_v43, %v15467_v59 }
 0x29f   :  { %6348 = vbcast.lane.b32.xlu1 %v6346_v44, 256  ;;  %6369 = vbcast.lane.b32.xlu0 %v6367_v29, 256  ;;  %v6423_v44 = vrot.slane %v13739_v43, %v14292_v37  ;;  %v6437_v29 = vrot.slane %v13739_v43, %v15450_v28 }
 0x2a3   :  { %6362 = vbcast.lane.b32.xlu1 %v6360_v17, 256  ;;  %6383 = vbcast.lane.b32.xlu0 %v6381_v57, 256  ;;  %v6104_v17 = vpop.xlane.xlu0 %6103 }
 0x2a4   :  { %v6138_v57 = vsub.f32 %v15318_v0, %v6104_v17  ;;  %v6472_v0 = vrot.slane %v13739_v43, %v15472_v11 }
 0x2a7   :  { %6376 = vbcast.lane.b32.xlu1 %v6374_v33, 256  ;;  %6397 = vbcast.lane.b32.xlu0 %v6395_v31, 256  ;;  %v6160_v33 = vmul.f32 1.442695, %v6138_v57  ;;  %v6444_v31 = vrot.slane %v13739_v43, %v15456_v20 }
 0x2a9   :  { %13742 = vpow2.f32 %v6160_v33 }
 0x2ab   :  { %6390 = vbcast.lane.b32.xlu1 %v6388_v39, 256  ;;  %6411 = vbcast.lane.b32.xlu0 %v6409_v5, 256  ;;  %v13741_v39 = vpop.eup %13740 }
 0x2ac   :  { %v6479_v5 = vrot.slane %v13741_v39, %v14292_v37  ;;  %v6507_v17 = vrot.slane %v13741_v39, %v15453_v61  ;;  %v6514_v43 = vrot.slane %v13741_v39, %v15467_v59 }
 0x2af   :  { %6404 = vbcast.lane.b32.xlu1 %v6402_v1, 256  ;;  %6425 = vbcast.lane.b32.xlu0 %v6423_v44, 256  ;;  %v6493_v1 = vrot.slane %v13741_v39, %v15450_v28  ;;  %v6107_v44 = vpop.xlane.xlu1 %6106 }
 0x2b3   :  { %6418 = vbcast.lane.b32.xlu1 %v6416_v46, 256  ;;  %6439 = vbcast.lane.b32.xlu0 %v6437_v29, 256  ;;  %v6139_v46 = vsub.f32 %v15316_v50, %v6107_v44  ;;  %v6486_v29 = vrot.slane %v13741_v39, %v15445_v52  ;;  %v6113_v50 = vpop.xlane.xlu1 %6112 }
 0x2b5   :  { %v6162_v57 = vmul.f32 1.442695, %v6139_v46 }
 0x2b6   :  { %v13743_v33 = vpop.eup %13742 }
 0x2b7   :  { %6432 = vbcast.lane.b32.xlu1 %v6430_v45, 256  ;;  %6453 = vbcast.lane.b32.xlu0 %v6451_v19, 256  ;;  %v6500_v45 = vrot.slane %v13741_v39, %v15456_v20  ;;  %v6521_v19 = vrot.slane %v13741_v39, %v15462_v24  ;;  %13744 = vpow2.f32 %v6162_v57  ;;  %v6542_v46 = vrot.slane %v13743_v33, %v15445_v52 }
 0x2b8   :  { %v6556_v57 = vrot.slane %v13743_v33, %v15456_v20 }
 0x2bb   :  { %6446 = vbcast.lane.b32.xlu1 %v6444_v31, 256  ;;  %6467 = vbcast.lane.b32.xlu0 %v6465_v26, 256  ;;  %v6535_v31 = vrot.slane %v13743_v33, %v14292_v37  ;;  %v6110_v26 = vpop.xlane.xlu0 %6109 }
 0x2bf   :  { %6460 = vbcast.lane.b32.xlu1 %v6458_v10, 256  ;;  %6481 = vbcast.lane.b32.xlu0 %v6479_v5, 256  ;;  %v6528_v10 = vrot.slane %v13741_v39, %v15472_v11  ;;  %v6549_v5 = vrot.slane %v13743_v33, %v15450_v28  ;;  %v6116_v44 = vpop.xlane.xlu0 %6115  ;;  %v6577_v39 = vrot.slane %v13743_v33, %v15462_v24 }
 0x2c3   :  { %6474 = vbcast.lane.b32.xlu1 %v6472_v0, 256  ;;  %6495 = vbcast.lane.b32.xlu0 %v6493_v1, 256  ;;  %v6140_v0 = vsub.f32 %v15330_v42, %v6110_v26  ;;  %v15522_v1 = vpop.xlane.xlu1 %6118  ;;  %v6570_v42 = vrot.slane %v13743_v33, %v15467_v59 }
 0x2c7   :  { %6488 = vbcast.lane.b32.xlu1 %v6486_v29, 256  ;;  %6509 = vbcast.lane.b32.xlu0 %v6507_v17, 256  ;;  %v6563_v29 = vrot.slane %v13743_v33, %v15453_v61  ;;  %v6164_v17 = vmul.f32 1.442695, %v6140_v0 }
 0x2c9   :  { %13746 = vpow2.f32 %v6164_v17 }
 0x2cb   :  { %6502 = vbcast.lane.b32.xlu1 %v6500_v45, 256  ;;  %6523 = vbcast.lane.b32.xlu0 %v6521_v19, 256  ;;  %v13745_v45 = vpop.eup %13744  ;;  %v15528_v19 = vpop.xlane.xlu1 %6124 }
 0x2cc   :  { %v6605_v0 = vrot.slane %v13745_v45, %v15450_v28 }
 0x2cf   :  { %6516 = vbcast.lane.b32.xlu1 %v6514_v43, 256  ;;  %6537 = vbcast.lane.b32.xlu0 %v6535_v31, 256  ;;  %v15530_v43 = vpop.xlane.xlu0 %6121  ;;  %v6591_v31 = vrot.slane %v13745_v45, %v14292_v37  ;;  %v15534_v26 = vpop.xlane.xlu1 %6130 }
 0x2d3   :  { %6530 = vbcast.lane.b32.xlu1 %v6528_v10, 256  ;;  %6551 = vbcast.lane.b32.xlu0 %v6549_v5, 256  ;;  %v15536_v10 = vpop.xlane.xlu0 %6127  ;;  %v6584_v5 = vrot.slane %v13743_v33, %v15472_v11 }
 0x2d7   :  { %6544 = vbcast.lane.b32.xlu1 %v6542_v46, 256  ;;  %6565 = vbcast.lane.b32.xlu0 %v6563_v29, 256  ;;  %v6141_v46 = vsub.f32 %v15328_v34, %v6113_v50  ;;  %v13747_v34 = vpop.eup %13746 }
 0x2d8   :  { %v6696_v48 = vrot.slane %v13747_v34, %v15472_v11 }
 0x2db   :  { %6558 = vbcast.lane.b32.xlu1 %v6556_v57, 256  ;;  %6579 = vbcast.lane.b32.xlu0 %v6577_v39, 256  ;;  %v6598_v57 = vrot.slane %v13745_v45, %v15445_v52  ;;  %v6619_v39 = vrot.slane %v13745_v45, %v15453_v61 }
 0x2df   :  { %6572 = vbcast.lane.b32.xlu1 %v6570_v42, 256  ;;  %6593 = vbcast.lane.b32.xlu0 %v6591_v31, 256  ;;  %v6166_v42 = vmul.f32 1.442695, %v6141_v46  ;;  %v6647_v46 = vrot.slane %v13747_v34, %v14292_v37 }
 0x2e1   :  { %13748 = vpow2.f32 %v6166_v42  ;;  %v6661_v42 = vrot.slane %v13747_v34, %v15450_v28 }
 0x2e3   :  { %6586 = vbcast.lane.b32.xlu1 %v6584_v5, 256  ;;  %6607 = vbcast.lane.b32.xlu0 %v6605_v0, 256  ;;  %v6612_v5 = vrot.slane %v13745_v45, %v15456_v20  ;;  %v6633_v0 = vrot.slane %v13745_v45, %v15462_v24 }
 0x2e5   :  { %v15541_v29 = vpop.permute.xlu1 %6208  ;;  %v15543_v17 = vpop.permute.xlu0 %6201 }
 0x2e7   :  { %6600 = vbcast.lane.b32.xlu1 %v6598_v57, 256  ;;  %6621 = vbcast.lane.b32.xlu0 %v6619_v39, 256  ;;  %v6626_v57 = vrot.slane %v13745_v45, %v15467_v59  ;;  %v14123_v39 = vmov 0  }
 0x2e8   :  { %13720 = vset.pattern.permute.xlu0 %v14123_v39  ;;  %13721 = vset.pattern.permute.xlu1 %v14123_v39 }
 0x2e9   :  { %v15547_v31 = vpop.permute.xlu1 %6215  ;;  %v15549_v33 = vpop.permute.xlu0 %6229 }
 0x2eb   :  { %6614 = vbcast.lane.b32.xlu1 %v6612_v5, 256  ;;  %6635 = vbcast.lane.b32.xlu0 %v6633_v0, 256  ;;  %v6640_v5 = vrot.slane %v13745_v45, %v15472_v11  ;;  %v6142_v0 = vsub.f32 %v15340_v47, %v6116_v44 }
 0x2ed   :  { %v15553_v50 = vpop.permute.xlu1 %6222  ;;  %v15555_v38 = vpop.permute.xlu0 %6243  ;;  %v6168_v39 = vmul.f32 1.442695, %v6142_v0 }
 0x2ee   :  { %v13749_v47 = vpop.eup %13748 }
 0x2ef   :  { %6628 = vbcast.lane.b32.xlu1 %v6626_v57, 256  ;;  %6649 = vbcast.lane.b32.xlu0 %v6647_v46, 256  ;;  %v6654_v57 = vrot.slane %v13747_v34, %v15445_v52  ;;  %v6675_v46 = vrot.slane %v13747_v34, %v15453_v61  ;;  %13750 = vpow2.f32 %v6168_v39  ;;  %v6703_v0 = vrot.slane %v13749_v47, %v14292_v37 }
 0x2f0   :  { %v6143_v39 = vsub.f32 %v15338_v13, %v15522_v1  ;;  %v6752_v22 = vrot.slane %v13749_v47, %v15472_v11 }
 0x2f1   :  { %v15559_v55 = vpop.permute.xlu1 %6236  ;;  %v15561_v15 = vpop.permute.xlu0 %6257 }
 0x2f2   :  { %v6170_v49 = vmul.f32 1.442695, %v6143_v39 }
 0x2f3   :  { %6642 = vbcast.lane.b32.xlu1 %v6640_v5, 256  ;;  %6663 = vbcast.lane.b32.xlu0 %v6661_v42, 256  ;;  %v6668_v5 = vrot.slane %v13747_v34, %v15456_v20  ;;  %v6689_v42 = vrot.slane %v13747_v34, %v15462_v24 }
 0x2f4   :  { %13752 = vpow2.f32 %v6170_v49  ;;  %v6144_v49 = vsub.f32 %v15350_v4, %v15530_v43 }
 0x2f5   :  { %v15566_v41 = vpop.permute.xlu1 %6250  ;;  %v15568_v62 = vpop.permute.xlu0 %6271 }
 0x2f7   :  { %6656 = vbcast.lane.b32.xlu1 %v6654_v57, 256  ;;  %6677 = vbcast.lane.b32.xlu0 %v6675_v46, 256  ;;  %v6682_v57 = vrot.slane %v13747_v34, %v15467_v59 }
 0x2f9   :  { %v15572_v18 = vpop.permute.xlu1 %6264  ;;  %v15574_v45 = vpop.permute.xlu0 %6285 }
 0x2fb   :  { %6670 = vbcast.lane.b32.xlu1 %v6668_v5, 256  ;;  %6691 = vbcast.lane.b32.xlu0 %v6689_v42, 256  ;;  %v6717_v5 = vrot.slane %v13749_v47, %v15450_v28 }
 0x2fc   :  { %v13751_v13 = vpop.eup %13750 }
 0x2fd   :  { %v15578_v44 = vpop.permute.xlu1 %6278  ;;  %v15580_v6 = vpop.permute.xlu0 %6299  ;;  %v6759_v39 = vrot.slane %v13751_v13, %v14292_v37 }
 0x2ff   :  { %6684 = vbcast.lane.b32.xlu1 %v6682_v57, 256  ;;  %6705 = vbcast.lane.b32.xlu0 %v6703_v0, 256  ;;  %v6710_v57 = vrot.slane %v13749_v47, %v15445_v52  ;;  %v6731_v0 = vrot.slane %v13749_v47, %v15453_v61 }
 0x301   :  { %v15584_v46 = vpop.permute.xlu1 %6292  ;;  %v15586_v56 = vpop.permute.xlu0 %6313 }
 0x302   :  { %v13753_v4 = vpop.eup %13752 }
 0x303   :  { %6698 = vbcast.lane.b32.xlu1 %v6696_v48, 256  ;;  %6719 = vbcast.lane.b32.xlu0 %v6717_v5, 256  ;;  %v6724_v48 = vrot.slane %v13749_v47, %v15456_v20  ;;  %v6745_v5 = vrot.slane %v13749_v47, %v15462_v24 }
 0x305   :  { %v15592_v42 = vpop.permute.xlu1 %6306  ;;  %v15594_v2 = vpop.permute.xlu0 %6327 }
 0x307   :  { %6712 = vbcast.lane.b32.xlu1 %v6710_v57, 256  ;;  %6733 = vbcast.lane.b32.xlu0 %v6731_v0, 256  ;;  %v6738_v57 = vrot.slane %v13749_v47, %v15467_v59 }
 0x309   :  { %v15598_v30 = vpop.permute.xlu1 %6320  ;;  %v15600_v34 = vpop.permute.xlu0 %6341 }
 0x30a   :  { %18207 = vst [vmem:[#allocation148_spill] sm:$0xff] %v15600_v34 }
 0x30b   :  { %6726 = vbcast.lane.b32.xlu1 %v6724_v48, 256  ;;  %6747 = vbcast.lane.b32.xlu0 %v6745_v5, 256  ;;  %v6773_v48 = vrot.slane %v13751_v13, %v15450_v28 }
 0x30d   :  { %v15604_v1 = vpop.permute.xlu1 %6334  ;;  %v15606_v12 = vpop.permute.xlu0 %6355 }
 0x30e   :  { %18208 = vst [vmem:[#allocation149_spill] sm:$0xff] %v15606_v12 }
 0x30f   :  { %6740 = vbcast.lane.b32.xlu1 %v6738_v57, 256  ;;  %6761 = vbcast.lane.b32.xlu0 %v6759_v39, 256  ;;  %v6766_v57 = vrot.slane %v13751_v13, %v15445_v52  ;;  %v6787_v39 = vrot.slane %v13751_v13, %v15453_v61 }
 0x311   :  { %v15610_v0 = vpop.permute.xlu1 %6348  ;;  %v15612_v34 = vpop.permute.xlu0 %6369 }
 0x312   :  { %18209 = vst [vmem:[#allocation150_spill] sm:$0xff] %v15612_v34  ;;  %v6172_v34 = vmul.f32 1.442695, %v6144_v49  ;;  %v6815_v49 = vrot.slane %v13753_v4, %v14292_v37 }
 0x313   :  { %6754 = vbcast.lane.b32.xlu1 %v6752_v22, 256  ;;  %6775 = vbcast.lane.b32.xlu0 %v6773_v48, 256  ;;  %v6780_v22 = vrot.slane %v13751_v13, %v15456_v20  ;;  %v6801_v48 = vrot.slane %v13751_v13, %v15462_v24 }
 0x314   :  { %13754 = vpow2.f32 %v6172_v34  ;;  %v6145_v34 = vsub.f32 %v15348_v14, %v15528_v19 }
 0x315   :  { %v15618_v5 = vpop.permute.xlu1 %6362  ;;  %v15620_v12 = vpop.permute.xlu0 %6383 }
 0x316   :  { %18210 = vst [vmem:[#allocation151_spill] sm:$0xff] %v15620_v12 }
 0x317   :  { %6768 = vbcast.lane.b32.xlu1 %v6766_v57, 256  ;;  %6789 = vbcast.lane.b32.xlu0 %v6787_v39, 256  ;;  %v6794_v57 = vrot.slane %v13751_v13, %v15467_v59 }
 0x319   :  { %v15624_v60 = vpop.permute.xlu1 %6376  ;;  %v15626_v47 = vpop.permute.xlu0 %6397 }
 0x31a   :  { %18211 = vst [vmem:[#allocation152_spill] sm:$0xff] %v15624_v60  ;;  %18212 = vst [vmem:[#allocation153_spill] sm:$0xff] %v15626_v47  ;;  %v6808_v60 = vrot.slane %v13751_v13, %v15472_v11 }
 0x31b   :  { %6782 = vbcast.lane.b32.xlu1 %v6780_v22, 256  ;;  %6803 = vbcast.lane.b32.xlu0 %v6801_v48, 256  ;;  %v6829_v22 = vrot.slane %v13753_v4, %v15450_v28 }
 0x31d   :  { %v15630_v43 = vpop.permute.xlu1 %6390  ;;  %v15632_v12 = vpop.permute.xlu0 %6411 }
 0x31e   :  { %18213 = vst [vmem:[#allocation154_spill] sm:$0xff] %v15632_v12 }
 0x31f   :  { %6796 = vbcast.lane.b32.xlu1 %v6794_v57, 256  ;;  %6817 = vbcast.lane.b32.xlu0 %v6815_v49, 256  ;;  %v6822_v57 = vrot.slane %v13753_v4, %v15445_v52  ;;  %v6843_v49 = vrot.slane %v13753_v4, %v15453_v61 }
 0x321   :  { %v15636_v39 = vpop.permute.xlu1 %6404  ;;  %v15638_v47 = vpop.permute.xlu0 %6425 }
 0x322   :  { %18214 = vst [vmem:[#allocation155_spill] sm:$0xff] %v15636_v39  ;;  %18215 = vst [vmem:[#allocation156_spill] sm:$0xff] %v15638_v47  ;;  %v6174_v47 = vmul.f32 1.442695, %v6145_v34  ;;  %v13755_v14 = vpop.eup %13754 }
 0x323   :  { %6810 = vbcast.lane.b32.xlu1 %v6808_v60, 256  ;;  %6831 = vbcast.lane.b32.xlu0 %v6829_v22, 256  ;;  %v6836_v60 = vrot.slane %v13753_v4, %v15456_v20  ;;  %v6857_v22 = vrot.slane %v13753_v4, %v15462_v24  ;;  %v6871_v34 = vrot.slane %v13755_v14, %v14292_v37 }
 0x324   :  { %13756 = vpow2.f32 %v6174_v47  ;;  %v6146_v47 = vsub.f32 %v15362_v40, %v15536_v10 }
 0x325   :  { %v15644_v48 = vpop.permute.xlu1 %6418  ;;  %v15646_v12 = vpop.permute.xlu0 %6439 }
 0x326   :  { %18216 = vst [vmem:[#allocation157_spill] sm:$0xff] %v15646_v12 }
 0x327   :  { %6824 = vbcast.lane.b32.xlu1 %v6822_v57, 256  ;;  %6845 = vbcast.lane.b32.xlu0 %v6843_v49, 256  ;;  %v6850_v57 = vrot.slane %v13753_v4, %v15467_v59 }
 0x329   :  { %v15650_v39 = vpop.permute.xlu1 %6432  ;;  %v15652_v13 = vpop.permute.xlu0 %6453 }
 0x32a   :  { %18217 = vst [vmem:[#allocation158_spill] sm:$0xff] %v15650_v39  ;;  %18218 = vst [vmem:[#allocation159_spill] sm:$0xff] %v15652_v13  ;;  %v6864_v39 = vrot.slane %v13753_v4, %v15472_v11 }
 0x32b   :  { %6838 = vbcast.lane.b32.xlu1 %v6836_v60, 256  ;;  %6859 = vbcast.lane.b32.xlu0 %v6857_v22, 256  ;;  %v6885_v60 = vrot.slane %v13755_v14, %v15450_v28 }
 0x32d   :  { %v15656_v19 = vpop.permute.xlu1 %6446  ;;  %v15658_v12 = vpop.permute.xlu0 %6467 }
 0x32e   :  { %18219 = vst [vmem:[#allocation160_spill] sm:$0xff] %v15658_v12 }
 0x32f   :  { %6852 = vbcast.lane.b32.xlu1 %v6850_v57, 256  ;;  %6873 = vbcast.lane.b32.xlu0 %v6871_v34, 256  ;;  %v6878_v57 = vrot.slane %v13755_v14, %v15445_v52  ;;  %v6899_v34 = vrot.slane %v13755_v14, %v15453_v61 }
 0x331   :  { %v15662_v49 = vpop.permute.xlu1 %6460  ;;  %v15664_v13 = vpop.permute.xlu0 %6481 }
 0x332   :  { %18220 = vst [vmem:[#allocation161_spill] sm:$0xff] %v15662_v49  ;;  %18221 = vst [vmem:[#allocation162_spill] sm:$0xff] %v15664_v13  ;;  %v6176_v13 = vmul.f32 1.442695, %v6146_v47  ;;  %v13757_v40 = vpop.eup %13756 }
 0x333   :  { %6866 = vbcast.lane.b32.xlu1 %v6864_v39, 256  ;;  %6887 = vbcast.lane.b32.xlu0 %v6885_v60, 256  ;;  %v6892_v39 = vrot.slane %v13755_v14, %v15456_v20  ;;  %v6913_v60 = vrot.slane %v13755_v14, %v15462_v24  ;;  %v6927_v47 = vrot.slane %v13757_v40, %v14292_v37 }
 0x334   :  { %13758 = vpow2.f32 %v6176_v13  ;;  %v6147_v13 = vsub.f32 %v15360_v23, %v15534_v26 }
 0x335   :  { %v15670_v22 = vpop.permute.xlu1 %6474  ;;  %v15672_v12 = vpop.permute.xlu0 %6495 }
 0x336   :  { %18222 = vst [vmem:[#allocation163_spill] sm:$0xff] %v15672_v12 }
 0x337   :  { %6880 = vbcast.lane.b32.xlu1 %v6878_v57, 256  ;;  %6901 = vbcast.lane.b32.xlu0 %v6899_v34, 256  ;;  %v6906_v57 = vrot.slane %v13755_v14, %v15467_v59 }
 0x339   :  { %v15676_v49 = vpop.permute.xlu1 %6488  ;;  %v15678_v4 = vpop.permute.xlu0 %6509 }
 0x33a   :  { %18223 = vst [vmem:[#allocation164_spill] sm:$0xff] %v15676_v49  ;;  %18224 = vst [vmem:[#allocation165_spill] sm:$0xff] %v15678_v4  ;;  %v6920_v49 = vrot.slane %v13755_v14, %v15472_v11 }
 0x33b   :  { %6894 = vbcast.lane.b32.xlu1 %v6892_v39, 256  ;;  %6915 = vbcast.lane.b32.xlu0 %v6913_v60, 256  ;;  %v6941_v39 = vrot.slane %v13757_v40, %v15450_v28 }
 0x33d   :  { %v15682_v10 = vpop.permute.xlu1 %6502  ;;  %v15684_v12 = vpop.permute.xlu0 %6523 }
 0x33e   :  { %18225 = vst [vmem:[#allocation166_spill] sm:$0xff] %v15684_v12 }
 0x33f   :  { %6908 = vbcast.lane.b32.xlu1 %v6906_v57, 256  ;;  %6929 = vbcast.lane.b32.xlu0 %v6927_v47, 256  ;;  %v6934_v57 = vrot.slane %v13757_v40, %v15445_v52  ;;  %v6955_v47 = vrot.slane %v13757_v40, %v15453_v61 }
 0x341   :  { %v15688_v34 = vpop.permute.xlu1 %6516  ;;  %v15690_v4 = vpop.permute.xlu0 %6537 }
 0x342   :  { %18226 = vst [vmem:[#allocation167_spill] sm:$0xff] %v15688_v34  ;;  %18227 = vst [vmem:[#allocation168_spill] sm:$0xff] %v15690_v4  ;;  %v6178_v4 = vmul.f32 1.442695, %v6147_v13  ;;  %v13759_v23 = vpop.eup %13758 }
 0x343   :  { %6922 = vbcast.lane.b32.xlu1 %v6920_v49, 256  ;;  %6943 = vbcast.lane.b32.xlu0 %v6941_v39, 256  ;;  %v6948_v49 = vrot.slane %v13757_v40, %v15456_v20  ;;  %v6969_v39 = vrot.slane %v13757_v40, %v15462_v24  ;;  %v6983_v13 = vrot.slane %v13759_v23, %v14292_v37 }
 0x344   :  { %13760 = vpow2.f32 %v6178_v4 }
 0x345   :  { %v15696_v60 = vpop.permute.xlu1 %6530  ;;  %v15698_v12 = vpop.permute.xlu0 %6551 }
 0x346   :  { %18228 = vst [vmem:[#allocation169_spill] sm:$0xff] %v15698_v12 }
 0x347   :  { %6936 = vbcast.lane.b32.xlu1 %v6934_v57, 256  ;;  %6957 = vbcast.lane.b32.xlu0 %v6955_v47, 256  ;;  %v6962_v57 = vrot.slane %v13757_v40, %v15467_v59 }
 0x349   :  { %v15702_v34 = vpop.permute.xlu1 %6544  ;;  %v15704_v14 = vpop.permute.xlu0 %6565 }
 0x34a   :  { %18229 = vst [vmem:[#allocation170_spill] sm:$0xff] %v15702_v34  ;;  %18230 = vst [vmem:[#allocation171_spill] sm:$0xff] %v15704_v14  ;;  %v6976_v34 = vrot.slane %v13757_v40, %v15472_v11  ;;  %v7004_v40 = vrot.slane %v13759_v23, %v15456_v20 }
 0x34b   :  { %6950 = vbcast.lane.b32.xlu1 %v6948_v49, 256  ;;  %6971 = vbcast.lane.b32.xlu0 %v6969_v39, 256  ;;  %v6997_v49 = vrot.slane %v13759_v23, %v15450_v28 }
 0x34d   :  { %v15708_v26 = vpop.permute.xlu1 %6558  ;;  %v15710_v12 = vpop.permute.xlu0 %6579 }
 0x34e   :  { %18231 = vst [vmem:[#allocation172_spill] sm:$0xff] %v15708_v26  ;;  %18232 = vst [vmem:[#allocation173_spill] sm:$0xff] %v15710_v12  ;;  %v6990_v12 = vrot.slane %v13759_v23, %v15445_v52  ;;  %v7011_v26 = vrot.slane %v13759_v23, %v15453_v61 }
 0x34f   :  { %6964 = vbcast.lane.b32.xlu1 %v6962_v57, 256  ;;  %6985 = vbcast.lane.b32.xlu0 %v6983_v13, 256 }
 0x351   :  { %v15714_v47 = vpop.permute.xlu1 %6572  ;;  %v15716_v14 = vpop.permute.xlu0 %6593 }
 0x352   :  { %18233 = vst [vmem:[#allocation174_spill] sm:$0xff] %v15714_v47  ;;  %18234 = vst [vmem:[#allocation175_spill] sm:$0xff] %v15716_v14  ;;  %v7025_v14 = vrot.slane %v13759_v23, %v15462_v24 }
 0x353   :  { %6978 = vbcast.lane.b32.xlu1 %v6976_v34, 256  ;;  %6999 = vbcast.lane.b32.xlu0 %v6997_v49, 256  ;;  %v13761_v34 = vpop.eup %13760 }
 0x354   :  { %v7053_v47 = vrot.slane %v13761_v34, %v15450_v28  ;;  %v7081_v28 = vrot.slane %v13761_v34, %v15462_v24 }
 0x355   :  { %v15720_v4 = vpop.permute.xlu1 %6586  ;;  %v15722_v39 = vpop.permute.xlu0 %6607 }
 0x356   :  { %18235 = vst [vmem:[#allocation176_spill] sm:$0xff] %v15720_v4  ;;  %18236 = vst [vmem:[#allocation177_spill] sm:$0xff] %v15722_v39  ;;  %v7018_v4 = vrot.slane %v13759_v23, %v15467_v59 }
 0x357   :  { %6992 = vbcast.lane.b32.xlu1 %v6990_v12, 256  ;;  %7013 = vbcast.lane.b32.xlu0 %v7011_v26, 256  ;;  %v7039_v12 = vrot.slane %v13761_v34, %v14292_v37  ;;  %v7067_v37 = vrot.slane %v13761_v34, %v15453_v61 }
 0x359   :  { %v15726_v57 = vpop.permute.xlu1 %6600  ;;  %v15728_v13 = vpop.permute.xlu0 %6621 }
 0x35a   :  { %18237 = vst [vmem:[#allocation178_spill] sm:$0xff] %v15726_v57  ;;  %18238 = vst [vmem:[#allocation179_spill] sm:$0xff] %v15728_v13  ;;  %v7032_v57 = vrot.slane %v13759_v23, %v15472_v11  ;;  %v7060_v23 = vrot.slane %v13761_v34, %v15456_v20 }
 0x35b   :  { %7006 = vbcast.lane.b32.xlu1 %v7004_v40, 256  ;;  %7027 = vbcast.lane.b32.xlu0 %v7025_v14, 256 }
 0x35d   :  { %v15732_v49 = vpop.permute.xlu1 %6614  ;;  %v15734_v39 = vpop.permute.xlu0 %6635 }
 0x35e   :  { %18239 = vst [vmem:[#allocation180_spill] sm:$0xff] %v15734_v39  ;;  %v7046_v39 = vrot.slane %v13761_v34, %v15445_v52 }
 0x35f   :  { %7020 = vbcast.lane.b32.xlu1 %v7018_v4, 256  ;;  %7041 = vbcast.lane.b32.xlu0 %v7039_v12, 256 }
 0x361   :  { %v15738_v26 = vpop.permute.xlu1 %6628  ;;  %v15740_v13 = vpop.permute.xlu0 %6649 }
 0x363   :  { %7034 = vbcast.lane.b32.xlu1 %v7032_v57, 256  ;;  %7055 = vbcast.lane.b32.xlu0 %v7053_v47, 256  ;;  %v769_v47 = vmax.f32 %v14612_v36, 1e-06 }
 0x365   :  { %v15744_v14 = vpop.permute.xlu1 %6642  ;;  %v15746_v40 = vpop.permute.xlu0 %6663  ;;  %v15758_v57 = vmul.f32 %v15543_v17, %v769_v47  ;;  %v7088_v17 = vrot.slane %v13761_v34, %v15472_v11  ;;  %v774_v47 = vmax.f32 %v14639_v7, 1e-06  ;;  %v18308_v11 = vld [vmem:[#allocation50_spill] sm:$0xff] }
 0x367   :  { %7048 = vbcast.lane.b32.xlu1 %v7046_v39, 256  ;;  %7069 = vbcast.lane.b32.xlu0 %v7067_v37, 256  ;;  %18240 = vst [vmem:[#allocation181_spill] sm:$0xff] %v15758_v57  ;;  %v7074_v37 = vrot.slane %v13761_v34, %v15467_v59  ;;  %v772_v39 = vmax.f32 %v14622_v51, 1e-06  ;;  %v18321_v59 = vld [vmem:[#allocation56_spill] sm:$0xff] }
 0x368   :  { %v776_v34 = vmax.f32 %v14659_v25, 1e-06 }
 0x369   :  { %v15750_v4 = vpop.permute.xlu1 %6656  ;;  %v15752_v12 = vpop.permute.xlu0 %6677  ;;  %v15768_v24 = vmul.f32 %v15553_v50, %v772_v39 }
 0x36a   :  { %v15796_v7 = vmul.f32 %v15566_v41, %v776_v34  ;;  %v18250_v34 = vld [vmem:[#allocation15_spill] sm:$0xff] }
 0x36b   :  { %7062 = vbcast.lane.b32.xlu1 %v7060_v23, 256  ;;  %7083 = vbcast.lane.b32.xlu0 %v7081_v28, 256  ;;  %18241 = vst [vmem:[#allocation182_spill] sm:$0xff] %v15768_v24  ;;  %v770_v23 = vmax.f32 %v14624_v53, 1e-06 }
 0x36c   :  { %18245 = vst [vmem:[#allocation186_spill] sm:$0xff] %v15796_v7 }
 0x36d   :  { %v15760_v52 = vpop.permute.xlu1 %6670  ;;  %v15762_v61 = vpop.permute.xlu0 %6691  ;;  %v15779_v51 = vmul.f32 %v15541_v29, %v770_v23  ;;  %v775_v23 = vmax.f32 %v14661_v27, 1e-06 }
 0x36f   :  { %7076 = vbcast.lane.b32.xlu1 %v7074_v37, 256  ;;  %7477 = vperm.xlu0 %13720, %v15758_v57   ;;  %18242 = vst [vmem:[#allocation183_spill] sm:$0xff] %v15779_v51  ;;  %v15782_v37 = vmul.f32 %v15559_v55, %v774_v47  ;;  %v771_v57 = vmax.f32 %v14610_v35, 1e-06  ;;  %v778_v35 = vmax.f32 %v14680_v54, 1e-06  ;;  %v15821_v54 = vmul.f32 %v15555_v38, %v775_v23 }
 0x371   :  { %v15770_v36 = vpop.permute.xlu1 %6684  ;;  %v15772_v28 = vpop.permute.xlu0 %6705  ;;  %18243 = vst [vmem:[#allocation184_spill] sm:$0xff] %v15782_v37  ;;  %v15793_v53 = vmul.f32 %v15547_v31, %v771_v57  ;;  %v15810_v31 = vmul.f32 %v15572_v18, %v778_v35  ;;  %18248 = vst [vmem:[#allocation189_spill] sm:$0xff] %v15821_v54  ;;  %v18251_v35 = vld [vmem:[#allocation17_spill] sm:$0xff] }
 0x372   :  { %v782_v27 = vmax.f32 %v18251_v35, 1e-06 }
 0x373   :  { %7090 = vbcast.lane.b32.xlu1 %v7088_v17, 256  ;;  %7486 = vperm.xlu0 %13720, %v15768_v24   ;;  %18244 = vst [vmem:[#allocation185_spill] sm:$0xff] %v15793_v53  ;;  %v773_v17 = vmax.f32 %v14641_v58, 1e-06  ;;  %18247 = vst [vmem:[#allocation188_spill] sm:$0xff] %v15810_v31  ;;  %v18297_v24 = vld [vmem:[#allocation42_spill] sm:$0xff] }
 0x374   :  { %v780_v58 = vmax.f32 %v14701_v16, 1e-06  ;;  %v15838_v38 = vmul.f32 %v15584_v46, %v782_v27  ;;  %v18258_v27 = vld [vmem:[#allocation18_spill] sm:$0xff] }
 0x375   :  { %v15784_v50 = vpop.permute.xlu1 %6698  ;;  %v15786_v39 = vpop.permute.xlu0 %6719  ;;  %v15807_v25 = vmul.f32 %v15549_v33, %v773_v17  ;;  %v777_v17 = vmax.f32 %v18250_v34, 1e-06 }
 0x376   :  { %v15824_v33 = vmul.f32 %v15578_v44, %v780_v58  ;;  %18253 = vst [vmem:[#allocation17_spill] sm:$0xff] %v15838_v38  ;;  %v18254_v58 = vld [vmem:[#allocation16_spill] sm:$0xff] }
 0x377   :  { %7480 = vperm.xlu1 %13721, %v15779_v51   ;;  %7492 = vperm.xlu0 %13720, %v15782_v37   ;;  %18246 = vst [vmem:[#allocation187_spill] sm:$0xff] %v15807_v25  ;;  %v15835_v16 = vmul.f32 %v15561_v15, %v777_v17  ;;  %v18302_v37 = vld [vmem:[#allocation46_spill] sm:$0xff] }
 0x378   :  { %18249 = vst [vmem:[#allocation190_spill] sm:$0xff] %v15824_v33  ;;  %v18314_v51 = vld [vmem:[#allocation54_spill] sm:$0xff] }
 0x379   :  { %v15798_v55 = vpop.permute.xlu1 %6712  ;;  %v15800_v29 = vpop.permute.xlu0 %6733  ;;  %18252 = vst [vmem:[#allocation15_spill] sm:$0xff] %v15835_v16 }
 0x37b   :  { %7483 = vperm.xlu1 %13721, %v15793_v53   ;;  %7498 = vperm.xlu0 %13720, %v15796_v7   ;;  %v779_v7 = vmax.f32 %v18254_v58, 1e-06  ;;  %v786_v58 = vmax.f32 %v14816_v8, 1e-06 }
 0x37d   :  { %v15812_v41 = vpop.permute.xlu1 %6726  ;;  %v15814_v57 = vpop.permute.xlu0 %6747  ;;  %v15849_v35 = vmul.f32 %v15568_v62, %v779_v7  ;;  %v15866_v62 = vmul.f32 %v15598_v30, %v786_v58  ;;  %v785_v58 = vmax.f32 %v14798_v9, 1e-06  ;;  %v792_v9 = vmax.f32 %v14944_v63, 1e-06  ;;  %v18270_v63 = vld [vmem:[#allocation148_spill] sm:$0xff] }
 0x37f   :  { %7489 = vperm.xlu1 %13721, %v15807_v25   ;;  %7504 = vperm.xlu0 %13720, %v15810_v31   ;;  %v18255_v25 = vld [vmem:[#allocation19_spill] sm:$0xff]  ;;  %18256 = vst [vmem:[#allocation16_spill] sm:$0xff] %v15849_v35  ;;  %18260 = vst [vmem:[#allocation191_spill] sm:$0xff] %v15866_v62 }
 0x380   :  { %v784_v34 = vmax.f32 %v18255_v25, 1e-06 }
 0x381   :  { %v15826_v18 = vpop.permute.xlu1 %6740  ;;  %v15828_v47 = vpop.permute.xlu0 %6761 }
 0x382   :  { %v15852_v15 = vmul.f32 %v15592_v42, %v784_v34  ;;  %v18261_v34 = vld [vmem:[#allocation20_spill] sm:$0xff] }
 0x383   :  { %7495 = vperm.xlu1 %13721, %v15821_v54   ;;  %7510 = vperm.xlu0 %13720, %v15824_v33   ;;  %v781_v54 = vmax.f32 %v18258_v27, 1e-06  ;;  %v788_v27 = vmax.f32 %v14861_v32, 1e-06  ;;  %v15891_v32 = vmul.f32 %v15586_v56, %v785_v58  ;;  %v15908_v56 = vmul.f32 %v15618_v5, %v792_v9  ;;  %v18291_v33 = vld [vmem:[#allocation37_spill] sm:$0xff] }
 0x384   :  { %18257 = vst [vmem:[#allocation19_spill] sm:$0xff] %v15852_v15 }
 0x385   :  { %v15840_v44 = vpop.permute.xlu1 %6754  ;;  %v15842_v23 = vpop.permute.xlu0 %6775  ;;  %v15863_v25 = vmul.f32 %v15574_v45, %v781_v54  ;;  %v15880_v45 = vmul.f32 %v15604_v1, %v788_v27  ;;  %18264 = vst [vmem:[#allocation193_spill] sm:$0xff] %v15891_v32  ;;  %v787_v27 = vmax.f32 %v14830_v21, 1e-06  ;;  %18267 = vst [vmem:[#allocation196_spill] sm:$0xff] %v15908_v56 }
 0x387   :  { %7501 = vperm.xlu1 %13721, %v15835_v16   ;;  %7516 = vperm.xlu0 %13720, %v15838_v38   ;;  %18259 = vst [vmem:[#allocation18_spill] sm:$0xff] %v15863_v25  ;;  %v783_v38 = vmax.f32 %v18261_v34, 1e-06  ;;  %18263 = vst [vmem:[#allocation192_spill] sm:$0xff] %v15880_v45  ;;  %v790_v34 = vmax.f32 %v14900_v3, 1e-06  ;;  %v15905_v3 = vmul.f32 %v15594_v2, %v787_v27 }
 0x388   :  { %v18272_v2 = vld [vmem:[#allocation152_spill] sm:$0xff]  ;;  %v18286_v16 = vld [vmem:[#allocation33_spill] sm:$0xff] }
 0x389   :  { %v15854_v46 = vpop.permute.xlu1 %6768  ;;  %v15856_v17 = vpop.permute.xlu0 %6789  ;;  %v15877_v8 = vmul.f32 %v15580_v6, %v783_v38  ;;  %v15894_v6 = vmul.f32 %v15610_v0, %v790_v34  ;;  %18266 = vst [vmem:[#allocation195_spill] sm:$0xff] %v15905_v3  ;;  %v18268_v34 = vld [vmem:[#allocation21_spill] sm:$0xff] }
 0x38b   :  { %7507 = vperm.xlu1 %13721, %v15849_v35   ;;  %7522 = vperm.xlu0 %13720, %v15852_v15   ;;  %18262 = vst [vmem:[#allocation20_spill] sm:$0xff] %v15877_v8  ;;  %18265 = vst [vmem:[#allocation194_spill] sm:$0xff] %v15894_v6  ;;  %v18275_v15 = vld [vmem:[#allocation26_spill] sm:$0xff]  ;;  %v18280_v35 = vld [vmem:[#allocation29_spill] sm:$0xff] }
 0x38d   :  { %v15868_v42 = vpop.permute.xlu1 %6782  ;;  %v15870_v7 = vpop.permute.xlu0 %6803 }
 0x38f   :  { %7513 = vperm.xlu1 %13721, %v15863_v25   ;;  %7528 = vperm.xlu0 %13720, %v15866_v62  }
 0x391   :  { %v15882_v30 = vpop.permute.xlu1 %6796  ;;  %v15884_v54 = vpop.permute.xlu0 %6817 }
 0x393   :  { %7519 = vperm.xlu1 %13721, %v15877_v8   ;;  %7534 = vperm.xlu0 %13720, %v15880_v45   ;;  %v789_v45 = vmax.f32 %v18268_v34, 1e-06  ;;  %v18269_v8 = vld [vmem:[#allocation24_spill] sm:$0xff]  ;;  %v796_v34 = vmax.f32 %v18275_v15, 1e-06  ;;  %v18281_v15 = vld [vmem:[#allocation150_spill] sm:$0xff] }
 0x394   :  { %v794_v21 = vmax.f32 %v18269_v8, 1e-06  ;;  %v18276_v8 = vld [vmem:[#allocation149_spill] sm:$0xff] }
 0x395   :  { %v15896_v1 = vpop.permute.xlu1 %6810  ;;  %v15898_v38 = vpop.permute.xlu0 %6831 }
 0x396   :  { %v15922_v27 = vmul.f32 %v18272_v2, %v794_v21  ;;  %v18279_v2 = vld [vmem:[#allocation23_spill] sm:$0xff] }
 0x397   :  { %7525 = vperm.xlu1 %13721, %v15891_v32   ;;  %7540 = vperm.xlu0 %13720, %v15894_v6   ;;  %v15919_v6 = vmul.f32 %v18270_v63, %v789_v45  ;;  %v18274_v32 = vld [vmem:[#allocation22_spill] sm:$0xff]  ;;  %v15936_v45 = vmul.f32 %v15630_v43, %v796_v34 }
 0x398   :  { %18273 = vst [vmem:[#allocation24_spill] sm:$0xff] %v15922_v27  ;;  %v791_v62 = vmax.f32 %v18274_v32, 1e-06  ;;  %v798_v32 = vmax.f32 %v18280_v35, 1e-06  ;;  %v18287_v35 = vld [vmem:[#allocation151_spill] sm:$0xff] }
 0x399   :  { %v15910_v0 = vpop.permute.xlu1 %6824  ;;  %v15912_v58 = vpop.permute.xlu0 %6845  ;;  %18271 = vst [vmem:[#allocation21_spill] sm:$0xff] %v15919_v6  ;;  %18278 = vst [vmem:[#allocation152_spill] sm:$0xff] %v15936_v45 }
 0x39b   :  { %7531 = vperm.xlu1 %13721, %v15905_v3   ;;  %7546 = vperm.xlu0 %13720, %v15908_v56   ;;  %v15933_v56 = vmul.f32 %v18276_v8, %v791_v62  ;;  %v793_v3 = vmax.f32 %v18279_v2, 1e-06  ;;  %v18283_v62 = vld [vmem:[#allocation155_spill] sm:$0xff]  ;;  %v800_v2 = vmax.f32 %v18286_v16, 1e-06  ;;  %v18292_v16 = vld [vmem:[#allocation153_spill] sm:$0xff] }
 0x39c   :  { %v15950_v8 = vmul.f32 %v18283_v62, %v798_v32  ;;  %v18290_v62 = vld [vmem:[#allocation27_spill] sm:$0xff] }
 0x39d   :  { %v15924_v5 = vpop.permute.xlu1 %6838  ;;  %v15926_v9 = vpop.permute.xlu0 %6859  ;;  %18277 = vst [vmem:[#allocation148_spill] sm:$0xff] %v15933_v56 }
 0x39e   :  { %18284 = vst [vmem:[#allocation26_spill] sm:$0xff] %v15950_v8 }
 0x39f   :  { %7537 = vperm.xlu1 %13721, %v15919_v6   ;;  %7552 = vperm.xlu0 %13720, %v15922_v27   ;;  %v15947_v6 = vmul.f32 %v18281_v15, %v793_v3  ;;  %v18285_v27 = vld [vmem:[#allocation25_spill] sm:$0xff]  ;;  %v15964_v3 = vmul.f32 %v15644_v48, %v800_v2 }
 0x3a0   :  { %v795_v25 = vmax.f32 %v18285_v27, 1e-06  ;;  %v802_v27 = vmax.f32 %v18291_v33, 1e-06  ;;  %v18298_v33 = vld [vmem:[#allocation154_spill] sm:$0xff] }
 0x3a1   :  { %v15938_v21 = vpop.permute.xlu1 %6852  ;;  %v15940_v63 = vpop.permute.xlu0 %6873  ;;  %18282 = vst [vmem:[#allocation22_spill] sm:$0xff] %v15947_v6  ;;  %18289 = vst [vmem:[#allocation23_spill] sm:$0xff] %v15964_v3 }
 0x3a3   :  { %7543 = vperm.xlu1 %13721, %v15933_v56   ;;  %7558 = vperm.xlu0 %13720, %v15936_v45   ;;  %v15961_v56 = vmul.f32 %v18287_v35, %v795_v25  ;;  %v797_v45 = vmax.f32 %v18290_v62, 1e-06  ;;  %v18294_v25 = vld [vmem:[#allocation158_spill] sm:$0xff]  ;;  %v804_v62 = vmax.f32 %v18297_v24, 1e-06  ;;  %v18303_v24 = vld [vmem:[#allocation156_spill] sm:$0xff] }
 0x3a4   :  { %v15978_v35 = vmul.f32 %v18294_v25, %v802_v27  ;;  %v18301_v25 = vld [vmem:[#allocation35_spill] sm:$0xff] }
 0x3a5   :  { %v15952_v43 = vpop.permute.xlu1 %6866  ;;  %v15954_v34 = vpop.permute.xlu0 %6887  ;;  %18288 = vst [vmem:[#allocation149_spill] sm:$0xff] %v15961_v56 }
 0x3a6   :  { %18295 = vst [vmem:[#allocation150_spill] sm:$0xff] %v15978_v35 }
 0x3a7   :  { %7549 = vperm.xlu1 %13721, %v15947_v6   ;;  %7564 = vperm.xlu0 %13720, %v15950_v8   ;;  %v15975_v8 = vmul.f32 %v18292_v16, %v797_v45  ;;  %v18296_v6 = vld [vmem:[#allocation30_spill] sm:$0xff]  ;;  %v15992_v45 = vmul.f32 %v15656_v19, %v804_v62 }
 0x3a8   :  { %v799_v31 = vmax.f32 %v18296_v6, 1e-06  ;;  %v806_v6 = vmax.f32 %v18302_v37, 1e-06  ;;  %v18309_v37 = vld [vmem:[#allocation157_spill] sm:$0xff] }
 0x3a9   :  { %v15966_v32 = vpop.permute.xlu1 %6880  ;;  %v15968_v15 = vpop.permute.xlu0 %6901  ;;  %18293 = vst [vmem:[#allocation29_spill] sm:$0xff] %v15975_v8  ;;  %18300 = vst [vmem:[#allocation25_spill] sm:$0xff] %v15992_v45 }
 0x3ab   :  { %7555 = vperm.xlu1 %13721, %v15961_v56   ;;  %7570 = vperm.xlu0 %13720, %v15964_v3   ;;  %v15989_v3 = vmul.f32 %v18298_v33, %v799_v31  ;;  %v801_v56 = vmax.f32 %v18301_v25, 1e-06  ;;  %v18305_v31 = vld [vmem:[#allocation161_spill] sm:$0xff]  ;;  %v808_v25 = vmax.f32 %v18308_v11, 1e-06  ;;  %v18315_v11 = vld [vmem:[#allocation159_spill] sm:$0xff] }
 0x3ac   :  { %v16006_v33 = vmul.f32 %v18305_v31, %v806_v6  ;;  %v18313_v31 = vld [vmem:[#allocation44_spill] sm:$0xff] }
 0x3ad   :  { %v15980_v48 = vpop.permute.xlu1 %6894  ;;  %v15982_v2 = vpop.permute.xlu0 %6915  ;;  %18299 = vst [vmem:[#allocation155_spill] sm:$0xff] %v15989_v3 }
 0x3ae   :  { %18306 = vst [vmem:[#allocation151_spill] sm:$0xff] %v16006_v33 }
 0x3af   :  { %7561 = vperm.xlu1 %13721, %v15975_v8   ;;  %7576 = vperm.xlu0 %13720, %v15978_v35   ;;  %v16003_v35 = vmul.f32 %v18303_v24, %v801_v56  ;;  %v18307_v8 = vld [vmem:[#allocation40_spill] sm:$0xff]  ;;  %v16020_v56 = vmul.f32 %v15670_v22, %v808_v25 }
 0x3b0   :  { %v803_v53 = vmax.f32 %v18307_v8, 1e-06  ;;  %v810_v8 = vmax.f32 %v18314_v51, 1e-06  ;;  %v18322_v51 = vld [vmem:[#allocation160_spill] sm:$0xff] }
 0x3b1   :  { %v15994_v27 = vpop.permute.xlu1 %6908  ;;  %v15996_v16 = vpop.permute.xlu0 %6929  ;;  %18304 = vst [vmem:[#allocation33_spill] sm:$0xff] %v16003_v35  ;;  %18311 = vst [vmem:[#allocation37_spill] sm:$0xff] %v16020_v56 }
 0x3b3   :  { %7567 = vperm.xlu1 %13721, %v15989_v3   ;;  %7582 = vperm.xlu0 %13720, %v15992_v45   ;;  %v16017_v45 = vmul.f32 %v18309_v37, %v803_v53  ;;  %v805_v3 = vmax.f32 %v18313_v31, 1e-06  ;;  %v18317_v53 = vld [vmem:[#allocation164_spill] sm:$0xff]  ;;  %v812_v31 = vmax.f32 %v18321_v59, 1e-06  ;;  %v18328_v59 = vld [vmem:[#allocation162_spill] sm:$0xff] }
 0x3b4   :  { %v16034_v37 = vmul.f32 %v18317_v53, %v810_v8  ;;  %v18326_v53 = vld [vmem:[#allocation52_spill] sm:$0xff] }
 0x3b5   :  { %v16008_v19 = vpop.permute.xlu1 %6922  ;;  %v16010_v62 = vpop.permute.xlu0 %6943  ;;  %18310 = vst [vmem:[#allocation27_spill] sm:$0xff] %v16017_v45 }
 0x3b6   :  { %18318 = vst [vmem:[#allocation30_spill] sm:$0xff] %v16034_v37 }
 0x3b7   :  { %7573 = vperm.xlu1 %13721, %v16003_v35   ;;  %7588 = vperm.xlu0 %13720, %v16006_v33   ;;  %v16031_v33 = vmul.f32 %v18315_v11, %v805_v3  ;;  %v18320_v35 = vld [vmem:[#allocation47_spill] sm:$0xff]  ;;  %v16048_v3 = vmul.f32 %v15682_v10, %v812_v31 }
 0x3b8   :  { %v807_v20 = vmax.f32 %v18320_v35, 1e-06 }
 0x3b9   :  { %v16022_v6 = vpop.permute.xlu1 %6936  ;;  %v16024_v24 = vpop.permute.xlu0 %6957  ;;  %18316 = vst [vmem:[#allocation158_spill] sm:$0xff] %v16031_v33  ;;  %18324 = vst [vmem:[#allocation35_spill] sm:$0xff] %v16048_v3 }
 0x3ba   :  { %18312 = vst [vmem:[#allocation153_spill] sm:$0xff] %v16024_v24  ;;  %v18334_v24 = vld [vmem:[#allocation60_spill] sm:$0xff] }
 0x3bb   :  { %7579 = vperm.xlu1 %13721, %v16017_v45   ;;  %7594 = vperm.xlu0 %13720, %v16020_v56   ;;  %v16045_v56 = vmul.f32 %v18322_v51, %v807_v20  ;;  %v809_v45 = vmax.f32 %v18326_v53, 1e-06  ;;  %v18330_v20 = vld [vmem:[#allocation167_spill] sm:$0xff]  ;;  %v816_v53 = vmax.f32 %v18334_v24, 1e-06  ;;  %v18342_v24 = vld [vmem:[#allocation165_spill] sm:$0xff] }
 0x3bd   :  { %v16036_v22 = vpop.permute.xlu1 %6950  ;;  %v16038_v25 = vpop.permute.xlu0 %6971  ;;  %18323 = vst [vmem:[#allocation154_spill] sm:$0xff] %v16045_v56 }
 0x3be   :  { %18319 = vst [vmem:[#allocation42_spill] sm:$0xff] %v16038_v25  ;;  %v18327_v25 = vld [vmem:[#allocation58_spill] sm:$0xff] }
 0x3bf   :  { %7585 = vperm.xlu1 %13721, %v16031_v33   ;;  %7600 = vperm.xlu0 %13720, %v16034_v37   ;;  %v814_v35 = vmax.f32 %v18327_v25, 1e-06  ;;  %v16059_v33 = vmul.f32 %v18328_v59, %v809_v45  ;;  %v18333_v37 = vld [vmem:[#allocation55_spill] sm:$0xff]  ;;  %v16076_v45 = vmul.f32 %v15696_v60, %v816_v53 }
 0x3c0   :  { %v18335_v25 = vld [vmem:[#allocation163_spill] sm:$0xff] }
 0x3c1   :  { %v16050_v8 = vpop.permute.xlu1 %6964  ;;  %v16052_v11 = vpop.permute.xlu0 %6985  ;;  %18329 = vst [vmem:[#allocation156_spill] sm:$0xff] %v16059_v33  ;;  %v16062_v51 = vmul.f32 %v18330_v20, %v814_v35  ;;  %18337 = vst [vmem:[#allocation157_spill] sm:$0xff] %v16076_v45  ;;  %v18340_v20 = vld [vmem:[#allocation57_spill] sm:$0xff] }
 0x3c2   :  { %18325 = vst [vmem:[#allocation46_spill] sm:$0xff] %v16052_v11  ;;  %v811_v11 = vmax.f32 %v18333_v37, 1e-06 }
 0x3c3   :  { %7591 = vperm.xlu1 %13721, %v16045_v56   ;;  %7606 = vperm.xlu0 %13720, %v16048_v3   ;;  %18331 = vst [vmem:[#allocation161_spill] sm:$0xff] %v16062_v51  ;;  %v813_v3 = vmax.f32 %v18340_v20, 1e-06 }
 0x3c4   :  { %v16073_v56 = vmul.f32 %v18335_v25, %v811_v11  ;;  %v18344_v11 = vld [vmem:[#allocation170_spill] sm:$0xff] }
 0x3c5   :  { %v16064_v10 = vpop.permute.xlu1 %6978  ;;  %v16066_v31 = vpop.permute.xlu0 %6999 }
 0x3c6   :  { %18332 = vst [vmem:[#allocation40_spill] sm:$0xff] %v16066_v31  ;;  %18336 = vst [vmem:[#allocation50_spill] sm:$0xff] %v16073_v56  ;;  %v18341_v31 = vld [vmem:[#allocation62_spill] sm:$0xff] }
 0x3c7   :  { %7597 = vperm.xlu1 %13721, %v16059_v33   ;;  %7612 = vperm.xlu0 %13720, %v16062_v51   ;;  %v818_v37 = vmax.f32 %v18341_v31, 1e-06  ;;  %v16087_v51 = vmul.f32 %v18342_v24, %v813_v3  ;;  %v18348_v33 = vld [vmem:[#allocation59_spill] sm:$0xff]  ;;  %v18350_v31 = vld [vmem:[#allocation166_spill] sm:$0xff]  ;;  %v18352_v3 = vld [vmem:[#allocation172_spill] sm:$0xff] }
 0x3c9   :  { %v16078_v35 = vpop.permute.xlu1 %6992  ;;  %v16080_v59 = vpop.permute.xlu0 %7013  ;;  %18343 = vst [vmem:[#allocation159_spill] sm:$0xff] %v16087_v51  ;;  %v16090_v25 = vmul.f32 %v18344_v11, %v818_v37  ;;  %v18355_v11 = vld [vmem:[#allocation61_spill] sm:$0xff] }
 0x3ca   :  { %18338 = vst [vmem:[#allocation44_spill] sm:$0xff] %v16078_v35  ;;  %18339 = vst [vmem:[#allocation54_spill] sm:$0xff] %v16080_v59  ;;  %v815_v59 = vmax.f32 %v18348_v33, 1e-06  ;;  %v18349_v35 = vld [vmem:[#allocation64_spill] sm:$0xff] }
 0x3cb   :  { %7603 = vperm.xlu1 %13721, %v16073_v56   ;;  %7618 = vperm.xlu0 %13720, %v16076_v45   ;;  %18345 = vst [vmem:[#allocation164_spill] sm:$0xff] %v16090_v25  ;;  %v820_v20 = vmax.f32 %v18349_v35, 1e-06  ;;  %v817_v56 = vmax.f32 %v18355_v11, 1e-06  ;;  %v18358_v35 = vld [vmem:[#allocation168_spill] sm:$0xff] }
 0x3cc   :  { %v16101_v45 = vmul.f32 %v18350_v31, %v815_v59  ;;  %v18360_v59 = vld [vmem:[#allocation174_spill] sm:$0xff] }
 0x3cd   :  { %v16092_v60 = vpop.permute.xlu1 %7006  ;;  %v16094_v53 = vpop.permute.xlu0 %7027  ;;  %v16104_v24 = vmul.f32 %v18352_v3, %v820_v20  ;;  %v18363_v3 = vld [vmem:[#allocation63_spill] sm:$0xff] }
 0x3ce   :  { %18346 = vst [vmem:[#allocation47_spill] sm:$0xff] %v16092_v60  ;;  %18347 = vst [vmem:[#allocation56_spill] sm:$0xff] %v16094_v53  ;;  %v18356_v60 = vld [vmem:[#allocation66_spill] sm:$0xff] }
 0x3cf   :  { %7609 = vperm.xlu1 %13721, %v16087_v51   ;;  %7624 = vperm.xlu0 %13720, %v16090_v25   ;;  %18351 = vst [vmem:[#allocation160_spill] sm:$0xff] %v16101_v45  ;;  %18353 = vst [vmem:[#allocation52_spill] sm:$0xff] %v16104_v24  ;;  %v822_v53 = vmax.f32 %v18356_v60, 1e-06  ;;  %v16115_v25 = vmul.f32 %v18358_v35, %v817_v56  ;;  %v819_v51 = vmax.f32 %v18363_v3, 1e-06 }
 0x3d0   :  { %v18365_v60 = vld [vmem:[#allocation169_spill] sm:$0xff]  ;;  %v18372_v3 = vld [vmem:[#allocation171_spill] sm:$0xff] }
 0x3d1   :  { %v16106_v37 = vpop.permute.xlu1 %7020  ;;  %v16112_v33 = vpop.permute.xlu0 %7041  ;;  %18359 = vst [vmem:[#allocation167_spill] sm:$0xff] %v16115_v25  ;;  %v16118_v31 = vmul.f32 %v18360_v59, %v822_v53  ;;  %v18370_v53 = vld [vmem:[#allocation65_spill] sm:$0xff]  ;;  %v18371_v59 = vld [vmem:[#allocation70_spill] sm:$0xff] }
 0x3d2   :  { %18354 = vst [vmem:[#allocation58_spill] sm:$0xff] %v16106_v37  ;;  %18357 = vst [vmem:[#allocation162_spill] sm:$0xff] %v16112_v33  ;;  %v18364_v37 = vld [vmem:[#allocation68_spill] sm:$0xff]  ;;  %v821_v35 = vmax.f32 %v18370_v53, 1e-06 }
 0x3d3   :  { %7615 = vperm.xlu1 %13721, %v16101_v45   ;;  %7630 = vperm.xlu0 %13720, %v16104_v24   ;;  %18361 = vst [vmem:[#allocation55_spill] sm:$0xff] %v16118_v31  ;;  %v824_v11 = vmax.f32 %v18364_v37, 1e-06  ;;  %v16127_v24 = vmul.f32 %v18365_v60, %v819_v51  ;;  %v18367_v45 = vld [vmem:[#allocation176_spill] sm:$0xff]  ;;  %v18374_v51 = vld [vmem:[#allocation178_spill] sm:$0xff] }
 0x3d5   :  { %v16120_v20 = vpop.permute.xlu1 %7034  ;;  %18366 = vst [vmem:[#allocation163_spill] sm:$0xff] %v16127_v24  ;;  %v16130_v33 = vmul.f32 %v18367_v45, %v824_v11  ;;  %v16132_v56 = vpop.permute.xlu0 %7055  ;;  %v18376_v45 = vld [vmem:[#allocation67_spill] sm:$0xff] }
 0x3d6   :  { %18362 = vst [vmem:[#allocation60_spill] sm:$0xff] %v16120_v20  ;;  %18369 = vst [vmem:[#allocation62_spill] sm:$0xff] %v16132_v56  ;;  %v826_v20 = vmax.f32 %v18371_v59, 1e-06  ;;  %v823_v11 = vmax.f32 %v18376_v45, 1e-06 }
 0x3d7   :  { %7621 = vperm.xlu1 %13721, %v16115_v25   ;;  %7636 = vperm.xlu0 %13720, %v16118_v31   ;;  %18368 = vst [vmem:[#allocation57_spill] sm:$0xff] %v16130_v33  ;;  %v16141_v31 = vmul.f32 %v18372_v3, %v821_v35  ;;  %v18377_v25 = vld [vmem:[#allocation72_spill] sm:$0xff]  ;;  %v18379_v59 = vld [vmem:[#allocation173_spill] sm:$0xff] }
 0x3d8   :  { %v16144_v60 = vmul.f32 %v18374_v51, %v826_v20  ;;  %v828_v56 = vmax.f32 %v18377_v25, 1e-06  ;;  %v18382_v20 = vld [vmem:[#allocation69_spill] sm:$0xff]  ;;  %v18383_v51 = vld [vmem:[#allocation74_spill] sm:$0xff]  ;;  %v18384_v25 = vld [vmem:[#allocation175_spill] sm:$0xff] }
 0x3d9   :  { %v16138_v37 = vpop.permute.xlu1 %7048  ;;  %18373 = vst [vmem:[#allocation165_spill] sm:$0xff] %v16141_v31  ;;  %v16150_v53 = vpop.permute.xlu0 %7069  ;;  %v825_v3 = vmax.f32 %v18382_v20, 1e-06  ;;  %v830_v45 = vmax.f32 %v18383_v51, 1e-06  ;;  %v18389_v51 = vld [vmem:[#allocation177_spill] sm:$0xff] }
 0x3da   :  { %18375 = vst [vmem:[#allocation170_spill] sm:$0xff] %v16144_v60  ;;  %18378 = vst [vmem:[#allocation59_spill] sm:$0xff] %v16150_v53 }
 0x3db   :  { %7627 = vperm.xlu1 %13721, %v16127_v24   ;;  %7642 = vperm.xlu0 %13720, %v16130_v33   ;;  %v16153_v33 = vmul.f32 %v18379_v59, %v823_v11  ;;  %v16156_v24 = vmul.f32 %v15732_v49, %v828_v56  ;;  %v18387_v49 = vld [vmem:[#allocation71_spill] sm:$0xff]  ;;  %v18388_v59 = vld [vmem:[#allocation76_spill] sm:$0xff] }
 0x3dc   :  { %v827_v56 = vmax.f32 %v18387_v49, 1e-06  ;;  %v832_v53 = vmax.f32 %v18388_v59, 1e-06  ;;  %v18395_v59 = vld [vmem:[#allocation179_spill] sm:$0xff] }
 0x3dd   :  { %18380 = vst [vmem:[#allocation64_spill] sm:$0xff] %v16153_v33  ;;  %18381 = vst [vmem:[#allocation166_spill] sm:$0xff] %v16156_v24  ;;  %v16158_v35 = vpop.permute.xlu1 %7062  ;;  %v16170_v11 = vpop.permute.xlu0 %7083 }
 0x3df   :  { %7633 = vperm.xlu1 %13721, %v16141_v31   ;;  %7648 = vperm.xlu0 %13720, %v16144_v60   ;;  %v16165_v31 = vmul.f32 %v18384_v25, %v825_v3  ;;  %v16168_v60 = vmul.f32 %v15738_v26, %v830_v45  ;;  %v16182_v3 = vmul.f32 %v15744_v14, %v832_v53  ;;  %v18393_v45 = vld [vmem:[#allocation73_spill] sm:$0xff]  ;;  %v18399_v53 = vld [vmem:[#allocation75_spill] sm:$0xff] }
 0x3e0   :  { %v829_v25 = vmax.f32 %v18393_v45, 1e-06 }
 0x3e1   :  { %18385 = vst [vmem:[#allocation172_spill] sm:$0xff] %v16165_v31  ;;  %18386 = vst [vmem:[#allocation61_spill] sm:$0xff] %v16168_v60  ;;  %v16176_v20 = vpop.permute.xlu1 %7076 }
 0x3e2   :  { %18391 = vst [vmem:[#allocation168_spill] sm:$0xff] %v16182_v3 }
 0x3e3   :  { %7639 = vperm.xlu1 %13721, %v16153_v33   ;;  %7654 = vperm.xlu0 %13720, %v16156_v24   ;;  %v16179_v33 = vmul.f32 %v18389_v51, %v827_v56  ;;  %v18394_v24 = vld [vmem:[#allocation78_spill] sm:$0xff]  ;;  %v831_v51 = vmax.f32 %v18399_v53, 1e-06 }
 0x3e4   :  { %v834_v49 = vmax.f32 %v18394_v24, 1e-06  ;;  %v18401_v24 = vld [vmem:[#allocation180_spill] sm:$0xff] }
 0x3e5   :  { %18390 = vst [vmem:[#allocation66_spill] sm:$0xff] %v16179_v33  ;;  %v16196_v56 = vpop.permute.xlu1 %7090 }
 0x3e7   :  { %7645 = vperm.xlu1 %13721, %v16165_v31   ;;  %7660 = vperm.xlu0 %13720, %v16168_v60   ;;  %v16191_v60 = vmul.f32 %v18395_v59, %v829_v25  ;;  %v16194_v31 = vmul.f32 %v15750_v4, %v834_v49  ;;  %v18404_v59 = vld [vmem:[#allocation77_spill] sm:$0xff] }
 0x3e9   :  { %18396 = vst [vmem:[#allocation63_spill] sm:$0xff] %v16191_v60  ;;  %18397 = vst [vmem:[#allocation68_spill] sm:$0xff] %v16194_v31 }
 0x3ea   :  { %v16184_v26 = vpop.permute.xlu0 %7477 }
 0x3eb   :  { %18392 = vst [vmem:[#allocation174_spill] sm:$0xff] %v16184_v26  ;;  %7651 = vperm.xlu1 %13721, %v16179_v33   ;;  %7666 = vperm.xlu0 %13720, %v16182_v3   ;;  %v18400_v26 = vld [vmem:[#allocation80_spill] sm:$0xff]  ;;  %v16205_v3 = vmul.f32 %v18401_v24, %v831_v51  ;;  %v833_v33 = vmax.f32 %v18404_v59, 1e-06  ;;  %v18408_v24 = vld [vmem:[#allocation79_spill] sm:$0xff] }
 0x3ec   :  { %v836_v45 = vmax.f32 %v18400_v26, 1e-06 }
 0x3ed   :  { %18402 = vst [vmem:[#allocation176_spill] sm:$0xff] %v16205_v3  ;;  %v16219_v26 = vmul.f32 %v15740_v13, %v833_v33 }
 0x3ee   :  { %v16198_v14 = vpop.permute.xlu0 %7486  ;;  %v16208_v25 = vmul.f32 %v15760_v52, %v836_v45 }
 0x3ef   :  { %18398 = vst [vmem:[#allocation169_spill] sm:$0xff] %v16198_v14  ;;  %7657 = vperm.xlu1 %13721, %v16191_v60   ;;  %7672 = vperm.xlu0 %13720, %v16194_v31   ;;  %v18405_v14 = vld [vmem:[#allocation82_spill] sm:$0xff]  ;;  %18406 = vst [vmem:[#allocation70_spill] sm:$0xff] %v16219_v26  ;;  %v835_v31 = vmax.f32 %v18408_v24, 1e-06  ;;  %v18409_v60 = vld [vmem:[#allocation84_spill] sm:$0xff] }
 0x3f0   :  { %18403 = vst [vmem:[#allocation65_spill] sm:$0xff] %v16208_v25  ;;  %v838_v53 = vmax.f32 %v18405_v14, 1e-06  ;;  %v840_v59 = vmax.f32 %v18409_v60, 1e-06 }
 0x3f1   :  { %v16233_v14 = vmul.f32 %v15746_v40, %v835_v31 }
 0x3f2   :  { %v16210_v4 = vpop.permute.xlu1 %7480  ;;  %v16212_v49 = vpop.permute.xlu0 %7492  ;;  %v16222_v51 = vmul.f32 %v15770_v36, %v838_v53  ;;  %v16236_v13 = vmul.f32 %v15784_v50, %v840_v59  ;;  %v18412_v53 = vld [vmem:[#allocation81_spill] sm:$0xff]  ;;  %v18416_v59 = vld [vmem:[#allocation83_spill] sm:$0xff] }
 0x3f3   :  { %7663 = vperm.xlu1 %13721, %v16205_v3   ;;  %7678 = vperm.xlu0 %13720, %v16208_v25   ;;  %18410 = vst [vmem:[#allocation178_spill] sm:$0xff] %v16233_v14  ;;  %v837_v3 = vmax.f32 %v18412_v53, 1e-06  ;;  %v18413_v25 = vld [vmem:[#allocation86_spill] sm:$0xff] }
 0x3f4   :  { %18407 = vst [vmem:[#allocation171_spill] sm:$0xff] %v16222_v51  ;;  %18411 = vst [vmem:[#allocation67_spill] sm:$0xff] %v16236_v13  ;;  %v842_v24 = vmax.f32 %v18413_v25, 1e-06 }
 0x3f5   :  { %v16247_v60 = vmul.f32 %v15752_v12, %v837_v3 }
 0x3f6   :  { %v16224_v52 = vpop.permute.xlu1 %7483  ;;  %v16226_v45 = vpop.permute.xlu0 %7498  ;;  %v16250_v40 = vmul.f32 %v15798_v55, %v842_v24  ;;  %v18420_v24 = vld [vmem:[#allocation85_spill] sm:$0xff] }
 0x3f7   :  { %7669 = vperm.xlu1 %13721, %v16219_v26   ;;  %7684 = vperm.xlu0 %13720, %v16222_v51   ;;  %18414 = vst [vmem:[#allocation72_spill] sm:$0xff] %v16247_v60  ;;  %v839_v51 = vmax.f32 %v18416_v59, 1e-06  ;;  %v18417_v26 = vld [vmem:[#allocation88_spill] sm:$0xff] }
 0x3f8   :  { %18415 = vst [vmem:[#allocation173_spill] sm:$0xff] %v16250_v40  ;;  %v844_v53 = vmax.f32 %v18417_v26, 1e-06 }
 0x3f9   :  { %v16261_v25 = vmul.f32 %v15762_v61, %v839_v51 }
 0x3fa   :  { %v16238_v36 = vpop.permute.xlu1 %7489  ;;  %v16240_v33 = vpop.permute.xlu0 %7504  ;;  %v16264_v12 = vmul.f32 %v15812_v41, %v844_v53  ;;  %v18424_v53 = vld [vmem:[#allocation87_spill] sm:$0xff] }
 0x3fb   :  { %7675 = vperm.xlu1 %13721, %v16233_v14   ;;  %7690 = vperm.xlu0 %13720, %v16236_v13   ;;  %18418 = vst [vmem:[#allocation69_spill] sm:$0xff] %v16261_v25  ;;  %v841_v13 = vmax.f32 %v18420_v24, 1e-06  ;;  %v18421_v14 = vld [vmem:[#allocation90_spill] sm:$0xff] }
 0x3fc   :  { %18419 = vst [vmem:[#allocation74_spill] sm:$0xff] %v16264_v12  ;;  %v846_v59 = vmax.f32 %v18421_v14, 1e-06 }
 0x3fd   :  { %v16275_v26 = vmul.f32 %v15772_v28, %v841_v13 }
 0x3fe   :  { %v16252_v50 = vpop.permute.xlu1 %7495  ;;  %v16254_v31 = vpop.permute.xlu0 %7510  ;;  %v16278_v61 = vmul.f32 %v15826_v18, %v846_v59  ;;  %v18428_v59 = vld [vmem:[#allocation89_spill] sm:$0xff] }
 0x3ff   :  { %7681 = vperm.xlu1 %13721, %v16247_v60   ;;  %7696 = vperm.xlu0 %13720, %v16250_v40   ;;  %18422 = vst [vmem:[#allocation175_spill] sm:$0xff] %v16275_v26  ;;  %v843_v60 = vmax.f32 %v18424_v53, 1e-06  ;;  %v18425_v40 = vld [vmem:[#allocation92_spill] sm:$0xff] }
 0x400   :  { %18423 = vst [vmem:[#allocation71_spill] sm:$0xff] %v16278_v61  ;;  %v848_v24 = vmax.f32 %v18425_v40, 1e-06 }
 0x401   :  { %v16289_v14 = vmul.f32 %v15786_v39, %v843_v60 }
 0x402   :  { %v16266_v55 = vpop.permute.xlu1 %7501  ;;  %v16268_v3 = vpop.permute.xlu0 %7516  ;;  %v16292_v28 = vmul.f32 %v15840_v44, %v848_v24  ;;  %v18432_v24 = vld [vmem:[#allocation91_spill] sm:$0xff] }
 0x403   :  { %7687 = vperm.xlu1 %13721, %v16261_v25   ;;  %7702 = vperm.xlu0 %13720, %v16264_v12   ;;  %18426 = vst [vmem:[#allocation76_spill] sm:$0xff] %v16289_v14  ;;  %v845_v25 = vmax.f32 %v18428_v59, 1e-06  ;;  %v18429_v12 = vld [vmem:[#allocation94_spill] sm:$0xff] }
 0x404   :  { %18427 = vst [vmem:[#allocation177_spill] sm:$0xff] %v16292_v28  ;;  %v850_v53 = vmax.f32 %v18429_v12, 1e-06 }
 0x405   :  { %v16303_v40 = vmul.f32 %v15800_v29, %v845_v25 }
 0x406   :  { %v16280_v41 = vpop.permute.xlu1 %7507  ;;  %v16282_v51 = vpop.permute.xlu0 %7522  ;;  %v16306_v39 = vmul.f32 %v15854_v46, %v850_v53  ;;  %v18436_v53 = vld [vmem:[#allocation93_spill] sm:$0xff] }
 0x407   :  { %7693 = vperm.xlu1 %13721, %v16275_v26   ;;  %7708 = vperm.xlu0 %13720, %v16278_v61   ;;  %18430 = vst [vmem:[#allocation73_spill] sm:$0xff] %v16303_v40  ;;  %v847_v61 = vmax.f32 %v18432_v24, 1e-06  ;;  %v18433_v26 = vld [vmem:[#allocation96_spill] sm:$0xff] }
 0x408   :  { %18431 = vst [vmem:[#allocation78_spill] sm:$0xff] %v16306_v39  ;;  %v852_v59 = vmax.f32 %v18433_v26, 1e-06 }
 0x409   :  { %v16317_v12 = vmul.f32 %v15814_v57, %v847_v61 }
 0x40a   :  { %v16294_v18 = vpop.permute.xlu1 %7513  ;;  %v16296_v13 = vpop.permute.xlu0 %7528  ;;  %v16320_v29 = vmul.f32 %v15868_v42, %v852_v59  ;;  %v18440_v59 = vld [vmem:[#allocation95_spill] sm:$0xff] }
 0x40b   :  { %7699 = vperm.xlu1 %13721, %v16289_v14   ;;  %7714 = vperm.xlu0 %13720, %v16292_v28   ;;  %18434 = vst [vmem:[#allocation179_spill] sm:$0xff] %v16317_v12  ;;  %v849_v28 = vmax.f32 %v18436_v53, 1e-06  ;;  %v18437_v14 = vld [vmem:[#allocation98_spill] sm:$0xff] }
 0x40c   :  { %18435 = vst [vmem:[#allocation75_spill] sm:$0xff] %v16320_v29  ;;  %v854_v24 = vmax.f32 %v18437_v14, 1e-06 }
 0x40d   :  { %v16331_v26 = vmul.f32 %v15828_v47, %v849_v28 }
 0x40e   :  { %v16308_v44 = vpop.permute.xlu1 %7519  ;;  %v16310_v60 = vpop.permute.xlu0 %7534  ;;  %v16334_v57 = vmul.f32 %v15882_v30, %v854_v24  ;;  %v18444_v24 = vld [vmem:[#allocation97_spill] sm:$0xff] }
 0x40f   :  { %7705 = vperm.xlu1 %13721, %v16303_v40   ;;  %7720 = vperm.xlu0 %13720, %v16306_v39   ;;  %18438 = vst [vmem:[#allocation80_spill] sm:$0xff] %v16331_v26  ;;  %v851_v40 = vmax.f32 %v18440_v59, 1e-06  ;;  %v18441_v39 = vld [vmem:[#allocation100_spill] sm:$0xff] }
 0x410   :  { %18439 = vst [vmem:[#allocation180_spill] sm:$0xff] %v16334_v57  ;;  %v856_v53 = vmax.f32 %v18441_v39, 1e-06 }
 0x411   :  { %v16345_v14 = vmul.f32 %v15842_v23, %v851_v40 }
 0x412   :  { %v16322_v46 = vpop.permute.xlu1 %7525  ;;  %v16324_v25 = vpop.permute.xlu0 %7540  ;;  %v16348_v47 = vmul.f32 %v15896_v1, %v856_v53  ;;  %v18448_v53 = vld [vmem:[#allocation99_spill] sm:$0xff] }
 0x413   :  { %7711 = vperm.xlu1 %13721, %v16317_v12   ;;  %7726 = vperm.xlu0 %13720, %v16320_v29   ;;  %18442 = vst [vmem:[#allocation77_spill] sm:$0xff] %v16345_v14  ;;  %v853_v12 = vmax.f32 %v18444_v24, 1e-06  ;;  %v18445_v29 = vld [vmem:[#allocation102_spill] sm:$0xff] }
 0x414   :  { %18443 = vst [vmem:[#allocation82_spill] sm:$0xff] %v16348_v47  ;;  %v858_v59 = vmax.f32 %v18445_v29, 1e-06 }
 0x415   :  { %v16359_v39 = vmul.f32 %v15856_v17, %v853_v12 }
 0x416   :  { %v16336_v42 = vpop.permute.xlu1 %7531  ;;  %v16338_v61 = vpop.permute.xlu0 %7546  ;;  %v16362_v23 = vmul.f32 %v15910_v0, %v858_v59  ;;  %v18452_v59 = vld [vmem:[#allocation101_spill] sm:$0xff] }
 0x417   :  { %7717 = vperm.xlu1 %13721, %v16331_v26   ;;  %7732 = vperm.xlu0 %13720, %v16334_v57   ;;  %18446 = vst [vmem:[#allocation79_spill] sm:$0xff] %v16359_v39  ;;  %v855_v57 = vmax.f32 %v18448_v53, 1e-06  ;;  %v18449_v26 = vld [vmem:[#allocation104_spill] sm:$0xff] }
 0x418   :  { %18447 = vst [vmem:[#allocation84_spill] sm:$0xff] %v16362_v23  ;;  %v860_v24 = vmax.f32 %v18449_v26, 1e-06 }
 0x419   :  { %v16373_v29 = vmul.f32 %v15870_v7, %v855_v57 }
 0x41a   :  { %v16350_v30 = vpop.permute.xlu1 %7537  ;;  %v16352_v28 = vpop.permute.xlu0 %7552  ;;  %v16376_v17 = vmul.f32 %v15924_v5, %v860_v24  ;;  %v18456_v24 = vld [vmem:[#allocation103_spill] sm:$0xff] }
 0x41b   :  { %7723 = vperm.xlu1 %13721, %v16345_v14   ;;  %7738 = vperm.xlu0 %13720, %v16348_v47   ;;  %18450 = vst [vmem:[#allocation81_spill] sm:$0xff] %v16373_v29  ;;  %v857_v47 = vmax.f32 %v18452_v59, 1e-06  ;;  %v18453_v14 = vld [vmem:[#allocation106_spill] sm:$0xff] }
 0x41c   :  { %18451 = vst [vmem:[#allocation86_spill] sm:$0xff] %v16376_v17  ;;  %v862_v53 = vmax.f32 %v18453_v14, 1e-06 }
 0x41d   :  { %v16387_v26 = vmul.f32 %v15884_v54, %v857_v47 }
 0x41e   :  { %v16364_v1 = vpop.permute.xlu1 %7543  ;;  %v16366_v40 = vpop.permute.xlu0 %7558  ;;  %v16390_v7 = vmul.f32 %v15938_v21, %v862_v53  ;;  %v18460_v53 = vld [vmem:[#allocation105_spill] sm:$0xff] }
 0x41f   :  { %7729 = vperm.xlu1 %13721, %v16359_v39   ;;  %7744 = vperm.xlu0 %13720, %v16362_v23   ;;  %18454 = vst [vmem:[#allocation83_spill] sm:$0xff] %v16387_v26  ;;  %v859_v39 = vmax.f32 %v18456_v24, 1e-06  ;;  %v18457_v23 = vld [vmem:[#allocation108_spill] sm:$0xff] }
 0x420   :  { %18455 = vst [vmem:[#allocation88_spill] sm:$0xff] %v16390_v7  ;;  %v864_v59 = vmax.f32 %v18457_v23, 1e-06 }
 0x421   :  { %v16401_v14 = vmul.f32 %v15898_v38, %v859_v39 }
 0x422   :  { %v16378_v0 = vpop.permute.xlu1 %7549  ;;  %v16380_v12 = vpop.permute.xlu0 %7564  ;;  %v16404_v54 = vmul.f32 %v15952_v43, %v864_v59  ;;  %v18464_v59 = vld [vmem:[#allocation107_spill] sm:$0xff] }
 0x423   :  { %7735 = vperm.xlu1 %13721, %v16373_v29   ;;  %7750 = vperm.xlu0 %13720, %v16376_v17   ;;  %18458 = vst [vmem:[#allocation85_spill] sm:$0xff] %v16401_v14  ;;  %v861_v29 = vmax.f32 %v18460_v53, 1e-06  ;;  %v18461_v17 = vld [vmem:[#allocation110_spill] sm:$0xff] }
 0x424   :  { %18459 = vst [vmem:[#allocation90_spill] sm:$0xff] %v16404_v54  ;;  %v866_v24 = vmax.f32 %v18461_v17, 1e-06 }
 0x425   :  { %v16415_v23 = vmul.f32 %v15912_v58, %v861_v29 }
 0x426   :  { %v16392_v5 = vpop.permute.xlu1 %7555  ;;  %v16394_v57 = vpop.permute.xlu0 %7570  ;;  %v16418_v38 = vmul.f32 %v15966_v32, %v866_v24  ;;  %v18468_v24 = vld [vmem:[#allocation109_spill] sm:$0xff] }
 0x427   :  { %7741 = vperm.xlu1 %13721, %v16387_v26   ;;  %7756 = vperm.xlu0 %13720, %v16390_v7   ;;  %18462 = vst [vmem:[#allocation87_spill] sm:$0xff] %v16415_v23  ;;  %v863_v7 = vmax.f32 %v18464_v59, 1e-06  ;;  %v18465_v26 = vld [vmem:[#allocation112_spill] sm:$0xff] }
 0x428   :  { %18463 = vst [vmem:[#allocation92_spill] sm:$0xff] %v16418_v38  ;;  %v868_v53 = vmax.f32 %v18465_v26, 1e-06 }
 0x429   :  { %v16429_v17 = vmul.f32 %v15926_v9, %v863_v7 }
 0x42a   :  { %v16406_v21 = vpop.permute.xlu1 %7561  ;;  %v16408_v47 = vpop.permute.xlu0 %7576  ;;  %v16432_v58 = vmul.f32 %v15980_v48, %v868_v53  ;;  %v18472_v53 = vld [vmem:[#allocation111_spill] sm:$0xff] }
 0x42b   :  { %7747 = vperm.xlu1 %13721, %v16401_v14   ;;  %7762 = vperm.xlu0 %13720, %v16404_v54   ;;  %18466 = vst [vmem:[#allocation89_spill] sm:$0xff] %v16429_v17  ;;  %v865_v54 = vmax.f32 %v18468_v24, 1e-06  ;;  %v18469_v14 = vld [vmem:[#allocation114_spill] sm:$0xff] }
 0x42c   :  { %18467 = vst [vmem:[#allocation94_spill] sm:$0xff] %v16432_v58  ;;  %v870_v59 = vmax.f32 %v18469_v14, 1e-06 }
 0x42d   :  { %v16443_v26 = vmul.f32 %v15940_v63, %v865_v54 }
 0x42e   :  { %v16420_v43 = vpop.permute.xlu1 %7567  ;;  %v16422_v39 = vpop.permute.xlu0 %7582  ;;  %v16446_v9 = vmul.f32 %v15994_v27, %v870_v59  ;;  %v18476_v59 = vld [vmem:[#allocation113_spill] sm:$0xff] }
 0x42f   :  { %7753 = vperm.xlu1 %13721, %v16415_v23   ;;  %7768 = vperm.xlu0 %13720, %v16418_v38   ;;  %18470 = vst [vmem:[#allocation91_spill] sm:$0xff] %v16443_v26  ;;  %v867_v23 = vmax.f32 %v18472_v53, 1e-06  ;;  %v18473_v38 = vld [vmem:[#allocation116_spill] sm:$0xff] }
 0x430   :  { %18471 = vst [vmem:[#allocation96_spill] sm:$0xff] %v16446_v9  ;;  %v872_v24 = vmax.f32 %v18473_v38, 1e-06 }
 0x431   :  { %v16457_v14 = vmul.f32 %v15954_v34, %v867_v23 }
 0x432   :  { %v16434_v32 = vpop.permute.xlu1 %7573  ;;  %v16436_v29 = vpop.permute.xlu0 %7588  ;;  %v16460_v63 = vmul.f32 %v16008_v19, %v872_v24  ;;  %v18480_v24 = vld [vmem:[#allocation115_spill] sm:$0xff] }
 0x433   :  { %7759 = vperm.xlu1 %13721, %v16429_v17   ;;  %7774 = vperm.xlu0 %13720, %v16432_v58   ;;  %18474 = vst [vmem:[#allocation93_spill] sm:$0xff] %v16457_v14  ;;  %v869_v17 = vmax.f32 %v18476_v59, 1e-06  ;;  %v18477_v58 = vld [vmem:[#allocation118_spill] sm:$0xff] }
 0x434   :  { %18475 = vst [vmem:[#allocation98_spill] sm:$0xff] %v16460_v63  ;;  %v874_v53 = vmax.f32 %v18477_v58, 1e-06 }
 0x435   :  { %v16471_v38 = vmul.f32 %v15968_v15, %v869_v17 }
 0x436   :  { %v16448_v48 = vpop.permute.xlu1 %7579  ;;  %v16450_v7 = vpop.permute.xlu0 %7594  ;;  %v16474_v34 = vmul.f32 %v16022_v6, %v874_v53  ;;  %v18485_v53 = vld [vmem:[#allocation117_spill] sm:$0xff] }
 0x437   :  { %7765 = vperm.xlu1 %13721, %v16443_v26   ;;  %7780 = vperm.xlu0 %13720, %v16446_v9   ;;  %18478 = vst [vmem:[#allocation95_spill] sm:$0xff] %v16471_v38  ;;  %v871_v9 = vmax.f32 %v18480_v24, 1e-06  ;;  %v18481_v26 = vld [vmem:[#allocation120_spill] sm:$0xff] }
 0x438   :  { %18479 = vst [vmem:[#allocation100_spill] sm:$0xff] %v16474_v34  ;;  %v876_v59 = vmax.f32 %v18481_v26, 1e-06 }
 0x439   :  { %v16485_v58 = vmul.f32 %v15982_v2, %v871_v9 }
 0x43a   :  { %v16462_v27 = vpop.permute.xlu1 %7585  ;;  %v16464_v54 = vpop.permute.xlu0 %7600  ;;  %v16488_v15 = vmul.f32 %v16036_v22, %v876_v59  ;;  %v18490_v59 = vld [vmem:[#allocation119_spill] sm:$0xff] }
 0x43b   :  { %7771 = vperm.xlu1 %13721, %v16457_v14   ;;  %7786 = vperm.xlu0 %13720, %v16460_v63   ;;  %18482 = vst [vmem:[#allocation97_spill] sm:$0xff] %v16485_v58  ;;  %v873_v63 = vmax.f32 %v18485_v53, 1e-06  ;;  %v18486_v14 = vld [vmem:[#allocation122_spill] sm:$0xff] }
 0x43c   :  { %18483 = vst [vmem:[#allocation102_spill] sm:$0xff] %v16488_v15  ;;  %v878_v24 = vmax.f32 %v18486_v14, 1e-06 }
 0x43d   :  { %v16499_v26 = vmul.f32 %v15996_v16, %v873_v63 }
 0x43e   :  { %v16476_v19 = vpop.permute.xlu1 %7591  ;;  %v16478_v23 = vpop.permute.xlu0 %7606  ;;  %v16502_v2 = vmul.f32 %v16050_v8, %v878_v24  ;;  %v18494_v24 = vld [vmem:[#allocation121_spill] sm:$0xff] }
 0x43f   :  { %7777 = vperm.xlu1 %13721, %v16471_v38   ;;  %7792 = vperm.xlu0 %13720, %v16474_v34   ;;  %18487 = vst [vmem:[#allocation104_spill] sm:$0xff] %v16499_v26  ;;  %v875_v38 = vmax.f32 %v18490_v59, 1e-06  ;;  %v18491_v34 = vld [vmem:[#allocation124_spill] sm:$0xff] }
 0x440   :  { %18488 = vst [vmem:[#allocation101_spill] sm:$0xff] %v16502_v2  ;;  %v880_v53 = vmax.f32 %v18491_v34, 1e-06  ;;  %v18496_v34 = vld [vmem:[#allocation153_spill] sm:$0xff] }
 0x441   :  { %v16513_v14 = vmul.f32 %v16010_v62, %v875_v38  ;;  %v18498_v62 = vld [vmem:[#allocation44_spill] sm:$0xff] }
 0x442   :  { %v16490_v6 = vpop.permute.xlu1 %7597  ;;  %v16492_v17 = vpop.permute.xlu0 %7612  ;;  %v16516_v16 = vmul.f32 %v16064_v10, %v880_v53 }
 0x443   :  { %18484 = vst [vmem:[#allocation99_spill] sm:$0xff] %v16492_v17  ;;  %7783 = vperm.xlu1 %13721, %v16485_v58   ;;  %7798 = vperm.xlu0 %13720, %v16488_v15   ;;  %18492 = vst [vmem:[#allocation103_spill] sm:$0xff] %v16513_v14  ;;  %v877_v58 = vmax.f32 %v18494_v24, 1e-06  ;;  %v18495_v15 = vld [vmem:[#allocation126_spill] sm:$0xff]  ;;  %v18503_v17 = vld [vmem:[#allocation128_spill] sm:$0xff] }
 0x444   :  { %18493 = vst [vmem:[#allocation108_spill] sm:$0xff] %v16516_v16  ;;  %v882_v59 = vmax.f32 %v18495_v15, 1e-06  ;;  %v884_v24 = vmax.f32 %v18503_v17, 1e-06  ;;  %v18504_v15 = vld [vmem:[#allocation42_spill] sm:$0xff] }
 0x445   :  { %v18511_v17 = vld [vmem:[#allocation46_spill] sm:$0xff] }
 0x446   :  { %v16504_v22 = vpop.permute.xlu1 %7603  ;;  %v16506_v9 = vpop.permute.xlu0 %7618  ;;  %v16530_v38 = vmul.f32 %v18498_v62, %v882_v59 }
 0x447   :  { %18489 = vst [vmem:[#allocation106_spill] sm:$0xff] %v16506_v9  ;;  %7789 = vperm.xlu1 %13721, %v16499_v26   ;;  %7804 = vperm.xlu0 %13720, %v16502_v2   ;;  %v16527_v2 = vmul.f32 %v18496_v34, %v877_v58  ;;  %v18502_v26 = vld [vmem:[#allocation123_spill] sm:$0xff] }
 0x448   :  { %18499 = vst [vmem:[#allocation110_spill] sm:$0xff] %v16530_v38  ;;  %v879_v9 = vmax.f32 %v18502_v26, 1e-06  ;;  %v18506_v58 = vld [vmem:[#allocation47_spill] sm:$0xff] }
 0x449   :  { %18497 = vst [vmem:[#allocation105_spill] sm:$0xff] %v16527_v2  ;;  %v16544_v34 = vmul.f32 %v18506_v58, %v884_v24  ;;  %v18516_v58 = vld [vmem:[#allocation127_spill] sm:$0xff] }
 0x44a   :  { %v16518_v8 = vpop.permute.xlu1 %7609  ;;  %v16520_v63 = vpop.permute.xlu0 %7624 }
 0x44b   :  { %7795 = vperm.xlu1 %13721, %v16513_v14   ;;  %7810 = vperm.xlu0 %13720, %v16516_v16   ;;  %v16541_v16 = vmul.f32 %v18504_v15, %v879_v9  ;;  %18507 = vst [vmem:[#allocation114_spill] sm:$0xff] %v16544_v34  ;;  %v18509_v14 = vld [vmem:[#allocation125_spill] sm:$0xff] }
 0x44d   :  { %18505 = vst [vmem:[#allocation109_spill] sm:$0xff] %v16541_v16 }
 0x44e   :  { %v16532_v10 = vpop.permute.xlu1 %7615  ;;  %v16534_v53 = vpop.permute.xlu0 %7630 }
 0x44f   :  { %18500 = vst [vmem:[#allocation107_spill] sm:$0xff] %v16532_v10  ;;  %18501 = vst [vmem:[#allocation112_spill] sm:$0xff] %v16534_v53  ;;  %7801 = vperm.xlu1 %13721, %v16527_v2   ;;  %7816 = vperm.xlu0 %13720, %v16530_v38   ;;  %v881_v53 = vmax.f32 %v18509_v14, 1e-06  ;;  %v18510_v10 = vld [vmem:[#allocation134_spill] sm:$0xff] }
 0x450   :  { %v890_v26 = vmax.f32 %v18510_v10, 1e-06  ;;  %v883_v38 = vmax.f32 %v18516_v58, 1e-06  ;;  %v18518_v10 = vld [vmem:[#allocation40_spill] sm:$0xff] }
 0x451   :  { %v16555_v2 = vmul.f32 %v18511_v17, %v881_v53  ;;  %v18520_v53 = vld [vmem:[#allocation62_spill] sm:$0xff] }
 0x452   :  { %v16546_v59 = vpop.permute.xlu1 %7621  ;;  %v16548_v62 = vpop.permute.xlu0 %7636  ;;  %v16558_v9 = vmul.f32 %v16138_v37, %v890_v26 }
 0x453   :  { %18508 = vst [vmem:[#allocation111_spill] sm:$0xff] %v16548_v62  ;;  %7807 = vperm.xlu1 %13721, %v16541_v16   ;;  %7822 = vperm.xlu0 %13720, %v16544_v34   ;;  %18512 = vst [vmem:[#allocation116_spill] sm:$0xff] %v16555_v2  ;;  %v18517_v62 = vld [vmem:[#allocation135_spill] sm:$0xff]  ;;  %v16569_v16 = vmul.f32 %v18518_v10, %v883_v38  ;;  %v18523_v34 = vld [vmem:[#allocation133_spill] sm:$0xff] }
 0x454   :  { %18513 = vst [vmem:[#allocation113_spill] sm:$0xff] %v16558_v9  ;;  %v891_v14 = vmax.f32 %v18517_v62, 1e-06  ;;  %v18525_v62 = vld [vmem:[#allocation162_spill] sm:$0xff] }
 0x455   :  { %18519 = vst [vmem:[#allocation120_spill] sm:$0xff] %v16569_v16 }
 0x456   :  { %v16560_v24 = vpop.permute.xlu1 %7627  ;;  %v16562_v15 = vpop.permute.xlu0 %7642  ;;  %v16572_v17 = vmul.f32 %v18520_v53, %v891_v14  ;;  %v18530_v53 = vld [vmem:[#allocation129_spill] sm:$0xff] }
 0x457   :  { %18514 = vst [vmem:[#allocation118_spill] sm:$0xff] %v16560_v24  ;;  %18515 = vst [vmem:[#allocation115_spill] sm:$0xff] %v16562_v15  ;;  %7813 = vperm.xlu1 %13721, %v16555_v2   ;;  %7840 = vperm.xlu0 %13720, %v16558_v9   ;;  %v889_v15 = vmax.f32 %v18523_v34, 1e-06  ;;  %v18524_v24 = vld [vmem:[#allocation136_spill] sm:$0xff] }
 0x458   :  { %18521 = vst [vmem:[#allocation117_spill] sm:$0xff] %v16572_v17  ;;  %v892_v58 = vmax.f32 %v18524_v24, 1e-06  ;;  %v885_v2 = vmax.f32 %v18530_v53, 1e-06  ;;  %v18532_v24 = vld [vmem:[#allocation54_spill] sm:$0xff] }
 0x459   :  { %v16583_v9 = vmul.f32 %v18525_v62, %v889_v15  ;;  %v18534_v15 = vld [vmem:[#allocation59_spill] sm:$0xff] }
 0x45a   :  { %v16574_v37 = vpop.permute.xlu1 %7633  ;;  %v16576_v26 = vpop.permute.xlu0 %7648  ;;  %v16586_v38 = vmul.f32 %v16158_v35, %v892_v58 }
 0x45b   :  { %18522 = vst [vmem:[#allocation122_spill] sm:$0xff] %v16574_v37  ;;  %7819 = vperm.xlu1 %13721, %v16569_v16   ;;  %7843 = vperm.xlu0 %13720, %v16572_v17   ;;  %18526 = vst [vmem:[#allocation119_spill] sm:$0xff] %v16583_v9  ;;  %v18531_v37 = vld [vmem:[#allocation137_spill] sm:$0xff]  ;;  %v16597_v17 = vmul.f32 %v18532_v24, %v885_v2  ;;  %v18537_v16 = vld [vmem:[#allocation130_spill] sm:$0xff] }
 0x45c   :  { %18527 = vst [vmem:[#allocation124_spill] sm:$0xff] %v16586_v38  ;;  %v893_v34 = vmax.f32 %v18531_v37, 1e-06  ;;  %v18539_v37 = vld [vmem:[#allocation58_spill] sm:$0xff] }
 0x45d   :  { %18533 = vst [vmem:[#allocation153_spill] sm:$0xff] %v16597_v17 }
 0x45e   :  { %v16588_v14 = vpop.permute.xlu1 %7639  ;;  %v16590_v10 = vpop.permute.xlu0 %7654  ;;  %v16600_v62 = vmul.f32 %v18534_v15, %v893_v34  ;;  %v18543_v15 = vld [vmem:[#allocation131_spill] sm:$0xff] }
 0x45f   :  { %18528 = vst [vmem:[#allocation121_spill] sm:$0xff] %v16588_v14  ;;  %18529 = vst [vmem:[#allocation126_spill] sm:$0xff] %v16590_v10  ;;  %7837 = vperm.xlu1 %13721, %v16583_v9   ;;  %7846 = vperm.xlu0 %13720, %v16586_v38   ;;  %v886_v14 = vmax.f32 %v18537_v16, 1e-06  ;;  %v18538_v10 = vld [vmem:[#allocation138_spill] sm:$0xff] }
 0x460   :  { %18535 = vst [vmem:[#allocation44_spill] sm:$0xff] %v16600_v62  ;;  %v894_v53 = vmax.f32 %v18538_v10, 1e-06  ;;  %v887_v9 = vmax.f32 %v18543_v15, 1e-06  ;;  %v18545_v10 = vlaneseq }
 0x461   :  { %v16611_v38 = vmul.f32 %v18539_v37, %v886_v14 }
 0x462   :  { %v16602_v35 = vpop.permute.xlu1 %7645  ;;  %v16604_v58 = vpop.permute.xlu0 %7660  ;;  %v16614_v2 = vmul.f32 %v16176_v20, %v894_v53 }
 0x463   :  { %18536 = vst [vmem:[#allocation123_spill] sm:$0xff] %v16604_v58  ;;  %7825 = vperm.xlu1 %13721, %v16597_v17   ;;  %7849 = vperm.xlu0 %13720, %v16600_v62   ;;  %18540 = vst [vmem:[#allocation128_spill] sm:$0xff] %v16611_v38  ;;  %v18544_v58 = vld [vmem:[#allocation140_spill] sm:$0xff]  ;;  %v7861_v62 = vand.u32 127, %v18545_v10 }
 0x464   :  { %18541 = vst [vmem:[#allocation42_spill] sm:$0xff] %v16614_v2  ;;  %v896_v16 = vmax.f32 %v18544_v58, 1e-06  ;;  %v18546_v17 = vld [vmem:[#allocation56_spill] sm:$0xff] }
 0x465   :  { %v16626_v14 = vmul.f32 %v18546_v17, %v887_v9  ;;  %v18550_v58 = vld [vmem:[#allocation12_spill] sm:$0xff] }
 0x466   :  { %v16616_v34 = vpop.permute.xlu1 %7651  ;;  %v16618_v24 = vpop.permute.xlu0 %7666  ;;  %v16629_v20 = vmul.f32 %v16196_v56, %v896_v16  ;;  %v18551_v10 = vld [vmem:[#allocation60_spill] sm:$0xff]  ;;  %v18553_v16 = vld [vmem:[#allocation139_spill] sm:$0xff] }
 0x467   :  { %18542 = vst [vmem:[#allocation47_spill] sm:$0xff] %v16618_v24  ;;  %7828 = vperm.xlu1 %13721, %v16611_v38   ;;  %7852 = vperm.xlu0 %13720, %v16614_v2   ;;  %v18549_v24 = vld [vmem:[#allocation132_spill] sm:$0xff]  ;;  %v16639_v2 = vsub.s32 %v7861_v62, %v18550_v58 }
 0x468   :  { %18547 = vst [vmem:[#allocation125_spill] sm:$0xff] %v16629_v20  ;;  %v888_v15 = vmax.f32 %v18549_v24, 1e-06 }
 0x469   :  { %v7897_v56 = vrot.slane %v16266_v55, %v16639_v2  ;;  %v7905_v24 = vrot.slane %v16280_v41, %v16639_v2  ;;  %v7901_v62 = vrot.slane %v16240_v33, %v16639_v2  ;;  %v7869_v55 = vrot.slane %v16210_v4, %v16639_v2  ;;  %v18555_v4 = vld [vmem:[#allocation174_spill] sm:$0xff] }
 0x46a   :  { %v16631_v53 = vpop.permute.xlu1 %7657  ;;  %v16633_v37 = vpop.permute.xlu0 %7672  ;;  %v16642_v38 = vmul.f32 %v18551_v10, %v888_v15  ;;  %v7873_v41 = vrot.slane %v16224_v52, %v16639_v2  ;;  %v7961_v52 = vrot.slane %v16378_v0, %v16639_v2 }
 0x46b   :  { %18548 = vst [vmem:[#allocation134_spill] sm:$0xff] %v16633_v37  ;;  %7831 = vperm.xlu1 %13721, %v16626_v14   ;;  %7858 = vperm.xlu0 %13720, %v16629_v20   ;;  %v895_v37 = vmax.f32 %v18553_v16, 1e-06  ;;  %v8388_v58 = vsel %vm8374_vm3, %v7901_v62, %v7897_v56  ;;  %v7865_v56 = vrot.slane %v18555_v4, %v16639_v2 }
 0x46c   :  { %18552 = vst [vmem:[#allocation46_spill] sm:$0xff] %v16642_v38  ;;  %v8389_v33 = vsel %vm8376_vm4, %v7905_v24, %v8388_v58  ;;  %v7909_v62 = vrot.slane %v16254_v31, %v16639_v2  ;;  %v18556_v24 = vld [vmem:[#allocation169_spill] sm:$0xff] }
 0x46d   :  { %v16657_v15 = vmul.f32 %v16170_v11, %v895_v37  ;;  %v7913_v11 = vrot.slane %v16294_v18, %v16639_v2  ;;  %v7929_v37 = vrot.slane %v16322_v46, %v16639_v2  ;;  %v7933_v18 = vrot.slane %v16296_v13, %v16639_v2 }
 0x46e   :  { %v16646_v9 = vpop.permute.xlu1 %7663  ;;  %v16648_v17 = vpop.permute.xlu0 %7678  ;;  %v7969_v46 = vrot.slane %v16392_v5, %v16639_v2  ;;  %v7877_v58 = vrot.slane %v18556_v24, %v16639_v2  ;;  %v8375_v4 = vsel %vm8374_vm3, %v7869_v55, %v7865_v56  ;;  %v8390_v31 = vsel %vm8378_vm5, %v7909_v62, %v8389_v33 }
 0x46f   :  { %7834 = vperm.xlu1 %13721, %v16642_v38   ;;  %18554 = vst [vmem:[#allocation127_spill] sm:$0xff] %v16657_v15  ;;  %v7937_v38 = vrot.slane %v16336_v42, %v16639_v2  ;;  %v7965_v42 = vrot.slane %v16352_v28, %v16639_v2  ;;  %v8377_v13 = vsel %vm8376_vm4, %v7873_v41, %v8375_v4 }
 0x470   :  { %v7881_v5 = vrot.slane %v16238_v36, %v16639_v2  ;;  %v8391_v20 = vsel %vm8380_vm6, %v7913_v11, %v8390_v31  ;;  %v8395_v24 = vsel %vm8374_vm3, %v7933_v18, %v7929_v37  ;;  %v7921_v55 = vrot.slane %v16308_v44, %v16639_v2 }
 0x471   :  { %v8396_v33 = vsel %vm8376_vm4, %v7937_v38, %v8395_v24  ;;  %v7945_v28 = vrot.slane %v16350_v30, %v16639_v2  ;;  %v8402_v56 = vsel %vm8374_vm3, %v7965_v42, %v7961_v52  ;;  %v7917_v41 = vrot.slane %v16268_v3, %v16639_v2 }
 0x472   :  { %v16662_v10 = vpop.permute.xlu1 %7669  ;;  %v16664_v16 = vpop.permute.xlu0 %7684  ;;  %v7941_v36 = vrot.slane %v16310_v60, %v16639_v2  ;;  %v8403_v11 = vsel %vm8376_vm4, %v7969_v46, %v8402_v56  ;;  %v7977_v37 = vrot.slane %v16406_v21, %v16639_v2  ;;  %v7885_v44 = vrot.slane %v16212_v49, %v16639_v2 }
 0x473   :  { %7855 = vperm.xlu1 %13721, %v16657_v15   ;;  %v8379_v38 = vsel %vm8378_vm5, %v7877_v58, %v8377_v13  ;;  %v7973_v30 = vrot.slane %v16366_v40, %v16639_v2  ;;  %v7889_v60 = vrot.slane %v16252_v50, %v16639_v2  ;;  %v8392_v18 = vsel %vm8382_vm7, %v7917_v41, %v8391_v20 }
 0x474   :  { %v8381_v3 = vsel %vm8380_vm6, %v7881_v5, %v8379_v38  ;;  %v8397_v21 = vsel %vm8378_vm5, %v7941_v36, %v8396_v33  ;;  %v7953_v46 = vrot.slane %v16364_v1, %v16639_v2  ;;  %v8393_v58 = vsel %vm8384_vm8, %v7921_v55, %v8392_v18 }
 0x475   :  { %v8398_v49 = vsel %vm8380_vm6, %v7945_v28, %v8397_v21  ;;  %v8404_v40 = vsel %vm8378_vm5, %v7973_v30, %v8403_v11  ;;  %v7925_v4 = vrot.slane %v16282_v51, %v16639_v2  ;;  %v7949_v31 = vrot.slane %v16324_v25, %v16639_v2 }
 0x476   :  { %v16692_v15 = vpop.permute.xlu1 %7675  ;;  %v16694_v0 = vpop.permute.xlu0 %7690  ;;  %v8405_v50 = vsel %vm8380_vm6, %v7977_v37, %v8404_v40  ;;  %v7985_v20 = vrot.slane %v16420_v43, %v16639_v2  ;;  %v7893_v42 = vrot.slane %v16226_v45, %v16639_v2  ;;  %v7981_v1 = vrot.slane %v16380_v12, %v16639_v2 }
 0x477   :  { %v8383_v51 = vsel %vm8382_vm7, %v7885_v44, %v8381_v3  ;;  %v7993_v25 = vrot.slane %v16434_v32, %v16639_v2  ;;  %v8394_v24 = vsel %vm8386_vm9, %v7925_v4, %v8393_v58  ;;  %v8399_v43 = vsel %vm8382_vm7, %v7949_v31, %v8398_v49 }
 0x478   :  { %v8385_v55 = vsel %vm8384_vm8, %v7889_v60, %v8383_v51  ;;  %v8001_v45 = vrot.slane %v16448_v48, %v16639_v2  ;;  %v8025_v12 = vrot.slane %v16490_v6, %v16639_v2  ;;  %v8400_v33 = vsel %vm8384_vm8, %v7953_v46, %v8399_v43 }
 0x479   :  { %v8406_v28 = vsel %vm8382_vm7, %v7981_v1, %v8405_v50  ;;  %v7957_v56 = vrot.slane %v16338_v61, %v16639_v2  ;;  %v7997_v32 = vrot.slane %v16408_v47, %v16639_v2  ;;  %v8033_v41 = vrot.slane %v16504_v22, %v16639_v2  ;;  %v18557_v1 = vld [vmem:[#allocation118_spill] sm:$0xff] }
 0x47a   :  { %v16719_v62 = vpop.permute.xlu1 %7681  ;;  %v16721_v52 = vpop.permute.xlu0 %7696  ;;  %v8407_v36 = vsel %vm8384_vm8, %v7985_v20, %v8406_v28  ;;  %v7989_v48 = vrot.slane %v16394_v57, %v16639_v2  ;;  %v8029_v6 = vrot.slane %v16464_v54, %v16639_v2  ;;  %v8512_v61 = vsel %vm4851_vm2, %v8394_v24, 0.0 }
 0x47b   :  { %v8409_v44 = vsel %vm8374_vm3, %v7997_v32, %v7993_v25  ;;  %v8401_v47 = vsel %vm8386_vm9, %v7957_v56, %v8400_v33  ;;  %v16777_v38 = vsel %vm8386_vm9, %v7893_v42, %v8385_v55  ;;  %v8009_v57 = vrot.slane %v16462_v27, %v16639_v2  ;;  %v18558_v25 = vld [vmem:[#allocation107_spill] sm:$0xff]  ;;  %v18560_v33 = vld [vmem:[#allocation126_spill] sm:$0xff] }
 0x47c   :  { %v8410_v22 = vsel %vm8376_vm4, %v8001_v45, %v8409_v44  ;;  %v8416_v30 = vsel %vm8374_vm3, %v8029_v6, %v8025_v12  ;;  %v8408_v54 = vsel %vm8386_vm9, %v7989_v48, %v8407_v36  ;;  %v8005_v3 = vrot.slane %v16422_v39, %v16639_v2  ;;  %v18562_v44 = vld [vmem:[#allocation122_spill] sm:$0xff] }
 0x47d   :  { %v8417_v60 = vsel %vm8376_vm4, %v8033_v41, %v8416_v30  ;;  %v8041_v21 = vrot.slane %v16518_v8, %v16639_v2  ;;  %v8089_v18 = vrot.slane %v16602_v35, %v16639_v2  ;;  %v8013_v49 = vrot.slane %v16436_v29, %v16639_v2  ;;  %v18561_v41 = vld [vmem:[#allocation106_spill] sm:$0xff] }
 0x47e   :  { %v16744_v13 = vpop.permute.xlu1 %7687  ;;  %v16746_v5 = vpop.permute.xlu0 %7702  ;;  %v8037_v27 = vrot.slane %v16478_v23, %v16639_v2  ;;  %v8097_v46 = vrot.slane %v16616_v34, %v16639_v2  ;;  %v8515_v39 = vsel %vm4851_vm2, %v8401_v47, 0.0  ;;  %v8021_v8 = vrot.slane %v16450_v7, %v16639_v2 }
 0x47f   :  { %v8411_v4 = vsel %vm8378_vm5, %v8005_v3, %v8410_v22  ;;  %v8093_v35 = vrot.slane %v16576_v26, %v16639_v2  ;;  %v8518_v29 = vsel %vm4851_vm2, %v8408_v54, 0.0  ;;  %v8017_v34 = vrot.slane %v16476_v19, %v16639_v2 }
 0x480   :  { %v8412_v23 = vsel %vm8380_vm6, %v8009_v57, %v8411_v4  ;;  %v8418_v31 = vsel %vm8378_vm5, %v8037_v27, %v8417_v60  ;;  %v8057_v50 = vrot.slane %v16546_v59, %v16639_v2  ;;  %v8061_v42 = vrot.slane %v16520_v63, %v16639_v2  ;;  %v18559_v63 = vld [vmem:[#allocation99_spill] sm:$0xff]  ;;  %v18563_v57 = vld [vmem:[#allocation112_spill] sm:$0xff] }
 0x481   :  { %v8419_v20 = vsel %vm8380_vm6, %v8041_v21, %v8418_v31  ;;  %v8065_v26 = vrot.slane %v18557_v1, %v16639_v2  ;;  %v8430_v51 = vsel %vm8374_vm3, %v8093_v35, %v8089_v18  ;;  %v8049_v24 = vrot.slane %v18558_v25, %v16639_v2  ;;  %v18564_v4 = vld [vmem:[#allocation123_spill] sm:$0xff]  ;;  %v18566_v31 = vld [vmem:[#allocation134_spill] sm:$0xff] }
 0x482   :  { %v7694_v11 = vpop.permute.xlu1 %7693  ;;  %v16771_v37 = vpop.permute.xlu0 %7708  ;;  %v8431_v19 = vsel %vm8376_vm4, %v8097_v46, %v8430_v51  ;;  %v8105_v43 = vrot.slane %v16631_v53, %v16639_v2  ;;  %v8045_v12 = vrot.slane %v18559_v63, %v16639_v2  ;;  %v8101_v28 = vrot.slane %v18560_v33, %v16639_v2 }
 0x483   :  { %v8153_v59 = vrot.slane %v7694_v11, %v16639_v2  ;;  %v8413_v32 = vsel %vm8382_vm7, %v8013_v49, %v8412_v23  ;;  %v8053_v36 = vrot.slane %v18561_v41, %v16639_v2  ;;  %v8423_v53 = vsel %vm8374_vm3, %v8061_v42, %v8057_v50  ;;  %v18567_v42 = vld [vmem:[#allocation121_spill] sm:$0xff] }
 0x484   :  { %v8157_v48 = vrot.slane %v16721_v52, %v16639_v2  ;;  %v8414_v6 = vsel %vm8384_vm8, %v8017_v34, %v8413_v32  ;;  %v8424_v11 = vsel %vm8376_vm4, %v8065_v26, %v8423_v53  ;;  %v8432_v47 = vsel %vm8378_vm5, %v8101_v28, %v8431_v19  ;;  %v18568_v26 = vld [vmem:[#allocation47_spill] sm:$0xff] }
 0x485   :  { %v8420_v22 = vsel %vm8382_vm7, %v8045_v12, %v8419_v20  ;;  %v8069_v30 = vrot.slane %v18563_v57, %v16639_v2  ;;  %v8433_v54 = vsel %vm8380_vm6, %v8105_v43, %v8432_v47  ;;  %v8113_v18 = vrot.slane %v16646_v9, %v16639_v2  ;;  %v18565_v9 = vld [vmem:[#allocation111_spill] sm:$0xff] }
 0x486   :  { %v7700_v40 = vpop.permute.xlu1 %7699  ;;  %v16797_v58 = vpop.permute.xlu0 %7714  ;;  %v8444_v3 = vsel %vm8374_vm3, %v8157_v48, %v8153_v59  ;;  %v8421_v21 = vsel %vm8384_vm8, %v8049_v24, %v8420_v22  ;;  %v8121_v49 = vrot.slane %v16662_v10, %v16639_v2  ;;  %v8109_v35 = vrot.slane %v18564_v4, %v16639_v2  ;;  %v18569_v47 = vld [vmem:[#allocation115_spill] sm:$0xff] }
 0x487   :  { %v8161_v56 = vrot.slane %v7700_v40, %v16639_v2  ;;  %v8425_v40 = vsel %vm8378_vm5, %v8069_v30, %v8424_v11  ;;  %v8165_v23 = vrot.slane %v16746_v5, %v16639_v2  ;;  %v8077_v34 = vrot.slane %v18565_v9, %v16639_v2 }
 0x488   :  { %v8125_v50 = vrot.slane %v18566_v31, %v16639_v2  ;;  %v8422_v20 = vsel %vm8386_vm9, %v8053_v36, %v8421_v21  ;;  %v8081_v1 = vrot.slane %v18567_v42, %v16639_v2  ;;  %v8117_v51 = vrot.slane %v18568_v26, %v16639_v2 }
 0x489   :  { %v8445_v27 = vsel %vm8376_vm4, %v8161_v56, %v8444_v3  ;;  %v8434_v24 = vsel %vm8382_vm7, %v8109_v35, %v8433_v54  ;;  %v8137_v12 = vrot.slane %v16719_v62, %v16639_v2  ;;  %v8173_v33 = vrot.slane %v16771_v37, %v16639_v2 }
 0x48a   :  { %v7706_v55 = vpop.permute.xlu1 %7705  ;;  %8513 = vadd.xlane.f32.xlu0 %v8512_v61  ;;  %v16824_v45 = vpop.permute.xlu0 %7720  ;;  %v8073_v61 = vrot.slane %v18562_v44, %v16639_v2  ;;  %v8437_v19 = vsel %vm8374_vm3, %v8125_v50, %v8121_v49  ;;  %v8133_v28 = vrot.slane %v16648_v17, %v16639_v2  ;;  %v8524_v56 = vsel %vm4851_vm2, %v8422_v20, 0.0 }
 0x48b   :  { %v8169_v46 = vrot.slane %v7706_v55, %v16639_v2  ;;  %v8435_v55 = vsel %vm8384_vm8, %v8113_v18, %v8434_v24  ;;  %v8509_v32 = vsel %vm4851_vm2, %v16777_v38, 0.0  ;;  %v8415_v41 = vsel %vm8386_vm9, %v8021_v8, %v8414_v6 }
 0x48c   :  { %v8426_v10 = vsel %vm8380_vm6, %v8073_v61, %v8425_v40  ;;  %v8189_v62 = vrot.slane %v16824_v45, %v16639_v2  ;;  %v8436_v53 = vsel %vm8386_vm9, %v8117_v51, %v8435_v55  ;;  %v8145_v6 = vrot.slane %v16744_v13, %v16639_v2 }
 0x48d   :  { %v8427_v48 = vsel %vm8382_vm7, %v8077_v34, %v8426_v10  ;;  %v8181_v44 = vrot.slane %v16797_v58, %v16639_v2  ;;  %v8085_v22 = vrot.slane %v18569_v47, %v16639_v2  ;;  %v8141_v57 = vrot.slane %v16664_v16, %v16639_v2 }
 0x48e   :  { %v7712_v60 = vpop.permute.xlu1 %7711  ;;  %8516 = vadd.xlane.f32.xlu0 %v8515_v39  ;;  %v16847_v52 = vpop.permute.xlu0 %7726  ;;  %v8129_v39 = vrot.slane %v16692_v15, %v16639_v2  ;;  %v8446_v15 = vsel %vm8378_vm5, %v8165_v23, %v8445_v27  ;;  %v8428_v8 = vsel %vm8384_vm8, %v8081_v1, %v8427_v48  ;;  %v8530_v54 = vsel %vm4851_vm2, %v8436_v53, 0.0 }
 0x48f   :  { %v8447_v43 = vsel %vm8380_vm6, %v8169_v46, %v8446_v15  ;;  %v8177_v59 = vrot.slane %v7712_v60, %v16639_v2  ;;  %v8197_v3 = vrot.slane %v16847_v52, %v16639_v2  ;;  %v8521_v58 = vsel %vm4851_vm2, %v8415_v41, 0.0 }
 0x490   :  { %v8438_v63 = vsel %vm8376_vm4, %v8129_v39, %v8437_v19  ;;  %v8448_v17 = vsel %vm8382_vm7, %v8173_v33, %v8447_v43  ;;  %v8429_v49 = vsel %vm8386_vm9, %v8085_v22, %v8428_v8  ;;  %v8149_v52 = vrot.slane %v16694_v0, %v16639_v2 }
 0x491   :  { %v8439_v11 = vsel %vm8378_vm5, %v8133_v28, %v8438_v63  ;;  %v8449_v7 = vsel %vm8384_vm8, %v8177_v59, %v8448_v17  ;;  %v8527_v9 = vsel %vm4851_vm2, %v8429_v49, 0.0 }
 0x492   :  { %v7718_v25 = vpop.permute.xlu1 %7717  ;;  %8519 = vadd.xlane.f32.xlu0 %v8518_v29  ;;  %v7733_v5 = vpop.permute.xlu0 %7732  ;;  %v8440_v45 = vsel %vm8380_vm6, %v8137_v12, %v8439_v11  ;;  %v8450_v21 = vsel %vm8386_vm9, %v8181_v44, %v8449_v7 }
 0x493   :  { %v8185_v29 = vrot.slane %v7718_v25, %v16639_v2  ;;  %v8441_v16 = vsel %vm8382_vm7, %v8141_v57, %v8440_v45  ;;  %v8536_v4 = vsel %vm4851_vm2, %v8450_v21, 0.0  ;;  %v8205_v35 = vrot.slane %v7733_v5, %v16639_v2 }
 0x494   :  { %v8442_v46 = vsel %vm8384_vm8, %v8145_v6, %v8441_v16 }
 0x495   :  { %v8451_v61 = vsel %vm8374_vm3, %v8189_v62, %v8185_v29  ;;  %v8443_v10 = vsel %vm8386_vm9, %v8149_v52, %v8442_v46 }
 0x496   :  { %v7724_v36 = vpop.permute.xlu1 %7723  ;;  %8525 = vadd.xlane.f32.xlu0 %v8524_v56  ;;  %v7739_v37 = vpop.permute.xlu0 %7738  ;;  %v8533_v1 = vsel %vm4851_vm2, %v8443_v10, 0.0 }
 0x497   :  { %v8193_v38 = vrot.slane %v7724_v36, %v16639_v2  ;;  %8510 = vadd.xlane.f32.xlu1 %v8509_v32  ;;  %v8213_v0 = vrot.slane %v7739_v37, %v16639_v2 }
 0x499   :  { %v8452_v30 = vsel %vm8376_vm4, %v8193_v38, %v8451_v61 }
 0x49a   :  { %v7730_v60 = vpop.permute.xlu1 %7729  ;;  %8531 = vadd.xlane.f32.xlu0 %v8530_v54  ;;  %v7745_v13 = vpop.permute.xlu0 %7744  ;;  %v8453_v27 = vsel %vm8378_vm5, %v8197_v3, %v8452_v30 }
 0x49b   :  { %v8201_v18 = vrot.slane %v7730_v60, %v16639_v2  ;;  %8522 = vadd.xlane.f32.xlu1 %v8521_v58  ;;  %v8221_v15 = vrot.slane %v7745_v13, %v16639_v2 }
 0x49d   :  { %v8454_v40 = vsel %vm8380_vm6, %v8201_v18, %v8453_v27 }
 0x49e   :  { %v7736_v39 = vpop.permute.xlu1 %7735  ;;  %8537 = vadd.xlane.f32.xlu0 %v8536_v4  ;;  %v7751_v23 = vpop.permute.xlu0 %7750  ;;  %v8455_v31 = vsel %vm8382_vm7, %v8205_v35, %v8454_v40 }
 0x49f   :  { %v8209_v34 = vrot.slane %v7736_v39, %v16639_v2  ;;  %8528 = vadd.xlane.f32.xlu1 %v8527_v9  ;;  %v8229_v55 = vrot.slane %v7751_v23, %v16639_v2 }
 0x4a1   :  { %v8456_v50 = vsel %vm8384_vm8, %v8209_v34, %v8455_v31 }
 0x4a2   :  { %v7742_v20 = vpop.permute.xlu1 %7741  ;;  %v7757_v42 = vpop.permute.xlu0 %7756  ;;  %v8457_v26 = vsel %vm8386_vm9, %v8213_v0, %v8456_v50 }
 0x4a3   :  { %8534 = vadd.xlane.f32.xlu1 %v8533_v1  ;;  %v8217_v51 = vrot.slane %v7742_v20, %v16639_v2  ;;  %v8539_v24 = vsel %vm4851_vm2, %v8457_v26, 0.0  ;;  %v8237_v56 = vrot.slane %v7757_v42, %v16639_v2 }
 0x4a5   :  { %v8458_v43 = vsel %vm8374_vm3, %v8221_v15, %v8217_v51 }
 0x4a6   :  { %v7748_v25 = vpop.permute.xlu1 %7747  ;;  %v7763_v5 = vpop.permute.xlu0 %7762 }
 0x4a7   :  { %v8225_v19 = vrot.slane %v7748_v25, %v16639_v2  ;;  %8540 = vadd.xlane.f32.xlu1 %v8539_v24  ;;  %v8245_v36 = vrot.slane %v7763_v5, %v16639_v2 }
 0x4a9   :  { %v8459_v59 = vsel %vm8376_vm4, %v8225_v19, %v8458_v43 }
 0x4aa   :  { %v7754_v63 = vpop.permute.xlu1 %7753  ;;  %v7769_v12 = vpop.permute.xlu0 %7768  ;;  %v8460_v29 = vsel %vm8378_vm5, %v8229_v55, %v8459_v59 }
 0x4ab   :  { %v8233_v33 = vrot.slane %v7754_v63, %v16639_v2  ;;  %v8253_v8 = vrot.slane %v7769_v12, %v16639_v2 }
 0x4ad   :  { %v8461_v28 = vsel %vm8380_vm6, %v8233_v33, %v8460_v29 }
 0x4ae   :  { %v7760_v32 = vpop.permute.xlu1 %7759  ;;  %v7775_v41 = vpop.permute.xlu0 %7774  ;;  %v8462_v37 = vsel %vm8382_vm7, %v8237_v56, %v8461_v28 }
 0x4af   :  { %v8241_v62 = vrot.slane %v7760_v32, %v16639_v2  ;;  %v8261_v22 = vrot.slane %v7775_v41, %v16639_v2 }
 0x4b1   :  { %v8463_v53 = vsel %vm8384_vm8, %v8241_v62, %v8462_v37 }
 0x4b2   :  { %v7766_v17 = vpop.permute.xlu1 %7765  ;;  %v7781_v48 = vpop.permute.xlu0 %7780  ;;  %v8464_v11 = vsel %vm8386_vm9, %v8245_v36, %v8463_v53 }
 0x4b3   :  { %v8542_v38 = vsel %vm4851_vm2, %v8464_v11, 0.0  ;;  %v8249_v7 = vrot.slane %v7766_v17, %v16639_v2  ;;  %v8269_v13 = vrot.slane %v7781_v48, %v16639_v2 }
 0x4b4   :  { %8543 = vadd.xlane.f32.xlu0 %v8542_v38 }
 0x4b5   :  { %v8465_v61 = vsel %vm8374_vm3, %v8253_v8, %v8249_v7 }
 0x4b6   :  { %v7772_v45 = vpop.permute.xlu1 %7771  ;;  %v7787_v6 = vpop.permute.xlu0 %7786 }
 0x4b7   :  { %v8257_v44 = vrot.slane %v7772_v45, %v16639_v2  ;;  %v8277_v49 = vrot.slane %v7787_v6, %v16639_v2 }
 0x4b9   :  { %v8466_v47 = vsel %vm8376_vm4, %v8257_v44, %v8465_v61 }
 0x4ba   :  { %v7778_v57 = vpop.permute.xlu1 %7777  ;;  %v7793_v30 = vpop.permute.xlu0 %7792  ;;  %v8467_v3 = vsel %vm8378_vm5, %v8261_v22, %v8466_v47 }
 0x4bb   :  { %v8265_v54 = vrot.slane %v7778_v57, %v16639_v2  ;;  %v8285_v39 = vrot.slane %v7793_v30, %v16639_v2 }
 0x4bd   :  { %v8468_v60 = vsel %vm8380_vm6, %v8265_v54, %v8467_v3 }
 0x4be   :  { %v7784_v58 = vpop.permute.xlu1 %7783  ;;  %v7799_v21 = vpop.permute.xlu0 %7798  ;;  %v8469_v16 = vsel %vm8382_vm7, %v8269_v13, %v8468_v60 }
 0x4bf   :  { %v8273_v18 = vrot.slane %v7784_v58, %v16639_v2  ;;  %v8293_v0 = vrot.slane %v7799_v21, %v16639_v2 }
 0x4c1   :  { %v8470_v27 = vsel %vm8384_vm8, %v8273_v18, %v8469_v16 }
 0x4c2   :  { %v7790_v46 = vpop.permute.xlu1 %7789  ;;  %v7805_v52 = vpop.permute.xlu0 %7804  ;;  %v8471_v40 = vsel %vm8386_vm9, %v8277_v49, %v8470_v27 }
 0x4c3   :  { %v8545_v4 = vsel %vm4851_vm2, %v8471_v40, 0.0  ;;  %v8281_v35 = vrot.slane %v7790_v46, %v16639_v2  ;;  %v8301_v51 = vrot.slane %v7805_v52, %v16639_v2 }
 0x4c4   :  { %8546 = vadd.xlane.f32.xlu1 %v8545_v4 }
 0x4c5   :  { %v8472_v10 = vsel %vm8374_vm3, %v8285_v39, %v8281_v35 }
 0x4c6   :  { %v7796_v23 = vpop.permute.xlu1 %7795  ;;  %v7811_v9 = vpop.permute.xlu0 %7810 }
 0x4c7   :  { %v8289_v34 = vrot.slane %v7796_v23, %v16639_v2  ;;  %v8309_v24 = vrot.slane %v7811_v9, %v16639_v2 }
 0x4c9   :  { %v8473_v31 = vsel %vm8376_vm4, %v8289_v34, %v8472_v10 }
 0x4ca   :  { %v7802_v50 = vpop.permute.xlu1 %7801  ;;  %v7817_v20 = vpop.permute.xlu0 %7816  ;;  %v8474_v1 = vsel %vm8378_vm5, %v8293_v0, %v8473_v31  ;;  %v18570_v0 = vld [vmem:[#allocation14_spill] sm:$0xff] }
 0x4cb   :  { %v8297_v42 = vrot.slane %v7802_v50, %v16639_v2  ;;  %v8317_v17 = vrot.slane %v7817_v20, %v16639_v2  ;;  %v18571_v20 = vld [vmem:[#allocation141_spill] sm:$0xff] }
 0x4cd   :  { %v8475_v26 = vsel %vm8380_vm6, %v8297_v42, %v8474_v1  ;;  %v18572_v1 = vld [vmem:[#allocation142_spill] sm:$0xff] }
 0x4ce   :  { %v7808_v15 = vpop.permute.xlu1 %7807  ;;  %v7823_v25 = vpop.permute.xlu0 %7822  ;;  %v8476_v19 = vsel %vm8382_vm7, %v8301_v51, %v8475_v26  ;;  %v18573_v51 = vld [vmem:[#allocation146_spill] sm:$0xff] }
 0x4cf   :  { %v8305_v5 = vrot.slane %v7808_v15, %v16639_v2  ;;  %v8325_v6 = vrot.slane %v7823_v25, %v16639_v2 }
 0x4d1   :  { %v8477_v43 = vsel %vm8384_vm8, %v8305_v5, %v8476_v19  ;;  %v18574_v5 = vld [vmem:[#allocation144_spill] sm:$0xff] }
 0x4d2   :  { %v7814_v59 = vpop.permute.xlu1 %7813  ;;  %v7841_v55 = vpop.permute.xlu0 %7840  ;;  %v8478_v63 = vsel %vm8386_vm9, %v8309_v24, %v8477_v43  ;;  %v18575_v43 = vld [vmem:[#allocation143_spill] sm:$0xff] }
 0x4d3   :  { %v8548_v12 = vsel %vm4851_vm2, %v8478_v63, 0.0  ;;  %v8313_v41 = vrot.slane %v7814_v59, %v16639_v2  ;;  %v8349_v48 = vrot.slane %v7841_v55, %v16639_v2 }
 0x4d4   :  { %8549 = vadd.xlane.f32.xlu0 %v8548_v12 }
 0x4d5   :  { %v8479_v11 = vsel %vm8374_vm3, %v8317_v17, %v8313_v41 }
 0x4d6   :  { %v7820_v33 = vpop.permute.xlu1 %7819  ;;  %v7844_v29 = vpop.permute.xlu0 %7843 }
 0x4d7   :  { %v8321_v36 = vrot.slane %v7820_v33, %v16639_v2  ;;  %v8353_v44 = vrot.slane %v7844_v29, %v16639_v2 }
 0x4d9   :  { %v8480_v38 = vsel %vm8376_vm4, %v8321_v36, %v8479_v11 }
 0x4da   :  { %v7838_v28 = vpop.permute.xlu1 %7837  ;;  %v7847_v56 = vpop.permute.xlu0 %7846  ;;  %v8481_v30 = vsel %vm8378_vm5, %v8325_v6, %v8480_v38  ;;  %v18580_v38 = vld [vmem:[#allocation145_spill] sm:$0xff] }
 0x4db   :  { %v8345_v37 = vrot.slane %v7838_v28, %v16639_v2  ;;  %v8357_v54 = vrot.slane %v7847_v56, %v16639_v2  ;;  %v18576_v28 = vld [vmem:[#allocation181_spill] sm:$0xff] }
 0x4dd   :  { %v8486_v7 = vsel %vm8374_vm3, %v8349_v48, %v8345_v37  ;;  %v18578_v37 = vld [vmem:[#allocation147_spill] sm:$0xff]  ;;  %v18579_v48 = vld [vmem:[#allocation185_spill] sm:$0xff] }
 0x4de   :  { %v7826_v32 = vpop.permute.xlu1 %7825  ;;  %v7850_v62 = vpop.permute.xlu0 %7849  ;;  %v8487_v57 = vsel %vm8376_vm4, %v8353_v44, %v8486_v7 }
 0x4df   :  { %v8329_v8 = vrot.slane %v7826_v32, %v16639_v2  ;;  %v8361_v13 = vrot.slane %v7850_v62, %v16639_v2  ;;  %v8488_v18 = vsel %vm8378_vm5, %v8357_v54, %v8487_v57  ;;  %v18577_v62 = vld [vmem:[#allocation183_spill] sm:$0xff] }
 0x4e1   :  { %v8482_v3 = vsel %vm8380_vm6, %v8329_v8, %v8481_v30  ;;  %v8489_v4 = vsel %vm8380_vm6, %v8361_v13, %v8488_v18 }
 0x4e2   :  { %v7829_v53 = vpop.permute.xlu1 %7828  ;;  %v7853_v47 = vpop.permute.xlu0 %7852 }
 0x4e3   :  { %v8333_v61 = vrot.slane %v7829_v53, %v16639_v2  ;;  %v8365_v49 = vrot.slane %v7853_v47, %v16639_v2 }
 0x4e5   :  { %v8483_v58 = vsel %vm8382_vm7, %v8333_v61, %v8482_v3  ;;  %v8490_v39 = vsel %vm8382_vm7, %v8365_v49, %v8489_v4  ;;  %v18583_v3 = vld [vmem:[#allocation188_spill] sm:$0xff] }
 0x4e6   :  { %v7832_v45 = vpop.permute.xlu1 %7831  ;;  %v7859_v27 = vpop.permute.xlu0 %7858 }
 0x4e7   :  { %v8337_v22 = vrot.slane %v7832_v45, %v16639_v2  ;;  %v8373_v23 = vrot.slane %v7859_v27, %v16639_v2  ;;  %v18581_v45 = vld [vmem:[#allocation184_spill] sm:$0xff]  ;;  %v18585_v27 = vld [vmem:[#allocation190_spill] sm:$0xff] }
 0x4e9   :  { %v8484_v16 = vsel %vm8384_vm8, %v8337_v22, %v8483_v58  ;;  %v18582_v22 = vld [vmem:[#allocation182_spill] sm:$0xff] }
 0x4ea   :  { %v7835_v60 = vpop.permute.xlu1 %7834 }
 0x4eb   :  { %v8341_v21 = vrot.slane %v7835_v60, %v16639_v2 }
 0x4ed   :  { %v8485_v46 = vsel %vm8386_vm9, %v8341_v21, %v8484_v16  ;;  %v18584_v21 = vld [vmem:[#allocation187_spill] sm:$0xff] }
 0x4ee   :  { %v7856_v52 = vpop.permute.xlu1 %7855  ;;  %v8551_v40 = vsel %vm4851_vm2, %v8485_v46, 0.0 }
 0x4ef   :  { %v8369_v35 = vrot.slane %v7856_v52, %v16639_v2  ;;  %8552 = vadd.xlane.f32.xlu1 %v8551_v40 }
 0x4f1   :  { %v8491_v9 = vsel %vm8384_vm8, %v8369_v35, %v8490_v39  ;;  %v18586_v35 = vld [vmem:[#allocation15_spill] sm:$0xff] }
 0x4f2   :  { %v8492_v34 = vsel %vm8386_vm9, %v8373_v23, %v8491_v9 }
 0x4f3   :  { %v8554_v10 = vsel %vm4851_vm2, %v8492_v34, 0.0  ;;  %v18587_v34 = vld [vmem:[#allocation18_spill] sm:$0xff] }
 0x4f4   :  { %8555 = vadd.xlane.f32.xlu0 %v8554_v10 }
 0x513   :  { %v8514_v25 = vpop.xlane.xlu0 %8513 }
 0x514   :  { %v8612_v19 = vrot.slane %v8514_v25, %v18571_v20  ;;  %v8620_v55 = vrot.slane %v8514_v25, %v18574_v5  ;;  %v8608_v63 = vrot.slane %v8514_v25, %v18570_v0  ;;  %v8624_v12 = vrot.slane %v8514_v25, %v18575_v43 }
 0x515   :  { %v8616_v32 = vrot.slane %v8514_v25, %v18572_v1  ;;  %v8636_v44 = vrot.slane %v8514_v25, %v18578_v37  ;;  %v8628_v30 = vrot.slane %v8514_v25, %v18573_v51  ;;  %v8632_v49 = vrot.slane %v8514_v25, %v18580_v38 }
 0x517   :  { %v17036_v47 = vpop.xlane.xlu0 %8516 }
 0x518   :  { %v8644_v13 = vrot.slane %v17036_v47, %v18571_v20  ;;  %v8652_v52 = vrot.slane %v17036_v47, %v18574_v5  ;;  %v8640_v23 = vrot.slane %v17036_v47, %v18570_v0 }
 0x51b   :  { %v17048_v4 = vpop.xlane.xlu0 %8519 }
 0x520   :  { %v8511_v31 = vpop.xlane.xlu1 %8510 }
 0x521   :  { %v8576_v50 = vrot.slane %v8511_v31, %v18570_v0  ;;  %v8580_v42 = vrot.slane %v8511_v31, %v18571_v20  ;;  %v8584_v26 = vrot.slane %v8511_v31, %v18572_v1  ;;  %v8596_v15 = vrot.slane %v8511_v31, %v18573_v51 }
 0x522   :  { %v8588_v24 = vrot.slane %v8511_v31, %v18574_v5  ;;  %v8592_v59 = vrot.slane %v8511_v31, %v18575_v43  ;;  %v8604_v53 = vrot.slane %v8511_v31, %v18578_v37  ;;  %v8600_v7 = vrot.slane %v8511_v31, %v18580_v38 }
 0x523   :  { %13762 = vrcp.f32 %v8576_v50  ;;  %v8676_v31 = vrot.slane %v17048_v4, %v18571_v20 }
 0x524   :  { %13764 = vrcp.f32 %v8580_v42  ;;  %v18588_v42 = vld [vmem:[#allocation16_spill] sm:$0xff] }
 0x525   :  { %13766 = vrcp.f32 %v8584_v26 }
 0x526   :  { %13768 = vrcp.f32 %v8596_v15  ;;  %v8648_v15 = vrot.slane %v17036_v47, %v18572_v1 }
 0x527   :  { %13770 = vrcp.f32 %v8588_v24  ;;  %v18589_v24 = vld [vmem:[#allocation186_spill] sm:$0xff] }
 0x528   :  { %13772 = vrcp.f32 %v8612_v19 }
 0x529   :  { %13774 = vrcp.f32 %v8592_v59  ;;  %v8656_v59 = vrot.slane %v17036_v47, %v18575_v43 }
 0x52a   :  { %13776 = vrcp.f32 %v8620_v55 }
 0x52b   :  { %13778 = vrcp.f32 %v8608_v63  ;;  %v18590_v63 = vld [vmem:[#allocation189_spill] sm:$0xff] }
 0x52c   :  { %13780 = vrcp.f32 %v8624_v12 }
 0x52d   :  { %13782 = vrcp.f32 %v8616_v32  ;;  %v8684_v32 = vrot.slane %v17048_v4, %v18574_v5 }
 0x52e   :  { %13784 = vrcp.f32 %v8604_v53  ;;  %v8680_v53 = vrot.slane %v17048_v4, %v18572_v1 }
 0x52f   :  { %13786 = vrcp.f32 %v8600_v7  ;;  %v8688_v7 = vrot.slane %v17048_v4, %v18575_v43 }
 0x530   :  { %v13763_v33 = vpop.eup %13762  ;;  %13788 = vrcp.f32 %v8636_v44  ;;  %v8660_v44 = vrot.slane %v17036_v47, %v18573_v51 }
 0x531   :  { %v13765_v29 = vpop.eup %13764  ;;  %v9214_v56 = vmul.f32 %v13763_v33, %v18576_v28  ;;  %13790 = vrcp.f32 %v8628_v30  ;;  %v8672_v33 = vrot.slane %v17048_v4, %v18570_v0  ;;  %v18591_v28 = vld [vmem:[#allocation19_spill] sm:$0xff]  ;;  %v8668_v30 = vrot.slane %v17036_v47, %v18578_v37 }
 0x532   :  { %v13767_v41 = vpop.eup %13766  ;;  %v9216_v36 = vmul.f32 %v13765_v29, %v18577_v62  ;;  %13792 = vrcp.f32 %v8644_v13  ;;  %v18592_v62 = vld [vmem:[#allocation17_spill] sm:$0xff]  ;;  %v8664_v13 = vrot.slane %v17036_v47, %v18580_v38 }
 0x533   :  { %v13769_v17 = vpop.eup %13768  ;;  %9478 = vperm.xlu1 %13721, %v9214_v56   ;;  %v9218_v11 = vmul.f32 %v13767_v41, %v18579_v48  ;;  %13794 = vrcp.f32 %v8632_v49  ;;  %v18593_v48 = vld [vmem:[#allocation191_spill] sm:$0xff]  ;;  %v8700_v49 = vrot.slane %v17048_v4, %v18578_v37  ;;  %v18599_v47 = vld [vmem:[#allocation21_spill] sm:$0xff] }
 0x534   :  { %9481 = vperm.xlu0 %13720, %v9216_v36   ;;  %v13771_v8 = vpop.eup %13770  ;;  %v9224_v6 = vmul.f32 %v13769_v17, %v18581_v45  ;;  %13796 = vrcp.f32 %v8652_v52  ;;  %v18594_v45 = vld [vmem:[#allocation20_spill] sm:$0xff] }
 0x535   :  { %v13773_v61 = vpop.eup %13772  ;;  %v9220_v57 = vmul.f32 %v13771_v8, %v18582_v22  ;;  %13798 = vrcp.f32 %v8640_v23  ;;  %v18595_v22 = vld [vmem:[#allocation192_spill] sm:$0xff] }
 0x536   :  { %v13775_v54 = vpop.eup %13774  ;;  %v9232_v60 = vmul.f32 %v13773_v61, %v18583_v3  ;;  %13800 = vrcp.f32 %v8676_v31  ;;  %v18596_v3 = vld [vmem:[#allocation193_spill] sm:$0xff]  ;;  %v8696_v31 = vrot.slane %v17048_v4, %v18580_v38 }
 0x537   :  { %9484 = vperm.xlu1 %13721, %v9218_v11   ;;  %v13777_v58 = vpop.eup %13776  ;;  %v9222_v18 = vmul.f32 %v13775_v54, %v18584_v21  ;;  %13802 = vrcp.f32 %v8648_v15  ;;  %v18597_v21 = vld [vmem:[#allocation24_spill] sm:$0xff] }
 0x538   :  { %9493 = vperm.xlu0 %13720, %v9224_v6   ;;  %v13779_v16 = vpop.eup %13778  ;;  %v9236_v46 = vmul.f32 %v13777_v58, %v18585_v27  ;;  %13804 = vrcp.f32 %v8656_v59  ;;  %v17086_v27 = vpop.xlane.xlu1 %8522 }
 0x539   :  { %v13781_v40 = vpop.eup %13780  ;;  %v9230_v39 = vmul.f32 %v13779_v16, %v18586_v35  ;;  %13806 = vrcp.f32 %v8672_v33  ;;  %v8708_v23 = vrot.slane %v17086_v27, %v18571_v20  ;;  %v8716_v15 = vrot.slane %v17086_v27, %v18574_v5 }
 0x53a   :  { %v13783_v9 = vpop.eup %13782  ;;  %v9238_v10 = vmul.f32 %v13781_v40, %v18587_v34  ;;  %13808 = vrcp.f32 %v8684_v32  ;;  %v8692_v40 = vrot.slane %v17048_v4, %v18573_v51  ;;  %v18600_v34 = vld [vmem:[#allocation22_spill] sm:$0xff]  ;;  %v18603_v4 = vld [vmem:[#allocation29_spill] sm:$0xff]  ;;  %v8712_v32 = vrot.slane %v17086_v27, %v18572_v1 }
 0x53b   :  { %9487 = vperm.xlu1 %13721, %v9220_v57   ;;  %v13785_v50 = vpop.eup %13784  ;;  %v9234_v26 = vmul.f32 %v13783_v9, %v18588_v42  ;;  %13810 = vrcp.f32 %v8680_v53  ;;  %v18601_v42 = vld [vmem:[#allocation152_spill] sm:$0xff]  ;;  %v8720_v53 = vrot.slane %v17086_v27, %v18575_v43 }
 0x53c   :  { %9624 = vperm.xlu0 %13720, %v9232_v60   ;;  %v13787_v25 = vpop.eup %13786  ;;  %v9228_v19 = vmul.f32 %v13785_v50, %v18589_v24  ;;  %13812 = vrcp.f32 %v8688_v7  ;;  %v17100_v24 = vpop.xlane.xlu0 %8525 }
 0x53d   :  { %v13789_v55 = vpop.eup %13788  ;;  %v9226_v12 = vmul.f32 %v13787_v25, %v18590_v63  ;;  %13814 = vrcp.f32 %v8660_v44  ;;  %v8740_v33 = vrot.slane %v17100_v24, %v18571_v20  ;;  %v8736_v7 = vrot.slane %v17100_v24, %v18570_v0 }
 0x53e   :  { %v13791_v29 = vpop.eup %13790  ;;  %v9244_v56 = vmul.f32 %v13789_v55, %v18591_v28  ;;  %13816 = vrcp.f32 %v8668_v30  ;;  %v8704_v55 = vrot.slane %v17086_v27, %v18570_v0  ;;  %v18604_v28 = vld [vmem:[#allocation194_spill] sm:$0xff]  ;;  %v8748_v44 = vrot.slane %v17100_v24, %v18574_v5 }
 0x53f   :  { %9490 = vperm.xlu1 %13721, %v9222_v18   ;;  %v13793_v41 = vpop.eup %13792  ;;  %v9240_v36 = vmul.f32 %v13791_v29, %v18592_v62  ;;  %13818 = vrcp.f32 %v8664_v13  ;;  %v18605_v62 = vld [vmem:[#allocation196_spill] sm:$0xff]  ;;  %v8744_v30 = vrot.slane %v17100_v24, %v18572_v1  ;;  %v8752_v13 = vrot.slane %v17100_v24, %v18575_v43 }
 0x540   :  { %9630 = vperm.xlu0 %13720, %v9236_v46   ;;  %v13795_v17 = vpop.eup %13794  ;;  %v9248_v11 = vmul.f32 %v13793_v41, %v18593_v48  ;;  %v18598_v46 = vld [vmem:[#allocation195_spill] sm:$0xff]  ;;  %13820 = vrcp.f32 %v8700_v49  ;;  %v18606_v48 = vld [vmem:[#allocation148_spill] sm:$0xff]  ;;  %v8724_v49 = vrot.slane %v17086_v27, %v18573_v51 }
 0x541   :  { %v13797_v8 = vpop.eup %13796  ;;  %v9242_v6 = vmul.f32 %v13795_v17, %v18594_v45  ;;  %13822 = vrcp.f32 %v8692_v40  ;;  %v18607_v45 = vld [vmem:[#allocation23_spill] sm:$0xff]  ;;  %v8732_v40 = vrot.slane %v17086_v27, %v18578_v37 }
 0x542   :  { %v13799_v61 = vpop.eup %13798  ;;  %v9252_v57 = vmul.f32 %v13797_v8, %v18595_v22  ;;  %13824 = vrcp.f32 %v8708_v23  ;;  %v18608_v22 = vld [vmem:[#allocation26_spill] sm:$0xff]  ;;  %v8728_v23 = vrot.slane %v17086_v27, %v18580_v38 }
 0x543   :  { %9621 = vperm.xlu1 %13721, %v9230_v39   ;;  %v13801_v54 = vpop.eup %13800  ;;  %v9246_v60 = vmul.f32 %v13799_v61, %v18596_v3  ;;  %13826 = vrcp.f32 %v8696_v31  ;;  %v18609_v3 = vld [vmem:[#allocation150_spill] sm:$0xff]  ;;  %v8764_v31 = vrot.slane %v17100_v24, %v18578_v37 }
 0x544   :  { %9633 = vperm.xlu0 %13720, %v9238_v10   ;;  %v13803_v58 = vpop.eup %13802  ;;  %v9264_v18 = vmul.f32 %v13801_v54, %v18597_v21  ;;  %13828 = vrcp.f32 %v8716_v15  ;;  %v18610_v21 = vld [vmem:[#allocation155_spill] sm:$0xff]  ;;  %v18615_v27 = vld [vmem:[#allocation158_spill] sm:$0xff] }
 0x545   :  { %v13805_v16 = vpop.eup %13804  ;;  %v9250_v52 = vmul.f32 %v13803_v58, %v18598_v46  ;;  %13830 = vrcp.f32 %v8704_v55  ;;  %v18611_v46 = vld [vmem:[#allocation25_spill] sm:$0xff] }
 0x546   :  { %v13807_v35 = vpop.eup %13806  ;;  %v9254_v39 = vmul.f32 %v13805_v16, %v18599_v47  ;;  %13832 = vrcp.f32 %v8740_v33  ;;  %v18612_v47 = vld [vmem:[#allocation33_spill] sm:$0xff]  ;;  %v8760_v33 = vrot.slane %v17100_v24, %v18580_v38 }
 0x547   :  { %9627 = vperm.xlu1 %13721, %v9234_v26   ;;  %v13809_v9 = vpop.eup %13808  ;;  %v9262_v10 = vmul.f32 %v13807_v35, %v18600_v34  ;;  %13834 = vrcp.f32 %v8712_v32  ;;  %v18613_v34 = vld [vmem:[#allocation30_spill] sm:$0xff] }
 0x548   :  { %9499 = vperm.xlu0 %13720, %v9228_v19   ;;  %v13811_v50 = vpop.eup %13810  ;;  %v9268_v26 = vmul.f32 %v13809_v9, %v18601_v42  ;;  %v18602_v19 = vld [vmem:[#allocation149_spill] sm:$0xff]  ;;  %13836 = vrcp.f32 %v8720_v53  ;;  %v17138_v42 = vpop.xlane.xlu1 %8528 }
 0x549   :  { %v13813_v25 = vpop.eup %13812  ;;  %v9266_v59 = vmul.f32 %v13811_v50, %v18602_v19  ;;  %13838 = vrcp.f32 %v8736_v7  ;;  %v8772_v55 = vrot.slane %v17138_v42, %v18571_v20  ;;  %v8780_v32 = vrot.slane %v17138_v42, %v18574_v5 }
 0x54a   :  { %v13815_v63 = vpop.eup %13814  ;;  %13840 = vrcp.f32 %v8748_v44  ;;  %v8776_v44 = vrot.slane %v17138_v42, %v18572_v1 }
 0x54b   :  { %9496 = vperm.xlu1 %13721, %v9226_v12   ;;  %v9270_v12 = vmul.f32 %v13813_v25, %v18603_v4  ;;  %v13817_v29 = vpop.eup %13816  ;;  %13842 = vrcp.f32 %v8744_v30  ;;  %v8756_v25 = vrot.slane %v17100_v24, %v18573_v51  ;;  %v18616_v4 = vld [vmem:[#allocation156_spill] sm:$0xff]  ;;  %v18619_v24 = vld [vmem:[#allocation159_spill] sm:$0xff]  ;;  %v8784_v30 = vrot.slane %v17138_v42, %v18575_v43 }
 0x54c   :  { %9642 = vperm.xlu0 %13720, %v9244_v56   ;;  %v9256_v56 = vmul.f32 %v13815_v63, %v18604_v28  ;;  %v13819_v41 = vpop.eup %13818  ;;  %13844 = vrcp.f32 %v8752_v13  ;;  %v18617_v28 = vld [vmem:[#allocation35_spill] sm:$0xff] }
 0x54d   :  { %v13821_v17 = vpop.eup %13820  ;;  %13846 = vrcp.f32 %v8724_v49 }
 0x54e   :  { %v13823_v8 = vpop.eup %13822  ;;  %13848 = vrcp.f32 %v8732_v40 }
 0x54f   :  { %9636 = vperm.xlu1 %13721, %v9240_v36   ;;  %v9260_v36 = vmul.f32 %v13817_v29, %v18605_v62  ;;  %v13825_v61 = vpop.eup %13824  ;;  %13850 = vrcp.f32 %v8728_v23  ;;  %v17152_v62 = vpop.xlane.xlu0 %8531 }
 0x550   :  { %9767 = vperm.xlu0 %13720, %v9248_v11   ;;  %v9258_v11 = vmul.f32 %v13819_v41, %v18606_v48  ;;  %v13827_v54 = vpop.eup %13826  ;;  %13852 = vrcp.f32 %v8764_v31  ;;  %v8804_v7 = vrot.slane %v17152_v62, %v18571_v20  ;;  %v8800_v13 = vrot.slane %v17152_v62, %v18570_v0 }
 0x551   :  { %v13829_v58 = vpop.eup %13828  ;;  %13854 = vrcp.f32 %v8756_v25  ;;  %v8812_v49 = vrot.slane %v17152_v62, %v18574_v5  ;;  %v8808_v40 = vrot.slane %v17152_v62, %v18572_v1  ;;  %v8816_v23 = vrot.slane %v17152_v62, %v18575_v43 }
 0x552   :  { %v13831_v16 = vpop.eup %13830  ;;  %13856 = vrcp.f32 %v8772_v55 }
 0x553   :  { %9639 = vperm.xlu1 %13721, %v9242_v6   ;;  %v9276_v6 = vmul.f32 %v13821_v17, %v18607_v45  ;;  %v13833_v35 = vpop.eup %13832  ;;  %13858 = vrcp.f32 %v8760_v33  ;;  %v8768_v17 = vrot.slane %v17138_v42, %v18570_v0  ;;  %v18620_v45 = vld [vmem:[#allocation151_spill] sm:$0xff] }
 0x554   :  { %9773 = vperm.xlu0 %13720, %v9252_v57   ;;  %v9272_v57 = vmul.f32 %v13823_v8, %v18608_v22  ;;  %v13835_v9 = vpop.eup %13834  ;;  %13860 = vrcp.f32 %v8780_v32  ;;  %v18621_v22 = vld [vmem:[#allocation37_spill] sm:$0xff] }
 0x555   :  { %v13837_v50 = vpop.eup %13836  ;;  %13862 = vrcp.f32 %v8768_v17 }
 0x556   :  { %v13839_v19 = vpop.eup %13838  ;;  %13864 = vrcp.f32 %v8804_v7 }
 0x557   :  { %9764 = vperm.xlu1 %13721, %v9246_v60   ;;  %v9280_v60 = vmul.f32 %v13825_v61, %v18609_v3  ;;  %v13841_v63 = vpop.eup %13840  ;;  %v18622_v3 = vld [vmem:[#allocation154_spill] sm:$0xff]  ;;  %13866 = vrcp.f32 %v8776_v44 }
 0x558   :  { %9910 = vperm.xlu0 %13720, %v9264_v18   ;;  %v9274_v18 = vmul.f32 %v13827_v54, %v18610_v21  ;;  %v13843_v29 = vpop.eup %13842  ;;  %v18623_v21 = vld [vmem:[#allocation157_spill] sm:$0xff]  ;;  %13868 = vrcp.f32 %v8784_v30 }
 0x559   :  { %v13845_v41 = vpop.eup %13844  ;;  %13870 = vrcp.f32 %v8800_v13  ;;  %v18635_v13 = vld [vmem:[#allocation63_spill] sm:$0xff] }
 0x55a   :  { %v13847_v48 = vpop.eup %13846  ;;  %13872 = vrcp.f32 %v8812_v49 }
 0x55b   :  { %9770 = vperm.xlu1 %13721, %v9250_v52   ;;  %v9284_v52 = vmul.f32 %v13829_v58, %v18611_v46  ;;  %v13849_v8 = vpop.eup %13848  ;;  %v18624_v46 = vld [vmem:[#allocation161_spill] sm:$0xff]  ;;  %13874 = vrcp.f32 %v8808_v40 }
 0x55c   :  { %9776 = vperm.xlu0 %13720, %v9254_v39   ;;  %v9278_v39 = vmul.f32 %v13831_v16, %v18612_v47  ;;  %v13851_v61 = vpop.eup %13850  ;;  %v18625_v47 = vld [vmem:[#allocation164_spill] sm:$0xff]  ;;  %13876 = vrcp.f32 %v8816_v23  ;;  %v8828_v23 = vrot.slane %v17152_v62, %v18578_v37 }
 0x55d   :  { %v13853_v54 = vpop.eup %13852 }
 0x55e   :  { %v13855_v58 = vpop.eup %13854 }
 0x55f   :  { %9907 = vperm.xlu1 %13721, %v9262_v10   ;;  %v9296_v10 = vmul.f32 %v13833_v35, %v18613_v34  ;;  %v13857_v16 = vpop.eup %13856  ;;  %v17178_v34 = vpop.xlane.xlu1 %8534 }
 0x560   :  { %9916 = vperm.xlu0 %13720, %v9268_v26   ;;  %v18614_v26 = vld [vmem:[#allocation27_spill] sm:$0xff]  ;;  %v13859_v35 = vpop.eup %13858 }
 0x561   :  { %v9282_v15 = vmul.f32 %v13835_v9, %v18614_v26  ;;  %v13861_v9 = vpop.eup %13860 }
 0x562   :  { %v13863_v26 = vpop.eup %13862 }
 0x563   :  { %9913 = vperm.xlu1 %13721, %v9266_v59   ;;  %v9286_v59 = vmul.f32 %v13837_v50, %v18615_v27  ;;  %v8788_v50 = vrot.slane %v17138_v42, %v18573_v51  ;;  %v13865_v27 = vpop.eup %13864 }
 0x564   :  { %9919 = vperm.xlu0 %13720, %v9270_v12   ;;  %v9294_v12 = vmul.f32 %v13839_v19, %v18616_v4  ;;  %v8836_v19 = vrot.slane %v17178_v34, %v18571_v20  ;;  %v13867_v4 = vpop.eup %13866 }
 0x565   :  { %13878 = vrcp.f32 %v8788_v50 }
 0x566   :  { %13880 = vrcp.f32 %v8836_v19  ;;  %v18639_v19 = vld [vmem:[#allocation57_spill] sm:$0xff] }
 0x567   :  { %9779 = vperm.xlu1 %13721, %v9256_v56   ;;  %v9300_v56 = vmul.f32 %v13841_v63, %v18617_v28  ;;  %v8792_v63 = vrot.slane %v17138_v42, %v18580_v38  ;;  %v13869_v28 = vpop.eup %13868 }
 0x568   :  { %9785 = vperm.xlu0 %13720, %v9260_v36   ;;  %v18618_v36 = vld [vmem:[#allocation50_spill] sm:$0xff] }
 0x569   :  { %v9298_v53 = vmul.f32 %v13843_v29, %v18618_v36  ;;  %v8796_v29 = vrot.slane %v17138_v42, %v18578_v37  ;;  %13882 = vrcp.f32 %v8792_v63  ;;  %v13871_v36 = vpop.eup %13870  ;;  %v18632_v42 = vld [vmem:[#allocation172_spill] sm:$0xff] }
 0x56a   :  { %v9326_v7 = vmul.f32 %v13871_v36, %v18632_v42 }
 0x56b   :  { %9782 = vperm.xlu1 %13721, %v9258_v11   ;;  %v9302_v11 = vmul.f32 %v13845_v41, %v18619_v24  ;;  %v8832_v41 = vrot.slane %v17178_v34, %v18570_v0  ;;  %13884 = vrcp.f32 %v8796_v29  ;;  %v13873_v24 = vpop.eup %13872 }
 0x56c   :  { %9928 = vperm.xlu0 %13720, %v9276_v6   ;;  %v9288_v6 = vmul.f32 %v13847_v48, %v18620_v45  ;;  %v8844_v48 = vrot.slane %v17178_v34, %v18574_v5  ;;  %v13875_v45 = vpop.eup %13874 }
 0x56d   :  { %13886 = vrcp.f32 %v8832_v41 }
 0x56e   :  { %13888 = vrcp.f32 %v8844_v48  ;;  %v8852_v48 = vrot.slane %v17178_v34, %v18573_v51 }
 0x56f   :  { %9922 = vperm.xlu1 %13721, %v9272_v57   ;;  %v9292_v57 = vmul.f32 %v13849_v8, %v18621_v22  ;;  %v8840_v8 = vrot.slane %v17178_v34, %v18572_v1  ;;  %v13877_v22 = vpop.eup %13876 }
 0x570   :  { %10053 = vperm.xlu0 %13720, %v9280_v60   ;;  %v9290_v60 = vmul.f32 %v13851_v61, %v18622_v3 }
 0x571   :  { %13890 = vrcp.f32 %v8840_v8 }
 0x572   :  { %v13879_v3 = vpop.eup %13878 }
 0x573   :  { %9925 = vperm.xlu1 %13721, %v9274_v18   ;;  %v9308_v18 = vmul.f32 %v13853_v54, %v18623_v21  ;;  %v8820_v54 = vrot.slane %v17152_v62, %v18573_v51  ;;  %v8848_v21 = vrot.slane %v17178_v34, %v18575_v43 }
 0x574   :  { %10059 = vperm.xlu0 %13720, %v9284_v52   ;;  %v9304_v52 = vmul.f32 %v13855_v58, %v18624_v46  ;;  %v9334_v58 = vmul.f32 %v13877_v22, %v18635_v13 }
 0x577   :  { %10050 = vperm.xlu1 %13721, %v9278_v39   ;;  %v9312_v39 = vmul.f32 %v13857_v16, %v18625_v47  ;;  %v18636_v16 = vld [vmem:[#allocation55_spill] sm:$0xff]  ;;  %v18637_v47 = vld [vmem:[#allocation68_spill] sm:$0xff] }
 0x578   :  { %10196 = vperm.xlu0 %13720, %v9296_v10   ;;  %v18626_v10 = vld [vmem:[#allocation160_spill] sm:$0xff]  ;;  %v9320_v46 = vmul.f32 %v13879_v3, %v18636_v16  ;;  %v18646_v16 = vld [vmem:[#allocation175_spill] sm:$0xff] }
 0x579   :  { %v9306_v31 = vmul.f32 %v13859_v35, %v18626_v10  ;;  %v18645_v3 = vld [vmem:[#allocation72_spill] sm:$0xff] }
 0x57b   :  { %10056 = vperm.xlu1 %13721, %v9282_v15   ;;  %v18627_v15 = vld [vmem:[#allocation52_spill] sm:$0xff] }
 0x57c   :  { %10062 = vperm.xlu0 %13720, %v9286_v59   ;;  %v9316_v25 = vmul.f32 %v13861_v9, %v18627_v15  ;;  %v18628_v59 = vld [vmem:[#allocation167_spill] sm:$0xff] }
 0x57d   :  { %v9310_v55 = vmul.f32 %v13863_v26, %v18628_v59  ;;  %v8824_v26 = vrot.slane %v17152_v62, %v18580_v38 }
 0x57f   :  { %10193 = vperm.xlu1 %13721, %v9294_v12   ;;  %v18629_v12 = vld [vmem:[#allocation170_spill] sm:$0xff] }
 0x580   :  { %10202 = vperm.xlu0 %13720, %v9300_v56   ;;  %v9328_v33 = vmul.f32 %v13865_v27, %v18629_v12  ;;  %v18630_v56 = vld [vmem:[#allocation163_spill] sm:$0xff] }
 0x581   :  { %v9314_v32 = vmul.f32 %v13867_v4, %v18630_v56  ;;  %v18640_v4 = vld [vmem:[#allocation70_spill] sm:$0xff] }
 0x583   :  { %10199 = vperm.xlu1 %13721, %v9298_v53   ;;  %v18631_v53 = vld [vmem:[#allocation165_spill] sm:$0xff] }
 0x584   :  { %10205 = vperm.xlu0 %13720, %v9302_v11   ;;  %v9318_v17 = vmul.f32 %v13869_v28, %v18631_v53  ;;  %v17198_v11 = vpop.xlane.xlu0 %8537  ;;  %v18641_v28 = vld [vmem:[#allocation65_spill] sm:$0xff]  ;;  %v18642_v53 = vld [vmem:[#allocation178_spill] sm:$0xff] }
 0x585   :  { %v8868_v61 = vrot.slane %v17198_v11, %v18571_v20  ;;  %v8876_v59 = vrot.slane %v17198_v11, %v18574_v5  ;;  %v8872_v62 = vrot.slane %v17198_v11, %v18572_v1 }
 0x587   :  { %10065 = vperm.xlu1 %13721, %v9288_v6   ;;  %v18633_v6 = vld [vmem:[#allocation166_spill] sm:$0xff]  ;;  %13892 = vrcp.f32 %v8868_v61  ;;  %v18644_v61 = vld [vmem:[#allocation61_spill] sm:$0xff] }
 0x588   :  { %10071 = vperm.xlu0 %13720, %v9292_v57   ;;  %v9332_v44 = vmul.f32 %v13873_v24, %v18633_v6  ;;  %v18634_v57 = vld [vmem:[#allocation66_spill] sm:$0xff]  ;;  %v17214_v49 = vpop.xlane.xlu0 %8543  ;;  %13894 = vrcp.f32 %v8820_v54 }
 0x589   :  { %v9330_v30 = vmul.f32 %v13875_v45, %v18634_v57  ;;  %13896 = vrcp.f32 %v8848_v21  ;;  %v8880_v45 = vrot.slane %v17198_v11, %v18575_v43 }
 0x58b   :  { %10068 = vperm.xlu1 %13721, %v9290_v60   ;;  %v17209_v60 = vpop.xlane.xlu1 %8540 }
 0x58c   :  { %10214 = vperm.xlu0 %13720, %v9308_v18   ;;  %v13881_v18 = vpop.eup %13880  ;;  %v17224_v10 = vpop.xlane.xlu0 %8549  ;;  %v8896_v57 = vrot.slane %v17209_v60, %v18570_v0 }
 0x58d   :  { %v13883_v40 = vpop.eup %13882 }
 0x58e   :  { %v13885_v9 = vpop.eup %13884 }
 0x58f   :  { %10208 = vperm.xlu1 %13721, %v9304_v52   ;;  %v8864_v52 = vrot.slane %v17198_v11, %v18570_v0  ;;  %v17219_v35 = vpop.xlane.xlu1 %8546  ;;  %v13887_v15 = vpop.eup %13886  ;;  %v9324_v27 = vmul.f32 %v13885_v9, %v18639_v19  ;;  %v8908_v9 = vrot.slane %v17209_v60, %v18574_v5  ;;  %v8904_v19 = vrot.slane %v17209_v60, %v18572_v1 }
 0x590   :  { %10339 = vperm.xlu0 %13720, %v9312_v39   ;;  %v9344_v39 = vmul.f32 %v13881_v18, %v18637_v47  ;;  %v17234_v63 = vpop.xlane.xlu0 %8555  ;;  %v9342_v12 = vmul.f32 %v13887_v15, %v18640_v4 }
 0x591   :  { %13898 = vrcp.f32 %v8864_v52  ;;  %v8856_v52 = vrot.slane %v17178_v34, %v18580_v38 }
 0x592   :  { %13900 = vrcp.f32 %v8828_v23 }
 0x593   :  { %10211 = vperm.xlu1 %13721, %v9306_v31   ;;  %v18638_v31 = vld [vmem:[#allocation64_spill] sm:$0xff]  ;;  %13902 = vrcp.f32 %v8824_v26 }
 0x594   :  { %10345 = vperm.xlu0 %13720, %v9316_v25   ;;  %v9322_v50 = vmul.f32 %v13883_v40, %v18638_v31  ;;  %v17229_v25 = vpop.xlane.xlu1 %8552  ;;  %13904 = vrcp.f32 %v8876_v59  ;;  %v18648_v26 = vld [vmem:[#allocation176_spill] sm:$0xff] }
 0x595   :  { %13906 = vrcp.f32 %v8872_v62 }
 0x597   :  { %10336 = vperm.xlu1 %13721, %v9310_v55   ;;  %v13889_v55 = vpop.eup %13888 }
 0x598   :  { %10482 = vperm.xlu0 %13720, %v9328_v33   ;;  %v13891_v33 = vpop.eup %13890  ;;  %v9348_v56 = vmul.f32 %v13889_v55, %v18641_v28 }
 0x599   :  { %v13893_v41 = vpop.eup %13892 }
 0x59a   :  { %v13895_v24 = vpop.eup %13894 }
 0x59b   :  { %10342 = vperm.xlu1 %13721, %v9314_v32   ;;  %v8900_v32 = vrot.slane %v17209_v60, %v18571_v20  ;;  %v13897_v6 = vpop.eup %13896  ;;  %v9336_v22 = vmul.f32 %v13895_v24, %v18644_v61 }
 0x59c   :  { %10348 = vperm.xlu0 %13720, %v9318_v17   ;;  %v9346_v17 = vmul.f32 %v13891_v33, %v18642_v53  ;;  %v9350_v13 = vmul.f32 %v13897_v6, %v18645_v3  ;;  %v18650_v53 = vld [vmem:[#allocation76_spill] sm:$0xff] }
 0x59d   :  { %13908 = vrcp.f32 %v8900_v32 }
 0x59e   :  { %13910 = vrcp.f32 %v8852_v48 }
 0x59f   :  { %10479 = vperm.xlu1 %13721, %v9326_v7   ;;  %v18643_v7 = vld [vmem:[#allocation173_spill] sm:$0xff]  ;;  %13912 = vrcp.f32 %v8880_v45 }
 0x5a0   :  { %10488 = vperm.xlu0 %13720, %v9332_v44   ;;  %v9360_v8 = vmul.f32 %v13893_v41, %v18643_v7  ;;  %13914 = vrcp.f32 %v8896_v57  ;;  %v18651_v7 = vld [vmem:[#allocation78_spill] sm:$0xff] }
 0x5a3   :  { %10485 = vperm.xlu1 %13721, %v9330_v30   ;;  %v13899_v30 = vpop.eup %13898 }
 0x5a4   :  { %10491 = vperm.xlu0 %13720, %v9334_v58   ;;  %v8860_v58 = vrot.slane %v17178_v34, %v18578_v37  ;;  %v13901_v21 = vpop.eup %13900  ;;  %v8932_v34 = vrot.slane %v17214_v49, %v18571_v20 }
 0x5a5   :  { %v13903_v40 = vpop.eup %13902 }
 0x5a6   :  { %13916 = vrcp.f32 %v8860_v58  ;;  %v13905_v31 = vpop.eup %13904  ;;  %v9338_v15 = vmul.f32 %v13903_v40, %v18648_v26  ;;  %v18652_v58 = vld [vmem:[#allocation171_spill] sm:$0xff]  ;;  %v8888_v26 = vrot.slane %v17198_v11, %v18580_v38 }
 0x5a7   :  { %10351 = vperm.xlu1 %13721, %v9320_v46   ;;  %v9358_v46 = vmul.f32 %v13899_v30, %v18646_v16  ;;  %13918 = vrcp.f32 %v8856_v52  ;;  %v8892_v30 = vrot.slane %v17198_v11, %v18578_v37 }
 0x5a8   :  { %10625 = vperm.xlu0 %13720, %v9344_v39   ;;  %v18647_v39 = vld [vmem:[#allocation168_spill] sm:$0xff]  ;;  %13920 = vrcp.f32 %v8908_v9 }
 0x5a9   :  { %v9340_v23 = vmul.f32 %v13901_v21, %v18647_v39  ;;  %13922 = vrcp.f32 %v8904_v19 }
 0x5aa   :  { %13924 = vrcp.f32 %v8932_v34 }
 0x5ab   :  { %10354 = vperm.xlu1 %13721, %v9322_v50  }
 0x5ac   :  { %10357 = vperm.xlu0 %13720, %v9324_v27   ;;  %v13907_v27 = vpop.eup %13906 }
 0x5ad   :  { %v13909_v33 = vpop.eup %13908 }
 0x5ae   :  { %v17239_v29 = vpop.permute.xlu1 %9478 }
 0x5af   :  { %v9482_v36 = vpop.permute.xlu0 %9481  ;;  %10622 = vperm.xlu1 %13721, %v9342_v12   ;;  %v9504_v59 = vrot.slane %v17239_v29, %v16639_v2  ;;  %v18649_v12 = vld [vmem:[#allocation74_spill] sm:$0xff]  ;;  %v8884_v29 = vrot.slane %v17198_v11, %v18573_v51 }
 0x5b0   :  { %10631 = vperm.xlu0 %13720, %v9348_v56   ;;  %v9508_v55 = vrot.slane %v9482_v36, %v16639_v2  ;;  %v9364_v62 = vmul.f32 %v13905_v31, %v18649_v12  ;;  %v13911_v36 = vpop.eup %13910 }
 0x5b1   :  { %v13913_v45 = vpop.eup %13912  ;;  %v9352_v21 = vmul.f32 %v13911_v36, %v18652_v58  ;;  %13926 = vrcp.f32 %v8884_v29  ;;  %v18656_v29 = vld [vmem:[#allocation28_spill] sm:$0xff]  ;;  %v18657_v36 = vld [vmem:[#allocation69_spill] sm:$0xff] }
 0x5b2   :  { %v9485_v42 = vpop.permute.xlu1 %9484  ;;  %v9533_v48 = vsel %vm8374_vm3, %v9508_v55, %v9504_v59  ;;  %v13915_v16 = vpop.eup %13914  ;;  %v18654_v59 = vld [vmem:[#allocation80_spill] sm:$0xff]  ;;  %v18660_v58 = vld [vmem:[#allocation77_spill] sm:$0xff] }
 0x5b3   :  { %v17250_v44 = vpop.permute.xlu0 %9493  ;;  %10628 = vperm.xlu1 %13721, %v9346_v17   ;;  %v9512_v28 = vrot.slane %v9485_v42, %v16639_v2  ;;  %v9362_v17 = vmul.f32 %v13907_v27, %v18650_v53  ;;  %v9376_v42 = vmul.f32 %v13909_v33, %v18651_v7  ;;  %v9374_v55 = vmul.f32 %v13915_v16, %v18654_v59 }
 0x5b4   :  { %10768 = vperm.xlu0 %13720, %v9360_v8   ;;  %v8912_v8 = vrot.slane %v17209_v60, %v18575_v43  ;;  %v18658_v7 = vmov 0.0   ;;  %v8916_v16 = vrot.slane %v17209_v60, %v18573_v51 }
 0x5b5   :  { %v9534_v6 = vsel %vm8376_vm4, %v9512_v28, %v9533_v48 }
 0x5b6   :  { %v9488_v54 = vpop.permute.xlu1 %9487  ;;  %13928 = vrcp.f32 %v8912_v8 }
 0x5b7   :  { %v17258_v18 = vpop.permute.xlu0 %9624  ;;  %10494 = vperm.xlu1 %13721, %v9336_v22   ;;  %v9516_v32 = vrot.slane %v9488_v54, %v16639_v2  ;;  %v8928_v54 = vrot.slane %v17214_v49, %v18570_v0 }
 0x5b8   :  { %10634 = vperm.xlu0 %13720, %v9350_v13   ;;  %v9651_v52 = vrot.slane %v17258_v18, %v16639_v2  ;;  %v8940_v18 = vrot.slane %v17214_v49, %v18574_v5 }
 0x5b9   :  { %v9535_v22 = vsel %vm8378_vm5, %v9516_v32, %v9534_v6  ;;  %13930 = vrcp.f32 %v8928_v54 }
 0x5ba   :  { %v9491_v47 = vpop.permute.xlu1 %9490  ;;  %13932 = vrcp.f32 %v8892_v30 }
 0x5bb   :  { %v17266_v50 = vpop.permute.xlu0 %9630  ;;  %10765 = vperm.xlu1 %13721, %v9358_v46   ;;  %v9520_v41 = vrot.slane %v9491_v47, %v16639_v2  ;;  %v9524_v46 = vrot.slane %v17250_v44, %v16639_v2  ;;  %v18653_v47 = vld [vmem:[#allocation73_spill] sm:$0xff]  ;;  %13934 = vrcp.f32 %v8888_v26  ;;  %v18662_v26 = vld [vmem:[#allocation31_spill] sm:$0xff] }
 0x5bc   :  { %10500 = vperm.xlu0 %13720, %v9340_v23   ;;  %v9366_v39 = vmul.f32 %v13913_v45, %v18653_v47  ;;  %v13917_v23 = vpop.eup %13916  ;;  %v9659_v11 = vrot.slane %v17266_v50, %v16639_v2  ;;  %v18659_v45 = vld [vmem:[#allocation75_spill] sm:$0xff]  ;;  %13936 = vrcp.f32 %v8940_v18 }
 0x5bd   :  { %v9536_v3 = vsel %vm8380_vm6, %v9520_v41, %v9535_v22 }
 0x5be   :  { %v9622_v4 = vpop.permute.xlu1 %9621  ;;  %v9537_v44 = vsel %vm8382_vm7, %v9524_v46, %v9536_v3 }
 0x5bf   :  { %v17278_v56 = vpop.permute.xlu0 %9633  ;;  %10497 = vperm.xlu1 %13721, %v9338_v15   ;;  %v9647_v57 = vrot.slane %v9622_v4, %v16639_v2  ;;  %v13919_v4 = vpop.eup %13918 }
 0x5c0   :  { %10774 = vperm.xlu0 %13720, %v9364_v62   ;;  %v18655_v62 = vld [vmem:[#allocation67_spill] sm:$0xff]  ;;  %v13921_v32 = vpop.eup %13920  ;;  %v9663_v50 = vrot.slane %v17278_v56, %v16639_v2  ;;  %v9354_v48 = vmul.f32 %v13919_v4, %v18657_v36 }
 0x5c1   :  { %v9676_v15 = vsel %vm8374_vm3, %v9651_v52, %v9647_v57  ;;  %v9356_v33 = vmul.f32 %v13917_v23, %v18655_v62  ;;  %v9380_v6 = vmul.f32 %v13921_v32, %v18659_v45  ;;  %v8944_v23 = vrot.slane %v17214_v49, %v18575_v43 }
 0x5c2   :  { %v9628_v24 = vpop.permute.xlu1 %9627 }
 0x5c3   :  { %v9500_v61 = vpop.permute.xlu0 %9499  ;;  %10771 = vperm.xlu1 %13721, %v9362_v17   ;;  %v9655_v13 = vrot.slane %v9628_v24, %v16639_v2  ;;  %v8936_v24 = vrot.slane %v17214_v49, %v18572_v1 }
 0x5c4   :  { %10911 = vperm.xlu0 %13720, %v9376_v42   ;;  %v9532_v19 = vrot.slane %v9500_v61, %v16639_v2  ;;  %v13923_v42 = vpop.eup %13922  ;;  %v8964_v61 = vrot.slane %v17219_v35, %v18571_v20 }
 0x5c5   :  { %v9677_v34 = vsel %vm8376_vm4, %v9655_v13, %v9676_v15  ;;  %v13925_v56 = vpop.eup %13924  ;;  %13938 = vrcp.f32 %v8936_v24  ;;  %v18663_v15 = vld [vmem:[#allocation71_spill] sm:$0xff] }
 0x5c6   :  { %v9497_v40 = vpop.permute.xlu1 %9496  ;;  %v9678_v53 = vsel %vm8378_vm5, %v9659_v11, %v9677_v34  ;;  %v13927_v46 = vpop.eup %13926  ;;  %13940 = vrcp.f32 %v8964_v61 }
 0x5c7   :  { %v9528_v9 = vrot.slane %v9497_v40, %v16639_v2  ;;  %v9643_v31 = vpop.permute.xlu0 %9642  ;;  %10637 = vperm.xlu1 %13721, %v9352_v21   ;;  %v9679_v22 = vsel %vm8380_vm6, %v9663_v50, %v9678_v53  ;;  %v9378_v21 = vmul.f32 %v13923_v42, %v18660_v58  ;;  %v18661_v40 = vld [vmem:[#allocation84_spill] sm:$0xff]  ;;  %13942 = vrcp.f32 %v8916_v16  ;;  %v18666_v53 = vld [vmem:[#allocation177_spill] sm:$0xff]  ;;  %v18667_v42 = vld [vmem:[#allocation179_spill] sm:$0xff] }
 0x5c8   :  { %10777 = vperm.xlu0 %13720, %v9366_v39   ;;  %v9675_v54 = vrot.slane %v9643_v31, %v16639_v2  ;;  %v9392_v47 = vmul.f32 %v13925_v56, %v18661_v40  ;;  %13944 = vrcp.f32 %v8944_v23  ;;  %v18668_v56 = vld [vmem:[#allocation86_spill] sm:$0xff]  ;;  %v8976_v23 = vrot.slane %v17219_v35, %v18575_v43 }
 0x5c9   :  { %v9538_v27 = vsel %vm8384_vm8, %v9528_v9, %v9537_v44  ;;  %v13929_v9 = vpop.eup %13928  ;;  %v8960_v44 = vrot.slane %v17219_v35, %v18570_v0 }
 0x5ca   :  { %v9637_v12 = vpop.permute.xlu1 %9636  ;;  %v9539_v28 = vsel %vm8386_vm9, %v9532_v19, %v9538_v27  ;;  %v9368_v19 = vmul.f32 %v13927_v46, %v18663_v15  ;;  %v13931_v18 = vpop.eup %13930  ;;  %v18664_v27 = vld [vmem:[#allocation79_spill] sm:$0xff] }
 0x5cb   :  { %v17319_v41 = vpop.permute.xlu0 %9767  ;;  %10908 = vperm.xlu1 %13721, %v9374_v55   ;;  %13553 = vmatmul.mubr.msk.f32.vlgmr.msra.gmra.mxu0 %vm4851_vm2, %v9539_v28  ;;  %v9667_v17 = vrot.slane %v9637_v12, %v16639_v2  ;;  %v9382_v59 = vmul.f32 %v13929_v9, %v18664_v27  ;;  %v8924_v55 = vrot.slane %v17209_v60, %v18578_v37  ;;  %v13933_v4 = vpop.eup %13932  ;;  %v18665_v12 = vld [vmem:[#allocation83_spill] sm:$0xff]  ;;  %13946 = vrcp.f32 %v8960_v44  ;;  %v18671_v27 = vld [vmem:[#allocation180_spill] sm:$0xff] }
 0x5cc   :  { %10643 = vperm.xlu0 %13720, %v9356_v33   ;;  %13561 = vmatpush3.msra.mxu0 %v18656_v29  ;;  %v9390_v62 = vmul.f32 %v13931_v18, %v18665_v12  ;;  %v8920_v33 = vrot.slane %v17209_v60, %v18580_v38  ;;  %v13935_v28 = vpop.eup %13934  ;;  %v8972_v29 = vrot.slane %v17219_v35, %v18574_v5 }
 0x5cd   :  { %13562 = vmatprep.mubr.msk.f32.mxu0 %vm14121_vm0, %v18658_v7  ;;  %13570 = vmatprep.subr.mxu0 %v18658_v7  ;;  %v9680_v3 = vsel %vm8382_vm7, %v9667_v17, %v9679_v22  ;;  %v9372_v17 = vmul.f32 %v13933_v4, %v18666_v53  ;;  %13948 = vrcp.f32 %v8924_v55  ;;  %v13937_v50 = vpop.eup %13936  ;;  %v8968_v60 = vrot.slane %v17219_v35, %v18572_v1 }
 0x5ce   :  { %v9640_v8 = vpop.permute.xlu1 %9639  ;;  %13950 = vrcp.f32 %v8920_v33  ;;  %v9396_v22 = vmul.f32 %v13937_v50, %v18668_v56  ;;  %v18674_v56 = vld [vmem:[#allocation82_spill] sm:$0xff] }
 0x5cf   :  { %v9671_v57 = vrot.slane %v9640_v8, %v16639_v2  ;;  %v17338_v30 = vpop.permute.xlu0 %9773  ;;  %10640 = vperm.xlu1 %13721, %v9354_v48   ;;  %v9370_v8 = vmul.f32 %v13935_v28, %v18667_v42  ;;  %13952 = vrcp.f32 %v8972_v29  ;;  %v8956_v28 = vrot.slane %v17214_v49, %v18578_v37 }
 0x5d0   :  { %10917 = vperm.xlu0 %13720, %v9380_v6   ;;  %v9794_v6 = vrot.slane %v17319_v41, %v16639_v2  ;;  %13954 = vrcp.f32 %v8968_v60  ;;  %v8948_v41 = vrot.slane %v17214_v49, %v18573_v51  ;;  %v8952_v29 = vrot.slane %v17214_v49, %v18580_v38  ;;  %v18673_v60 = vld [vmem:[#allocation91_spill] sm:$0xff] }
 0x5d1   :  { %v9681_v13 = vsel %vm8384_vm8, %v9671_v57, %v9680_v3  ;;  %v8996_v57 = vrot.slane %v17224_v10, %v18571_v20 }
 0x5d2   :  { %v9765_v52 = vpop.permute.xlu1 %9764  ;;  %v9682_v39 = vsel %vm8386_vm9, %v9675_v54, %v9681_v13  ;;  %v13939_v45 = vpop.eup %13938 }
 0x5d3   :  { %v17350_v31 = vpop.permute.xlu0 %9910  ;;  %10914 = vperm.xlu1 %13721, %v9378_v21   ;;  %13558 = vmatmul.mubr.msk.f32.vlgmr.msra.gmra.mxu1 %vm4851_vm2, %v9682_v39  ;;  %v9790_v48 = vrot.slane %v9765_v52, %v16639_v2  ;;  %v13941_v54 = vpop.eup %13940  ;;  %v18669_v21 = vld [vmem:[#allocation85_spill] sm:$0xff]  ;;  %v9802_v52 = vrot.slane %v17338_v30, %v16639_v2  ;;  %13956 = vrcp.f32 %v8996_v57  ;;  %v8992_v30 = vrot.slane %v17224_v10, %v18570_v0 }
 0x5d4   :  { %11054 = vperm.xlu0 %13720, %v9392_v47   ;;  %13566 = vmatpush3.msra.mxu1 %v18662_v26  ;;  %v9394_v16 = vmul.f32 %v13939_v45, %v18669_v21  ;;  %v13943_v46 = vpop.eup %13942  ;;  %v18670_v47 = vld [vmem:[#allocation92_spill] sm:$0xff]  ;;  %13958 = vrcp.f32 %v8948_v41  ;;  %v9937_v4 = vrot.slane %v17350_v31, %v16639_v2  ;;  %v18676_v41 = vld [vmem:[#allocation81_spill] sm:$0xff] }
 0x5d5   :  { %13567 = vmatprep.mubr.msk.f32.mxu1 %vm14121_vm0, %v18658_v7  ;;  %13575 = vmatprep.subr.mxu1 %v18658_v7  ;;  %v9819_v13 = vsel %vm8374_vm3, %v9794_v6, %v9790_v48  ;;  %v9408_v39 = vmul.f32 %v13941_v54, %v18670_v47  ;;  %v13945_v9 = vpop.eup %13944  ;;  %13960 = vrcp.f32 %v8976_v23 }
 0x5d6   :  { %v9771_v34 = vpop.permute.xlu1 %9770  ;;  %13962 = vrcp.f32 %v8992_v30 }
 0x5d7   :  { %v9777_v11 = vpop.permute.xlu0 %9776  ;;  %10780 = vperm.xlu1 %13721, %v9368_v19   ;;  %v9798_v24 = vrot.slane %v9771_v34, %v16639_v2  ;;  %13964 = vrcp.f32 %v8956_v28  ;;  %v9008_v28 = vrot.slane %v17224_v10, %v18575_v43 }
 0x5d8   :  { %10920 = vperm.xlu0 %13720, %v9382_v59   ;;  %v9806_v18 = vrot.slane %v9777_v11, %v16639_v2  ;;  %v9384_v59 = vmul.f32 %v13943_v46, %v18671_v27  ;;  %v13947_v55 = vpop.eup %13946  ;;  %13966 = vrcp.f32 %v8952_v29 }
 0x5d9   :  { %v9820_v58 = vsel %vm8376_vm4, %v9798_v24, %v9819_v13  ;;  %v9004_v24 = vrot.slane %v17224_v10, %v18574_v5  ;;  %v9406_v45 = vmul.f32 %v13947_v55, %v18673_v60 }
 0x5da   :  { %v9908_v32 = vpop.permute.xlu1 %9907  ;;  %v9821_v15 = vsel %vm8378_vm5, %v9802_v52, %v9820_v58  ;;  %v9000_v52 = vrot.slane %v17224_v10, %v18572_v1 }
 0x5db   :  { %v17369_v36 = vpop.permute.xlu0 %9916  ;;  %11051 = vperm.xlu1 %13721, %v9390_v62   ;;  %v9933_v19 = vrot.slane %v9908_v32, %v16639_v2  ;;  %v18672_v62 = vld [vmem:[#allocation87_spill] sm:$0xff]  ;;  %v13949_v32 = vpop.eup %13948  ;;  %v9822_v53 = vsel %vm8380_vm6, %v9806_v18, %v9821_v15  ;;  %13968 = vrcp.f32 %v9004_v24 }
 0x5dc   :  { %10786 = vperm.xlu0 %13720, %v9372_v17   ;;  %v9398_v33 = vmul.f32 %v13945_v9, %v18672_v62  ;;  %v13951_v6 = vpop.eup %13950  ;;  %v9945_v49 = vrot.slane %v17369_v36, %v16639_v2  ;;  %v9028_v9 = vrot.slane %v17229_v25, %v18571_v20  ;;  %13970 = vrcp.f32 %v9000_v52  ;;  %v18682_v24 = vld [vmem:[#allocation95_spill] sm:$0xff] }
 0x5dd   :  { %v9962_v50 = vsel %vm8374_vm3, %v9937_v4, %v9933_v19  ;;  %v13953_v54 = vpop.eup %13952  ;;  %v9386_v46 = vmul.f32 %v13951_v6, %v18676_v41  ;;  %v18683_v6 = vld [vmem:[#allocation104_spill] sm:$0xff] }
 0x5de   :  { %v9914_v61 = vpop.permute.xlu1 %9913  ;;  %13972 = vrcp.f32 %v9028_v9 }
 0x5df   :  { %v17381_v3 = vpop.permute.xlu0 %9919  ;;  %10783 = vperm.xlu1 %13721, %v9370_v8   ;;  %v9941_v34 = vrot.slane %v9914_v61, %v16639_v2 }
 0x5e0   :  { %11060 = vperm.xlu0 %13720, %v9396_v22   ;;  %v9388_v22 = vmul.f32 %v13949_v32, %v18674_v56  ;;  %v9949_v36 = vrot.slane %v17381_v3, %v16639_v2 }
 0x5e1   :  { %v9963_v42 = vsel %vm8376_vm4, %v9941_v34, %v9962_v50  ;;  %v18678_v34 = vld [vmem:[#allocation93_spill] sm:$0xff]  ;;  %v9024_v50 = vrot.slane %v17229_v25, %v18570_v0 }
 0x5e2   :  { %v9780_v40 = vpop.permute.xlu1 %9779  ;;  %v9964_v58 = vsel %vm8378_vm5, %v9945_v49, %v9963_v42 }
 0x5e3   :  { %v9786_v26 = vpop.permute.xlu0 %9785  ;;  %11057 = vperm.xlu1 %13721, %v9394_v16   ;;  %v9810_v44 = vrot.slane %v9780_v40, %v16639_v2  ;;  %v18675_v16 = vld [vmem:[#allocation32_spill] sm:$0xff]  ;;  %v13955_v40 = vpop.eup %13954 }
 0x5e4   :  { %11197 = vperm.xlu0 %13720, %v9408_v39   ;;  %v9818_v48 = vrot.slane %v9786_v26, %v16639_v2  ;;  %v18677_v39 = vld [vmem:[#allocation94_spill] sm:$0xff]  ;;  %v13957_v3 = vpop.eup %13956  ;;  %v9965_v26 = vsel %vm8380_vm6, %v9949_v36, %v9964_v58  ;;  %v9410_v27 = vmul.f32 %v13955_v40, %v18678_v34  ;;  %v9036_v58 = vrot.slane %v17229_v25, %v18574_v5 }
 0x5e5   :  { %v9823_v31 = vsel %vm8382_vm7, %v9810_v44, %v9822_v53  ;;  %v9412_v23 = vmul.f32 %v13953_v54, %v18677_v39  ;;  %v13959_v55 = vpop.eup %13958 }
 0x5e6   :  { %v9783_v12 = vpop.permute.xlu1 %9782  ;;  %v13961_v32 = vpop.eup %13960 }
 0x5e7   :  { %v9814_v11 = vrot.slane %v9783_v12, %v16639_v2  ;;  %v9929_v17 = vpop.permute.xlu0 %9928  ;;  %10923 = vperm.xlu1 %13721, %v9384_v59   ;;  %v8980_v59 = vrot.slane %v17219_v35, %v18573_v51  ;;  %v18679_v12 = vld [vmem:[#allocation100_spill] sm:$0xff]  ;;  %v9414_v42 = vmul.f32 %v13961_v32, %v18682_v24 }
 0x5e8   :  { %11063 = vperm.xlu0 %13720, %v9398_v33   ;;  %v9961_v44 = vrot.slane %v9929_v17, %v16639_v2  ;;  %v9424_v62 = vmul.f32 %v13957_v3, %v18679_v12  ;;  %v18681_v17 = vld [vmem:[#allocation88_spill] sm:$0xff]  ;;  %v9060_v3 = vrot.slane %v17234_v63, %v18571_v20  ;;  %v9040_v12 = vrot.slane %v17229_v25, %v18575_v43 }
 0x5e9   :  { %v9824_v8 = vsel %vm8384_vm8, %v9814_v11, %v9823_v31  ;;  %v18680_v11 = vld [vmem:[#allocation34_spill] sm:$0xff]  ;;  %v9400_v29 = vmul.f32 %v13959_v55, %v18681_v17  ;;  %13974 = vrcp.f32 %v8980_v59  ;;  %v13963_v31 = vpop.eup %13962 }
 0x5ea   :  { %v9923_v61 = vpop.permute.xlu1 %9922  ;;  %v9825_v57 = vsel %vm8386_vm9, %v9818_v48, %v9824_v8  ;;  %13976 = vrcp.f32 %v9008_v28  ;;  %v8988_v8 = vrot.slane %v17219_v35, %v18578_v37  ;;  %v13965_v60 = vpop.eup %13964  ;;  %v9422_v49 = vmul.f32 %v13963_v31, %v18683_v6  ;;  %v18688_v55 = vld [vmem:[#allocation110_spill] sm:$0xff] }
 0x5eb   :  { %v17422_v13 = vpop.permute.xlu0 %10053  ;;  %11194 = vperm.xlu1 %13721, %v9406_v45   ;;  %13563 = vmatmul.mubr.msk.f32.vlgmr.msra.gmra.mxu0 %vm4851_vm2, %v9825_v57  ;;  %v9953_v21 = vrot.slane %v9923_v61, %v16639_v2  ;;  %13978 = vrcp.f32 %v9024_v50  ;;  %v8984_v61 = vrot.slane %v17219_v35, %v18580_v38  ;;  %v13967_v56 = vpop.eup %13966  ;;  %v18684_v57 = vld [vmem:[#allocation90_spill] sm:$0xff]  ;;  %v9032_v35 = vrot.slane %v17229_v25, %v18572_v1  ;;  %v18689_v50 = vld [vmem:[#allocation96_spill] sm:$0xff] }
 0x5ec   :  { %10929 = vperm.xlu0 %13720, %v9388_v22   ;;  %13571 = vmatpush3.msra.mxu0 %v18675_v16  ;;  %v9404_v54 = vmul.f32 %v13965_v60, %v18684_v57  ;;  %13980 = vrcp.f32 %v8988_v8  ;;  %v18690_v8 = vld [vmem:[#allocation105_spill] sm:$0xff]  ;;  %v9020_v6 = vrot.slane %v17224_v10, %v18578_v37 }
 0x5ed   :  { %13572 = vmatprep.mubr.msk.f32.mxu0 %vm14121_vm0, %v18658_v7  ;;  %13580 = vmatprep.subr.mxu0 %v18658_v7  ;;  %v9966_v30 = vsel %vm8382_vm7, %v9953_v21, %v9965_v26  ;;  %v13969_v21 = vpop.eup %13968  ;;  %13982 = vrcp.f32 %v8984_v61 }
 0x5ee   :  { %v9926_v47 = vpop.permute.xlu1 %9925  ;;  %v13971_v40 = vpop.eup %13970  ;;  %13984 = vrcp.f32 %v9036_v58  ;;  %v9068_v58 = vrot.slane %v17234_v63, %v18574_v5 }
 0x5ef   :  { %v9957_v15 = vrot.slane %v9926_v47, %v16639_v2  ;;  %v17441_v19 = vpop.permute.xlu0 %10059  ;;  %10926 = vperm.xlu1 %13721, %v9386_v46   ;;  %v18685_v46 = vld [vmem:[#allocation89_spill] sm:$0xff]  ;;  %v10080_v47 = vrot.slane %v17422_v13, %v16639_v2  ;;  %v13973_v26 = vpop.eup %13972  ;;  %13986 = vrcp.f32 %v9032_v35  ;;  %v9012_v13 = vrot.slane %v17224_v10, %v18573_v51 }
 0x5f0   :  { %11203 = vperm.xlu0 %13720, %v9412_v23   ;;  %v9402_v52 = vmul.f32 %v13967_v56, %v18685_v46  ;;  %v18686_v23 = vld [vmem:[#allocation102_spill] sm:$0xff]  ;;  %v10088_v59 = vrot.slane %v17441_v19, %v16639_v2  ;;  %13988 = vrcp.f32 %v9060_v3  ;;  %v9056_v19 = vrot.slane %v17234_v63, %v18570_v0 }
 0x5f1   :  { %v9967_v18 = vsel %vm8384_vm8, %v9957_v15, %v9966_v30  ;;  %v9428_v9 = vmul.f32 %v13969_v21, %v18686_v23  ;;  %13990 = vrcp.f32 %v9012_v13 }
 0x5f2   :  { %v10051_v4 = vpop.permute.xlu1 %10050  ;;  %v9968_v33 = vsel %vm8386_vm9, %v9961_v44, %v9967_v18  ;;  %v18687_v18 = vld [vmem:[#allocation103_spill] sm:$0xff]  ;;  %13992 = vrcp.f32 %v9040_v12 }
 0x5f3   :  { %v17453_v53 = vpop.permute.xlu0 %10196  ;;  %11200 = vperm.xlu1 %13721, %v9410_v27   ;;  %13568 = vmatmul.mubr.msk.f32.vlgmr.msra.gmra.mxu1 %vm4851_vm2, %v9968_v33  ;;  %v10076_v36 = vrot.slane %v10051_v4, %v16639_v2  ;;  %v9426_v34 = vmul.f32 %v13971_v40, %v18687_v18  ;;  %v9440_v4 = vmul.f32 %v13973_v26, %v18688_v55  ;;  %13994 = vrcp.f32 %v9056_v19  ;;  %v18692_v40 = vld [vmem:[#allocation98_spill] sm:$0xff]  ;;  %v18693_v26 = vld [vmem:[#allocation36_spill] sm:$0xff] }
 0x5f4   :  { %11340 = vperm.xlu0 %13720, %v9424_v62   ;;  %13576 = vmatpush3.msra.mxu1 %v18680_v11  ;;  %v10223_v24 = vrot.slane %v17453_v53, %v16639_v2  ;;  %13996 = vrcp.f32 %v9020_v6  ;;  %v9064_v18 = vrot.slane %v17234_v63, %v18572_v1  ;;  %v9048_v6 = vrot.slane %v17229_v25, %v18580_v38 }
 0x5f5   :  { %13577 = vmatprep.mubr.msk.f32.mxu1 %vm14121_vm0, %v18658_v7  ;;  %13585 = vmatprep.subr.mxu1 %v18658_v7  ;;  %v10105_v44 = vsel %vm8374_vm3, %v10080_v47, %v10076_v36 }
 0x5f6   :  { %v10057_v48 = vpop.permute.xlu1 %10056  ;;  %v13975_v27 = vpop.eup %13974 }
 0x5f7   :  { %v10063_v45 = vpop.permute.xlu0 %10062  ;;  %11066 = vperm.xlu1 %13721, %v9400_v29   ;;  %v10084_v41 = vrot.slane %v10057_v48, %v16639_v2  ;;  %v13977_v62 = vpop.eup %13976  ;;  %v9416_v31 = vmul.f32 %v13975_v27, %v18689_v50  ;;  %v18695_v27 = vld [vmem:[#allocation114_spill] sm:$0xff] }
 0x5f8   :  { %11206 = vperm.xlu0 %13720, %v9414_v42   ;;  %v10092_v17 = vrot.slane %v10063_v45, %v16639_v2  ;;  %v13979_v48 = vpop.eup %13978  ;;  %v9430_v60 = vmul.f32 %v13977_v62, %v18690_v8  ;;  %v18699_v8 = vld [vmem:[#allocation101_spill] sm:$0xff] }
 0x5f9   :  { %v10106_v30 = vsel %vm8376_vm4, %v10084_v41, %v10105_v44  ;;  %v18691_v41 = vld [vmem:[#allocation116_spill] sm:$0xff]  ;;  %v18694_v44 = vld [vmem:[#allocation97_spill] sm:$0xff] }
 0x5fa   :  { %v10194_v22 = vpop.permute.xlu1 %10193  ;;  %v10107_v28 = vsel %vm8378_vm5, %v10088_v59, %v10106_v30  ;;  %v9438_v46 = vmul.f32 %v13979_v48, %v18691_v41  ;;  %v18702_v41 = vld [vmem:[#allocation108_spill] sm:$0xff] }
 0x5fb   :  { %v17472_v16 = vpop.permute.xlu0 %10202  ;;  %11337 = vperm.xlu1 %13721, %v9422_v49   ;;  %v10219_v32 = vrot.slane %v10194_v22, %v16639_v2  ;;  %v13981_v49 = vpop.eup %13980  ;;  %v10108_v61 = vsel %vm8380_vm6, %v10092_v17, %v10107_v28  ;;  %v9016_v22 = vrot.slane %v17224_v10, %v18580_v38  ;;  %v18696_v28 = vld [vmem:[#allocation120_spill] sm:$0xff]  ;;  %v18697_v17 = vld [vmem:[#allocation113_spill] sm:$0xff] }
 0x5fc   :  { %11072 = vperm.xlu0 %13720, %v9404_v54   ;;  %v10231_v10 = vrot.slane %v17472_v16, %v16639_v2  ;;  %v9420_v47 = vmul.f32 %v13981_v49, %v18692_v40 }
 0x5fd   :  { %v10248_v57 = vsel %vm8374_vm3, %v10223_v24, %v10219_v32  ;;  %13998 = vrcp.f32 %v9016_v22 }
 0x5fe   :  { %v10200_v39 = vpop.permute.xlu1 %10199  ;;  %14000 = vrcp.f32 %v9068_v58  ;;  %v9052_v58 = vrot.slane %v17229_v25, %v18578_v37 }
 0x5ff   :  { %v17484_v15 = vpop.permute.xlu0 %10205  ;;  %11069 = vperm.xlu1 %13721, %v9402_v52   ;;  %v10227_v29 = vrot.slane %v10200_v39, %v16639_v2  ;;  %v13983_v52 = vpop.eup %13982  ;;  %14002 = vrcp.f32 %v9064_v18 }
 0x600   :  { %11346 = vperm.xlu0 %13720, %v9428_v9   ;;  %v13985_v23 = vpop.eup %13984  ;;  %v10235_v16 = vrot.slane %v17484_v15, %v16639_v2  ;;  %v9418_v30 = vmul.f32 %v13983_v52, %v18694_v44 }
 0x601   :  { %v10249_v21 = vsel %vm8376_vm4, %v10227_v29, %v10248_v57  ;;  %v9444_v59 = vmul.f32 %v13985_v23, %v18695_v27  ;;  %v17585_v23 = vld.sshfl [vmem:[%s17915_s4 + $0x28] sm:$0xff pattern:$0x75316420]  ;;  %v18706_v27 = vld [vmem:[#allocation13_spill] sm:$0xff]  ;;  %s14124_s4 = smov [#allocation8]  }
 0x602   :  { %v10066_v20 = vpop.permute.xlu1 %10065  ;;  %v10250_v5 = vsel %vm8378_vm5, %v10231_v10, %v10249_v21  ;;  %s12964_s30 = sshll.u32 %s14124_s4, 4  ;;  %s12965_s30 = int_to_ptr.vmem [resolvable:$true] %s12964_s30 }
 0x603   :  { %v10072_v33 = vpop.permute.xlu0 %10071  ;;  %11343 = vperm.xlu1 %13721, %v9426_v34   ;;  %v10096_v11 = vrot.slane %v10066_v20, %v16639_v2  ;;  %v13987_v34 = vpop.eup %13986  ;;  %v9072_v20 = vrot.slane %v17234_v63, %v18575_v43  ;;  %v10251_v55 = vsel %vm8380_vm6, %v10235_v16, %v10250_v5  ;;  %v9044_v43 = vrot.slane %v17229_v25, %v18573_v51  ;;  %s14089_s9 = scalar_lea.vmem %s12965_s30, 128  ;;  %p14094_p2 = scmp.lt.s32.totalorder %s12965_s30, %s12965_s30 }
 0x604   :  { %11483 = vperm.xlu0 %13720, %v9440_v4   ;;  %v10104_v54 = vrot.slane %v10072_v33, %v16639_v2  ;;  %v13989_v15 = vpop.eup %13988  ;;  %v9442_v32 = vmul.f32 %v13987_v34, %v18696_v28  ;;  %p14090_p1 = scmp.ne.s32.totalorder %s12965_s30, %s14089_s9  ;;  %p14095_p3 = scmp.lt.s32.totalorder %s14089_s9, %s14089_s9 }
 0x605   :  { %v10109_v53 = vsel %vm8382_vm7, %v10096_v11, %v10108_v61  ;;  %v13991_v11 = vpop.eup %13990  ;;  %v9456_v29 = vmul.f32 %v13989_v15, %v18697_v17  ;;  %14004 = vrcp.f32 %v9072_v20  ;;  %v18700_v61 = vld [vmem:[#allocation153_spill] sm:$0xff]  ;;  %v18707_v15 = vld [vmem:[#allocation44_spill] sm:$0xff]  ;;  %v18709_v17 = vld [vmem:[#allocation42_spill] sm:$0xff] }
 0x606   :  { %v10069_v42 = vpop.permute.xlu1 %10068  ;;  %v13993_v48 = vpop.eup %13992  ;;  %14006 = vrcp.f32 %v9044_v43  ;;  %p14096_p4 = por %p14095_p3, %p14094_p2 }
 0x607   :  { %v10100_v45 = vrot.slane %v10069_v42, %v16639_v2  ;;  %v10215_v56 = vpop.permute.xlu0 %10214  ;;  %11209 = vperm.xlu1 %13721, %v9416_v31   ;;  %v9076_v31 = vrot.slane %v17234_v63, %v18573_v51  ;;  %v18698_v42 = vld [vmem:[#allocation38_spill] sm:$0xff]  ;;  %v13995_v51 = vpop.eup %13994 }
 0x608   :  { %11349 = vperm.xlu0 %13720, %v9430_v60   ;;  %v10247_v1 = vrot.slane %v10215_v56, %v16639_v2  ;;  %v9432_v60 = vmul.f32 %v13991_v11, %v18699_v8  ;;  %v9084_v56 = vrot.slane %v17234_v63, %v18578_v37  ;;  %v13997_v22 = vpop.eup %13996  ;;  %v9080_v37 = vrot.slane %v17234_v63, %v18580_v38  ;;  %v18705_v63 = vld [vmem:[#allocation117_spill] sm:$0xff]  ;;  %p14097_p5 = pnand %p14096_p4, %p14090_p1 }
 0x609   :  { %v10110_v36 = vsel %vm8384_vm8, %v10100_v45, %v10109_v53  ;;  %v9446_v45 = vmul.f32 %v13993_v48, %v18700_v61  ;;  %14008 = vrcp.f32 %v9076_v31  ;;  %v18701_v53 = vld [vmem:[#allocation119_spill] sm:$0xff] }
 0x60a   :  { %v10209_v35 = vpop.permute.xlu1 %10208  ;;  %v10111_v39 = vsel %vm8386_vm9, %v10104_v54, %v10110_v36  ;;  %v9454_v54 = vmul.f32 %v13995_v51, %v18701_v53  ;;  %14010 = vrcp.f32 %v9048_v6  ;;  %v13999_v21 = vpop.eup %13998  ;;  %v18710_v61 = vld [vmem:[#allocation39_spill] sm:$0xff] }
 0x60b   :  { %v17525_v9 = vpop.permute.xlu0 %10339  ;;  %11480 = vperm.xlu1 %13721, %v9438_v46   ;;  %13573 = vmatmul.mubr.msk.f32.vlgmr.msra.gmra.mxu0 %vm4851_vm2, %v10111_v39  ;;  %v10239_v3 = vrot.slane %v10209_v35, %v16639_v2  ;;  %v9436_v46 = vmul.f32 %v13997_v22, %v18702_v41  ;;  %14012 = vrcp.f32 %v9084_v56  ;;  %v14001_v52 = vpop.eup %14000 }
 0x60c   :  { %11215 = vperm.xlu0 %13720, %v9420_v47   ;;  %13581 = vmatpush3.msra.mxu0 %v18693_v26  ;;  %v18703_v47 = vld [vmem:[#allocation109_spill] sm:$0xff]  ;;  %14014 = vrcp.f32 %v9052_v58  ;;  %v14003_v25 = vpop.eup %14002  ;;  %v10366_v5 = vrot.slane %v17525_v9, %v16639_v2  ;;  %v18704_v26 = vld [vmem:[#allocation124_spill] sm:$0xff]  ;;  %v17599_v9 = vrot.slane %v17585_v23, %v18706_v27  ;;  %v18712_v58 = vld [vmem:[#allocation46_spill] sm:$0xff] }
 0x60d   :  { %13582 = vmatprep.mubr.msk.f32.mxu0 %vm14121_vm0, %v18658_v7  ;;  %13590 = vmatprep.subr.mxu0 %v18658_v7  ;;  %v10252_v62 = vsel %vm8382_vm7, %v10239_v3, %v10251_v55  ;;  %v9434_v39 = vmul.f32 %v13999_v21, %v18703_v47  ;;  %v9460_v16 = vmul.f32 %v14001_v52, %v18704_v26  ;;  %14016 = vrcp.f32 %v9080_v37 }
 0x60e   :  { %v10212_v13 = vpop.permute.xlu1 %10211  ;;  %v9458_v34 = vmul.f32 %v14003_v25, %v18705_v63 }
 0x60f   :  { %v10243_v4 = vrot.slane %v10212_v13, %v16639_v2  ;;  %v17544_v12 = vpop.permute.xlu0 %10345  ;;  %11212 = vperm.xlu1 %13721, %v9418_v30  }
 0x610   :  { %11489 = vperm.xlu0 %13720, %v9444_v59   ;;  %v10374_v59 = vrot.slane %v17544_v12, %v16639_v2  ;;  %v1414_v12 = vrot.slane %v17599_v9, %v18570_v0 }
 0x611   :  { %v10253_v33 = vsel %vm8384_vm8, %v10243_v4, %v10252_v62 }
 0x612   :  { %v10337_v19 = vpop.permute.xlu1 %10336  ;;  %v10254_v50 = vsel %vm8386_vm9, %v10247_v1, %v10253_v33  ;;  %v14005_v44 = vpop.eup %14004 }
 0x613   :  { %v17556_v24 = vpop.permute.xlu0 %10482  ;;  %11486 = vperm.xlu1 %13721, %v9442_v32   ;;  %13578 = vmatmul.mubr.msk.f32.vlgmr.msra.gmra.mxu1 %vm4851_vm2, %v10254_v50  ;;  %v10362_v35 = vrot.slane %v10337_v19, %v16639_v2  ;;  %v14007_v13 = vpop.eup %14006  ;;  %v9462_v55 = vmul.f32 %v14005_v44, %v18707_v15  ;;  %v18708_v32 = vld [vmem:[#allocation128_spill] sm:$0xff] }
 0x614   :  { %11626 = vperm.xlu0 %13720, %v9456_v29   ;;  %13586 = vmatpush3.msra.mxu1 %v18698_v42  ;;  %v9448_v43 = vmul.f32 %v14007_v13, %v18708_v32  ;;  %v10509_v37 = vrot.slane %v17556_v24, %v16639_v2 }
 0x615   :  { %13587 = vmatprep.mubr.msk.f32.mxu1 %vm14121_vm0, %v18658_v7  ;;  %13595 = vmatprep.subr.mxu1 %v18658_v7  ;;  %v10391_v18 = vsel %vm8374_vm3, %v10366_v5, %v10362_v35 }
 0x616   :  { %v10343_v49 = vpop.permute.xlu1 %10342  ;;  %v14009_v4 = vpop.eup %14008 }
 0x617   :  { %v10349_v57 = vpop.permute.xlu0 %10348  ;;  %11352 = vperm.xlu1 %13721, %v9432_v60   ;;  %v10370_v40 = vrot.slane %v10343_v49, %v16639_v2  ;;  %v14011_v11 = vpop.eup %14010  ;;  %v9464_v29 = vmul.f32 %v14009_v4, %v18709_v17 }
 0x618   :  { %11492 = vperm.xlu0 %13720, %v9446_v45   ;;  %v10378_v28 = vrot.slane %v10349_v57, %v16639_v2  ;;  %v14013_v50 = vpop.eup %14012  ;;  %v9450_v51 = vmul.f32 %v14011_v11, %v16626_v14  ;;  %v4358_v45 = vadd.f32 %v18710_v61, %v1414_v12  ;;  %v18711_v57 = vld [vmem:[#allocation125_spill] sm:$0xff] }
 0x619   :  { %v10392_v38 = vsel %vm8376_vm4, %v10370_v40, %v10391_v18  ;;  %v14015_v49 = vpop.eup %14014  ;;  %v9468_v53 = vmul.f32 %v14013_v50, %v18711_v57  ;;  %v18713_v40 = vld [vmem:[#allocation127_spill] sm:$0xff] }
 0x61a   :  { %v17572_v36 = vpop.permute.xlu1 %10479  ;;  %v10393_v62 = vsel %vm8378_vm5, %v10374_v59, %v10392_v38  ;;  %v9452_v21 = vmul.f32 %v14015_v49, %v18712_v58  ;;  %v14017_v14 = vpop.eup %14016 }
 0x61b   :  { %v17575_v10 = vpop.permute.xlu0 %10488  ;;  %11623 = vperm.xlu1 %13721, %v9454_v54   ;;  %v10394_v31 = vsel %vm8380_vm6, %v10378_v28, %v10393_v62  ;;  %v10505_v52 = vrot.slane %v17572_v36, %v16639_v2  ;;  %v9466_v47 = vmul.f32 %v14017_v14, %v18713_v40 }
 0x61c   :  { %11358 = vperm.xlu0 %13720, %v9436_v46  }
 0x61d   :  { %v10534_v26 = vsel %vm8374_vm3, %v10509_v37, %v10505_v52 }
 0x61e   :  { %v17589_v3 = vpop.permute.xlu1 %10485 }
 0x61f   :  { %v17592_v30 = vpop.permute.xlu0 %10491  ;;  %11355 = vperm.xlu1 %13721, %v9434_v39   ;;  %v10513_v35 = vrot.slane %v17589_v3, %v16639_v2  ;;  %v1217_v39 = vcombine.high %v17585_v23, %v17585_v23  ;;  %v10517_v3 = vrot.slane %v17575_v10, %v16639_v2 }
 0x620   :  { %11632 = vperm.xlu0 %13720, %v9460_v16   ;;  %v10521_v24 = vrot.slane %v17592_v30, %v16639_v2 }
 0x621   :  { %v10535_v16 = vsel %vm8376_vm4, %v10513_v35, %v10534_v26  ;;  %v17641_v36 = vrot.slane %v1217_v39, %v18706_v27 }
 0x622   :  { %v10352_v20 = vpop.permute.xlu1 %10351  ;;  %v10536_v23 = vsel %vm8378_vm5, %v10517_v3, %v10535_v16 }
 0x623   :  { %v17604_v1 = vpop.permute.xlu0 %10625  ;;  %11629 = vperm.xlu1 %13721, %v9458_v34   ;;  %v10382_v33 = vrot.slane %v10352_v20, %v16639_v2  ;;  %v1418_v63 = vrot.slane %v17641_v36, %v18570_v0  ;;  %v10537_v13 = vsel %vm8380_vm6, %v10521_v24, %v10536_v23  ;;  %v1249_v40 = vcombine.high %v17641_v36, %v17641_v36 }
 0x624   :  { %11635 = vperm.xlu0 %13720, %v9462_v55   ;;  %v18714_v55 = vld [vmem:[#allocation41_spill] sm:$0xff]  ;;  %v10652_v12 = vrot.slane %v17604_v1, %v16639_v2 }
 0x625   :  { %v10395_v8 = vsel %vm8382_vm7, %v10382_v33, %v10394_v31  ;;  %v4428_v4 = vadd.f32 %v18714_v55, %v1418_v63  ;;  %v1426_v3 = vrot.slane %v1249_v40, %v18570_v0 }
 0x626   :  { %v10355_v19 = vpop.permute.xlu1 %10354 }
 0x627   :  { %v10386_v48 = vrot.slane %v10355_v19, %v16639_v2  ;;  %v10358_v42 = vpop.permute.xlu0 %10357  ;;  %11495 = vperm.xlu1 %13721, %v9448_v43   ;;  %v1247_v19 = vcombine.high %v17599_v9, %v17599_v9 }
 0x628   :  { %v10390_v60 = vrot.slane %v10358_v42, %v16639_v2  ;;  %11638 = vperm.xlu0 %13720, %v9464_v29  }
 0x629   :  { %v10396_v6 = vsel %vm8384_vm8, %v10386_v48, %v10395_v8 }
 0x62a   :  { %v10397_v56 = vsel %vm8386_vm9, %v10390_v60, %v10396_v6  ;;  %v10623_v22 = vpop.permute.xlu1 %10622  ;;  %v1422_v60 = vrot.slane %v1247_v19, %v18570_v0 }
 0x62b   :  { %v10632_v54 = vpop.permute.xlu0 %10631  ;;  %11498 = vperm.xlu1 %13721, %v9450_v51   ;;  %13583 = vmatmul.mubr.msk.f32.vlgmr.msra.gmra.mxu0 %vm4851_vm2, %v10397_v56  ;;  %v10648_v28 = vrot.slane %v10623_v22, %v16639_v2  ;;  %v18715_v22 = vld [vmem:[#allocation43_spill] sm:$0xff] }
 0x62c   :  { %11644 = vperm.xlu0 %13720, %v9468_v53   ;;  %13591 = vmatpush3.msra.mxu0 %v4358_v45  ;;  %v10660_v42 = vrot.slane %v10632_v54, %v16639_v2  ;;  %v4498_v57 = vadd.f32 %v18715_v22, %v1422_v60 }
 0x62d   :  { %13592 = vmatprep.mubr.msk.f32.mxu0 %vm14121_vm0, %v18658_v7  ;;  %13600 = vmatprep.subr.mxu0 %v18658_v7  ;;  %v10677_v17 = vsel %vm8374_vm3, %v10652_v12, %v10648_v28 }
 0x62e   :  { %v10629_v41 = vpop.permute.xlu1 %10628 }
 0x62f   :  { %v17627_v46 = vpop.permute.xlu0 %10768  ;;  %11501 = vperm.xlu1 %13721, %v9452_v21   ;;  %v10656_v43 = vrot.slane %v10629_v41, %v16639_v2 }
 0x630   :  { %v10795_v35 = vrot.slane %v17627_v46, %v16639_v2 }
 0x631   :  { %v10678_v50 = vsel %vm8376_vm4, %v10656_v43, %v10677_v17 }
 0x632   :  { %v10495_v25 = vpop.permute.xlu1 %10494  ;;  %v10679_v6 = vsel %vm8378_vm5, %v10660_v42, %v10678_v50 }
 0x633   :  { %v10635_v5 = vpop.permute.xlu0 %10634  ;;  %11641 = vperm.xlu1 %13721, %v9466_v47   ;;  %v10525_v38 = vrot.slane %v10495_v25, %v16639_v2 }
 0x634   :  { %v10664_v31 = vrot.slane %v10635_v5, %v16639_v2 }
 0x635   :  { %v10538_v10 = vsel %vm8382_vm7, %v10525_v38, %v10537_v13 }
 0x636   :  { %v10766_v44 = vpop.permute.xlu1 %10765  ;;  %v10680_v51 = vsel %vm8380_vm6, %v10664_v31, %v10679_v6 }
 0x637   :  { %v10501_v18 = vpop.permute.xlu0 %10500  ;;  %v10791_v21 = vrot.slane %v10766_v44, %v16639_v2 }
 0x638   :  { %v10533_v20 = vrot.slane %v10501_v18, %v16639_v2 }
 0x639   :  { %v10820_v47 = vsel %vm8374_vm3, %v10795_v35, %v10791_v21 }
 0x63a   :  { %v10498_v34 = vpop.permute.xlu1 %10497 }
 0x63b   :  { %v10529_v27 = vrot.slane %v10498_v34, %v16639_v2  ;;  %v10775_v59 = vpop.permute.xlu0 %10774  ;;  %v18716_v34 = vld [vmem:[#allocation45_spill] sm:$0xff] }
 0x63c   :  { %v10803_v26 = vrot.slane %v10775_v59, %v16639_v2  ;;  %v4568_v13 = vadd.f32 %v18716_v34, %v1426_v3 }
 0x63d   :  { %v10539_v15 = vsel %vm8384_vm8, %v10529_v27, %v10538_v10 }
 0x63e   :  { %v10772_v62 = vpop.permute.xlu1 %10771  ;;  %v10540_v30 = vsel %vm8386_vm9, %v10533_v20, %v10539_v15 }
 0x63f   :  { %v17658_v33 = vpop.permute.xlu0 %10911  ;;  %13588 = vmatmul.mubr.msk.f32.vlgmr.msra.gmra.mxu1 %vm4851_vm2, %v10540_v30  ;;  %v10799_v41 = vrot.slane %v10772_v62, %v16639_v2 }
 0x640   :  { %13596 = vmatpush3.msra.mxu1 %v4428_v4  ;;  %13597 = vmatprep.mubr.msk.f32.mxu1 %vm14121_vm0, %v18658_v7  ;;  %v10938_v4 = vrot.slane %v17658_v33, %v16639_v2 }
 0x641   :  { %13605 = vmatprep.subr.mxu1 %v18658_v7  ;;  %v10821_v37 = vsel %vm8376_vm4, %v10799_v41, %v10820_v47 }
 0x642   :  { %v10638_v32 = vpop.permute.xlu1 %10637  ;;  %v10822_v44 = vsel %vm8378_vm5, %v10803_v26, %v10821_v37 }
 0x643   :  { %v10778_v11 = vpop.permute.xlu0 %10777  ;;  %v10668_v8 = vrot.slane %v10638_v32, %v16639_v2 }
 0x644   :  { %v10807_v25 = vrot.slane %v10778_v11, %v16639_v2 }
 0x645   :  { %v10681_v61 = vsel %vm8382_vm7, %v10668_v8, %v10680_v51 }
 0x646   :  { %v10909_v29 = vpop.permute.xlu1 %10908  ;;  %v10823_v18 = vsel %vm8380_vm6, %v10807_v25, %v10822_v44 }
 0x647   :  { %v10644_v48 = vpop.permute.xlu0 %10643  ;;  %v10934_v10 = vrot.slane %v10909_v29, %v16639_v2 }
 0x648   :  { %v10676_v45 = vrot.slane %v10644_v48, %v16639_v2 }
 0x649   :  { %v10963_v62 = vsel %vm8374_vm3, %v10938_v4, %v10934_v10 }
 0x64a   :  { %v10641_v1 = vpop.permute.xlu1 %10640 }
 0x64b   :  { %v10672_v9 = vrot.slane %v10641_v1, %v16639_v2  ;;  %v10918_v49 = vpop.permute.xlu0 %10917  ;;  %v18717_v1 = vld [vmem:[#allocation48_spill] sm:$0xff] }
 0x64c   :  { %v10946_v11 = vrot.slane %v10918_v49, %v16639_v2 }
 0x64d   :  { %v10682_v56 = vsel %vm8384_vm8, %v10672_v9, %v10681_v61 }
 0x64e   :  { %v10915_v53 = vpop.permute.xlu1 %10914  ;;  %v10683_v54 = vsel %vm8386_vm9, %v10676_v45, %v10682_v56 }
 0x64f   :  { %v17684_v58 = vpop.permute.xlu0 %11054  ;;  %13593 = vmatmul.mubr.msk.f32.vlgmr.msra.gmra.mxu0 %vm4851_vm2, %v10683_v54  ;;  %v10942_v15 = vrot.slane %v10915_v53, %v16639_v2 }
 0x650   :  { %13601 = vmatpush3.msra.mxu0 %v4498_v57  ;;  %13602 = vmatprep.mubr.msk.f32.mxu0 %vm14121_vm0, %v18658_v7  ;;  %v11081_v45 = vrot.slane %v17684_v58, %v16639_v2 }
 0x651   :  { %13610 = vmatprep.subr.mxu0 %v18658_v7  ;;  %v10964_v28 = vsel %vm8376_vm4, %v10942_v15, %v10963_v62 }
 0x652   :  { %v10781_v14 = vpop.permute.xlu1 %10780  ;;  %v10965_v19 = vsel %vm8378_vm5, %v10946_v11, %v10964_v28 }
 0x653   :  { %v10921_v52 = vpop.permute.xlu0 %10920  ;;  %v10811_v16 = vrot.slane %v10781_v14, %v16639_v2 }
 0x654   :  { %v10950_v32 = vrot.slane %v10921_v52, %v16639_v2 }
 0x655   :  { %v10824_v38 = vsel %vm8382_vm7, %v10811_v16, %v10823_v18  ;;  %v18718_v16 = vld [vmem:[#allocation49_spill] sm:$0xff] }
 0x656   :  { %v11052_v39 = vpop.permute.xlu1 %11051  ;;  %v10966_v29 = vsel %vm8380_vm6, %v10950_v32, %v10965_v19 }
 0x657   :  { %v10787_v5 = vpop.permute.xlu0 %10786  ;;  %v11077_v51 = vrot.slane %v11052_v39, %v16639_v2 }
 0x658   :  { %v10819_v24 = vrot.slane %v10787_v5, %v16639_v2 }
 0x659   :  { %v11106_v56 = vsel %vm8374_vm3, %v11081_v45, %v11077_v51 }
 0x65a   :  { %v10784_v46 = vpop.permute.xlu1 %10783 }
 0x65b   :  { %v10815_v36 = vrot.slane %v10784_v46, %v16639_v2  ;;  %v11061_v23 = vpop.permute.xlu0 %11060 }
 0x65c   :  { %v11089_v21 = vrot.slane %v11061_v23, %v16639_v2 }
 0x65d   :  { %v10825_v63 = vsel %vm8384_vm8, %v10815_v36, %v10824_v38 }
 0x65e   :  { %v11058_v27 = vpop.permute.xlu1 %11057  ;;  %v10826_v59 = vsel %vm8386_vm9, %v10819_v24, %v10825_v63 }
 0x65f   :  { %v17710_v0 = vpop.permute.xlu0 %11197  ;;  %13598 = vmatmul.mubr.msk.f32.vlgmr.msra.gmra.mxu1 %vm4851_vm2, %v10826_v59  ;;  %v11085_v49 = vrot.slane %v11058_v27, %v16639_v2 }
 0x660   :  { %13606 = vmatpush3.msra.mxu1 %v4568_v13  ;;  %13607 = vmatprep.mubr.msk.f32.mxu1 %vm14121_vm0, %v18658_v7  ;;  %v11224_v36 = vrot.slane %v17710_v0, %v16639_v2 }
 0x661   :  { %13615 = vmatprep.subr.mxu1 %v18658_v7  ;;  %v11107_v57 = vsel %vm8376_vm4, %v11085_v49, %v11106_v56 }
 0x662   :  { %v10924_v20 = vpop.permute.xlu1 %10923  ;;  %v11108_v41 = vsel %vm8378_vm5, %v11089_v21, %v11107_v57 }
 0x663   :  { %v11064_v55 = vpop.permute.xlu0 %11063  ;;  %v10954_v12 = vrot.slane %v10924_v20, %v16639_v2 }
 0x664   :  { %v11093_v53 = vrot.slane %v11064_v55, %v16639_v2 }
 0x665   :  { %v10967_v31 = vsel %vm8382_vm7, %v10954_v12, %v10966_v29  ;;  %v18719_v12 = vld [vmem:[#allocation51_spill] sm:$0xff] }
 0x666   :  { %v11195_v30 = vpop.permute.xlu1 %11194  ;;  %v11109_v35 = vsel %vm8380_vm6, %v11093_v53, %v11108_v41  ;;  %v18720_v41 = vld [vmem:[#allocation53_spill] sm:$0xff] }
 0x667   :  { %v10930_v43 = vpop.permute.xlu0 %10929  ;;  %v11220_v3 = vrot.slane %v11195_v30, %v16639_v2 }
 0x668   :  { %v10962_v48 = vrot.slane %v10930_v43, %v16639_v2 }
 0x669   :  { %v11249_v23 = vsel %vm8374_vm3, %v11224_v36, %v11220_v3 }
 0x66a   :  { %v10927_v17 = vpop.permute.xlu1 %10926 }
 0x66b   :  { %v10958_v50 = vrot.slane %v10927_v17, %v16639_v2  ;;  %v11204_v33 = vpop.permute.xlu0 %11203 }
 0x66c   :  { %v11232_v13 = vrot.slane %v11204_v33, %v16639_v2 }
 0x66d   :  { %v10968_v42 = vsel %vm8384_vm8, %v10958_v50, %v10967_v31 }
 0x66e   :  { %v11201_v8 = vpop.permute.xlu1 %11200  ;;  %v10969_v60 = vsel %vm8386_vm9, %v10962_v48, %v10968_v42 }
 0x66f   :  { %v17732_v6 = vpop.permute.xlu0 %11340  ;;  %13603 = vmatmul.mubr.msk.f32.vlgmr.msra.gmra.mxu0 %vm4851_vm2, %v10969_v60  ;;  %v11228_v46 = vrot.slane %v11201_v8, %v16639_v2 }
 0x670   :  { %13611 = vmatpush3.msra.mxu0 %v18717_v1  ;;  %13612 = vmatprep.mubr.msk.f32.mxu0 %vm14121_vm0, %v18658_v7  ;;  %v11367_v31 = vrot.slane %v17732_v6, %v16639_v2 }
 0x671   :  { %13620 = vmatprep.subr.mxu0 %v18658_v7  ;;  %v11250_v24 = vsel %vm8376_vm4, %v11228_v46, %v11249_v23 }
 0x672   :  { %v11067_v9 = vpop.permute.xlu1 %11066  ;;  %v11251_v59 = vsel %vm8378_vm5, %v11232_v13, %v11250_v24 }
 0x673   :  { %v11207_v61 = vpop.permute.xlu0 %11206  ;;  %v11097_v14 = vrot.slane %v11067_v9, %v16639_v2 }
 0x674   :  { %v11236_v63 = vrot.slane %v11207_v61, %v16639_v2 }
 0x675   :  { %v11110_v47 = vsel %vm8382_vm7, %v11097_v14, %v11109_v35 }
 0x676   :  { %v11338_v22 = vpop.permute.xlu1 %11337  ;;  %v11252_v20 = vsel %vm8380_vm6, %v11236_v63, %v11251_v59 }
 0x677   :  { %v11073_v54 = vpop.permute.xlu0 %11072  ;;  %v11363_v19 = vrot.slane %v11338_v22, %v16639_v2 }
 0x678   :  { %v11105_v39 = vrot.slane %v11073_v54, %v16639_v2 }
 0x679   :  { %v11392_v42 = vsel %vm8374_vm3, %v11367_v31, %v11363_v19  ;;  %v11758_v31 = vld [vmem:[#allocation7 + $0x8] sm:$0xff] }
 0x67a   :  { %v11070_v52 = vpop.permute.xlu1 %11069 }
 0x67b   :  { %v11101_v40 = vrot.slane %v11070_v52, %v16639_v2  ;;  %v11347_v58 = vpop.permute.xlu0 %11346 }
 0x67c   :  { %v11375_v9 = vrot.slane %v11347_v58, %v16639_v2 }
 0x67d   :  { %v11111_v37 = vsel %vm8384_vm8, %v11101_v40, %v11110_v47 }
 0x67e   :  { %v11344_v25 = vpop.permute.xlu1 %11343  ;;  %v11112_v5 = vsel %vm8386_vm9, %v11105_v39, %v11111_v37 }
 0x67f   :  { %v17755_v26 = vpop.permute.xlu0 %11483  ;;  %13608 = vmatmul.mubr.msk.f32.vlgmr.msra.gmra.mxu1 %vm4851_vm2, %v11112_v5  ;;  %v11371_v29 = vrot.slane %v11344_v25, %v16639_v2 }
 0x680   :  { %13616 = vmatpush3.msra.mxu1 %v18718_v16  ;;  %13617 = vmatprep.mubr.msk.f32.mxu1 %vm14121_vm0, %v18658_v7  ;;  %v11510_v39 = vrot.slane %v17755_v26, %v16639_v2 }
 0x681   :  { %13625 = vmatprep.subr.mxu1 %v18658_v7  ;;  %v11393_v60 = vsel %vm8376_vm4, %v11371_v29, %v11392_v42  ;;  %v11759_v29 = vld [vmem:[#allocation7 + $0x10] sm:$0xff] }
 0x682   :  { %v11210_v44 = vpop.permute.xlu1 %11209  ;;  %v11394_v61 = vsel %vm8378_vm5, %v11375_v9, %v11393_v60  ;;  %v11760_v60 = vld [vmem:[#allocation7 + $0x18] sm:$0xff] }
 0x683   :  { %v11350_v18 = vpop.permute.xlu0 %11349  ;;  %v11240_v27 = vrot.slane %v11210_v44, %v16639_v2  ;;  %v11764_v9 = vld [vmem:[#allocation7 + $0x38] sm:$0xff] }
 0x684   :  { %v11379_v1 = vrot.slane %v11350_v18, %v16639_v2 }
 0x685   :  { %v11253_v4 = vsel %vm8382_vm7, %v11240_v27, %v11252_v20 }
 0x686   :  { %v11481_v38 = vpop.permute.xlu1 %11480  ;;  %v11395_v56 = vsel %vm8380_vm6, %v11379_v1, %v11394_v61 }
 0x687   :  { %v11216_v34 = vpop.permute.xlu0 %11215  ;;  %v11506_v52 = vrot.slane %v11481_v38, %v16639_v2 }
 0x688   :  { %v11248_v62 = vrot.slane %v11216_v34, %v16639_v2 }
 0x689   :  { %v11535_v5 = vsel %vm8374_vm3, %v11510_v39, %v11506_v52  ;;  %v11770_v39 = vld [vmem:[#allocation7 + $0x68] sm:$0xff] }
 0x68a   :  { %v11213_v10 = vpop.permute.xlu1 %11212 }
 0x68b   :  { %v11244_v15 = vrot.slane %v11213_v10, %v16639_v2  ;;  %v11490_v0 = vpop.permute.xlu0 %11489  ;;  %v17774_v55 = vpop.f32.mrf.mxu0 }
 0x68c   :  { %v11518_v18 = vrot.slane %v11490_v0, %v16639_v2 }
 0x68d   :  { %v11254_v30 = vsel %vm8384_vm8, %v11244_v15, %v11253_v4  ;;  %v13554_v28 = vpop.f32.mrf.mxu0 }
 0x68e   :  { %v11487_v32 = vpop.permute.xlu1 %11486  ;;  %v11255_v43 = vsel %vm8386_vm9, %v11248_v62, %v11254_v30  ;;  %v11757_v62 = vld [vmem:[#allocation7] sm:$0xff] }
 0x68f   :  { %v11627_v11 = vpop.permute.xlu0 %11626  ;;  %13613 = vmatmul.mubr.msk.f32.vlgmr.msra.gmra.mxu0 %vm4851_vm2, %v11255_v43  ;;  %v11514_v40 = vrot.slane %v11487_v32, %v16639_v2 }
 0x690   :  { %13621 = vmatpush3.msra.mxu0 %v18719_v12  ;;  %13622 = vmatprep.mubr.msk.f32.mxu0 %vm14121_vm0, %v18658_v7  ;;  %v11653_v25 = vrot.slane %v11627_v11, %v16639_v2 }
 0x691   :  { %13630 = vmatprep.subr.mxu0 %v18658_v7  ;;  %v11536_v16 = vsel %vm8376_vm4, %v11514_v40, %v11535_v5  ;;  %v11769_v40 = vld [vmem:[#allocation7 + $0x60] sm:$0xff]  ;;  %v11771_v5 = vld [vmem:[#allocation7 + $0x70] sm:$0xff] }
 0x692   :  { %v11353_v17 = vpop.permute.xlu1 %11352  ;;  %v11537_v63 = vsel %vm8378_vm5, %v11518_v18, %v11536_v16 }
 0x693   :  { %v11493_v50 = vpop.permute.xlu0 %11492  ;;  %v17787_v33 = vpop.f32.mrf.mxu1  ;;  %v11383_v49 = vrot.slane %v11353_v17, %v16639_v2 }
 0x694   :  { %v11522_v3 = vrot.slane %v11493_v50, %v16639_v2 }
 0x695   :  { %v13559_v48 = vpop.f32.mrf.mxu1  ;;  %v11396_v57 = vsel %vm8382_vm7, %v11383_v49, %v11395_v56 }
 0x696   :  { %v11624_v8 = vpop.permute.xlu1 %11623  ;;  %v11538_v34 = vsel %vm8380_vm6, %v11522_v3, %v11537_v63 }
 0x697   :  { %v11359_v51 = vpop.permute.xlu0 %11358  ;;  %v11649_v58 = vrot.slane %v11624_v8, %v16639_v2 }
 0x698   :  { %v11391_v53 = vrot.slane %v11359_v51, %v16639_v2 }
 0x699   :  { %v11678_v44 = vsel %vm8374_vm3, %v11653_v25, %v11649_v58 }
 0x69a   :  { %v11356_v45 = vpop.permute.xlu1 %11355 }
 0x69b   :  { %v11387_v6 = vrot.slane %v11356_v45, %v16639_v2  ;;  %v11633_v22 = vpop.permute.xlu0 %11632  ;;  %v11765_v45 = vld [vmem:[#allocation7 + $0x40] sm:$0xff] }
 0x69c   :  { %v11661_v38 = vrot.slane %v11633_v22, %v16639_v2  ;;  %v11766_v22 = vld [vmem:[#allocation7 + $0x48] sm:$0xff] }
 0x69d   :  { %v11397_v54 = vsel %vm8384_vm8, %v11387_v6, %v11396_v57 }
 0x69e   :  { %v11630_v21 = vpop.permute.xlu1 %11629  ;;  %v11398_v14 = vsel %vm8386_vm9, %v11391_v53, %v11397_v54  ;;  %v11767_v54 = vld [vmem:[#allocation7 + $0x50] sm:$0xff] }
 0x69f   :  { %13618 = vmatmul.mubr.msk.f32.vlgmr.msra.gmra.mxu1 %vm4851_vm2, %v11398_v14  ;;  %v11636_v35 = vpop.permute.xlu0 %11635  ;;  %v11657_v37 = vrot.slane %v11630_v21, %v16639_v2 }
 0x6a0   :  { %13626 = vmatpush3.msra.mxu1 %v18720_v41  ;;  %13627 = vmatprep.mubr.msk.f32.mxu1 %vm14121_vm0, %v18658_v7  ;;  %v11665_v59 = vrot.slane %v11636_v35, %v16639_v2  ;;  %v11768_v41 = vld [vmem:[#allocation7 + $0x58] sm:$0xff] }
 0x6a1   :  { %13635 = vmatprep.subr.mxu1 %v18658_v7  ;;  %v11679_v36 = vsel %vm8376_vm4, %v11657_v37, %v11678_v44  ;;  %v11772_v44 = vld [vmem:[#allocation7 + $0x78] sm:$0xff] }
 0x6a2   :  { %v11496_v47 = vpop.permute.xlu1 %11495  ;;  %v11680_v13 = vsel %vm8378_vm5, %v11661_v38, %v11679_v36 }
 0x6a3   :  { %v11526_v23 = vrot.slane %v11496_v47, %v16639_v2  ;;  %v11639_v26 = vpop.permute.xlu0 %11638  ;;  %v11681_v30 = vsel %vm8380_vm6, %v11665_v59, %v11680_v13 }
 0x6a4   :  { %v11669_v0 = vrot.slane %v11639_v26, %v16639_v2 }
 0x6a5   :  { %v11539_v10 = vsel %vm8382_vm7, %v11526_v23, %v11538_v34 }
 0x6a6   :  { %v11499_v46 = vpop.permute.xlu1 %11498  ;;  %v11682_v19 = vsel %vm8382_vm7, %v11669_v0, %v11681_v30 }
 0x6a7   :  { %v11530_v24 = vrot.slane %v11499_v46, %v16639_v2  ;;  %v11645_v28 = vpop.permute.xlu0 %11644 }
 0x6a8   :  { %v11677_v17 = vrot.slane %v11645_v28, %v16639_v2 }
 0x6a9   :  { %v11540_v4 = vsel %vm8384_vm8, %v11530_v24, %v11539_v10 }
 0x6aa   :  { %v11502_v27 = vpop.permute.xlu1 %11501 }
 0x6ab   :  { %v11534_v20 = vrot.slane %v11502_v27, %v16639_v2  ;;  %v9894_v15 = vpop.f32.mrf.mxu0 }
 0x6ad   :  { %v11541_v32 = vsel %vm8386_vm9, %v11534_v20, %v11540_v4  ;;  %v13564_v43 = vpop.f32.mrf.mxu0 }
 0x6ae   :  { %v11642_v11 = vpop.permute.xlu1 %11641  ;;  %13623 = vmatmul.mubr.msk.f32.vlgmr.msra.gmra.mxu0 %vm4851_vm2, %v11541_v32 }
 0x6af   :  { %v11673_v12 = vrot.slane %v11642_v11, %v16639_v2  ;;  %13631 = vmatpush3.msra.mxu0 %v11757_v62  ;;  %13632 = vmatprep.mubr.msk.f32.mxu0 %vm14121_vm0, %v18658_v7  ;;  %v11761_v2 = vld [vmem:[#allocation7 + $0x20] sm:$0xff] }
 0x6b0   :  { %13640 = vmatprep.subr.mxu0 %v18658_v7 }
 0x6b1   :  { %v11683_v50 = vsel %vm8384_vm8, %v11673_v12, %v11682_v19 }
 0x6b2   :  { %13633 = vmatmul.mubr.msk.f32.vlgmr.msra.gmra.mxu0 %vm4851_vm2, %v17774_v55  ;;  %v11684_v48 = vsel %vm8386_vm9, %v11677_v17, %v11683_v50  ;;  %v11762_v55 = vld [vmem:[#allocation7 + $0x28] sm:$0xff] }
 0x6b3   :  { %v10037_v42 = vpop.f32.mrf.mxu1  ;;  %13628 = vmatmul.mubr.msk.f32.vlgmr.msra.gmra.mxu1 %vm4851_vm2, %v11684_v48  ;;  %13641 = vmatpush3.msra.mxu0 %v11759_v29 }
 0x6b4   :  { %13642 = vmatprep.mubr.msk.f32.mxu0 %vm14121_vm0, %v18658_v7  ;;  %13636 = vmatpush3.msra.mxu1 %v11758_v31 }
 0x6b5   :  { %v13569_v8 = vpop.f32.mrf.mxu1  ;;  %13637 = vmatprep.mubr.msk.f32.mxu1 %vm14121_vm0, %v18658_v7  ;;  %13645 = vmatprep.subr.mxu1 %v18658_v7 }
 0x6b6   :  { %13643 = vmatmul.mubr.msk.f32.vlgmr.msra.gmra.mxu0 %vm4851_vm2, %v9894_v15  ;;  %13650 = vmatprep.subr.mxu0 %v18658_v7 }
 0x6b7   :  { %13638 = vmatmul.mubr.msk.f32.vlgmr.msra.gmra.mxu1 %vm4851_vm2, %v17787_v33  ;;  %13651 = vmatpush3.msra.mxu0 %v11761_v2  ;;  %v11763_v33 = vld [vmem:[#allocation7 + $0x30] sm:$0xff] }
 0x6b8   :  { %13646 = vmatpush3.msra.mxu1 %v11760_v60  ;;  %13647 = vmatprep.mubr.msk.f32.mxu1 %vm14121_vm0, %v18658_v7 }
 0x6b9   :  { %13652 = vmatprep.mubr.msk.f32.mxu0 %vm14121_vm0, %v18658_v7  ;;  %13655 = vmatprep.subr.mxu1 %v18658_v7 }
 0x6ba   :  { %13660 = vmatprep.subr.mxu0 %v18658_v7 }
 0x6bb   :  { %13648 = vmatmul.mubr.msk.f32.vlgmr.msra.gmra.mxu1 %vm4851_vm2, %v10037_v42 }
 0x6bc   :  { %13656 = vmatpush3.msra.mxu1 %v11762_v55  ;;  %13657 = vmatprep.mubr.msk.f32.mxu1 %vm14121_vm0, %v18658_v7 }
 0x6bd   :  { %13665 = vmatprep.subr.mxu1 %v18658_v7 }
 0x6cb   :  { %v10180_v1 = vpop.f32.mrf.mxu0 }
 0x6cc   :  { %13653 = vmatmul.mubr.msk.f32.vlgmr.msra.gmra.mxu0 %vm4851_vm2, %v10180_v1 }
 0x6cd   :  { %v13574_v51 = vpop.f32.mrf.mxu0  ;;  %13661 = vmatpush3.msra.mxu0 %v11763_v33  ;;  %13662 = vmatprep.mubr.msk.f32.mxu0 %vm14121_vm0, %v18658_v7 }
 0x6ce   :  { %13670 = vmatprep.subr.mxu0 %v18658_v7 }
 0x6d3   :  { %v10323_v49 = vpop.f32.mrf.mxu1 }
 0x6d4   :  { %13658 = vmatmul.mubr.msk.f32.vlgmr.msra.gmra.mxu1 %vm4851_vm2, %v10323_v49 }
 0x6d5   :  { %v13579_v61 = vpop.f32.mrf.mxu1  ;;  %13666 = vmatpush3.msra.mxu1 %v11764_v9  ;;  %13667 = vmatprep.mubr.msk.f32.mxu1 %vm14121_vm0, %v18658_v7 }
 0x6d6   :  { %13675 = vmatprep.subr.mxu1 %v18658_v7 }
 0x6eb   :  { %v10466_v56 = vpop.f32.mrf.mxu0 }
 0x6ec   :  { %13663 = vmatmul.mubr.msk.f32.vlgmr.msra.gmra.mxu0 %vm4851_vm2, %v10466_v56 }
 0x6ed   :  { %v13584_v6 = vpop.f32.mrf.mxu0  ;;  %13671 = vmatpush3.msra.mxu0 %v11765_v45  ;;  %13672 = vmatprep.mubr.msk.f32.mxu0 %vm14121_vm0, %v18658_v7 }
 0x6ee   :  { %13680 = vmatprep.subr.mxu0 %v18658_v7 }
 0x6ff   :  { %v10609_v57 = vpop.f32.mrf.mxu1 }
 0x700   :  { %13668 = vmatmul.mubr.msk.f32.vlgmr.msra.gmra.mxu1 %vm4851_vm2, %v10609_v57 }
 0x701   :  { %v13589_v53 = vpop.f32.mrf.mxu1  ;;  %13676 = vmatpush3.msra.mxu1 %v11766_v22  ;;  %13677 = vmatprep.mubr.msk.f32.mxu1 %vm14121_vm0, %v18658_v7 }
 0x702   :  { %13685 = vmatprep.subr.mxu1 %v18658_v7 }
 0x70f   :  { %v10752_v21 = vpop.f32.mrf.mxu0 }
 0x710   :  { %13673 = vmatmul.mubr.msk.f32.vlgmr.msra.gmra.mxu0 %vm4851_vm2, %v10752_v21 }
 0x711   :  { %v13594_v14 = vpop.f32.mrf.mxu0  ;;  %13681 = vmatpush3.msra.mxu0 %v11767_v54  ;;  %13682 = vmatprep.mubr.msk.f32.mxu0 %vm14121_vm0, %v18658_v7 }
 0x712   :  { %13690 = vmatprep.subr.mxu0 %v18658_v7 }
 0x71f   :  { %v10895_v52 = vpop.f32.mrf.mxu1 }
 0x720   :  { %13678 = vmatmul.mubr.msk.f32.vlgmr.msra.gmra.mxu1 %vm4851_vm2, %v10895_v52 }
 0x721   :  { %v13599_v35 = vpop.f32.mrf.mxu1  ;;  %13686 = vmatpush3.msra.mxu1 %v11768_v41  ;;  %13687 = vmatprep.mubr.msk.f32.mxu1 %vm14121_vm0, %v18658_v7 }
 0x722   :  { %13695 = vmatprep.subr.mxu1 %v18658_v7  ;;  %v14027_v35 = vld [vmem:[%s17911_s0] sm:$0xff] }
 0x72f   :  { %v11038_v58 = vpop.f32.mrf.mxu0 }
 0x730   :  { %13683 = vmatmul.mubr.msk.f32.vlgmr.msra.gmra.mxu0 %vm4851_vm2, %v11038_v58 }
 0x731   :  { %v13604_v47 = vpop.f32.mrf.mxu0  ;;  %13691 = vmatpush3.msra.mxu0 %v11769_v40  ;;  %13692 = vmatprep.mubr.msk.f32.mxu0 %vm14121_vm0, %v18658_v7 }
 0x732   :  { %13700 = vmatprep.subr.mxu0 %v18658_v7 }
 0x73f   :  { %v11181_v37 = vpop.f32.mrf.mxu1 }
 0x740   :  { %13688 = vmatmul.mubr.msk.f32.vlgmr.msra.gmra.mxu1 %vm4851_vm2, %v11181_v37 }
 0x741   :  { %v13609_v25 = vpop.f32.mrf.mxu1  ;;  %13696 = vmatpush3.msra.mxu1 %v11770_v39  ;;  %13697 = vmatprep.mubr.msk.f32.mxu1 %vm14121_vm0, %v18658_v7 }
 0x742   :  { %13705 = vmatprep.subr.mxu1 %v18658_v7 }
 0x74f   :  { %v11324_v16 = vpop.f32.mrf.mxu0 }
 0x750   :  { %13693 = vmatmul.mubr.msk.f32.vlgmr.msra.gmra.mxu0 %vm4851_vm2, %v11324_v16 }
 0x751   :  { %v13614_v3 = vpop.f32.mrf.mxu0  ;;  %13701 = vmatpush3.msra.mxu0 %v11771_v5  ;;  %13702 = vmatprep.mubr.msk.f32.mxu0 %vm14121_vm0, %v18658_v7 }
 0x75f   :  { %v11467_v46 = vpop.f32.mrf.mxu1 }
 0x760   :  { %13698 = vmatmul.mubr.msk.f32.vlgmr.msra.gmra.mxu1 %vm4851_vm2, %v11467_v46 }
 0x761   :  { %v13619_v18 = vpop.f32.mrf.mxu1  ;;  %13706 = vmatpush3.msra.mxu1 %v11772_v44  ;;  %13707 = vmatprep.mubr.msk.f32.mxu1 %vm14121_vm0, %v18658_v7 }
 0x76e   :  { %v11610_v36 = vpop.f32.mrf.mxu0 }
 0x76f   :  { %13703 = vmatmul.mubr.msk.f32.vlgmr.msra.gmra.mxu0 %vm4851_vm2, %v11610_v36 }
 0x770   :  { %v13624_v23 = vpop.f32.mrf.mxu0 }
 0x772   :  { %v11842_v26 = vpop.f32.mrf.mxu0 }
 0x773   :  { %v11753_v38 = vpop.f32.mrf.mxu1 }
 0x774   :  { %v13634_v24 = vpop.f32.mrf.mxu0  ;;  %13708 = vmatmul.mubr.msk.f32.vlgmr.msra.gmra.mxu1 %vm4851_vm2, %v11753_v38 }
 0x775   :  { %v13629_v63 = vpop.f32.mrf.mxu1 }
 0x776   :  { %v11988_v34 = vpop.f32.mrf.mxu0 }
 0x777   :  { %v11915_v13 = vpop.f32.mrf.mxu1 }
 0x778   :  { %v12941_v27 = vadd.f32 %v11915_v13, %v11842_v26  ;;  %v13644_v59 = vpop.f32.mrf.mxu0 }
 0x779   :  { %v13639_v10 = vpop.f32.mrf.mxu1 }
 0x77a   :  { %v12942_v20 = vadd.f32 %v12941_v27, %v11988_v34 }
 0x77b   :  { %v12061_v15 = vpop.f32.mrf.mxu1 }
 0x77c   :  { %v12943_v0 = vadd.f32 %v12942_v20, %v12061_v15 }
 0x77d   :  { %v13649_v4 = vpop.f32.mrf.mxu1 }
 0x78c   :  { %v12134_v7 = vpop.f32.mrf.mxu0 }
 0x78d   :  { %v12944_v62 = vadd.f32 %v12943_v0, %v12134_v7 }
 0x78e   :  { %v13654_v30 = vpop.f32.mrf.mxu0 }
 0x794   :  { %v12207_v28 = vpop.f32.mrf.mxu1 }
 0x795   :  { %v12945_v32 = vadd.f32 %v12944_v62, %v12207_v28 }
 0x796   :  { %v13659_v43 = vpop.f32.mrf.mxu1 }
 0x7ac   :  { %v12280_v11 = vpop.f32.mrf.mxu0 }
 0x7ad   :  { %v12946_v12 = vadd.f32 %v12945_v32, %v12280_v11 }
 0x7ae   :  { %v13664_v19 = vpop.f32.mrf.mxu0 }
 0x7c0   :  { %v12353_v17 = vpop.f32.mrf.mxu1 }
 0x7c1   :  { %v12947_v29 = vadd.f32 %v12946_v12, %v12353_v17 }
 0x7c2   :  { %v13669_v50 = vpop.f32.mrf.mxu1 }
 0x7d0   :  { %v12426_v31 = vpop.f32.mrf.mxu0 }
 0x7d1   :  { %v12948_v48 = vadd.f32 %v12947_v29, %v12426_v31 }
 0x7d2   :  { %v13674_v42 = vpop.f32.mrf.mxu0 }
 0x7e0   :  { %v12499_v2 = vpop.f32.mrf.mxu1 }
 0x7e1   :  { %v12949_v8 = vadd.f32 %v12948_v48, %v12499_v2 }
 0x7e2   :  { %v13679_v60 = vpop.f32.mrf.mxu1 }
 0x7f0   :  { %v12572_v55 = vpop.f32.mrf.mxu0 }
 0x7f1   :  { %v12950_v56 = vadd.f32 %v12949_v8, %v12572_v55 }
 0x7f2   :  { %v13684_v33 = vpop.f32.mrf.mxu0 }
 0x800   :  { %v12645_v1 = vpop.f32.mrf.mxu1 }
 0x801   :  { %v12951_v6 = vadd.f32 %v12950_v56, %v12645_v1 }
 0x802   :  { %v13689_v51 = vpop.f32.mrf.mxu1 }
 0x810   :  { %v12718_v9 = vpop.f32.mrf.mxu0 }
 0x811   :  { %v12952_v22 = vadd.f32 %v12951_v6, %v12718_v9 }
 0x812   :  { %v13694_v49 = vpop.f32.mrf.mxu0 }
 0x820   :  { %v12791_v61 = vpop.f32.mrf.mxu1 }
 0x821   :  { %v12953_v53 = vadd.f32 %v12952_v22, %v12791_v61 }
 0x822   :  { %v13699_v45 = vpop.f32.mrf.mxu1 }
 0x82f   :  { %v12864_v57 = vpop.f32.mrf.mxu0 }
 0x830   :  { %v12954_v21 = vadd.f32 %v12953_v53, %v12864_v57 }
 0x831   :  { %v13704_v54 = vpop.f32.mrf.mxu0 }
 0x834   :  { %v12937_v14 = vpop.f32.mrf.mxu1 }
 0x835   :  { %v12955_v41 = vadd.f32 %v12954_v21, %v12937_v14 }
 0x836   :  { %v13709_v52 = vpop.f32.mrf.mxu1 }
 0x837   :  { %v12956_v40 = vadd.f32 %v14027_v35, %v12955_v41 }
 0x839   :  { %12957 = vst [vmem:[#allocation8] sm:$0xff] %v12956_v40 }
 0x83a   :  { %14100 = shalt.err (!%p14097_p5)
}
 0x83b   :  { %12967 = dma.vmem_to_hbm [thread:$0]  %s12965_s30, 128, %s17917_s6, [#allocation4]  }
 0x83c   :  { %14113 = dma.done.wait [#allocation4], 128  }
 0x83d   :  { %14114 = vsyncadd [#allocation4], 4294967168 }
 0x83e   :  { %12971 = vsyncpa [#allocation3], 1 }
 0x83f   :  { %12972 = vsyncpa [#allocation6], 1 }
 0x840   :  { %12973 = vsyncpa [#allocation4], 1 }

</bundles_post_ra>
